<compile_context>
chip_gen: v5e
topology: v5e:2x2
jax: 0.10.0
libtpu: 0.0.40
codegen_flags: <defaults>
</compile_context>

<pallas_src>
import functools

import jax
import jax.numpy as jnp
from jax.experimental import pallas as pl
from jax.experimental.pallas import tpu as pltpu

_H = 1024  # hidden width of both first-stage linears (fixed by the module)


def _probe_kernel(p_ref, a_ref,
                  w1_ref, b1_ref,
                  w2_ref, b2_ref,
                  wcp_ref, wca_ref, bc_ref,
                  o_ref,
                  h1_ref, h2_ref):
    # First stage only once per batch tile (j == 0); h1/h2 are carried across
    # the embedding-tile axis in VMEM scratch.
    @pl.when(pl.program_id(1) == 0)
    def _():
        h1 = jnp.dot(p_ref[...].astype(jnp.bfloat16), w1_ref[...],
                     preferred_element_type=jnp.float32)
        h1_ref[...] = jnp.maximum(h1 + b1_ref[...], 0.0).astype(jnp.bfloat16)
        h2 = jnp.dot(a_ref[...].astype(jnp.bfloat16), w2_ref[...],
                     preferred_element_type=jnp.float32)
        h2_ref[...] = jnp.maximum(h2 + b2_ref[...], 0.0).astype(jnp.bfloat16)

    # Combiner over the (virtual) concat: two independent weight streams.
    out = jnp.dot(h1_ref[...], wcp_ref[...], preferred_element_type=jnp.float32)
    out = out + jnp.dot(h2_ref[...], wca_ref[...],
                        preferred_element_type=jnp.float32)
    o_ref[...] = jnp.maximum(out + bc_ref[...], 0.0).astype(o_ref.dtype)


def _footprint(tb, te, P, A, E, out_bytes):
    """Conservative per-step VMEM estimate (double-buffer every input/output)."""
    resident = 2 * ((P + A) * _H * 2 + 2 * _H * 4)        # W1, W2 (bf16), b1, b2 (f32)
    wc_stream = 2 * (2 * _H * te * 2 + te * 4)            # wc_p + wc_a (bf16), bc (f32)
    acts = 2 * tb * (P + A) * 4                           # f32 activations
    outp = 2 * tb * te * out_bytes
    scratch = 2 * tb * _H * 2                             # h1 + h2 bf16 scratch
    return resident + wc_stream + acts + outp + scratch


def _choose_tiles(B, P, A, E, out_bytes, budget=28 * 1024 * 1024):
    tb = min(B, 512)                     # large tb: Wc is re-streamed once per batch tile
    tb = ((tb + 7) // 8) * 8             # keep sublane-aligned
    te = E                               # te == E -> Wc VMEM-resident, single j step
    # Shrink te first (recompute-free thanks to the h1/h2 scratch), then tb.
    while _footprint(tb, te, P, A, E, out_bytes) > budget and te % 256 == 0:
        te //= 2
    while _footprint(tb, te, P, A, E, out_bytes) > budget and tb > 8 and tb % 16 == 0:
        tb //= 2
    return tb, te, _footprint(tb, te, P, A, E, out_bytes)


def hybrid_embedding_probe(primary, auxiliary, params, *, out_dtype=jnp.float32):
    """primary: (B, P) f32, auxiliary: (B, A) f32 -> (B, E) out_dtype."""
    w1, b1 = params["w1"], params["b1"]
    w2, b2 = params["w2"], params["b2"]
    wc_p, wc_a, bc = params["wc_p"], params["wc_a"], params["bc"]

    B, P = primary.shape
    _, A = auxiliary.shape
    H = w1.shape[1]
    E = wc_p.shape[1]
    assert H == _H and wc_a.shape == (H, E)

    out_bytes = jnp.dtype(out_dtype).itemsize
    tb, te, fp = _choose_tiles(B, P, A, E, out_bytes)

    # Pad batch to a multiple of the batch tile (robust to arbitrary B).
    Bp = ((B + tb - 1) // tb) * tb
    if Bp != B:
        pad = Bp - B
        primary = jnp.pad(primary, ((0, pad), (0, 0)))
        auxiliary = jnp.pad(auxiliary, ((0, pad), (0, 0)))

    n_i, n_j = Bp // tb, E // te
    grid = (n_i, n_j)

    flops = 2 * Bp * (P * H + A * H + 2 * H * E)
    bytes_accessed = (
        2 * (P * H + A * H)          # W1, W2 bf16 (resident)
        + n_i * 2 * (2 * H * E)      # Wc re-read once per batch tile
        + 4 * (2 * H + E)            # f32 biases
        + 4 * Bp * (P + A)           # f32 activations
        + out_bytes * Bp * E         # output writeback
    )

    # Explicit scoped-VMEM limit: >= 32 MiB so v5e's 16 MiB default never binds,
    # capped at 48 MiB to stay comfortably inside v7x's 64 MiB physical VMEM.
    vmem_limit = min(max(32 * 1024 * 1024, int(1.25 * fp)), 48 * 1024 * 1024)

    out = pl.pallas_call(
        _probe_kernel,
        out_shape=jax.ShapeDtypeStruct((Bp, E), out_dtype),
        grid_spec=pltpu.PrefetchScalarGridSpec(
            num_scalar_prefetch=0,
            grid=grid,
            in_specs=[
                pl.BlockSpec((tb, P), lambda i, j: (i, 0)),      # primary tile (f32)
                pl.BlockSpec((tb, A), lambda i, j: (i, 0)),      # auxiliary tile (f32)
                pl.BlockSpec((P, H), lambda i, j: (0, 0)),       # W1 (VMEM-resident)
                pl.BlockSpec((1, H), lambda i, j: (0, 0)),       # b1
                pl.BlockSpec((A, H), lambda i, j: (0, 0)),       # W2 (VMEM-resident)
                pl.BlockSpec((1, H), lambda i, j: (0, 0)),       # b2
                pl.BlockSpec((H, te), lambda i, j: (0, j)),      # Wc (primary half)
                pl.BlockSpec((H, te), lambda i, j: (0, j)),      # Wc (auxiliary half)
                pl.BlockSpec((1, te), lambda i, j: (0, j)),      # bc tile
            ],
            out_specs=pl.BlockSpec((tb, te), lambda i, j: (i, j)),
            scratch_shapes=[
                pltpu.VMEM((tb, H), jnp.bfloat16),               # h1 carry across j
                pltpu.VMEM((tb, H), jnp.bfloat16),               # h2 carry across j
            ],
        ),
        compiler_params=pltpu.CompilerParams(
            # j carries the h1/h2 scratch -> must be "arbitrary"; batch axis
            # stays "parallel" for v7x megacore sharding (amortizes over tiles).
            dimension_semantics=("parallel", "arbitrary"),
            vmem_limit_bytes=vmem_limit,
        ),
        cost_estimate=pl.CostEstimate(
            flops=flops, bytes_accessed=bytes_accessed, transcendentals=0),
    )(primary, auxiliary, w1, b1, w2, b2, wc_p, wc_a, bc)

    return out[:B] if Bp != B else out


def _init_linear(key, fan_in, fan_out):
    # matches PyTorch nn.Linear default: U(-1/sqrt(fan_in), 1/sqrt(fan_in))
    kw, kb = jax.random.split(key)
    bound = 1.0 / (fan_in ** 0.5)
    w = jax.random.uniform(kw, (fan_in, fan_out), jnp.float32, -bound, bound)
    b = jax.random.uniform(kb, (1, fan_out), jnp.float32, -bound, bound)
    # weights stored bf16 once here (MXU-native, halves HBM bytes); biases f32
    return w.astype(jnp.bfloat16), b


def make_params(key, primary_features, auxiliary_features, embedding_size, hidden=_H):
    k1, k2, k3 = jax.random.split(key, 3)
    w1, b1 = _init_linear(k1, primary_features, hidden)
    w2, b2 = _init_linear(k2, auxiliary_features, hidden)
    wc, bc = _init_linear(k3, 2 * hidden, embedding_size)
    # Split the combiner weight once at param time: removes in-kernel slicing
    # and gives the pipeline two independent, smaller DMA streams.
    return dict(w1=w1, b1=b1, w2=w2, b2=b2,
                wc_p=wc[:hidden], wc_a=wc[hidden:], bc=bc)


def reference_forward(primary, auxiliary, params):
    # mirrors the kernel's bf16-operand / f32-accumulate numerics
    hi = jax.lax.Precision.HIGHEST
    f32 = lambda x: x.astype(jnp.float32)
    h1 = jnp.maximum(
        jnp.dot(f32(primary.astype(jnp.bfloat16)), f32(params["w1"]), precision=hi)
        + params["b1"], 0.0).astype(jnp.bfloat16)
    h2 = jnp.maximum(
        jnp.dot(f32(auxiliary.astype(jnp.bfloat16)), f32(params["w2"]), precision=hi)
        + params["b2"], 0.0).astype(jnp.bfloat16)
    out = (jnp.dot(f32(h1), f32(params["wc_p"]), precision=hi)
           + jnp.dot(f32(h2), f32(params["wc_a"]), precision=hi)
           + params["bc"])
    return jnp.maximum(out, 0.0)


if __name__ == "__main__":
    # Small shapes consistent with the module: hidden size of one token = 256,
    # auxiliary = 5 context tokens flattened = 5*256, embedding_size = 512.
    # TODO(synk): Dropout(0.5) is modelled as eval-mode identity (no RNG masking).
    B = 8
    PRIMARY = 256
    AUXILIARY = 5 * 256
    EMBED = 512

    key = jax.random.PRNGKey(0)
    kp, ka, kparams = jax.random.split(key, 3)

    primary = jax.random.normal(kp, (B, PRIMARY), jnp.float32)
    auxiliary = jax.random.normal(ka, (B, AUXILIARY), jnp.float32)
    params = make_params(kparams, PRIMARY, AUXILIARY, EMBED)

    out = hybrid_embedding_probe(primary, auxiliary, params)
    out = jax.block_until_ready(out)

    ref = reference_forward(primary, auxiliary, params)
    assert out.shape == (B, EMBED), out.shape
    assert jnp.allclose(out, ref, atol=1e-2, rtol=1e-2), "mismatch vs. reference"

    print("KERNEL_OK")
</pallas_src>

<mosaic_0001>
module attributes {stable_mosaic.version = 11 : i64} {
  func.func @_probe_kernel(%arg0: i32, %arg1: i32, %arg2: memref<8x256xf32, #tpu.memory_space<vmem>>, %arg3: memref<8x1280xf32, #tpu.memory_space<vmem>>, %arg4: memref<256x1024xbf16, #tpu.memory_space<vmem>>, %arg5: memref<1x1024xf32, #tpu.memory_space<vmem>>, %arg6: memref<1280x1024xbf16, #tpu.memory_space<vmem>>, %arg7: memref<1x1024xf32, #tpu.memory_space<vmem>>, %arg8: memref<1024x512xbf16, #tpu.memory_space<vmem>>, %arg9: memref<1024x512xbf16, #tpu.memory_space<vmem>>, %arg10: memref<1x512xf32, #tpu.memory_space<vmem>>, %arg11: memref<8x512xf32, #tpu.memory_space<vmem>>, %arg12: memref<8x1024xbf16, #tpu.memory_space<vmem>>, %arg13: memref<8x1024xbf16, #tpu.memory_space<vmem>>) attributes {dimension_semantics = [#tpu.dimension_semantics<parallel>, #tpu.dimension_semantics<arbitrary>], iteration_bounds = array<i64: 1, 1>, scalar_prefetch = 0 : i64, scratch_operands = 2 : i64, tpu.core_type = #tpu.core_type<tc>, window_params = [{transform_indices = @transform_0, window_bounds = array<i64: 8, 256>}, {transform_indices = @transform_1, window_bounds = array<i64: 8, 1280>}, {pipeline_mode = #tpu.pipeline_mode<synchronous>, transform_indices = @transform_2, window_bounds = array<i64: 256, 1024>}, {pipeline_mode = #tpu.pipeline_mode<synchronous>, transform_indices = @transform_3, window_bounds = array<i64: 1, 1024>}, {pipeline_mode = #tpu.pipeline_mode<synchronous>, transform_indices = @transform_4, window_bounds = array<i64: 1280, 1024>}, {pipeline_mode = #tpu.pipeline_mode<synchronous>, transform_indices = @transform_5, window_bounds = array<i64: 1, 1024>}, {transform_indices = @transform_6, window_bounds = array<i64: 1024, 512>}, {transform_indices = @transform_7, window_bounds = array<i64: 1024, 512>}, {transform_indices = @transform_8, window_bounds = array<i64: 1, 512>}, {transform_indices = @transform_9, window_bounds = array<i64: 8, 512>}]} {
    %c0_i32 = arith.constant 0 : i32
    %0 = arith.cmpi eq, %arg1, %c0_i32 : i32
    %1 = arith.extui %0 : i1 to i32
    %c0_i32_0 = arith.constant 0 : i32
    %2 = arith.cmpi ne, %1, %c0_i32_0 : i32
    scf.if %2 {
      %c0_14 = arith.constant 0 : index
      %c0_15 = arith.constant 0 : index
      %16 = vector.load %arg2[%c0_14, %c0_15] : memref<8x256xf32, #tpu.memory_space<vmem>>, vector<8x256xf32>
      %17 = arith.truncf %16 : vector<8x256xf32> to vector<8x256xbf16>
      %c0_16 = arith.constant 0 : index
      %c0_17 = arith.constant 0 : index
      %18 = vector.load %arg4[%c0_16, %c0_17] : memref<256x1024xbf16, #tpu.memory_space<vmem>>, vector<256x1024xbf16>
      %cst_18 = arith.constant dense<0.000000e+00> : vector<8x1024xf32>
      %19 = tpu.matmul %17, %18, %cst_18 {dimension_numbers = #tpu.dot_dimension_numbers<[1], [0], [0], [1], [0, 0, 1, 1], [], []>} : vector<8x256xbf16>, vector<256x1024xbf16>, vector<8x1024xf32> -> vector<8x1024xf32>
      %c0_19 = arith.constant 0 : index
      %c0_20 = arith.constant 0 : index
      %20 = vector.load %arg5[%c0_19, %c0_20] : memref<1x1024xf32, #tpu.memory_space<vmem>>, vector<1x1024xf32>
      %21 = vector.broadcast %20 : vector<1x1024xf32> to vector<8x1024xf32>
      %22 = arith.addf %19, %21 : vector<8x1024xf32>
      %cst_21 = arith.constant 0.000000e+00 : f32
      %23 = vector.broadcast %cst_21 : f32 to vector<8x1024xf32>
      %24 = arith.maximumf %22, %23 : vector<8x1024xf32>
      %25 = arith.truncf %24 : vector<8x1024xf32> to vector<8x1024xbf16>
      %c0_22 = arith.constant 0 : index
      %c0_23 = arith.constant 0 : index
      %26 = vector.load %arg12[%c0_22, %c0_23] : memref<8x1024xbf16, #tpu.memory_space<vmem>>, vector<8x1024xbf16>
      tpu.vector_store %arg12[%c0_22, %c0_23], %25 {strides = array<i32>} : memref<8x1024xbf16, #tpu.memory_space<vmem>>, vector<8x1024xbf16>,
      %c0_24 = arith.constant 0 : index
      %c0_25 = arith.constant 0 : index
      %27 = vector.load %arg3[%c0_24, %c0_25] : memref<8x1280xf32, #tpu.memory_space<vmem>>, vector<8x1280xf32>
      %28 = arith.truncf %27 : vector<8x1280xf32> to vector<8x1280xbf16>
      %c0_26 = arith.constant 0 : index
      %c0_27 = arith.constant 0 : index
      %29 = vector.load %arg6[%c0_26, %c0_27] : memref<1280x1024xbf16, #tpu.memory_space<vmem>>, vector<1280x1024xbf16>
      %cst_28 = arith.constant dense<0.000000e+00> : vector<8x1024xf32>
      %30 = tpu.matmul %28, %29, %cst_28 {dimension_numbers = #tpu.dot_dimension_numbers<[1], [0], [0], [1], [0, 0, 1, 1], [], []>} : vector<8x1280xbf16>, vector<1280x1024xbf16>, vector<8x1024xf32> -> vector<8x1024xf32>
      %c0_29 = arith.constant 0 : index
      %c0_30 = arith.constant 0 : index
      %31 = vector.load %arg7[%c0_29, %c0_30] : memref<1x1024xf32, #tpu.memory_space<vmem>>, vector<1x1024xf32>
      %32 = vector.broadcast %31 : vector<1x1024xf32> to vector<8x1024xf32>
      %33 = arith.addf %30, %32 : vector<8x1024xf32>
      %cst_31 = arith.constant 0.000000e+00 : f32
      %34 = vector.broadcast %cst_31 : f32 to vector<8x1024xf32>
      %35 = arith.maximumf %33, %34 : vector<8x1024xf32>
      %36 = arith.truncf %35 : vector<8x1024xf32> to vector<8x1024xbf16>
      %c0_32 = arith.constant 0 : index
      %c0_33 = arith.constant 0 : index
      %37 = vector.load %arg13[%c0_32, %c0_33] : memref<8x1024xbf16, #tpu.memory_space<vmem>>, vector<8x1024xbf16>
      tpu.vector_store %arg13[%c0_32, %c0_33], %36 {strides = array<i32>} : memref<8x1024xbf16, #tpu.memory_space<vmem>>, vector<8x1024xbf16>,
    } else {
    }
    %c0 = arith.constant 0 : index
    %c0_1 = arith.constant 0 : index
    %3 = vector.load %arg12[%c0, %c0_1] : memref<8x1024xbf16, #tpu.memory_space<vmem>>, vector<8x1024xbf16>
    %c0_2 = arith.constant 0 : index
    %c0_3 = arith.constant 0 : index
    %4 = vector.load %arg8[%c0_2, %c0_3] : memref<1024x512xbf16, #tpu.memory_space<vmem>>, vector<1024x512xbf16>
    %cst = arith.constant dense<0.000000e+00> : vector<8x512xf32>
    %5 = tpu.matmul %3, %4, %cst {dimension_numbers = #tpu.dot_dimension_numbers<[1], [0], [0], [1], [0, 0, 1, 1], [], []>} : vector<8x1024xbf16>, vector<1024x512xbf16>, vector<8x512xf32> -> vector<8x512xf32>
    %c0_4 = arith.constant 0 : index
    %c0_5 = arith.constant 0 : index
    %6 = vector.load %arg13[%c0_4, %c0_5] : memref<8x1024xbf16, #tpu.memory_space<vmem>>, vector<8x1024xbf16>
    %c0_6 = arith.constant 0 : index
    %c0_7 = arith.constant 0 : index
    %7 = vector.load %arg9[%c0_6, %c0_7] : memref<1024x512xbf16, #tpu.memory_space<vmem>>, vector<1024x512xbf16>
    %cst_8 = arith.constant dense<0.000000e+00> : vector<8x512xf32>
    %8 = tpu.matmul %6, %7, %cst_8 {dimension_numbers = #tpu.dot_dimension_numbers<[1], [0], [0], [1], [0, 0, 1, 1], [], []>} : vector<8x1024xbf16>, vector<1024x512xbf16>, vector<8x512xf32> -> vector<8x512xf32>
    %9 = arith.addf %5, %8 : vector<8x512xf32>
    %c0_9 = arith.constant 0 : index
    %c0_10 = arith.constant 0 : index
    %10 = vector.load %arg10[%c0_9, %c0_10] : memref<1x512xf32, #tpu.memory_space<vmem>>, vector<1x512xf32>
    %11 = vector.broadcast %10 : vector<1x512xf32> to vector<8x512xf32>
    %12 = arith.addf %9, %11 : vector<8x512xf32>
    %cst_11 = arith.constant 0.000000e+00 : f32
    %13 = vector.broadcast %cst_11 : f32 to vector<8x512xf32>
    %14 = arith.maximumf %12, %13 : vector<8x512xf32>
    %c0_12 = arith.constant 0 : index
    %c0_13 = arith.constant 0 : index
    %15 = vector.load %arg11[%c0_12, %c0_13] : memref<8x512xf32, #tpu.memory_space<vmem>>, vector<8x512xf32>
    tpu.vector_store %arg11[%c0_12, %c0_13], %14 {strides = array<i32>} : memref<8x512xf32, #tpu.memory_space<vmem>>, vector<8x512xf32>,
    return
  }
  func.func @transform_0(%arg0: i32, %arg1: i32) -> (i32, i32) {
    %c0_i32 = arith.constant 0 : i32
    %c0_i32_0 = arith.constant 0 : i32
    return %arg0, %c0_i32 : i32, i32
  }
  func.func @transform_1(%arg0: i32, %arg1: i32) -> (i32, i32) {
    %c0_i32 = arith.constant 0 : i32
    %c0_i32_0 = arith.constant 0 : i32
    return %arg0, %c0_i32 : i32, i32
  }
  func.func @transform_2(%arg0: i32, %arg1: i32) -> (i32, i32) {
    %c0_i32 = arith.constant 0 : i32
    %c0_i32_0 = arith.constant 0 : i32
    %c0_i32_1 = arith.constant 0 : i32
    return %c0_i32, %c0_i32_0 : i32, i32
  }
  func.func @transform_3(%arg0: i32, %arg1: i32) -> (i32, i32) {
    %c0_i32 = arith.constant 0 : i32
    %c0_i32_0 = arith.constant 0 : i32
    %c0_i32_1 = arith.constant 0 : i32
    return %c0_i32, %c0_i32_0 : i32, i32
  }
  func.func @transform_4(%arg0: i32, %arg1: i32) -> (i32, i32) {
    %c0_i32 = arith.constant 0 : i32
    %c0_i32_0 = arith.constant 0 : i32
    %c0_i32_1 = arith.constant 0 : i32
    return %c0_i32, %c0_i32_0 : i32, i32
  }
  func.func @transform_5(%arg0: i32, %arg1: i32) -> (i32, i32) {
    %c0_i32 = arith.constant 0 : i32
    %c0_i32_0 = arith.constant 0 : i32
    %c0_i32_1 = arith.constant 0 : i32
    return %c0_i32, %c0_i32_0 : i32, i32
  }
  func.func @transform_6(%arg0: i32, %arg1: i32) -> (i32, i32) {
    %c0_i32 = arith.constant 0 : i32
    %c0_i32_0 = arith.constant 0 : i32
    return %c0_i32, %arg1 : i32, i32
  }
  func.func @transform_7(%arg0: i32, %arg1: i32) -> (i32, i32) {
    %c0_i32 = arith.constant 0 : i32
    %c0_i32_0 = arith.constant 0 : i32
    return %c0_i32, %arg1 : i32, i32
  }
  func.func @transform_8(%arg0: i32, %arg1: i32) -> (i32, i32) {
    %c0_i32 = arith.constant 0 : i32
    %c0_i32_0 = arith.constant 0 : i32
    return %c0_i32, %arg1 : i32, i32
  }
  func.func @transform_9(%arg0: i32, %arg1: i32) -> (i32, i32) {
    %c0_i32 = arith.constant 0 : i32
    return %arg0, %arg1 : i32, i32
  }
}

</mosaic_0001>

<bundles_post_ra>
// kernel: tpu_custom_call.1
= control target key start
LH: loop header
LB: loop body
LE: loop exit
PB: predicated region body
PF: predicated region fallthrough
CT: control target
= control target key end

     0   :  { %14 = vsyncpa [#allocation5], 0  ;;  %s17318_s0 = inlined_call_operand.hbm [shape: f32[8,256], index: 0, kind: input, shape index: {}]   ;;  %s17319_s1 = inlined_call_operand.hbm [shape: f32[8,1280], index: 1, kind: input, shape index: {}]   ;;  %s17320_s2 = inlined_call_operand.hbm [shape: bf16[256,1024], index: 2, kind: input, shape index: {}]   ;;  %s17321_s3 = inlined_call_operand.hbm [shape: f32[1,1024], index: 3, kind: input, shape index: {}]   ;;  %s17322_s4 = inlined_call_operand.hbm [shape: bf16[1280,1024], index: 4, kind: input, shape index: {}]   ;;  %s17323_s5 = inlined_call_operand.hbm [shape: f32[1,1024], index: 5, kind: input, shape index: {}]   ;;  %s17324_s6 = inlined_call_operand.hbm [shape: bf16[1024,512], index: 6, kind: input, shape index: {}]   ;;  %s17325_s7 = inlined_call_operand.hbm [shape: bf16[1024,512], index: 7, kind: input, shape index: {}]   ;;  %s17326_s8 = inlined_call_operand.hbm [shape: f32[1,512], index: 8, kind: input, shape index: {}]   ;;  %s17327_s9 = inlined_call_operand.hbm [shape: f32[8,512], index: 9, kind: output, shape index: {}]  }
   0x1   :  { %15 = vsyncpa [#allocation8], 0 }
   0x2   :  { %16 = vsyncpa [#allocation11], 0 }
   0x3   :  { %17 = vsyncpa [#allocation14], 0 }
   0x4   :  { %18 = vsyncpa [#allocation17], 0  ;;  %s36_s11 = sshll.u32 %s17319_s1, 4  ;;  %s37_s11 = int_to_ptr.hbm [resolvable:$true] %s36_s11 }
   0x5   :  { %19 = vsyncpa [#allocation6], 0  ;;  %s16795_s12 = smov [#allocation7]   ;;  %s60_s16 = sshll.u32 %s17321_s3, 4  ;;  %s61_s16 = int_to_ptr.hbm [resolvable:$true] %s60_s16 }
   0x6   :  { %s38_s13 = sshll.u32 %s16795_s12, 4  ;;  %s16796_s17 = smov [#allocation10]   ;;  %s39_s13 = int_to_ptr.vmem [resolvable:$true] %s38_s13 }
   0x7   :  { %41 = dma.hbm_to_vmem [thread:$0]  %s37_s11, 1280, %s39_s13, [#allocation8]  }
   0x8   :  { %s62_s18 = sshll.u32 %s16796_s17, 4  ;;  %s84_s21 = sshll.u32 %s17323_s5, 4  ;;  %s63_s18 = int_to_ptr.vmem [resolvable:$true] %s62_s18  ;;  %s85_s21 = int_to_ptr.hbm [resolvable:$true] %s84_s21 }
   0x9   :  { %65 = dma.hbm_to_vmem [thread:$0]  %s61_s16, 128, %s63_s18, [#allocation11]  }
   0xa   :  { %s16797_s1 = smov [#allocation13]   ;;  %s107_s25 = sshll.u32 %s17325_s7, 4  ;;  %s108_s25 = int_to_ptr.hbm [resolvable:$true] %s107_s25 }
   0xb   :  { %s86_s22 = sshll.u32 %s16797_s1, 4  ;;  %s16798_s3 = smov [#allocation16]   ;;  %s87_s22 = int_to_ptr.vmem [resolvable:$true] %s86_s22 }
   0xc   :  { %89 = dma.hbm_to_vmem [thread:$0]  %s85_s21, 128, %s87_s22, [#allocation14]  }
   0xd   :  { %s109_s26 = sshll.u32 %s16798_s3, 4  ;;  %s25_s29 = sshll.u32 %s17318_s0, 4  ;;  %s110_s26 = int_to_ptr.vmem [resolvable:$true] %s109_s26  ;;  %s26_s29 = int_to_ptr.hbm [resolvable:$true] %s25_s29 }
   0xe   :  { %s16799_s5 = smov 256   ;;  %s16800_s30 = smov 16  }
   0xf   :  { %115 = dma.hbm_to_vmem [thread:$0]  %s108_s25, 32768, %s110_s26, [#allocation17], %s16799_s5, %s16799_s5, %s16800_s30  }
  0x10   :  { %s46_s7 = sshll.u32 %s17320_s2, 4  ;;  %s16801_s12 = smov [#allocation4]   ;;  %s47_s7 = int_to_ptr.hbm [resolvable:$true] %s46_s7 }
  0x11   :  { %s27_s13 = sshll.u32 %s16801_s12, 4  ;;  %s16802_s14 = smov [#allocation9]   ;;  %s28_s13 = int_to_ptr.vmem [resolvable:$true] %s27_s13 }
  0x12   :  { %30 = dma.hbm_to_vmem [thread:$0]  %s26_s29, 256, %s28_s13, [#allocation5]  }
  0x13   :  { %s48_s15 = sshll.u32 %s16802_s14, 4  ;;  %s16803_s0 = smov 512   ;;  %s49_s15 = int_to_ptr.vmem [resolvable:$true] %s48_s15 }
  0x14   :  { %s16804_s16 = smov 32   ;;  %s70_s19 = sshll.u32 %s17322_s4, 4  ;;  %s71_s19 = int_to_ptr.hbm [resolvable:$true] %s70_s19 }
  0x15   :  { %54 = dma.hbm_to_vmem [thread:$0]  %s47_s7, 16384, %s49_s15, [#allocation8], %s16803_s0, %s16803_s0, %s16804_s16  }
  0x16   :  { %s16805_s20 = smov [#allocation12]   ;;  %s94_s22 = sshll.u32 %s17324_s6, 4  ;;  %s95_s22 = int_to_ptr.hbm [resolvable:$true] %s94_s22 }
  0x17   :  { %s72_s21 = sshll.u32 %s16805_s20, 4  ;;  %s16806_s23 = smov [#allocation15]   ;;  %s73_s21 = int_to_ptr.vmem [resolvable:$true] %s72_s21 }
  0x18   :  { %78 = dma.hbm_to_vmem [thread:$0]  %s71_s19, 81920, %s73_s21, [#allocation11], %s16803_s0, %s16803_s0, %s16804_s16  }
  0x19   :  { %s96_s24 = sshll.u32 %s16806_s23, 4  ;;  %s121_s26 = sshll.u32 %s17326_s8, 4  ;;  %s97_s24 = int_to_ptr.vmem [resolvable:$true] %s96_s24  ;;  %s122_s26 = int_to_ptr.hbm [resolvable:$true] %s121_s26 }
  0x1a   :  { %102 = dma.hbm_to_vmem [thread:$0]  %s95_s22, 32768, %s97_s24, [#allocation14], %s16799_s5, %s16799_s5, %s16800_s30  }
  0x1b   :  { %s16807_s4 = smov [#allocation18]  }
  0x1c   :  { %s123_s27 = sshll.u32 %s16807_s4, 4  ;;  %s124_s27 = int_to_ptr.vmem [resolvable:$true] %s123_s27 }
  0x1d   :  { %126 = dma.hbm_to_vmem [thread:$0]  %s122_s26, 64, %s124_s27, [#allocation17]  }
  0x1e   :  { %16783 = dma.done.wait [#allocation5], 256  }
  0x1f   :  { %16784 = vsyncadd [#allocation5], 4294967040 }
  0x20   :  { %16785 = dma.done.wait [#allocation8], 17664  }
  0x21   :  { %16786 = vsyncadd [#allocation8], 4294949632 }
  0x22   :  { %16787 = dma.done.wait [#allocation11], 82048  }
  0x23   :  { %16788 = vsyncadd [#allocation11], 4294885248 }
  0x24   :  { %16789 = dma.done.wait [#allocation14], 32896  }
  0x25   :  { %16790 = vsyncadd [#allocation14], 4294934400 }
  0x26   :  { %16791 = dma.done.wait [#allocation17], 32832  }
  0x27   :  { %16792 = vsyncadd [#allocation17], 4294934464  ;;  %v10352_v0 = vld [vmem:[#allocation9 + $0x1c0] sm:$0xf]  ;;  %v15302_v5 = vld [vmem:[#allocation9 + $0x1c4] sm:$0xf] }
  0x28   :  { %v15306_v1 = vld [vmem:[#allocation9 + $0x1dc] sm:$0xf0]  ;;  %v10354_v6 = vld [vmem:[#allocation9 + $0x1e0] sm:$0xf0]  ;;  %s16808_s6 = smov [#allocation19]   ;;  %s10112_s5 = sshll.u32 %s17327_s9, 4  ;;  %s10113_s5 = int_to_ptr.hbm [resolvable:$true] %s10112_s5 }
  0x29   :  { %v10608_v2 = vld [vmem:[#allocation9 + $0x3c0] sm:$0xf]  ;;  %v10353_v3 = vor.u32 %v15306_v1, %v10352_v0  ;;  %v10357_v8 = vor.u32 %v15302_v5, %v10354_v6  ;;  %v15366_v9 = vld [vmem:[#allocation9 + $0x3c4] sm:$0xf]  ;;  %s10110_s8 = sshll.u32 %s16808_s6, 4  ;;  %s10111_s8 = int_to_ptr.vmem [resolvable:$true] %s10110_s8 }
  0x2a   :  { %v15370_v4 = vld [vmem:[#allocation9 + $0x3dc] sm:$0xf0]  ;;  %v10610_v10 = vld [vmem:[#allocation9 + $0x3e0] sm:$0xf0] }
  0x2b   :  { %v10609_v7 = vor.u32 %v15370_v4, %v10608_v2  ;;  %v10320_v11 = vld [vmem:[#allocation9 + $0x180] sm:$0xf]  ;;  %957 = vmatpush.bf16.msra.mxu0 %v10353_v3  ;;  %v10613_v12 = vor.u32 %v15366_v9, %v10610_v10  ;;  %983 = vmatpush.bf16.msra.mxu2 %v10357_v8  ;;  %v15294_v18 = vld [vmem:[#allocation9 + $0x184] sm:$0xf] }
  0x2c   :  { %v15298_v13 = vld [vmem:[#allocation9 + $0x19c] sm:$0xf0]  ;;  %v10322_v19 = vld [vmem:[#allocation9 + $0x1a0] sm:$0xf0] }
  0x2d   :  { %v10576_v14 = vld [vmem:[#allocation9 + $0x380] sm:$0xf]  ;;  %970 = vmatpush.bf16.msra.mxu1 %v10609_v7  ;;  %v10321_v16 = vor.u32 %v15298_v13, %v10320_v11  ;;  %v15358_v20 = vld [vmem:[#allocation9 + $0x384] sm:$0xf]  ;;  %996 = vmatpush.bf16.msra.mxu3 %v10613_v12  ;;  %v10325_v21 = vor.u32 %v15294_v18, %v10322_v19 }
  0x2e   :  { %v15362_v15 = vld [vmem:[#allocation9 + $0x39c] sm:$0xf0]  ;;  %v10578_v22 = vld [vmem:[#allocation9 + $0x3a0] sm:$0xf0] }
  0x2f   :  { %v10577_v17 = vor.u32 %v15362_v15, %v10576_v14  ;;  %v10288_v23 = vld [vmem:[#allocation9 + $0x140] sm:$0xf]  ;;  %v10581_v25 = vor.u32 %v15358_v20, %v10578_v22  ;;  %v15286_v28 = vld [vmem:[#allocation9 + $0x144] sm:$0xf]  ;;  %958 = vmatpush.bf16.msra.mxu0 %v10321_v16  ;;  %984 = vmatpush.bf16.msra.mxu2 %v10325_v21 }
  0x30   :  { %v15290_v24 = vld [vmem:[#allocation9 + $0x15c] sm:$0xf0]  ;;  %v10290_v30 = vld [vmem:[#allocation9 + $0x160] sm:$0xf0] }
  0x31   :  { %v10544_v26 = vld [vmem:[#allocation9 + $0x340] sm:$0xf]  ;;  %v10289_v29 = vor.u32 %v15290_v24, %v10288_v23  ;;  %v15350_v31 = vld [vmem:[#allocation9 + $0x344] sm:$0xf]  ;;  %971 = vmatpush.bf16.msra.mxu1 %v10577_v17  ;;  %v10293_v34 = vor.u32 %v15286_v28, %v10290_v30  ;;  %997 = vmatpush.bf16.msra.mxu3 %v10581_v25  ;;  %v10360_v28 = vld [vmem:[#allocation9 + $0x1c8] sm:$0xf] }
  0x32   :  { %v15354_v27 = vld [vmem:[#allocation9 + $0x35c] sm:$0xf0]  ;;  %v10546_v32 = vld [vmem:[#allocation9 + $0x360] sm:$0xf0]  ;;  %v10616_v30 = vld [vmem:[#allocation9 + $0x3c8] sm:$0xf] }
  0x33   :  { %v10545_v33 = vor.u32 %v15354_v27, %v10544_v26  ;;  %v10256_v35 = vld [vmem:[#allocation9 + $0x100] sm:$0xf]  ;;  %v10549_v38 = vor.u32 %v15350_v31, %v10546_v32  ;;  %v15278_v40 = vld [vmem:[#allocation9 + $0x104] sm:$0xf]  ;;  %959 = vmatpush.bf16.msra.mxu0 %v10289_v29  ;;  %985 = vmatpush.bf16.msra.mxu2 %v10293_v34  ;;  %v15307_v29 = vld [vmem:[#allocation9 + $0x1e4] sm:$0xf0] }
  0x34   :  { %v15282_v36 = vld [vmem:[#allocation9 + $0x11c] sm:$0xf0]  ;;  %v10258_v41 = vld [vmem:[#allocation9 + $0x120] sm:$0xf0]  ;;  %v15371_v32 = vld [vmem:[#allocation9 + $0x3e4] sm:$0xf0] }
  0x35   :  { %v10512_v37 = vld [vmem:[#allocation9 + $0x300] sm:$0xf]  ;;  %v15342_v42 = vld [vmem:[#allocation9 + $0x304] sm:$0xf]  ;;  %v10257_v44 = vor.u32 %v15282_v36, %v10256_v35  ;;  %972 = vmatpush.bf16.msra.mxu1 %v10545_v33  ;;  %v10261_v46 = vor.u32 %v15278_v40, %v10258_v41  ;;  %998 = vmatpush.bf16.msra.mxu3 %v10549_v38  ;;  %v15303_v33 = vld [vmem:[#allocation9 + $0x1cc] sm:$0xf]  ;;  %v10361_v40 = vor.u32 %v15307_v29, %v10360_v28 }
  0x36   :  { %v15346_v39 = vld [vmem:[#allocation9 + $0x31c] sm:$0xf0]  ;;  %v10514_v43 = vld [vmem:[#allocation9 + $0x320] sm:$0xf0]  ;;  %v10362_v34 = vld [vmem:[#allocation9 + $0x1e8] sm:$0xf0]  ;;  %v10617_v41 = vor.u32 %v15371_v32, %v10616_v30 }
  0x37   :  { %v10513_v45 = vor.u32 %v15346_v39, %v10512_v37  ;;  %v10224_v47 = vld [vmem:[#allocation9 + $0xc0] sm:$0xf]  ;;  %v10517_v50 = vor.u32 %v15342_v42, %v10514_v43  ;;  %v15270_v52 = vld [vmem:[#allocation9 + $0xc4] sm:$0xf]  ;;  %960 = vmatpush.bf16.msra.mxu0 %v10257_v44  ;;  %986 = vmatpush.bf16.msra.mxu2 %v10261_v46  ;;  %v15367_v37 = vld [vmem:[#allocation9 + $0x3cc] sm:$0xf]  ;;  %v10365_v42 = vor.u32 %v15303_v33, %v10362_v34 }
  0x38   :  { %v15274_v48 = vld [vmem:[#allocation9 + $0xdc] sm:$0xf0]  ;;  %v10226_v53 = vld [vmem:[#allocation9 + $0xe0] sm:$0xf0]  ;;  %v10618_v38 = vld [vmem:[#allocation9 + $0x3e8] sm:$0xf0] }
  0x39   :  { %v10480_v49 = vld [vmem:[#allocation9 + $0x2c0] sm:$0xf]  ;;  %v15334_v54 = vld [vmem:[#allocation9 + $0x2c4] sm:$0xf]  ;;  %v10225_v56 = vor.u32 %v15274_v48, %v10224_v47  ;;  %973 = vmatpush.bf16.msra.mxu1 %v10513_v45  ;;  %v10229_v58 = vor.u32 %v15270_v52, %v10226_v53  ;;  %999 = vmatpush.bf16.msra.mxu3 %v10517_v50  ;;  %v10328_v43 = vld [vmem:[#allocation9 + $0x188] sm:$0xf]  ;;  %v10621_v46 = vor.u32 %v15367_v37, %v10618_v38 }
  0x3a   :  { %v15338_v51 = vld [vmem:[#allocation9 + $0x2dc] sm:$0xf0]  ;;  %v10482_v55 = vld [vmem:[#allocation9 + $0x2e0] sm:$0xf0]  ;;  %v15299_v44 = vld [vmem:[#allocation9 + $0x1a4] sm:$0xf0] }
  0x3b   :  { %v10481_v57 = vor.u32 %v15338_v51, %v10480_v49  ;;  %v10192_v59 = vld [vmem:[#allocation9 + $0x80] sm:$0xf]  ;;  %v10485_v62 = vor.u32 %v15334_v54, %v10482_v55  ;;  %v15262_v0 = vld [vmem:[#allocation9 + $0x84] sm:$0xf]  ;;  %961 = vmatpush.bf16.msra.mxu0 %v10225_v56  ;;  %987 = vmatpush.bf16.msra.mxu2 %v10229_v58  ;;  %v10584_v45 = vld [vmem:[#allocation9 + $0x388] sm:$0xf]  ;;  %v10329_v52 = vor.u32 %v15299_v44, %v10328_v43 }
  0x3c   :  { %v15266_v60 = vld [vmem:[#allocation9 + $0x9c] sm:$0xf0]  ;;  %v10194_v1 = vld [vmem:[#allocation9 + $0xa0] sm:$0xf0]  ;;  %v15363_v47 = vld [vmem:[#allocation9 + $0x3a4] sm:$0xf0] }
  0x3d   :  { %v10448_v61 = vld [vmem:[#allocation9 + $0x280] sm:$0xf]  ;;  %v15326_v2 = vld [vmem:[#allocation9 + $0x284] sm:$0xf]  ;;  %v10193_v4 = vor.u32 %v15266_v60, %v10192_v59  ;;  %974 = vmatpush.bf16.msra.mxu1 %v10481_v57  ;;  %v10197_v6 = vor.u32 %v15262_v0, %v10194_v1  ;;  %1000 = vmatpush.bf16.msra.mxu3 %v10485_v62  ;;  %v15295_v48 = vld [vmem:[#allocation9 + $0x18c] sm:$0xf]  ;;  %v10585_v54 = vor.u32 %v15363_v47, %v10584_v45 }
  0x3e   :  { %v15330_v63 = vld [vmem:[#allocation9 + $0x29c] sm:$0xf0]  ;;  %v10450_v3 = vld [vmem:[#allocation9 + $0x2a0] sm:$0xf0]  ;;  %v10330_v49 = vld [vmem:[#allocation9 + $0x1a8] sm:$0xf0] }
  0x3f   :  { %v10449_v5 = vor.u32 %v15330_v63, %v10448_v61  ;;  %v10160_v7 = vld [vmem:[#allocation9 + $0x40] sm:$0xf]  ;;  %v10453_v10 = vor.u32 %v15326_v2, %v10450_v3  ;;  %v15254_v12 = vld [vmem:[#allocation9 + $0x44] sm:$0xf]  ;;  %962 = vmatpush.bf16.msra.mxu0 %v10193_v4  ;;  %988 = vmatpush.bf16.msra.mxu2 %v10197_v6  ;;  %v15359_v50 = vld [vmem:[#allocation9 + $0x38c] sm:$0xf]  ;;  %v10333_v55 = vor.u32 %v15295_v48, %v10330_v49 }
  0x40   :  { %v15258_v8 = vld [vmem:[#allocation9 + $0x5c] sm:$0xf0]  ;;  %v10162_v13 = vld [vmem:[#allocation9 + $0x60] sm:$0xf0]  ;;  %v10586_v51 = vld [vmem:[#allocation9 + $0x3a8] sm:$0xf0] }
  0x41   :  { %v10416_v9 = vld [vmem:[#allocation9 + $0x240] sm:$0xf]  ;;  %v15318_v14 = vld [vmem:[#allocation9 + $0x244] sm:$0xf]  ;;  %v10161_v16 = vor.u32 %v15258_v8, %v10160_v7  ;;  %975 = vmatpush.bf16.msra.mxu1 %v10449_v5  ;;  %v10165_v20 = vor.u32 %v15254_v12, %v10162_v13  ;;  %1001 = vmatpush.bf16.msra.mxu3 %v10453_v10  ;;  %v10296_v53 = vld [vmem:[#allocation9 + $0x148] sm:$0xf]  ;;  %v10589_v59 = vor.u32 %v15359_v50, %v10586_v51 }
  0x42   :  { %v15322_v11 = vld [vmem:[#allocation9 + $0x25c] sm:$0xf0]  ;;  %v10418_v15 = vld [vmem:[#allocation9 + $0x260] sm:$0xf0]  ;;  %v15291_v56 = vld [vmem:[#allocation9 + $0x164] sm:$0xf0] }
  0x43   :  { %v10128_v17 = vld [vmem:[#allocation9] sm:$0xf]  ;;  %v10417_v19 = vor.u32 %v15322_v11, %v10416_v9  ;;  %v15246_v23 = vld [vmem:[#allocation9 + $0x4] sm:$0xf]  ;;  %v10421_v24 = vor.u32 %v15318_v14, %v10418_v15  ;;  %963 = vmatpush.bf16.msra.mxu0 %v10161_v16  ;;  %989 = vmatpush.bf16.msra.mxu2 %v10165_v20  ;;  %v10552_v57 = vld [vmem:[#allocation9 + $0x348] sm:$0xf]  ;;  %v10297_v0 = vor.u32 %v15291_v56, %v10296_v53 }
  0x44   :  { %v15250_v18 = vld [vmem:[#allocation9 + $0x1c] sm:$0xf0]  ;;  %v10130_v25 = vld [vmem:[#allocation9 + $0x20] sm:$0xf0]  ;;  %v15355_v58 = vld [vmem:[#allocation9 + $0x364] sm:$0xf0] }
  0x45   :  { %v10384_v21 = vld [vmem:[#allocation9 + $0x200] sm:$0xf]  ;;  %v15310_v26 = vld [vmem:[#allocation9 + $0x204] sm:$0xf]  ;;  %v10129_v31 = vor.u32 %v15250_v18, %v10128_v17  ;;  %976 = vmatpush.bf16.msra.mxu1 %v10417_v19  ;;  %v10133_v36 = vor.u32 %v15246_v23, %v10130_v25  ;;  %1002 = vmatpush.bf16.msra.mxu3 %v10421_v24  ;;  %v15287_v60 = vld [vmem:[#allocation9 + $0x14c] sm:$0xf]  ;;  %v10553_v1 = vor.u32 %v15355_v58, %v10552_v57 }
  0x46   :  { %v15314_v22 = vld [vmem:[#allocation9 + $0x21c] sm:$0xf0]  ;;  %v10386_v27 = vld [vmem:[#allocation9 + $0x220] sm:$0xf0]  ;;  %v10298_v61 = vld [vmem:[#allocation9 + $0x168] sm:$0xf0] }
  0x47   :  { %v10385_v35 = vor.u32 %v15314_v22, %v10384_v21  ;;  %v10389_v39 = vor.u32 %v15310_v26, %v10386_v27  ;;  %964 = vmatpush.bf16.msra.mxu0 %v10129_v31  ;;  %990 = vmatpush.bf16.msra.mxu2 %v10133_v36  ;;  %v15351_v62 = vld [vmem:[#allocation9 + $0x34c] sm:$0xf]  ;;  %v167_v2 = vld [vmem:[#allocation4] sm:$0xff]  ;;  %v10301_v4 = vor.u32 %v15287_v60, %v10298_v61  ;;  %v10264_v5 = vld [vmem:[#allocation9 + $0x108] sm:$0xf] }
  0x48   :  { %v10554_v63 = vld [vmem:[#allocation9 + $0x368] sm:$0xf0]  ;;  %v15283_v6 = vld [vmem:[#allocation9 + $0x124] sm:$0xf0]  ;;  %v16892_v8 = vpack.c.bf16 %v167_v2, %v167_v2  ;;  %v10624_v2 = vld [vmem:[#allocation9 + $0x3d0] sm:$0xf] }
  0x49   :  { %977 = vmatpush.bf16.msra.mxu1 %v10385_v35  ;;  %1003 = vmatpush.bf16.msra.mxu3 %v10389_v39  ;;  %v168_v3 = vld [vmem:[#allocation4 + $0x8] sm:$0xff]  ;;  %v10557_v10 = vor.u32 %v15351_v62, %v10554_v63  ;;  %v10265_v16 = vor.u32 %v15283_v6, %v10264_v5  ;;  %v15304_v5 = vld [vmem:[#allocation9 + $0x1d4] sm:$0xf] }
  0x4a   :  { %v10520_v7 = vld [vmem:[#allocation9 + $0x308] sm:$0xf]  ;;  %v16894_v9 = vpack.c.bf16 %v168_v3, %v168_v3  ;;  %v15279_v12 = vld [vmem:[#allocation9 + $0x10c] sm:$0xf]  ;;  %991 = vmatmul.bf16.vlgmr.msra.gmra.mxu2 %v16892_v8  ;;  %965 = vmatmul.bf16.vlgmr.msra.gmra.mxu0 %v16892_v8  ;;  %v10370_v6 = vld [vmem:[#allocation9 + $0x1f0] sm:$0xf0] }
  0x4b   :  { %1009 = vmatpush.bf16.msrb.mxu0 %v10361_v40  ;;  %1035 = vmatpush.bf16.msrb.mxu2 %v10365_v42  ;;  %v15347_v11 = vld [vmem:[#allocation9 + $0x324] sm:$0xf0]  ;;  %v10266_v13 = vld [vmem:[#allocation9 + $0x128] sm:$0xf0] }
  0x4c   :  { %v15343_v14 = vld [vmem:[#allocation9 + $0x30c] sm:$0xf]  ;;  %1004 = vmatmul.bf16.vlgmr.msra.gmra.mxu3 %v16894_v9  ;;  %v10521_v17 = vor.u32 %v15347_v11, %v10520_v7  ;;  %v10269_v18 = vor.u32 %v15279_v12, %v10266_v13  ;;  %v10232_v19 = vld [vmem:[#allocation9 + $0xc8] sm:$0xf]  ;;  %978 = vmatmul.bf16.vlgmr.msra.gmra.mxu1 %v16894_v9  ;;  %v15368_v11 = vld [vmem:[#allocation9 + $0x3d4] sm:$0xf] }
  0x4d   :  { %1022 = vmatpush.bf16.msrb.mxu1 %v10617_v41  ;;  %1048 = vmatpush.bf16.msrb.mxu3 %v10621_v46  ;;  %v10522_v15 = vld [vmem:[#allocation9 + $0x328] sm:$0xf0]  ;;  %v15275_v20 = vld [vmem:[#allocation9 + $0xe4] sm:$0xf0]  ;;  %v10626_v12 = vld [vmem:[#allocation9 + $0x3f0] sm:$0xf0] }
  0x4e   :  { %v10488_v21 = vld [vmem:[#allocation9 + $0x2c8] sm:$0xf]  ;;  %v10525_v22 = vor.u32 %v15343_v14, %v10522_v15  ;;  %v15271_v24 = vld [vmem:[#allocation9 + $0xcc] sm:$0xf]  ;;  %v10233_v28 = vor.u32 %v15275_v20, %v10232_v19  ;;  %v10592_v19 = vld [vmem:[#allocation9 + $0x390] sm:$0xf]  ;;  %v10629_v20 = vor.u32 %v15368_v11, %v10626_v12 }
  0x4f   :  { %1010 = vmatpush.bf16.msrb.mxu0 %v10329_v52  ;;  %1036 = vmatpush.bf16.msrb.mxu2 %v10333_v55  ;;  %v15339_v23 = vld [vmem:[#allocation9 + $0x2e4] sm:$0xf0]  ;;  %v10234_v25 = vld [vmem:[#allocation9 + $0xe8] sm:$0xf0]  ;;  %v10466_v11 = vld [vmem:[#allocation9 + $0x2b0] sm:$0xf0] }
  0x50   :  { %v15335_v26 = vld [vmem:[#allocation9 + $0x2cc] sm:$0xf]  ;;  %v10489_v29 = vor.u32 %v15339_v23, %v10488_v21  ;;  %v10237_v30 = vor.u32 %v15271_v24, %v10234_v25  ;;  %v10200_v31 = vld [vmem:[#allocation9 + $0x88] sm:$0xf]  ;;  %v15364_v21 = vld [vmem:[#allocation9 + $0x3ac] sm:$0xf0] }
  0x51   :  { %1023 = vmatpush.bf16.msrb.mxu1 %v10585_v54  ;;  %1049 = vmatpush.bf16.msrb.mxu3 %v10589_v59  ;;  %v10490_v27 = vld [vmem:[#allocation9 + $0x2e8] sm:$0xf0]  ;;  %v15267_v32 = vld [vmem:[#allocation9 + $0xa4] sm:$0xf0]  ;;  %v10338_v23 = vld [vmem:[#allocation9 + $0x1b0] sm:$0xf0] }
  0x52   :  { %v10456_v33 = vld [vmem:[#allocation9 + $0x288] sm:$0xf]  ;;  %v10493_v34 = vor.u32 %v15335_v26, %v10490_v27  ;;  %v15263_v36 = vld [vmem:[#allocation9 + $0x8c] sm:$0xf]  ;;  %v10201_v40 = vor.u32 %v15267_v32, %v10200_v31  ;;  %v15360_v24 = vld [vmem:[#allocation9 + $0x394] sm:$0xf]  ;;  %v10593_v27 = vor.u32 %v15364_v21, %v10592_v19 }
  0x53   :  { %1011 = vmatpush.bf16.msrb.mxu0 %v10297_v0  ;;  %1037 = vmatpush.bf16.msrb.mxu2 %v10301_v4  ;;  %v15331_v35 = vld [vmem:[#allocation9 + $0x2a4] sm:$0xf0]  ;;  %v10202_v37 = vld [vmem:[#allocation9 + $0xa8] sm:$0xf0]  ;;  %v10368_v0 = vld [vmem:[#allocation9 + $0x1d0] sm:$0xf] }
  0x54   :  { %v15327_v38 = vld [vmem:[#allocation9 + $0x28c] sm:$0xf]  ;;  %v10457_v41 = vor.u32 %v15331_v35, %v10456_v33  ;;  %v10205_v42 = vor.u32 %v15263_v36, %v10202_v37  ;;  %v10168_v43 = vld [vmem:[#allocation9 + $0x48] sm:$0xf]  ;;  %v15372_v4 = vld [vmem:[#allocation9 + $0x3ec] sm:$0xf0] }
  0x55   :  { %1024 = vmatpush.bf16.msrb.mxu1 %v10553_v1  ;;  %1050 = vmatpush.bf16.msrb.mxu3 %v10557_v10  ;;  %v10458_v39 = vld [vmem:[#allocation9 + $0x2a8] sm:$0xf0]  ;;  %v15259_v44 = vld [vmem:[#allocation9 + $0x64] sm:$0xf0]  ;;  %v15308_v1 = vld [vmem:[#allocation9 + $0x1ec] sm:$0xf0]  ;;  %v10625_v15 = vor.u32 %v15372_v4, %v10624_v2 }
  0x56   :  { %v10424_v45 = vld [vmem:[#allocation9 + $0x248] sm:$0xf]  ;;  %v10461_v46 = vor.u32 %v15327_v38, %v10458_v39  ;;  %v15255_v48 = vld [vmem:[#allocation9 + $0x4c] sm:$0xf]  ;;  %v10169_v52 = vor.u32 %v15259_v44, %v10168_v43  ;;  %v10369_v14 = vor.u32 %v15308_v1, %v10368_v0  ;;  %v10594_v25 = vld [vmem:[#allocation9 + $0x3b0] sm:$0xf0] }
  0x57   :  { %1012 = vmatpush.bf16.msrb.mxu0 %v10265_v16  ;;  %1038 = vmatpush.bf16.msrb.mxu2 %v10269_v18  ;;  %v15323_v47 = vld [vmem:[#allocation9 + $0x264] sm:$0xf0]  ;;  %v10170_v49 = vld [vmem:[#allocation9 + $0x68] sm:$0xf0]  ;;  %v10373_v16 = vor.u32 %v15304_v5, %v10370_v6  ;;  %v15300_v18 = vld [vmem:[#allocation9 + $0x1ac] sm:$0xf0]  ;;  %v10597_v32 = vor.u32 %v15360_v24, %v10594_v25 }
  0x58   :  { %v15319_v50 = vld [vmem:[#allocation9 + $0x24c] sm:$0xf]  ;;  %v10136_v53 = vld [vmem:[#allocation9 + $0x8] sm:$0xf]  ;;  %v10425_v55 = vor.u32 %v15323_v47, %v10424_v45  ;;  %v10173_v56 = vor.u32 %v15255_v48, %v10170_v49  ;;  %v10560_v31 = vld [vmem:[#allocation9 + $0x350] sm:$0xf] }
  0x59   :  { %1025 = vmatpush.bf16.msrb.mxu1 %v10521_v17  ;;  %1051 = vmatpush.bf16.msrb.mxu3 %v10525_v22  ;;  %v10426_v51 = vld [vmem:[#allocation9 + $0x268] sm:$0xf0]  ;;  %v15251_v54 = vld [vmem:[#allocation9 + $0x24] sm:$0xf0]  ;;  %v10336_v17 = vld [vmem:[#allocation9 + $0x190] sm:$0xf] }
  0x5a   :  { %v10392_v57 = vld [vmem:[#allocation9 + $0x208] sm:$0xf]  ;;  %v15247_v59 = vld [vmem:[#allocation9 + $0xc] sm:$0xf]  ;;  %v10429_v60 = vor.u32 %v15319_v50, %v10426_v51  ;;  %v10137_v3 = vor.u32 %v15251_v54, %v10136_v53  ;;  %v15296_v22 = vld [vmem:[#allocation9 + $0x194] sm:$0xf]  ;;  %v10337_v26 = vor.u32 %v15300_v18, %v10336_v17 }
  0x5b   :  { %1013 = vmatpush.bf16.msrb.mxu0 %v10233_v28  ;;  %1039 = vmatpush.bf16.msrb.mxu2 %v10237_v30  ;;  %v15315_v58 = vld [vmem:[#allocation9 + $0x224] sm:$0xf0]  ;;  %v10138_v61 = vld [vmem:[#allocation9 + $0x28] sm:$0xf0]  ;;  %v10341_v28 = vor.u32 %v15296_v22, %v10338_v23  ;;  %v15292_v30 = vld [vmem:[#allocation9 + $0x16c] sm:$0xf0] }
  0x5c   :  { %v15311_v62 = vld [vmem:[#allocation9 + $0x20c] sm:$0xf]  ;;  %v10393_v7 = vor.u32 %v15315_v58, %v10392_v57  ;;  %v10141_v10 = vor.u32 %v15247_v59, %v10138_v61  ;;  %v15356_v33 = vld [vmem:[#allocation9 + $0x36c] sm:$0xf0]  ;;  %v10306_v35 = vld [vmem:[#allocation9 + $0x170] sm:$0xf0] }
  0x5d   :  { %1026 = vmatpush.bf16.msrb.mxu1 %v10489_v29  ;;  %1052 = vmatpush.bf16.msrb.mxu3 %v10493_v34  ;;  %v10394_v63 = vld [vmem:[#allocation9 + $0x228] sm:$0xf0]  ;;  %v10304_v29 = vld [vmem:[#allocation9 + $0x150] sm:$0xf]  ;;  %v15288_v34 = vld [vmem:[#allocation9 + $0x154] sm:$0xf]  ;;  %v10561_v39 = vor.u32 %v15356_v33, %v10560_v31 }
  0x5e   :  { %v10397_v13 = vor.u32 %v15311_v62, %v10394_v63  ;;  %v15352_v36 = vld [vmem:[#allocation9 + $0x354] sm:$0xf]  ;;  %v10305_v38 = vor.u32 %v15292_v30, %v10304_v29  ;;  %v10528_v43 = vld [vmem:[#allocation9 + $0x310] sm:$0xf] }
  0x5f   :  { %1014 = vmatpush.bf16.msrb.mxu0 %v10201_v40  ;;  %1040 = vmatpush.bf16.msrb.mxu2 %v10205_v42  ;;  %v10562_v37 = vld [vmem:[#allocation9 + $0x370] sm:$0xf0]  ;;  %v10309_v40 = vor.u32 %v15288_v34, %v10306_v35  ;;  %v15284_v42 = vld [vmem:[#allocation9 + $0x12c] sm:$0xf0] }
  0x60   :  { %v10565_v44 = vor.u32 %v15352_v36, %v10562_v37  ;;  %v15348_v45 = vld [vmem:[#allocation9 + $0x32c] sm:$0xf0]  ;;  %v10274_v47 = vld [vmem:[#allocation9 + $0x130] sm:$0xf0]  ;;  %v10376_v36 = vld [vmem:[#allocation9 + $0x1d8] sm:$0xf] }
  0x61   :  { %1027 = vmatpush.bf16.msrb.mxu1 %v10457_v41  ;;  %1053 = vmatpush.bf16.msrb.mxu3 %v10461_v46  ;;  %v10272_v41 = vld [vmem:[#allocation9 + $0x110] sm:$0xf]  ;;  %v15280_v46 = vld [vmem:[#allocation9 + $0x114] sm:$0xf]  ;;  %v10529_v51 = vor.u32 %v15348_v45, %v10528_v43  ;;  %v15309_v37 = vld [vmem:[#allocation9 + $0x1f4] sm:$0xf0] }
  0x62   :  { %v15344_v48 = vld [vmem:[#allocation9 + $0x314] sm:$0xf]  ;;  %v10273_v50 = vor.u32 %v15284_v42, %v10272_v41  ;;  %v10240_v53 = vld [vmem:[#allocation9 + $0xd0] sm:$0xf]  ;;  %v15305_v41 = vld [vmem:[#allocation9 + $0x1dc] sm:$0xf] }
  0x63   :  { %1015 = vmatpush.bf16.msrb.mxu0 %v10169_v52  ;;  %1041 = vmatpush.bf16.msrb.mxu2 %v10173_v56  ;;  %v10530_v49 = vld [vmem:[#allocation9 + $0x330] sm:$0xf0]  ;;  %v10277_v52 = vor.u32 %v15280_v46, %v10274_v47  ;;  %v15276_v54 = vld [vmem:[#allocation9 + $0xec] sm:$0xf0]  ;;  %v10378_v42 = vld [vmem:[#allocation9 + $0x1f8] sm:$0xf0] }
  0x64   :  { %v10533_v56 = vor.u32 %v15344_v48, %v10530_v49  ;;  %v15340_v57 = vld [vmem:[#allocation9 + $0x2ec] sm:$0xf0]  ;;  %v15272_v58 = vld [vmem:[#allocation9 + $0xd4] sm:$0xf]  ;;  %v10241_v62 = vor.u32 %v15276_v54, %v10240_v53  ;;  %v15369_v45 = vld [vmem:[#allocation9 + $0x3dc] sm:$0xf]  ;;  %v10377_v48 = vor.u32 %v15309_v37, %v10376_v36 }
  0x65   :  { %1028 = vmatpush.bf16.msrb.mxu1 %v10425_v55  ;;  %1054 = vmatpush.bf16.msrb.mxu3 %v10429_v60  ;;  %v10496_v55 = vld [vmem:[#allocation9 + $0x2d0] sm:$0xf]  ;;  %v10242_v59 = vld [vmem:[#allocation9 + $0xf0] sm:$0xf0]  ;;  %v10634_v46 = vld [vmem:[#allocation9 + $0x3f8] sm:$0xf0] }
  0x66   :  { %v15336_v60 = vld [vmem:[#allocation9 + $0x2d4] sm:$0xf]  ;;  %v10497_v63 = vor.u32 %v15340_v57, %v10496_v55  ;;  %v10245_v0 = vor.u32 %v15272_v58, %v10242_v59  ;;  %v10208_v1 = vld [vmem:[#allocation9 + $0x90] sm:$0xf]  ;;  %v10600_v53 = vld [vmem:[#allocation9 + $0x398] sm:$0xf]  ;;  %v10637_v54 = vor.u32 %v15369_v45, %v10634_v46 }
  0x67   :  { %1016 = vmatpush.bf16.msrb.mxu0 %v10137_v3  ;;  %1042 = vmatpush.bf16.msrb.mxu2 %v10141_v10  ;;  %v10498_v61 = vld [vmem:[#allocation9 + $0x2f0] sm:$0xf0]  ;;  %v15268_v2 = vld [vmem:[#allocation9 + $0xac] sm:$0xf0]  ;;  %v15365_v55 = vld [vmem:[#allocation9 + $0x3b4] sm:$0xf0] }
  0x68   :  { %v10464_v3 = vld [vmem:[#allocation9 + $0x290] sm:$0xf]  ;;  %v10501_v4 = vor.u32 %v15336_v60, %v10498_v61  ;;  %v15264_v6 = vld [vmem:[#allocation9 + $0x94] sm:$0xf]  ;;  %v10209_v12 = vor.u32 %v15268_v2, %v10208_v1  ;;  %v10346_v57 = vld [vmem:[#allocation9 + $0x1b8] sm:$0xf0]  ;;  %v10601_v61 = vor.u32 %v15365_v55, %v10600_v53 }
  0x69   :  { %1029 = vmatpush.bf16.msrb.mxu1 %v10393_v7  ;;  %1055 = vmatpush.bf16.msrb.mxu3 %v10397_v13  ;;  %v15332_v5 = vld [vmem:[#allocation9 + $0x2ac] sm:$0xf0]  ;;  %v10210_v7 = vld [vmem:[#allocation9 + $0xb0] sm:$0xf0]  ;;  %v15361_v58 = vld [vmem:[#allocation9 + $0x39c] sm:$0xf] }
  0x6a   :  { %1043 = vmatmul.bf16.vlgmr.msrb.gmra.mxu2 %v16892_v8  ;;  %1017 = vmatmul.bf16.vlgmr.msrb.gmra.mxu0 %v16892_v8  ;;  %v15328_v10 = vld [vmem:[#allocation9 + $0x294] sm:$0xf]  ;;  %v10465_v13 = vor.u32 %v15332_v5, %v10464_v3  ;;  %v10432_v17 = vld [vmem:[#allocation9 + $0x250] sm:$0xf]  ;;  %v10602_v59 = vld [vmem:[#allocation9 + $0x3b8] sm:$0xf0] }
  0x6b   :  { %1061 = vmatpush.bf16.msra.mxu0 %v10369_v14  ;;  %1087 = vmatpush.bf16.msra.mxu2 %v10373_v16  ;;  %v10213_v14 = vor.u32 %v15264_v6, %v10210_v7  ;;  %v15260_v16 = vld [vmem:[#allocation9 + $0x6c] sm:$0xf0]  ;;  %v10469_v18 = vor.u32 %v15328_v10, %v10466_v11  ;;  %v10178_v21 = vld [vmem:[#allocation9 + $0x70] sm:$0xf0]  ;;  %v10568_v1 = vld [vmem:[#allocation9 + $0x358] sm:$0xf]  ;;  %v10605_v2 = vor.u32 %v15361_v58, %v10602_v59 }
  0x6c   :  { %1056 = vmatmul.bf16.vlgmr.msrb.gmra.mxu3 %v16894_v9  ;;  %1030 = vmatmul.bf16.vlgmr.msrb.gmra.mxu1 %v16894_v9  ;;  %v15324_v19 = vld [vmem:[#allocation9 + $0x26c] sm:$0xf0]  ;;  %v15320_v22 = vld [vmem:[#allocation9 + $0x254] sm:$0xf]  ;;  %v15357_v3 = vld [vmem:[#allocation9 + $0x374] sm:$0xf0] }
  0x6d   :  { %1074 = vmatpush.bf16.msra.mxu1 %v10625_v15  ;;  %1100 = vmatpush.bf16.msra.mxu3 %v10629_v20  ;;  %v10176_v15 = vld [vmem:[#allocation9 + $0x50] sm:$0xf]  ;;  %v15256_v20 = vld [vmem:[#allocation9 + $0x54] sm:$0xf]  ;;  %v10314_v5 = vld [vmem:[#allocation9 + $0x178] sm:$0xf0]  ;;  %v10569_v11 = vor.u32 %v15357_v3, %v10568_v1 }
  0x6e   :  { %v10434_v23 = vld [vmem:[#allocation9 + $0x270] sm:$0xf0]  ;;  %v10177_v24 = vor.u32 %v15260_v16, %v10176_v15  ;;  %v10144_v25 = vld [vmem:[#allocation9 + $0x10] sm:$0xf]  ;;  %v15353_v6 = vld [vmem:[#allocation9 + $0x35c] sm:$0xf] }
  0x6f   :  { %1062 = vmatpush.bf16.msra.mxu0 %v10337_v26  ;;  %1088 = vmatpush.bf16.msra.mxu2 %v10341_v28  ;;  %v15252_v26 = vld [vmem:[#allocation9 + $0x2c] sm:$0xf0]  ;;  %v10181_v28 = vor.u32 %v15256_v20, %v10178_v21  ;;  %v15248_v31 = vld [vmem:[#allocation9 + $0x14] sm:$0xf]  ;;  %v10570_v7 = vld [vmem:[#allocation9 + $0x378] sm:$0xf0] }
  0x70   :  { %v10400_v29 = vld [vmem:[#allocation9 + $0x210] sm:$0xf]  ;;  %v10146_v33 = vld [vmem:[#allocation9 + $0x30] sm:$0xf0]  ;;  %v10536_v15 = vld [vmem:[#allocation9 + $0x318] sm:$0xf]  ;;  %v10573_v16 = vor.u32 %v15353_v6, %v10570_v7 }
  0x71   :  { %1075 = vmatpush.bf16.msra.mxu1 %v10593_v27  ;;  %1101 = vmatpush.bf16.msra.mxu3 %v10597_v32  ;;  %v10433_v27 = vor.u32 %v15324_v19, %v10432_v17  ;;  %v15316_v30 = vld [vmem:[#allocation9 + $0x22c] sm:$0xf0]  ;;  %v10437_v32 = vor.u32 %v15320_v22, %v10434_v23  ;;  %v15312_v34 = vld [vmem:[#allocation9 + $0x214] sm:$0xf]  ;;  %v15349_v17 = vld [vmem:[#allocation9 + $0x334] sm:$0xf0] }
  0x72   :  { %v10402_v35 = vld [vmem:[#allocation9 + $0x230] sm:$0xf0]  ;;  %v10401_v43 = vor.u32 %v15316_v30, %v10400_v29  ;;  %v10282_v19 = vld [vmem:[#allocation9 + $0x138] sm:$0xf0]  ;;  %v10537_v23 = vor.u32 %v15349_v17, %v10536_v15  ;;  %v15341_v29 = vld [vmem:[#allocation9 + $0x2f4] sm:$0xf0] }
  0x73   :  { %1063 = vmatpush.bf16.msra.mxu0 %v10305_v38  ;;  %1089 = vmatpush.bf16.msra.mxu2 %v10309_v40  ;;  %v10632_v38 = vld [vmem:[#allocation9 + $0x3d8] sm:$0xf]  ;;  %v10405_v47 = vor.u32 %v15312_v34, %v10402_v35  ;;  %v15345_v20 = vld [vmem:[#allocation9 + $0x31c] sm:$0xf]  ;;  %v10864_v6 = vld [vmem:[#allocation12 + $0x1c0] sm:$0xf] }
  0x74   :  { %v15373_v40 = vld [vmem:[#allocation9 + $0x3f4] sm:$0xf0]  ;;  %v10538_v21 = vld [vmem:[#allocation9 + $0x338] sm:$0xf0]  ;;  %v15434_v7 = vld [vmem:[#allocation12 + $0x1dc] sm:$0xf0] }
  0x75   :  { %1076 = vmatpush.bf16.msra.mxu1 %v10561_v39  ;;  %1102 = vmatpush.bf16.msra.mxu3 %v10565_v44  ;;  %v10145_v39 = vor.u32 %v15252_v26, %v10144_v25  ;;  %v10149_v44 = vor.u32 %v15248_v31, %v10146_v33  ;;  %v10633_v49 = vor.u32 %v15373_v40, %v10632_v38  ;;  %v10248_v25 = vld [vmem:[#allocation9 + $0xd8] sm:$0xf]  ;;  %v15273_v30 = vld [vmem:[#allocation9 + $0xdc] sm:$0xf]  ;;  %v11632_v17 = vld [vmem:[#allocation12 + $0x7c0] sm:$0xf] }
  0x76   :  { %v15277_v26 = vld [vmem:[#allocation9 + $0xf4] sm:$0xf0]  ;;  %v10250_v31 = vld [vmem:[#allocation9 + $0xf8] sm:$0xf0] }
  0x77   :  { %1064 = vmatpush.bf16.msra.mxu0 %v10273_v50  ;;  %1090 = vmatpush.bf16.msra.mxu2 %v10277_v52  ;;  %v10381_v50 = vor.u32 %v15305_v41, %v10378_v42  ;;  %v15301_v52 = vld [vmem:[#allocation9 + $0x1b4] sm:$0xf0]  ;;  %v10506_v33 = vld [vmem:[#allocation9 + $0x2f8] sm:$0xf0]  ;;  %v10249_v34 = vor.u32 %v15277_v26, %v10248_v25  ;;  %v10253_v36 = vor.u32 %v15273_v30, %v10250_v31  ;;  %v11088_v25 = vld [vmem:[#allocation12 + $0x380] sm:$0xf] }
  0x78   :  { %v10216_v37 = vld [vmem:[#allocation9 + $0x98] sm:$0xf]  ;;  %v15265_v42 = vld [vmem:[#allocation9 + $0x9c] sm:$0xf]  ;;  %v11600_v30 = vld [vmem:[#allocation12 + $0x780] sm:$0xf] }
  0x79   :  { %1077 = vmatpush.bf16.msra.mxu1 %v10529_v51  ;;  %1103 = vmatpush.bf16.msra.mxu3 %v10533_v56  ;;  %v10344_v51 = vld [vmem:[#allocation9 + $0x198] sm:$0xf]  ;;  %v15297_v56 = vld [vmem:[#allocation9 + $0x19c] sm:$0xf]  ;;  %v15618_v31 = vld [vmem:[#allocation12 + $0x79c] sm:$0xf0] }
  0x7a   :  { %v10345_v60 = vor.u32 %v15301_v52, %v10344_v51  ;;  %v15269_v38 = vld [vmem:[#allocation9 + $0xb4] sm:$0xf0]  ;;  %v10474_v45 = vld [vmem:[#allocation9 + $0x2b8] sm:$0xf0] }
  0x7b   :  { %1065 = vmatpush.bf16.msra.mxu0 %v10241_v62  ;;  %1091 = vmatpush.bf16.msra.mxu2 %v10245_v0  ;;  %v10349_v62 = vor.u32 %v15297_v56, %v10346_v57  ;;  %v15293_v0 = vld [vmem:[#allocation9 + $0x174] sm:$0xf0]  ;;  %v10217_v46 = vor.u32 %v15269_v38, %v10216_v37  ;;  %v10186_v55 = vld [vmem:[#allocation9 + $0x78] sm:$0xf0]  ;;  %v11056_v37 = vld [vmem:[#allocation12 + $0x340] sm:$0xf]  ;;  %v11601_v38 = vor.u32 %v15618_v31, %v11600_v30 }
  0x7c   :  { %v15333_v41 = vld [vmem:[#allocation9 + $0x2b4] sm:$0xf0]  ;;  %v15321_v56 = vld [vmem:[#allocation9 + $0x25c] sm:$0xf]  ;;  %v15378_v30 = vld [vmem:[#allocation12 + $0x1c] sm:$0xf0] }
  0x7d   :  { %1078 = vmatpush.bf16.msra.mxu1 %v10497_v63  ;;  %1104 = vmatpush.bf16.msra.mxu3 %v10501_v4  ;;  %v10312_v63 = vld [vmem:[#allocation9 + $0x158] sm:$0xf]  ;;  %v15289_v4 = vld [vmem:[#allocation9 + $0x15c] sm:$0xf] }
  0x7e   :  { %v10313_v10 = vor.u32 %v15293_v0, %v10312_v63  ;;  %v10440_v51 = vld [vmem:[#allocation9 + $0x258] sm:$0xf]  ;;  %v10442_v57 = vld [vmem:[#allocation9 + $0x278] sm:$0xf0] }
  0x7f   :  { %1066 = vmatpush.bf16.msra.mxu0 %v10209_v12  ;;  %1092 = vmatpush.bf16.msra.mxu2 %v10213_v14  ;;  %v10317_v12 = vor.u32 %v15289_v4, %v10314_v5  ;;  %v15285_v14 = vld [vmem:[#allocation9 + $0x134] sm:$0xf0]  ;;  %v15249_v1 = vld [vmem:[#allocation9 + $0x1c] sm:$0xf] }
  0x80   :  { %v15325_v53 = vld [vmem:[#allocation9 + $0x274] sm:$0xf0]  ;;  %v10154_v3 = vld [vmem:[#allocation9 + $0x38] sm:$0xf0] }
  0x81   :  { %1079 = vmatpush.bf16.msra.mxu1 %v10465_v13  ;;  %1105 = vmatpush.bf16.msra.mxu3 %v10469_v18  ;;  %v10280_v13 = vld [vmem:[#allocation9 + $0x118] sm:$0xf]  ;;  %v15281_v18 = vld [vmem:[#allocation9 + $0x11c] sm:$0xf] }
  0x82   :  { %v10281_v22 = vor.u32 %v15285_v14, %v10280_v13  ;;  %v10152_v59 = vld [vmem:[#allocation9 + $0x18] sm:$0xf]  ;;  %v15313_v4 = vld [vmem:[#allocation9 + $0x21c] sm:$0xf]  ;;  %v11376_v13 = vld [vmem:[#allocation12 + $0x5c0] sm:$0xf] }
  0x83   :  { %1067 = vmatpush.bf16.msra.mxu0 %v10177_v24  ;;  %1093 = vmatpush.bf16.msra.mxu2 %v10181_v28  ;;  %v10285_v24 = vor.u32 %v15281_v18, %v10282_v19  ;;  %v10541_v28 = vor.u32 %v15345_v20, %v10538_v21  ;;  %v10408_v63 = vld [vmem:[#allocation9 + $0x218] sm:$0xf]  ;;  %v10410_v5 = vld [vmem:[#allocation9 + $0x238] sm:$0xf0]  ;;  %v15562_v14 = vld [vmem:[#allocation12 + $0x5dc] sm:$0xf0]  ;;  %v10865_v20 = vor.u32 %v15434_v7, %v10864_v6 }
  0x84   :  { %v15317_v0 = vld [vmem:[#allocation9 + $0x234] sm:$0xf0]  ;;  %v15626_v18 = vld [vmem:[#allocation12 + $0x7dc] sm:$0xf0]  ;;  %v10413_v19 = vor.u32 %v15313_v4, %v10410_v5 }
  0x85   :  { %1080 = vmatpush.bf16.msra.mxu1 %v10433_v27  ;;  %1106 = vmatpush.bf16.msra.mxu3 %v10437_v32  ;;  %v10504_v27 = vld [vmem:[#allocation9 + $0x2d8] sm:$0xf]  ;;  %v15337_v32 = vld [vmem:[#allocation9 + $0x2dc] sm:$0xf]  ;;  %v10409_v15 = vor.u32 %v15317_v0, %v10408_v63  ;;  %v11633_v26 = vor.u32 %v15626_v18, %v11632_v17  ;;  %v15530_v63 = vld [vmem:[#allocation12 + $0x4dc] sm:$0xf0] }
  0x86   :  { %v10505_v35 = vor.u32 %v15341_v29, %v10504_v27  ;;  %v10509_v40 = vor.u32 %v15337_v32, %v10506_v33  ;;  %v15490_v27 = vld [vmem:[#allocation12 + $0x39c] sm:$0xf0] }
  0x87   :  { %1068 = vmatpush.bf16.msra.mxu0 %v10145_v39  ;;  %1094 = vmatpush.bf16.msra.mxu2 %v10149_v44  ;;  %v10472_v39 = vld [vmem:[#allocation9 + $0x298] sm:$0xf]  ;;  %v15329_v44 = vld [vmem:[#allocation9 + $0x29c] sm:$0xf]  ;;  %v15554_v29 = vld [vmem:[#allocation12 + $0x59c] sm:$0xf0]  ;;  %v11089_v33 = vor.u32 %v15490_v27, %v11088_v25 }
  0x88   :  { %v10477_v52 = vor.u32 %v15329_v44, %v10474_v45  ;;  %v11504_v0 = vld [vmem:[#allocation12 + $0x6c0] sm:$0xf] }
  0x89   :  { %1081 = vmatpush.bf16.msra.mxu1 %v10401_v43  ;;  %1107 = vmatpush.bf16.msra.mxu3 %v10405_v47  ;;  %v10218_v43 = vld [vmem:[#allocation9 + $0xb8] sm:$0xf0]  ;;  %v10473_v47 = vor.u32 %v15333_v41, %v10472_v39  ;;  %v15482_v39 = vld [vmem:[#allocation12 + $0x35c] sm:$0xf0] }
  0x8a   :  { %1095 = vmatmul.bf16.vlgmr.msra.gmra.mxu2 %v16892_v8  ;;  %1069 = vmatmul.bf16.vlgmr.msra.gmra.mxu0 %v16892_v8  ;;  %v15546_v41 = vld [vmem:[#allocation12 + $0x55c] sm:$0xf0]  ;;  %v11057_v45 = vor.u32 %v15482_v39, %v11056_v37 }
  0x8b   :  { %1113 = vmatpush.bf16.msrb.mxu0 %v10377_v48  ;;  %1139 = vmatpush.bf16.msrb.mxu2 %v10381_v50  ;;  %v10221_v48 = vor.u32 %v15265_v42, %v10218_v43  ;;  %v15261_v50 = vld [vmem:[#allocation9 + $0x74] sm:$0xf0]  ;;  %v11568_v42 = vld [vmem:[#allocation12 + $0x740] sm:$0xf] }
  0x8c   :  { %1108 = vmatmul.bf16.vlgmr.msra.gmra.mxu3 %v16894_v9  ;;  %1082 = vmatmul.bf16.vlgmr.msra.gmra.mxu1 %v16894_v9  ;;  %v15610_v43 = vld [vmem:[#allocation12 + $0x75c] sm:$0xf0] }
  0x8d   :  { %1126 = vmatpush.bf16.msrb.mxu1 %v10633_v49  ;;  %1152 = vmatpush.bf16.msrb.mxu3 %v10637_v54  ;;  %v10184_v49 = vld [vmem:[#allocation9 + $0x58] sm:$0xf]  ;;  %v15257_v54 = vld [vmem:[#allocation9 + $0x5c] sm:$0xf]  ;;  %v10704_v5 = vld [vmem:[#allocation12 + $0x80] sm:$0xf] }
  0x8e   :  { %v10185_v58 = vor.u32 %v15261_v50, %v10184_v49  ;;  %v11024_v49 = vld [vmem:[#allocation12 + $0x300] sm:$0xf]  ;;  %v11569_v50 = vor.u32 %v15610_v43, %v11568_v42 }
  0x8f   :  { %1114 = vmatpush.bf16.msrb.mxu0 %v10345_v60  ;;  %1140 = vmatpush.bf16.msrb.mxu2 %v10349_v62  ;;  %v15253_v60 = vld [vmem:[#allocation9 + $0x34] sm:$0xf0]  ;;  %v10189_v62 = vor.u32 %v15257_v54, %v10186_v55  ;;  %v11536_v54 = vld [vmem:[#allocation12 + $0x700] sm:$0xf] }
  0x90   :  { %v15394_v6 = vld [vmem:[#allocation12 + $0x9c] sm:$0xf0] }
  0x91   :  { %1127 = vmatpush.bf16.msrb.mxu1 %v10601_v61  ;;  %1153 = vmatpush.bf16.msrb.mxu3 %v10605_v2  ;;  %v10441_v61 = vor.u32 %v15325_v53, %v10440_v51  ;;  %v10445_v2 = vor.u32 %v15321_v56, %v10442_v57  ;;  %v15474_v51 = vld [vmem:[#allocation12 + $0x31c] sm:$0xf0] }
  0x92   :  { %v15538_v53 = vld [vmem:[#allocation12 + $0x51c] sm:$0xf0]  ;;  %v11025_v56 = vor.u32 %v15474_v51, %v11024_v49  ;;  %v1183_v51 = vld [vmem:[#allocation7 + $0x10] sm:$0xff] }
  0x93   :  { %1115 = vmatpush.bf16.msrb.mxu0 %v10313_v10  ;;  %1141 = vmatpush.bf16.msrb.mxu2 %v10317_v12  ;;  %v11120_v10 = vld [vmem:[#allocation12 + $0x3c0] sm:$0xf] }
  0x94   :  { %v15498_v12 = vld [vmem:[#allocation12 + $0x3dc] sm:$0xf0] }
  0x95   :  { %1128 = vmatpush.bf16.msrb.mxu1 %v10569_v11  ;;  %1154 = vmatpush.bf16.msrb.mxu3 %v10573_v16  ;;  %v10153_v11 = vor.u32 %v15253_v60, %v10152_v59  ;;  %v10157_v16 = vor.u32 %v15249_v1, %v10154_v3  ;;  %v11121_v21 = vor.u32 %v15498_v12, %v11120_v10  ;;  %v10736_v57 = vld [vmem:[#allocation12 + $0xc0] sm:$0xf] }
  0x96   :  { %v10992_v59 = vld [vmem:[#allocation12 + $0x2c0] sm:$0xf] }
  0x97   :  { %1116 = vmatpush.bf16.msrb.mxu0 %v10281_v22  ;;  %1142 = vmatpush.bf16.msrb.mxu2 %v10285_v24  ;;  %v11377_v22 = vor.u32 %v15562_v14, %v11376_v13  ;;  %v15426_v24 = vld [vmem:[#allocation12 + $0x19c] sm:$0xf0] }
  0x98   :  { %v15594_v1 = vld [vmem:[#allocation12 + $0x6dc] sm:$0xf0] }
  0x99   :  { %1129 = vmatpush.bf16.msrb.mxu1 %v10537_v23  ;;  %1155 = vmatpush.bf16.msrb.mxu3 %v10541_v28  ;;  %v10832_v23 = vld [vmem:[#allocation12 + $0x180] sm:$0xf]  ;;  %v11505_v10 = vor.u32 %v15594_v1, %v11504_v0  ;;  %v16912_v0 = vpack.c.bf16 %v1183_v51, %v1183_v51 }
  0x9a   :  { %v11344_v28 = vld [vmem:[#allocation12 + $0x580] sm:$0xf]  ;;  %v10833_v32 = vor.u32 %v15426_v24, %v10832_v23 }
  0x9b   :  { %1117 = vmatpush.bf16.msrb.mxu0 %v10249_v34  ;;  %1143 = vmatpush.bf16.msrb.mxu2 %v10253_v36  ;;  %v11345_v34 = vor.u32 %v15554_v29, %v11344_v28  ;;  %v15418_v36 = vld [vmem:[#allocation12 + $0x15c] sm:$0xf0] }
  0x9c   :  { %v10960_v7 = vld [vmem:[#allocation12 + $0x280] sm:$0xf] }
  0x9d   :  { %1130 = vmatpush.bf16.msrb.mxu1 %v10505_v35  ;;  %1156 = vmatpush.bf16.msrb.mxu3 %v10509_v40  ;;  %v10800_v35 = vld [vmem:[#allocation12 + $0x140] sm:$0xf] }
  0x9e   :  { %v11312_v40 = vld [vmem:[#allocation12 + $0x540] sm:$0xf]  ;;  %v10801_v44 = vor.u32 %v15418_v36, %v10800_v35 }
  0x9f   :  { %1118 = vmatpush.bf16.msrb.mxu0 %v10217_v46  ;;  %1144 = vmatpush.bf16.msrb.mxu2 %v10221_v48  ;;  %v11313_v46 = vor.u32 %v15546_v41, %v11312_v40  ;;  %v15410_v48 = vld [vmem:[#allocation12 + $0x11c] sm:$0xf0] }
  0xa0   :  { %v11216_v12 = vld [vmem:[#allocation12 + $0x480] sm:$0xf] }
  0xa1   :  { %1131 = vmatpush.bf16.msrb.mxu1 %v10473_v47  ;;  %1157 = vmatpush.bf16.msrb.mxu3 %v10477_v52  ;;  %v10768_v47 = vld [vmem:[#allocation12 + $0x100] sm:$0xf] }
  0xa2   :  { %v11280_v52 = vld [vmem:[#allocation12 + $0x500] sm:$0xf]  ;;  %v10769_v55 = vor.u32 %v15410_v48, %v10768_v47 }
  0xa3   :  { %1119 = vmatpush.bf16.msrb.mxu0 %v10185_v58  ;;  %1145 = vmatpush.bf16.msrb.mxu2 %v10189_v62  ;;  %v15402_v58 = vld [vmem:[#allocation12 + $0xdc] sm:$0xf0] }
  0xa4   :  { %v11248_v62 = vld [vmem:[#allocation12 + $0x4c0] sm:$0xf] }
  0xa5   :  { %1132 = vmatpush.bf16.msrb.mxu1 %v10441_v61  ;;  %1158 = vmatpush.bf16.msrb.mxu3 %v10445_v2  ;;  %v15466_v61 = vld [vmem:[#allocation12 + $0x2dc] sm:$0xf0]  ;;  %v10737_v2 = vor.u32 %v15402_v58, %v10736_v57  ;;  %v11249_v4 = vor.u32 %v15530_v63, %v11248_v62 }
  0xa6   :  { %v10993_v3 = vor.u32 %v15466_v61, %v10992_v59  ;;  %v15522_v13 = vld [vmem:[#allocation12 + $0x49c] sm:$0xf0]  ;;  %v1182_v59 = vld [vmem:[#allocation7 + $0x8] sm:$0xff] }
  0xa7   :  { %1120 = vmatpush.bf16.msrb.mxu0 %v10153_v11  ;;  %1146 = vmatpush.bf16.msrb.mxu2 %v10157_v16  ;;  %v15458_v11 = vld [vmem:[#allocation12 + $0x29c] sm:$0xf0]  ;;  %v10705_v16 = vor.u32 %v15394_v6, %v10704_v5  ;;  %v11217_v18 = vor.u32 %v15522_v13, %v11216_v12  ;;  %v16918_v6 = vpack.c.bf16 %v1182_v59, %v1182_v59 }
  0xa8   :  { %v11472_v14 = vld [vmem:[#allocation12 + $0x680] sm:$0xf]  ;;  %v10961_v17 = vor.u32 %v15458_v11, %v10960_v7 }
  0xa9   :  { %1133 = vmatpush.bf16.msrb.mxu1 %v10409_v15  ;;  %1159 = vmatpush.bf16.msrb.mxu3 %v10413_v19  ;;  %v15586_v15 = vld [vmem:[#allocation12 + $0x69c] sm:$0xf0] }
  0xaa   :  { %1147 = vmatmul.bf16.vlgmr.msrb.gmra.mxu2 %v16892_v8  ;;  %1121 = vmatmul.bf16.vlgmr.msrb.gmra.mxu0 %v16892_v8  ;;  %v15602_v8 = vld [vmem:[#allocation12 + $0x71c] sm:$0xf0] }
  0xab   :  { %5059 = vmatpush.bf16.msra.mxu0 %v10865_v20  ;;  %5085 = vmatpush.bf16.msra.mxu2 %v11377_v22  ;;  %v11537_v60 = vor.u32 %v15602_v8, %v11536_v54  ;;  %v10672_v19 = vld [vmem:[#allocation12 + $0x40] sm:$0xf]  ;;  %v11473_v22 = vor.u32 %v15586_v15, %v11472_v14  ;;  %v1181_v8 = vld [vmem:[#allocation7] sm:$0xff] }
  0xac   :  { %1160 = vmatmul.bf16.vlgmr.msrb.gmra.mxu3 %v16894_v9  ;;  %1134 = vmatmul.bf16.vlgmr.msrb.gmra.mxu1 %v16894_v9  ;;  %v11281_v9 = vor.u32 %v15538_v53, %v11280_v52  ;;  %v15386_v20 = vld [vmem:[#allocation12 + $0x5c] sm:$0xf0] }
  0xad   :  { %5072 = vmatpush.bf16.msra.mxu1 %v11121_v21  ;;  %5098 = vmatpush.bf16.msra.mxu3 %v11633_v26  ;;  %v10928_v21 = vld [vmem:[#allocation12 + $0x240] sm:$0xf]  ;;  %v10673_v28 = vor.u32 %v15386_v20, %v10672_v19 }
  0xae   :  { %v15450_v23 = vld [vmem:[#allocation12 + $0x25c] sm:$0xf0] }
  0xaf   :  { %5060 = vmatpush.bf16.msra.mxu0 %v10833_v32  ;;  %5086 = vmatpush.bf16.msra.mxu2 %v11345_v34  ;;  %v11184_v24 = vld [vmem:[#allocation12 + $0x440] sm:$0xf]  ;;  %v10929_v31 = vor.u32 %v15450_v23, %v10928_v21 }
  0xb0   :  { %v15514_v25 = vld [vmem:[#allocation12 + $0x45c] sm:$0xf0] }
  0xb1   :  { %5073 = vmatpush.bf16.msra.mxu1 %v11089_v33  ;;  %5099 = vmatpush.bf16.msra.mxu3 %v11601_v38  ;;  %v11440_v26 = vld [vmem:[#allocation12 + $0x640] sm:$0xf]  ;;  %v11185_v32 = vor.u32 %v15514_v25, %v11184_v24 }
  0xb2   :  { %v15578_v27 = vld [vmem:[#allocation12 + $0x65c] sm:$0xf0] }
  0xb3   :  { %5061 = vmatpush.bf16.msra.mxu0 %v10801_v44  ;;  %5087 = vmatpush.bf16.msra.mxu2 %v11313_v46  ;;  %v10640_v29 = vld [vmem:[#allocation12] sm:$0xf]  ;;  %v11441_v36 = vor.u32 %v15578_v27, %v11440_v26 }
  0xb4   :  { %v10896_v33 = vld [vmem:[#allocation12 + $0x200] sm:$0xf]  ;;  %v10641_v43 = vor.u32 %v15378_v30, %v10640_v29  ;;  %v16924_v30 = vld [vmem:[#allocation10] sm:$0xff] }
  0xb5   :  { %5074 = vmatpush.bf16.msra.mxu1 %v11057_v45  ;;  %5100 = vmatpush.bf16.msra.mxu3 %v11569_v50  ;;  %v15442_v34 = vld [vmem:[#allocation12 + $0x21c] sm:$0xf0]  ;;  %v302_v59 = vperm.slane %v16924_v30, 1 }
  0xb6   :  { %v11152_v35 = vld [vmem:[#allocation12 + $0x400] sm:$0xf]  ;;  %v10897_v47 = vor.u32 %v15442_v34, %v10896_v33 }
  0xb7   :  { %5062 = vmatpush.bf16.msra.mxu0 %v10769_v55  ;;  %5088 = vmatpush.bf16.msra.mxu2 %v11281_v9  ;;  %v15506_v37 = vld [vmem:[#allocation12 + $0x41c] sm:$0xf0] }
  0xb8   :  { %v11408_v38 = vld [vmem:[#allocation12 + $0x600] sm:$0xf]  ;;  %v11153_v48 = vor.u32 %v15506_v37, %v11152_v35 }
  0xb9   :  { %5075 = vmatpush.bf16.msra.mxu1 %v11025_v56  ;;  %5101 = vmatpush.bf16.msra.mxu3 %v11537_v60  ;;  %v15570_v39 = vld [vmem:[#allocation12 + $0x61c] sm:$0xf0] }
  0xba   :  { %v11888_v40 = vld [vmem:[#allocation12 + $0x9c0] sm:$0xf]  ;;  %v11409_v52 = vor.u32 %v15570_v39, %v11408_v38  ;;  %v301_v39 = vperm.slane %v16924_v30, 0 }
  0xbb   :  { %5063 = vmatpush.bf16.msra.mxu0 %v10737_v2  ;;  %5089 = vmatpush.bf16.msra.mxu2 %v11249_v4  ;;  %v15690_v41 = vld [vmem:[#allocation12 + $0x9dc] sm:$0xf0] }
  0xbc   :  { %v12144_v42 = vld [vmem:[#allocation12 + $0xbc0] sm:$0xf]  ;;  %v11889_v53 = vor.u32 %v15690_v41, %v11888_v40 }
  0xbd   :  { %5076 = vmatpush.bf16.msra.mxu1 %v10993_v3  ;;  %5102 = vmatpush.bf16.msra.mxu3 %v11505_v10  ;;  %v15754_v44 = vld [vmem:[#allocation12 + $0xbdc] sm:$0xf0]  ;;  %v16914_v3 = vpack.c.bf16 %v1181_v8, %v1181_v8 }
  0xbe   :  { %v12400_v45 = vld [vmem:[#allocation12 + $0xdc0] sm:$0xf]  ;;  %v12145_v56 = vor.u32 %v15754_v44, %v12144_v42 }
  0xbf   :  { %5064 = vmatpush.bf16.msra.mxu0 %v10705_v16  ;;  %5090 = vmatpush.bf16.msra.mxu2 %v11217_v18  ;;  %v15818_v46 = vld [vmem:[#allocation12 + $0xddc] sm:$0xf0] }
  0xc0   :  { %v12656_v49 = vld [vmem:[#allocation12 + $0xfc0] sm:$0xf]  ;;  %v12401_v9 = vor.u32 %v15818_v46, %v12400_v45 }
  0xc1   :  { %5077 = vmatpush.bf16.msra.mxu1 %v10961_v17  ;;  %5103 = vmatpush.bf16.msra.mxu3 %v11473_v22  ;;  %v15882_v50 = vld [vmem:[#allocation12 + $0xfdc] sm:$0xf0] }
  0xc2   :  { %v11856_v54 = vld [vmem:[#allocation12 + $0x980] sm:$0xf]  ;;  %v12657_v60 = vor.u32 %v15882_v50, %v12656_v49 }
  0xc3   :  { %5065 = vmatpush.bf16.msra.mxu0 %v10673_v28  ;;  %5091 = vmatpush.bf16.msra.mxu2 %v11185_v32  ;;  %v1184_v55 = vld [vmem:[#allocation7 + $0x18] sm:$0xff] }
  0xc4   :  { %v15682_v57 = vld [vmem:[#allocation12 + $0x99c] sm:$0xf0]  ;;  %v16916_v4 = vpack.c.bf16 %v1184_v55, %v1184_v55 }
  0xc5   :  { %5078 = vmatpush.bf16.msra.mxu1 %v10929_v31  ;;  %5104 = vmatpush.bf16.msra.mxu3 %v11441_v36  ;;  %v12112_v58 = vld [vmem:[#allocation12 + $0xb80] sm:$0xf]  ;;  %v11857_v5 = vor.u32 %v15682_v57, %v11856_v54 }
  0xc6   :  { %v15746_v61 = vld [vmem:[#allocation12 + $0xb9c] sm:$0xf0] }
  0xc7   :  { %5066 = vmatpush.bf16.msra.mxu0 %v10641_v43  ;;  %v12368_v62 = vld [vmem:[#allocation12 + $0xd80] sm:$0xf]  ;;  %5092 = vmatpush.bf16.msra.mxu2 %v11153_v48  ;;  %v12113_v7 = vor.u32 %v15746_v61, %v12112_v58 }
  0xc8   :  { %v15810_v63 = vld [vmem:[#allocation12 + $0xd9c] sm:$0xf0] }
  0xc9   :  { %5079 = vmatpush.bf16.msra.mxu1 %v10897_v47  ;;  %v12624_v1 = vld [vmem:[#allocation12 + $0xf80] sm:$0xf]  ;;  %5105 = vmatpush.bf16.msra.mxu3 %v11409_v52  ;;  %v12369_v10 = vor.u32 %v15810_v63, %v12368_v62  ;;  %v966_v47 = vpop.f32.mrf.mxu0  ;;  %v979_v58 = vpop.f32.mrf.mxu1 }
  0xca   :  { %v15874_v2 = vld [vmem:[#allocation12 + $0xf9c] sm:$0xf0]  ;;  %5093 = vmatmul.bf16.vlgmr.msra.gmra.mxu2 %v16912_v0  ;;  %5067 = vmatmul.bf16.vlgmr.msra.gmra.mxu0 %v16914_v3 }
  0xcb   :  { %5111 = vmatpush.bf16.msrb.mxu0 %v11889_v53  ;;  %5137 = vmatpush.bf16.msrb.mxu2 %v12401_v9  ;;  %v11824_v11 = vld [vmem:[#allocation12 + $0x940] sm:$0xf]  ;;  %v12625_v14 = vor.u32 %v15874_v2, %v12624_v1  ;;  %v967_v53 = vadd.f32 %v966_v47, %v301_v39  ;;  %v1187_v47 = vld [vmem:[#allocation7 + $0x30] sm:$0xff] }
  0xcc   :  { %v15674_v12 = vld [vmem:[#allocation12 + $0x95c] sm:$0xf0]  ;;  %5106 = vmatmul.bf16.vlgmr.msra.gmra.mxu3 %v16916_v4  ;;  %5080 = vmatmul.bf16.vlgmr.msra.gmra.mxu1 %v16918_v6 }
  0xcd   :  { %5124 = vmatpush.bf16.msrb.mxu1 %v12145_v56  ;;  %v12080_v13 = vld [vmem:[#allocation12 + $0xb40] sm:$0xf]  ;;  %5150 = vmatpush.bf16.msrb.mxu3 %v12657_v60  ;;  %v11825_v20 = vor.u32 %v15674_v12, %v11824_v11  ;;  %v980_v61 = vadd.f32 %v979_v58, %v967_v53 }
  0xce   :  { %v15738_v15 = vld [vmem:[#allocation12 + $0xb5c] sm:$0xf0] }
  0xcf   :  { %v12336_v16 = vld [vmem:[#allocation12 + $0xd40] sm:$0xf]  ;;  %5112 = vmatpush.bf16.msrb.mxu0 %v11857_v5  ;;  %5138 = vmatpush.bf16.msrb.mxu2 %v12369_v10  ;;  %v12081_v22 = vor.u32 %v15738_v15, %v12080_v13  ;;  %v992_v13 = vpop.f32.mrf.mxu2 }
  0xd0   :  { %v15802_v17 = vld [vmem:[#allocation12 + $0xd5c] sm:$0xf0] }
  0xd1   :  { %v12592_v18 = vld [vmem:[#allocation12 + $0xf40] sm:$0xf]  ;;  %5125 = vmatpush.bf16.msrb.mxu1 %v12113_v7  ;;  %v12337_v23 = vor.u32 %v15802_v17, %v12336_v16  ;;  %5151 = vmatpush.bf16.msrb.mxu3 %v12625_v14  ;;  %v993_v17 = vadd.f32 %v992_v13, %v302_v59 }
  0xd2   :  { %v15866_v19 = vld [vmem:[#allocation12 + $0xf5c] sm:$0xf0] }
  0xd3   :  { %v11792_v21 = vld [vmem:[#allocation12 + $0x900] sm:$0xf]  ;;  %v12593_v27 = vor.u32 %v15866_v19, %v12592_v18  ;;  %5113 = vmatpush.bf16.msrb.mxu0 %v11825_v20  ;;  %5139 = vmatpush.bf16.msrb.mxu2 %v12337_v23  ;;  %v1005_v18 = vpop.f32.mrf.mxu3  ;;  %v968_v23 = vpop.f32.mrf.mxu0 }
  0xd4   :  { %v15666_v24 = vld [vmem:[#allocation12 + $0x91c] sm:$0xf0] }
  0xd5   :  { %v12048_v25 = vld [vmem:[#allocation12 + $0xb00] sm:$0xf]  ;;  %v11793_v33 = vor.u32 %v15666_v24, %v11792_v21  ;;  %5126 = vmatpush.bf16.msrb.mxu1 %v12081_v22  ;;  %5152 = vmatpush.bf16.msrb.mxu3 %v12593_v27 }
  0xd6   :  { %v15730_v26 = vld [vmem:[#allocation12 + $0xb1c] sm:$0xf0] }
  0xd7   :  { %v12304_v28 = vld [vmem:[#allocation12 + $0xd00] sm:$0xf]  ;;  %v12049_v35 = vor.u32 %v15730_v26, %v12048_v25  ;;  %5114 = vmatpush.bf16.msrb.mxu0 %v11793_v33 }
  0xd8   :  { %v15794_v29 = vld [vmem:[#allocation12 + $0xd1c] sm:$0xf0] }
  0xd9   :  { %v12560_v31 = vld [vmem:[#allocation12 + $0xf00] sm:$0xf]  ;;  %v12305_v36 = vor.u32 %v15794_v29, %v12304_v28  ;;  %5127 = vmatpush.bf16.msrb.mxu1 %v12049_v35  ;;  %v1165_v28 = vmax.f32 %v980_v61, 0.0  ;;  %v1006_v29 = vadd.f32 %v1005_v18, %v993_v17  ;;  %v15422_v61 = vld [vmem:[#allocation12 + $0x184] sm:$0xf] }
  0xda   :  { %v15858_v32 = vld [vmem:[#allocation12 + $0xf1c] sm:$0xf0] }
  0xdb   :  { %v11760_v34 = vld [vmem:[#allocation12 + $0x8c0] sm:$0xf]  ;;  %v12561_v40 = vor.u32 %v15858_v32, %v12560_v31  ;;  %5140 = vmatpush.bf16.msrb.mxu2 %v12305_v36  ;;  %v1007_v58 = vpop.f32.mrf.mxu3 }
  0xdc   :  { %v15658_v37 = vld [vmem:[#allocation12 + $0x8dc] sm:$0xf0] }
  0xdd   :  { %v12016_v38 = vld [vmem:[#allocation12 + $0xac0] sm:$0xf]  ;;  %v11761_v46 = vor.u32 %v15658_v37, %v11760_v34  ;;  %5153 = vmatpush.bf16.msrb.mxu3 %v12561_v40  ;;  %v1166_v37 = vmax.f32 %v1006_v29, 0.0  ;;  %v303_v29 = vperm.slane %v16924_v30, 2 }
  0xde   :  { %v15722_v41 = vld [vmem:[#allocation12 + $0xadc] sm:$0xf0] }
  0xdf   :  { %v12272_v42 = vld [vmem:[#allocation12 + $0xcc0] sm:$0xf]  ;;  %v12017_v48 = vor.u32 %v15722_v41, %v12016_v38  ;;  %5115 = vmatpush.bf16.msrb.mxu0 %v11761_v46  ;;  %v981_v38 = vpop.f32.mrf.mxu1  ;;  %v15430_v41 = vld [vmem:[#allocation12 + $0x1c4] sm:$0xf] }
  0xe0   :  { %v15786_v43 = vld [vmem:[#allocation12 + $0xcdc] sm:$0xf0]  ;;  %v11122_v46 = vld [vmem:[#allocation12 + $0x3e0] sm:$0xf0] }
  0xe1   :  { %v12528_v44 = vld [vmem:[#allocation12 + $0xec0] sm:$0xf]  ;;  %v12273_v49 = vor.u32 %v15786_v43, %v12272_v42  ;;  %5128 = vmatpush.bf16.msrb.mxu1 %v12017_v48  ;;  %v10866_v42 = vld [vmem:[#allocation12 + $0x1e0] sm:$0xf0]  ;;  %v16928_v48 = vpack.c.bf16 %v1166_v37, %v1165_v28 }
  0xe2   :  { %v15850_v45 = vld [vmem:[#allocation12 + $0xedc] sm:$0xf0] }
  0xe3   :  { %v11728_v50 = vld [vmem:[#allocation12 + $0x880] sm:$0xf]  ;;  %v12529_v54 = vor.u32 %v15850_v45, %v12528_v44  ;;  %5141 = vmatpush.bf16.msrb.mxu2 %v12273_v49  ;;  %v15494_v45 = vld [vmem:[#allocation12 + $0x3c4] sm:$0xf] }
  0xe4   :  { %v15650_v51 = vld [vmem:[#allocation12 + $0x89c] sm:$0xf0]  ;;  %v11125_v59 = vor.u32 %v15494_v45, %v11122_v46 }
  0xe5   :  { %v11984_v52 = vld [vmem:[#allocation12 + $0xa80] sm:$0xf]  ;;  %v11729_v60 = vor.u32 %v15650_v51, %v11728_v50  ;;  %5154 = vmatpush.bf16.msrb.mxu3 %v12529_v54  ;;  %v994_v54 = vpop.f32.mrf.mxu2 }
  0xe6   :  { %v15714_v8 = vld [vmem:[#allocation12 + $0xa9c] sm:$0xf0] }
  0xe7   :  { %v12240_v55 = vld [vmem:[#allocation12 + $0xc80] sm:$0xf]  ;;  %v11985_v62 = vor.u32 %v15714_v8, %v11984_v52  ;;  %5116 = vmatpush.bf16.msrb.mxu0 %v11729_v60  ;;  %v1185_v52 = vld [vmem:[#allocation7 + $0x20] sm:$0xff] }
  0xe8   :  { %v15778_v56 = vld [vmem:[#allocation12 + $0xc9c] sm:$0xf0] }
  0xe9   :  { %v12496_v9 = vld [vmem:[#allocation12 + $0xe80] sm:$0xf]  ;;  %v12241_v63 = vor.u32 %v15778_v56, %v12240_v55  ;;  %5129 = vmatpush.bf16.msrb.mxu1 %v11985_v62  ;;  %v10869_v55 = vor.u32 %v15430_v41, %v10866_v42  ;;  %v10834_v62 = vld [vmem:[#allocation12 + $0x1a0] sm:$0xf0]  ;;  %v1031_v46 = vpop.f32.mrf.mxu1 }
  0xea   :  { %v15842_v57 = vld [vmem:[#allocation12 + $0xe9c] sm:$0xf0]  ;;  %v10837_v13 = vor.u32 %v15422_v61, %v10834_v62  ;;  %v15390_v62 = vld [vmem:[#allocation12 + $0x84] sm:$0xf] }
  0xeb   :  { %v11696_v1 = vld [vmem:[#allocation12 + $0x840] sm:$0xf]  ;;  %v12497_v7 = vor.u32 %v15842_v57, %v12496_v9  ;;  %5142 = vmatpush.bf16.msrb.mxu2 %v12241_v63  ;;  %v1186_v57 = vld [vmem:[#allocation7 + $0x28] sm:$0xff]  ;;  %v16930_v63 = vpack.c.bf16 %v1187_v47, %v1187_v47 }
  0xec   :  { %v15642_v2 = vld [vmem:[#allocation12 + $0x85c] sm:$0xf0] }
  0xed   :  { %v11952_v5 = vld [vmem:[#allocation12 + $0xa40] sm:$0xf]  ;;  %v11697_v19 = vor.u32 %v15642_v2, %v11696_v1  ;;  %5155 = vmatpush.bf16.msrb.mxu3 %v12497_v7  ;;  %v15486_v1 = vld [vmem:[#allocation12 + $0x384] sm:$0xf] }
  0xee   :  { %v15706_v10 = vld [vmem:[#allocation12 + $0xa5c] sm:$0xf0]  ;;  %v11090_v2 = vld [vmem:[#allocation12 + $0x3a0] sm:$0xf0] }
  0xef   :  { %v12208_v11 = vld [vmem:[#allocation12 + $0xc40] sm:$0xf]  ;;  %v11953_v24 = vor.u32 %v15706_v10, %v11952_v5  ;;  %5117 = vmatpush.bf16.msrb.mxu0 %v11697_v19  ;;  %v16932_v5 = vpack.c.bf16 %v1185_v52, %v1185_v52  ;;  %v11093_v17 = vor.u32 %v15486_v1, %v11090_v2  ;;  %v15414_v19 = vld [vmem:[#allocation12 + $0x144] sm:$0xf] }
  0xf0   :  { %v15770_v12 = vld [vmem:[#allocation12 + $0xc5c] sm:$0xf0]  ;;  %v15462_v52 = vld [vmem:[#allocation12 + $0x2c4] sm:$0xf] }
  0xf1   :  { %v12464_v14 = vld [vmem:[#allocation12 + $0xe40] sm:$0xf]  ;;  %v12209_v25 = vor.u32 %v15770_v12, %v12208_v11  ;;  %5130 = vmatpush.bf16.msrb.mxu1 %v11953_v24  ;;  %v16936_v11 = vpack.c.bf16 %v1186_v57, %v1186_v57  ;;  %v10706_v1 = vld [vmem:[#allocation12 + $0xa0] sm:$0xf0] }
  0xf2   :  { %v15834_v15 = vld [vmem:[#allocation12 + $0xe5c] sm:$0xf0] }
  0xf3   :  { %v11664_v16 = vld [vmem:[#allocation12 + $0x800] sm:$0xf]  ;;  %v12465_v31 = vor.u32 %v15834_v15, %v12464_v14  ;;  %5143 = vmatpush.bf16.msrb.mxu2 %v12209_v25 }
  0xf4   :  { %v15634_v20 = vld [vmem:[#allocation12 + $0x81c] sm:$0xf0] }
  0xf5   :  { %v11920_v21 = vld [vmem:[#allocation12 + $0xa00] sm:$0xf]  ;;  %v11665_v39 = vor.u32 %v15634_v20, %v11664_v16  ;;  %5156 = vmatpush.bf16.msrb.mxu3 %v12465_v31  ;;  %v10802_v20 = vld [vmem:[#allocation12 + $0x160] sm:$0xf0] }
  0xf6   :  { %v15698_v22 = vld [vmem:[#allocation12 + $0xa1c] sm:$0xf0] }
  0xf7   :  { %v12176_v26 = vld [vmem:[#allocation12 + $0xc00] sm:$0xf]  ;;  %v11921_v43 = vor.u32 %v15698_v22, %v11920_v21  ;;  %5118 = vmatpush.bf16.msrb.mxu0 %v11665_v39  ;;  %v15478_v21 = vld [vmem:[#allocation12 + $0x344] sm:$0xf]  ;;  %v1018_v39 = vpop.f32.mrf.mxu0 }
  0xf8   :  { %v15762_v27 = vld [vmem:[#allocation12 + $0xc1c] sm:$0xf0]  ;;  %v11058_v22 = vld [vmem:[#allocation12 + $0x360] sm:$0xf0]  ;;  %v1019_v45 = vadd.f32 %v1018_v39, %v303_v29 }
  0xf9   :  { %v12432_v32 = vld [vmem:[#allocation12 + $0xe00] sm:$0xf]  ;;  %v12177_v44 = vor.u32 %v15762_v27, %v12176_v26  ;;  %5131 = vmatpush.bf16.msrb.mxu1 %v11921_v43  ;;  %v10805_v26 = vor.u32 %v15414_v19, %v10802_v20  ;;  %v11061_v31 = vor.u32 %v15478_v21, %v11058_v22  ;;  %v10709_v20 = vor.u32 %v15390_v62, %v10706_v1  ;;  %v15446_v29 = vld [vmem:[#allocation12 + $0x244] sm:$0xf] }
  0xfa   :  { %v15826_v33 = vld [vmem:[#allocation12 + $0xe1c] sm:$0xf0]  ;;  %5119 = vmatmul.bf16.vlgmr.msrb.gmra.mxu0 %v16932_v5  ;;  %v1032_v54 = vadd.f32 %v1031_v46, %v1019_v45  ;;  %v10898_v45 = vld [vmem:[#allocation12 + $0x220] sm:$0xf0] }
  0xfb   :  { %v12912_v34 = vld [vmem:[#allocation12 + $0x11c0] sm:$0xf]  ;;  %v12433_v49 = vor.u32 %v15826_v33, %v12432_v32  ;;  %5144 = vmatpush.bf16.msrb.mxu2 %v12177_v44  ;;  %v15406_v33 = vld [vmem:[#allocation12 + $0x104] sm:$0xf] }
  0xfc   :  { %v15946_v35 = vld [vmem:[#allocation12 + $0x11dc] sm:$0xf0]  ;;  %5132 = vmatmul.bf16.vlgmr.msrb.gmra.mxu1 %v16936_v11  ;;  %v15550_v1 = vld [vmem:[#allocation12 + $0x584] sm:$0xf] }
  0xfd   :  { %v13168_v36 = vld [vmem:[#allocation12 + $0x13c0] sm:$0xf]  ;;  %v12913_v50 = vor.u32 %v15946_v35, %v12912_v34  ;;  %5157 = vmatpush.bf16.msrb.mxu3 %v12433_v49  ;;  %v10770_v34 = vld [vmem:[#allocation12 + $0x120] sm:$0xf0] }
  0xfe   :  { %v16010_v40 = vld [vmem:[#allocation12 + $0x13dc] sm:$0xf0]  ;;  %5145 = vmatmul.bf16.vlgmr.msrb.gmra.mxu2 %v16930_v63  ;;  %v15470_v35 = vld [vmem:[#allocation12 + $0x304] sm:$0xf]  ;;  %v10773_v41 = vor.u32 %v15406_v33, %v10770_v34 }
  0xff   :  { %v12880_v51 = vld [vmem:[#allocation12 + $0x1180] sm:$0xf]  ;;  %v13169_v8 = vor.u32 %v16010_v40, %v13168_v36  ;;  %5163 = vmatpush.bf16.msra.mxu0 %v12913_v50  ;;  %5189 = vmatpush.bf16.msra.mxu2 %v10869_v55  ;;  %v11026_v36 = vld [vmem:[#allocation12 + $0x320] sm:$0xf0] }
 0x100   :  { %v1188_v53 = vld [vmem:[#allocation7 + $0x38] sm:$0xff]  ;;  %v11029_v47 = vor.u32 %v15470_v35, %v11026_v36 }
 0x101   :  { %v15938_v56 = vld [vmem:[#allocation12 + $0x119c] sm:$0xf0]  ;;  %v16934_v7 = vpack.c.bf16 %v1188_v53, %v1188_v53  ;;  %5176 = vmatpush.bf16.msra.mxu1 %v13169_v8  ;;  %5202 = vmatpush.bf16.msra.mxu3 %v11125_v59  ;;  %v15398_v49 = vld [vmem:[#allocation12 + $0xc4] sm:$0xf]  ;;  %v1044_v59 = vpop.f32.mrf.mxu2 }
 0x102   :  { %v13136_v9 = vld [vmem:[#allocation12 + $0x1380] sm:$0xf]  ;;  %v12881_v10 = vor.u32 %v15938_v56, %v12880_v51  ;;  %v10738_v50 = vld [vmem:[#allocation12 + $0xe0] sm:$0xf0]  ;;  %v304_v51 = vperm.slane %v16924_v30, 3 }
 0x103   :  { %v16002_v60 = vld [vmem:[#allocation12 + $0x139c] sm:$0xf0]  ;;  %5158 = vmatmul.bf16.vlgmr.msrb.gmra.mxu3 %v16934_v7  ;;  %5190 = vmatpush.bf16.msra.mxu2 %v10837_v13  ;;  %v10994_v53 = vld [vmem:[#allocation12 + $0x2e0] sm:$0xf0]  ;;  %v10741_v56 = vor.u32 %v15398_v49, %v10738_v50 }
 0x104   :  { %v13137_v12 = vor.u32 %v16002_v60, %v13136_v9  ;;  %v12848_v14 = vld [vmem:[#allocation12 + $0x1140] sm:$0xf]  ;;  %5164 = vmatpush.bf16.msra.mxu0 %v12881_v10  ;;  %v10997_v60 = vor.u32 %v15462_v52, %v10994_v53  ;;  %v1045_v2 = vadd.f32 %v1044_v59, %v304_v51  ;;  %v1057_v10 = vpop.f32.mrf.mxu3  ;;  %v10962_v13 = vld [vmem:[#allocation12 + $0x2a0] sm:$0xf0] }
 0x105   :  { %v15930_v15 = vld [vmem:[#allocation12 + $0x115c] sm:$0xf0]  ;;  %5203 = vmatpush.bf16.msra.mxu3 %v11093_v17  ;;  %v11378_v49 = vld [vmem:[#allocation12 + $0x5e0] sm:$0xf0] }
 0x106   :  { %v13104_v16 = vld [vmem:[#allocation12 + $0x1340] sm:$0xf]  ;;  %v12849_v23 = vor.u32 %v15930_v15, %v12848_v14  ;;  %5177 = vmatpush.bf16.msra.mxu1 %v13137_v12  ;;  %v15454_v12 = vld [vmem:[#allocation12 + $0x284] sm:$0xf]  ;;  %v1058_v17 = vadd.f32 %v1057_v10, %v1045_v2 }
 0x107   :  { %v15994_v18 = vld [vmem:[#allocation12 + $0x135c] sm:$0xf0]  ;;  %5191 = vmatpush.bf16.msra.mxu2 %v10805_v26  ;;  %v15382_v26 = vld [vmem:[#allocation12 + $0x44] sm:$0xf] }
 0x108   :  { %v12816_v24 = vld [vmem:[#allocation12 + $0x1100] sm:$0xf]  ;;  %v13105_v25 = vor.u32 %v15994_v18, %v13104_v16  ;;  %5165 = vmatpush.bf16.msra.mxu0 %v12849_v23  ;;  %v1167_v16 = vmax.f32 %v1032_v54, 0.0  ;;  %v1020_v18 = vpop.f32.mrf.mxu0  ;;  %v15622_v50 = vld [vmem:[#allocation12 + $0x7c4] sm:$0xf] }
 0x109   :  { %v15922_v27 = vld [vmem:[#allocation12 + $0x111c] sm:$0xf0]  ;;  %5204 = vmatpush.bf16.msra.mxu3 %v11061_v31  ;;  %v10930_v31 = vld [vmem:[#allocation12 + $0x260] sm:$0xf0] }
 0x10a   :  { %v13072_v28 = vld [vmem:[#allocation12 + $0x1300] sm:$0xf]  ;;  %v12817_v37 = vor.u32 %v15922_v27, %v12816_v24  ;;  %5178 = vmatpush.bf16.msra.mxu1 %v13105_v25  ;;  %v1033_v24 = vpop.f32.mrf.mxu1  ;;  %v10965_v25 = vor.u32 %v15454_v12, %v10962_v13  ;;  %v10674_v27 = vld [vmem:[#allocation12 + $0x60] sm:$0xf0] }
 0x10b   :  { %v15986_v32 = vld [vmem:[#allocation12 + $0x131c] sm:$0xf0]  ;;  %5192 = vmatpush.bf16.msra.mxu2 %v10773_v41  ;;  %v1046_v41 = vpop.f32.mrf.mxu2  ;;  %v11634_v52 = vld [vmem:[#allocation12 + $0x7e0] sm:$0xf0] }
 0x10c   :  { %v12784_v38 = vld [vmem:[#allocation12 + $0x10c0] sm:$0xf]  ;;  %v13073_v40 = vor.u32 %v15986_v32, %v13072_v28  ;;  %5166 = vmatpush.bf16.msra.mxu0 %v12817_v37  ;;  %v1168_v28 = vmax.f32 %v1058_v17, 0.0  ;;  %v10677_v37 = vor.u32 %v15382_v26, %v10674_v27  ;;  %v1059_v46 = vpop.f32.mrf.mxu3  ;;  %v15686_v53 = vld [vmem:[#allocation12 + $0x9c4] sm:$0xf] }
 0x10d   :  { %v15914_v42 = vld [vmem:[#allocation12 + $0x10dc] sm:$0xf0]  ;;  %5205 = vmatpush.bf16.msra.mxu3 %v11029_v47  ;;  %v15558_v47 = vld [vmem:[#allocation12 + $0x5c4] sm:$0xf] }
 0x10e   :  { %v13040_v43 = vld [vmem:[#allocation12 + $0x12c0] sm:$0xf]  ;;  %v12785_v8 = vor.u32 %v15914_v42, %v12784_v38  ;;  %5179 = vmatpush.bf16.msra.mxu1 %v13073_v40  ;;  %v16944_v35 = vpack.c.bf16 %v1168_v28, %v1167_v16  ;;  %v15374_v40 = vld [vmem:[#allocation12 + $0x4] sm:$0xf]  ;;  %v10933_v42 = vor.u32 %v15446_v29, %v10930_v31  ;;  %v11381_v59 = vor.u32 %v15558_v47, %v11378_v49 }
 0x10f   :  { %v15978_v44 = vld [vmem:[#allocation12 + $0x12dc] sm:$0xf0]  ;;  %5193 = vmatpush.bf16.msra.mxu2 %v10741_v56  ;;  %v11890_v54 = vld [vmem:[#allocation12 + $0x9e0] sm:$0xf0] }
 0x110   :  { %v13041_v55 = vor.u32 %v15978_v44, %v13040_v43  ;;  %v12752_v9 = vld [vmem:[#allocation12 + $0x1080] sm:$0xf]  ;;  %5167 = vmatpush.bf16.msra.mxu0 %v12785_v8  ;;  %v10642_v43 = vld [vmem:[#allocation12 + $0x20] sm:$0xf0]  ;;  %v11893_v62 = vor.u32 %v15686_v53, %v11890_v54 }
 0x111   :  { %v15906_v57 = vld [vmem:[#allocation12 + $0x109c] sm:$0xf0]  ;;  %5206 = vmatpush.bf16.msra.mxu3 %v10997_v60  ;;  %v15438_v44 = vld [vmem:[#allocation12 + $0x204] sm:$0xf]  ;;  %v1190_v60 = vld [vmem:[#allocation7 + $0x48] sm:$0xff] }
 0x112   :  { %v13008_v58 = vld [vmem:[#allocation12 + $0x1280] sm:$0xf]  ;;  %v12753_v14 = vor.u32 %v15906_v57, %v12752_v9  ;;  %5180 = vmatpush.bf16.msra.mxu1 %v13041_v55  ;;  %v10645_v55 = vor.u32 %v15374_v40, %v10642_v43  ;;  %v15750_v56 = vld [vmem:[#allocation12 + $0xbc4] sm:$0xf]  ;;  %v1189_v57 = vld [vmem:[#allocation7 + $0x40] sm:$0xff]  ;;  %v16948_v17 = vpack.c.bf16 %v1190_v60, %v1190_v60  ;;  %v305_v40 = vperm.slane %v16924_v30, 4 }
 0x113   :  { %v15970_v61 = vld [vmem:[#allocation12 + $0x129c] sm:$0xf0]  ;;  %5194 = vmatpush.bf16.msra.mxu2 %v10709_v20  ;;  %v12146_v9 = vld [vmem:[#allocation12 + $0xbe0] sm:$0xf0]  ;;  %v16946_v13 = vpack.c.bf16 %v1189_v57, %v1189_v57 }
 0x114   :  { %v12720_v15 = vld [vmem:[#allocation12 + $0x1040] sm:$0xf]  ;;  %v13009_v19 = vor.u32 %v15970_v61, %v13008_v58  ;;  %5168 = vmatpush.bf16.msra.mxu0 %v12753_v14  ;;  %v10901_v58 = vor.u32 %v15438_v44, %v10898_v45  ;;  %v11637_v61 = vor.u32 %v15622_v50, %v11634_v52  ;;  %v11346_v2 = vld [vmem:[#allocation12 + $0x5a0] sm:$0xf0]  ;;  %v12149_v12 = vor.u32 %v15750_v56, %v12146_v9  ;;  %v1070_v50 = vpop.f32.mrf.mxu0  ;;  %v1083_v56 = vpop.f32.mrf.mxu1 }
 0x115   :  { %v15898_v21 = vld [vmem:[#allocation12 + $0x105c] sm:$0xf0]  ;;  %5207 = vmatpush.bf16.msra.mxu3 %v10965_v25  ;;  %v15614_v10 = vld [vmem:[#allocation12 + $0x784] sm:$0xf]  ;;  %v11349_v20 = vor.u32 %v15550_v1, %v11346_v2 }
 0x116   :  { %v12976_v22 = vld [vmem:[#allocation12 + $0x1240] sm:$0xf]  ;;  %v12721_v32 = vor.u32 %v15898_v21, %v12720_v15  ;;  %5181 = vmatpush.bf16.msra.mxu1 %v13009_v19  ;;  %v11602_v14 = vld [vmem:[#allocation12 + $0x7a0] sm:$0xf0] }
 0x117   :  { %v15962_v23 = vld [vmem:[#allocation12 + $0x125c] sm:$0xf0]  ;;  %5195 = vmatpush.bf16.msra.mxu2 %v10677_v37  ;;  %v15678_v15 = vld [vmem:[#allocation12 + $0x984] sm:$0xf]  ;;  %v11605_v21 = vor.u32 %v15614_v10, %v11602_v14 }
 0x118   :  { %v12688_v33 = vld [vmem:[#allocation12 + $0x1000] sm:$0xf]  ;;  %v12977_v36 = vor.u32 %v15962_v23, %v12976_v22  ;;  %5169 = vmatpush.bf16.msra.mxu0 %v12721_v32  ;;  %v11858_v16 = vld [vmem:[#allocation12 + $0x9a0] sm:$0xf0] }
 0x119   :  { %v15890_v34 = vld [vmem:[#allocation12 + $0x101c] sm:$0xf0]  ;;  %5208 = vmatpush.bf16.msra.mxu3 %v10933_v42  ;;  %v15742_v18 = vld [vmem:[#allocation12 + $0xb84] sm:$0xf]  ;;  %v11861_v22 = vor.u32 %v15678_v15, %v11858_v16  ;;  %v1096_v16 = vpop.f32.mrf.mxu2 }
 0x11a   :  { %v12944_v38 = vld [vmem:[#allocation12 + $0x1200] sm:$0xf]  ;;  %v12689_v51 = vor.u32 %v15890_v34, %v12688_v33  ;;  %5182 = vmatpush.bf16.msra.mxu1 %v12977_v36  ;;  %v12114_v19 = vld [vmem:[#allocation12 + $0xba0] sm:$0xf0] }
 0x11b   :  { %v15954_v39 = vld [vmem:[#allocation12 + $0x121c] sm:$0xf0]  ;;  %5196 = vmatpush.bf16.msra.mxu2 %v10645_v55  ;;  %v15542_v23 = vld [vmem:[#allocation12 + $0x544] sm:$0xf]  ;;  %v12117_v26 = vor.u32 %v15742_v18, %v12114_v19  ;;  %v1071_v55 = vadd.f32 %v1070_v50, %v305_v40 }
 0x11c   :  { %v12945_v8 = vor.u32 %v15954_v39, %v12944_v38  ;;  %5170 = vmatpush.bf16.msra.mxu0 %v12689_v51  ;;  %v11314_v24 = vld [vmem:[#allocation12 + $0x560] sm:$0xf0] }
 0x11d   :  { %5209 = vmatpush.bf16.msra.mxu3 %v10901_v58  ;;  %v15606_v25 = vld [vmem:[#allocation12 + $0x744] sm:$0xf]  ;;  %v11317_v33 = vor.u32 %v15542_v23, %v11314_v24  ;;  %v1109_v23 = vpop.f32.mrf.mxu3 }
 0x11e   :  { %5183 = vmatpush.bf16.msra.mxu1 %v12945_v8  ;;  %v11570_v27 = vld [vmem:[#allocation12 + $0x760] sm:$0xf0]  ;;  %5197 = vmatmul.bf16.vlgmr.msra.gmra.mxu2 %v16914_v3 }
 0x11f   :  { %5241 = vmatpush.bf16.msrb.mxu2 %v11893_v62  ;;  %5171 = vmatmul.bf16.vlgmr.msra.gmra.mxu0 %v16946_v13  ;;  %v15670_v28 = vld [vmem:[#allocation12 + $0x944] sm:$0xf]  ;;  %v11573_v36 = vor.u32 %v15606_v25, %v11570_v27  ;;  %v1084_v62 = vadd.f32 %v1083_v56, %v1071_v55 }
 0x120   :  { %5215 = vmatpush.bf16.msrb.mxu0 %v11381_v59  ;;  %v11826_v29 = vld [vmem:[#allocation12 + $0x960] sm:$0xf0]  ;;  %5210 = vmatmul.bf16.vlgmr.msra.gmra.mxu3 %v16918_v6  ;;  %v306_v59 = vperm.slane %v16924_v30, 5 }
 0x121   :  { %5254 = vmatpush.bf16.msrb.mxu3 %v12149_v12  ;;  %5184 = vmatmul.bf16.vlgmr.msra.gmra.mxu1 %v16948_v17  ;;  %v15734_v31 = vld [vmem:[#allocation12 + $0xb44] sm:$0xf]  ;;  %v11829_v37 = vor.u32 %v15670_v28, %v11826_v29  ;;  %v1169_v28 = vmax.f32 %v1084_v62, 0.0 }
 0x122   :  { %5228 = vmatpush.bf16.msrb.mxu1 %v11637_v61  ;;  %v12082_v32 = vld [vmem:[#allocation12 + $0xb60] sm:$0xf0] }
 0x123   :  { %v15534_v34 = vld [vmem:[#allocation12 + $0x504] sm:$0xf]  ;;  %5242 = vmatpush.bf16.msrb.mxu2 %v11861_v22  ;;  %v12085_v41 = vor.u32 %v15734_v31, %v12082_v32  ;;  %v1097_v22 = vadd.f32 %v1096_v16, %v306_v59  ;;  %v1072_v31 = vpop.f32.mrf.mxu0 }
 0x124   :  { %5216 = vmatpush.bf16.msrb.mxu0 %v11349_v20  ;;  %v11282_v38 = vld [vmem:[#allocation12 + $0x520] sm:$0xf0] }
 0x125   :  { %v15598_v39 = vld [vmem:[#allocation12 + $0x704] sm:$0xf]  ;;  %5255 = vmatpush.bf16.msrb.mxu3 %v12117_v26  ;;  %v11285_v47 = vor.u32 %v15534_v34, %v11282_v38  ;;  %v1110_v29 = vadd.f32 %v1109_v23, %v1097_v22  ;;  %v1085_v38 = vpop.f32.mrf.mxu1 }
 0x126   :  { %5229 = vmatpush.bf16.msrb.mxu1 %v11605_v21  ;;  %v11538_v42 = vld [vmem:[#allocation12 + $0x720] sm:$0xf0] }
 0x127   :  { %v15662_v43 = vld [vmem:[#allocation12 + $0x904] sm:$0xf]  ;;  %5243 = vmatpush.bf16.msrb.mxu2 %v11829_v37  ;;  %v11541_v51 = vor.u32 %v15598_v39, %v11538_v42  ;;  %v1170_v42 = vmax.f32 %v1110_v29, 0.0 }
 0x128   :  { %v11794_v44 = vld [vmem:[#allocation12 + $0x920] sm:$0xf0]  ;;  %5217 = vmatpush.bf16.msrb.mxu0 %v11317_v33 }
 0x129   :  { %v15726_v45 = vld [vmem:[#allocation12 + $0xb04] sm:$0xf]  ;;  %v11797_v52 = vor.u32 %v15662_v43, %v11794_v44  ;;  %5256 = vmatpush.bf16.msrb.mxu3 %v12085_v41 }
 0x12a   :  { %v12050_v46 = vld [vmem:[#allocation12 + $0xb20] sm:$0xf0]  ;;  %5230 = vmatpush.bf16.msrb.mxu1 %v11573_v36 }
 0x12b   :  { %v15526_v49 = vld [vmem:[#allocation12 + $0x4c4] sm:$0xf]  ;;  %v12053_v9 = vor.u32 %v15726_v45, %v12050_v46  ;;  %5244 = vmatpush.bf16.msrb.mxu2 %v11797_v52 }
 0x12c   :  { %v11250_v53 = vld [vmem:[#allocation12 + $0x4e0] sm:$0xf0]  ;;  %5218 = vmatpush.bf16.msrb.mxu0 %v11285_v47 }
 0x12d   :  { %v15590_v54 = vld [vmem:[#allocation12 + $0x6c4] sm:$0xf]  ;;  %v11253_v1 = vor.u32 %v15526_v49, %v11250_v53  ;;  %5257 = vmatpush.bf16.msrb.mxu3 %v12053_v9  ;;  %v16956_v49 = vpack.c.bf16 %v1170_v42, %v1169_v28 }
 0x12e   :  { %v11506_v8 = vld [vmem:[#allocation12 + $0x6e0] sm:$0xf0]  ;;  %5231 = vmatpush.bf16.msrb.mxu1 %v11541_v51 }
 0x12f   :  { %v15654_v57 = vld [vmem:[#allocation12 + $0x8c4] sm:$0xf]  ;;  %v11509_v2 = vor.u32 %v15590_v54, %v11506_v8  ;;  %v1098_v8 = vpop.f32.mrf.mxu2 }
 0x130   :  { %v11762_v58 = vld [vmem:[#allocation12 + $0x8e0] sm:$0xf0]  ;;  %5219 = vmatpush.bf16.msrb.mxu0 %v11253_v1 }
 0x131   :  { %v15718_v60 = vld [vmem:[#allocation12 + $0xac4] sm:$0xf]  ;;  %v11765_v10 = vor.u32 %v15654_v57, %v11762_v58  ;;  %v1111_v58 = vpop.f32.mrf.mxu3 }
 0x132   :  { %v12018_v61 = vld [vmem:[#allocation12 + $0xae0] sm:$0xf0]  ;;  %5232 = vmatpush.bf16.msrb.mxu1 %v11509_v2 }
 0x133   :  { %v15518_v12 = vld [vmem:[#allocation12 + $0x484] sm:$0xf]  ;;  %v12021_v18 = vor.u32 %v15718_v60, %v12018_v61  ;;  %5245 = vmatpush.bf16.msrb.mxu2 %v11765_v10 }
 0x134   :  { %v11218_v14 = vld [vmem:[#allocation12 + $0x4a0] sm:$0xf0] }
 0x135   :  { %v15582_v15 = vld [vmem:[#allocation12 + $0x684] sm:$0xf]  ;;  %v11221_v26 = vor.u32 %v15518_v12, %v11218_v14  ;;  %5258 = vmatpush.bf16.msrb.mxu3 %v12021_v18 }
 0x136   :  { %v11474_v19 = vld [vmem:[#allocation12 + $0x6a0] sm:$0xf0] }
 0x137   :  { %v15646_v20 = vld [vmem:[#allocation12 + $0x884] sm:$0xf]  ;;  %v11477_v32 = vor.u32 %v15582_v15, %v11474_v19  ;;  %5220 = vmatpush.bf16.msrb.mxu0 %v11221_v26 }
 0x138   :  { %v11730_v21 = vld [vmem:[#allocation12 + $0x8a0] sm:$0xf0] }
 0x139   :  { %v15710_v24 = vld [vmem:[#allocation12 + $0xa84] sm:$0xf]  ;;  %v11733_v33 = vor.u32 %v15646_v20, %v11730_v21  ;;  %5233 = vmatpush.bf16.msrb.mxu1 %v11477_v32 }
 0x13a   :  { %v11986_v25 = vld [vmem:[#allocation12 + $0xaa0] sm:$0xf0] }
 0x13b   :  { %v15510_v27 = vld [vmem:[#allocation12 + $0x444] sm:$0xf]  ;;  %v11989_v39 = vor.u32 %v15710_v24, %v11986_v25  ;;  %5246 = vmatpush.bf16.msrb.mxu2 %v11733_v33 }
 0x13c   :  { %v11186_v34 = vld [vmem:[#allocation12 + $0x460] sm:$0xf0] }
 0x13d   :  { %v15574_v36 = vld [vmem:[#allocation12 + $0x644] sm:$0xf]  ;;  %v11189_v45 = vor.u32 %v15510_v27, %v11186_v34  ;;  %5259 = vmatpush.bf16.msrb.mxu3 %v11989_v39 }
 0x13e   :  { %v11442_v37 = vld [vmem:[#allocation12 + $0x660] sm:$0xf0] }
 0x13f   :  { %v15638_v40 = vld [vmem:[#allocation12 + $0x844] sm:$0xf]  ;;  %v11445_v50 = vor.u32 %v15574_v36, %v11442_v37  ;;  %5221 = vmatpush.bf16.msrb.mxu0 %v11189_v45 }
 0x140   :  { %v11698_v41 = vld [vmem:[#allocation12 + $0x860] sm:$0xf0] }
 0x141   :  { %v15702_v43 = vld [vmem:[#allocation12 + $0xa44] sm:$0xf]  ;;  %v11701_v51 = vor.u32 %v15638_v40, %v11698_v41  ;;  %5234 = vmatpush.bf16.msrb.mxu1 %v11445_v50 }
 0x142   :  { %v11954_v44 = vld [vmem:[#allocation12 + $0xa60] sm:$0xf0] }
 0x143   :  { %v15502_v46 = vld [vmem:[#allocation12 + $0x404] sm:$0xf]  ;;  %v11957_v55 = vor.u32 %v15702_v43, %v11954_v44  ;;  %5247 = vmatpush.bf16.msrb.mxu2 %v11701_v51 }
 0x144   :  { %v11154_v47 = vld [vmem:[#allocation12 + $0x420] sm:$0xf0] }
 0x145   :  { %v15566_v52 = vld [vmem:[#allocation12 + $0x604] sm:$0xf]  ;;  %v11157_v62 = vor.u32 %v15502_v46, %v11154_v47  ;;  %5260 = vmatpush.bf16.msrb.mxu3 %v11957_v55 }
 0x146   :  { %v11410_v53 = vld [vmem:[#allocation12 + $0x620] sm:$0xf0] }
 0x147   :  { %v15630_v54 = vld [vmem:[#allocation12 + $0x804] sm:$0xf]  ;;  %v11413_v12 = vor.u32 %v15566_v52, %v11410_v53  ;;  %5222 = vmatpush.bf16.msrb.mxu0 %v11157_v62  ;;  %v307_v53 = vperm.slane %v16924_v30, 6 }
 0x148   :  { %v11666_v56 = vld [vmem:[#allocation12 + $0x820] sm:$0xf0] }
 0x149   :  { %v15694_v9 = vld [vmem:[#allocation12 + $0xa04] sm:$0xf]  ;;  %v11669_v14 = vor.u32 %v15630_v54, %v11666_v56  ;;  %5235 = vmatpush.bf16.msrb.mxu1 %v11413_v12 }
 0x14a   :  { %v11922_v57 = vld [vmem:[#allocation12 + $0xa20] sm:$0xf0]  ;;  %5223 = vmatmul.bf16.vlgmr.msrb.gmra.mxu0 %v16912_v0 }
 0x14b   :  { %v15814_v59 = vld [vmem:[#allocation12 + $0xdc4] sm:$0xf]  ;;  %v11925_v18 = vor.u32 %v15694_v9, %v11922_v57  ;;  %5248 = vmatpush.bf16.msrb.mxu2 %v11669_v14  ;;  %v1135_v14 = vpop.f32.mrf.mxu1 }
 0x14c   :  { %v12402_v60 = vld [vmem:[#allocation12 + $0xde0] sm:$0xf0]  ;;  %5236 = vmatmul.bf16.vlgmr.msrb.gmra.mxu1 %v16916_v4 }
 0x14d   :  { %v15878_v61 = vld [vmem:[#allocation12 + $0xfc4] sm:$0xf]  ;;  %v12405_v19 = vor.u32 %v15814_v59, %v12402_v60  ;;  %5261 = vmatpush.bf16.msrb.mxu3 %v11925_v18  ;;  %v1122_v60 = vpop.f32.mrf.mxu0 }
 0x14e   :  { %v12658_v1 = vld [vmem:[#allocation12 + $0xfe0] sm:$0xf0]  ;;  %5249 = vmatmul.bf16.vlgmr.msrb.gmra.mxu2 %v16932_v5  ;;  %v1123_v12 = vadd.f32 %v1122_v60, %v307_v53 }
 0x14f   :  { %v15942_v2 = vld [vmem:[#allocation12 + $0x11c4] sm:$0xf]  ;;  %v12661_v20 = vor.u32 %v15878_v61, %v12658_v1  ;;  %5267 = vmatpush.bf16.msra.mxu0 %v12405_v19  ;;  %v308_v19 = vperm.slane %v16924_v30, 7  ;;  %v1161_v30 = vpop.f32.mrf.mxu3 }
 0x150   :  { %v12914_v10 = vld [vmem:[#allocation12 + $0x11e0] sm:$0xf0]  ;;  %5262 = vmatmul.bf16.vlgmr.msrb.gmra.mxu3 %v16936_v11 }
 0x151   :  { %v16006_v15 = vld [vmem:[#allocation12 + $0x13c4] sm:$0xf]  ;;  %v12917_v21 = vor.u32 %v15942_v2, %v12914_v10  ;;  %5280 = vmatpush.bf16.msra.mxu1 %v12661_v20 }
 0x152   :  { %v13170_v16 = vld [vmem:[#allocation12 + $0x13e0] sm:$0xf0] }
 0x153   :  { %v15806_v22 = vld [vmem:[#allocation12 + $0xd84] sm:$0xf]  ;;  %v13173_v25 = vor.u32 %v16006_v15, %v13170_v16  ;;  %5293 = vmatpush.bf16.msra.mxu2 %v12917_v21 }
 0x154   :  { %v12370_v23 = vld [vmem:[#allocation12 + $0xda0] sm:$0xf0] }
 0x155   :  { %v15870_v24 = vld [vmem:[#allocation12 + $0xf84] sm:$0xf]  ;;  %v12373_v32 = vor.u32 %v15806_v22, %v12370_v23  ;;  %5306 = vmatpush.bf16.msra.mxu3 %v13173_v25  ;;  %v1136_v22 = vadd.f32 %v1135_v14, %v1123_v12 }
 0x156   :  { %v12626_v26 = vld [vmem:[#allocation12 + $0xfa0] sm:$0xf0] }
 0x157   :  { %v15934_v27 = vld [vmem:[#allocation12 + $0x1184] sm:$0xf]  ;;  %v12629_v33 = vor.u32 %v15870_v24, %v12626_v26  ;;  %5268 = vmatpush.bf16.msra.mxu0 %v12373_v32 }
 0x158   :  { %v12882_v28 = vld [vmem:[#allocation12 + $0x11a0] sm:$0xf0] }
 0x159   :  { %v15998_v29 = vld [vmem:[#allocation12 + $0x1384] sm:$0xf]  ;;  %v12885_v34 = vor.u32 %v15934_v27, %v12882_v28  ;;  %5281 = vmatpush.bf16.msra.mxu1 %v12629_v33 }
 0x15a   :  { %v13138_v31 = vld [vmem:[#allocation12 + $0x13a0] sm:$0xf0] }
 0x15b   :  { %v15798_v36 = vld [vmem:[#allocation12 + $0xd44] sm:$0xf]  ;;  %v13141_v39 = vor.u32 %v15998_v29, %v13138_v31  ;;  %5294 = vmatpush.bf16.msra.mxu2 %v12885_v34  ;;  %v1148_v29 = vpop.f32.mrf.mxu2 }
 0x15c   :  { %v12338_v37 = vld [vmem:[#allocation12 + $0xd60] sm:$0xf0] }
 0x15d   :  { %v15862_v38 = vld [vmem:[#allocation12 + $0xf44] sm:$0xf]  ;;  %v12341_v45 = vor.u32 %v15798_v36, %v12338_v37  ;;  %5307 = vmatpush.bf16.msra.mxu3 %v13141_v39  ;;  %v1149_v36 = vadd.f32 %v1148_v29, %v308_v19  ;;  %v10872_v19 = vld [vmem:[#allocation12 + $0x1c8] sm:$0xf] }
 0x15e   :  { %v12594_v40 = vld [vmem:[#allocation12 + $0xf60] sm:$0xf0]  ;;  %v15627_v29 = vld [vmem:[#allocation12 + $0x7e4] sm:$0xf0] }
 0x15f   :  { %v15926_v41 = vld [vmem:[#allocation12 + $0x1144] sm:$0xf]  ;;  %v12597_v47 = vor.u32 %v15862_v38, %v12594_v40  ;;  %5269 = vmatpush.bf16.msra.mxu0 %v12341_v45 }
 0x160   :  { %v12850_v42 = vld [vmem:[#allocation12 + $0x1160] sm:$0xf0] }
 0x161   :  { %v15990_v43 = vld [vmem:[#allocation12 + $0x1344] sm:$0xf]  ;;  %v12853_v50 = vor.u32 %v15926_v41, %v12850_v42  ;;  %5282 = vmatpush.bf16.msra.mxu1 %v12597_v47  ;;  %v1171_v41 = vmax.f32 %v1136_v22, 0.0  ;;  %v1162_v42 = vadd.f32 %v1161_v30, %v1149_v36  ;;  %v10840_v36 = vld [vmem:[#allocation12 + $0x188] sm:$0xf] }
 0x162   :  { %v13106_v44 = vld [vmem:[#allocation12 + $0x1360] sm:$0xf0]  ;;  %v15427_v30 = vld [vmem:[#allocation12 + $0x1a4] sm:$0xf0] }
 0x163   :  { %v15790_v46 = vld [vmem:[#allocation12 + $0xd04] sm:$0xf]  ;;  %v13109_v54 = vor.u32 %v15990_v43, %v13106_v44  ;;  %5295 = vmatpush.bf16.msra.mxu2 %v12853_v50  ;;  %v1124_v43 = vpop.f32.mrf.mxu0 }
 0x164   :  { %v12306_v51 = vld [vmem:[#allocation12 + $0xd20] sm:$0xf0]  ;;  %v15619_v43 = vld [vmem:[#allocation12 + $0x7a4] sm:$0xf0] }
 0x165   :  { %v15854_v52 = vld [vmem:[#allocation12 + $0xf04] sm:$0xf]  ;;  %v12309_v58 = vor.u32 %v15790_v46, %v12306_v51  ;;  %5308 = vmatpush.bf16.msra.mxu3 %v13109_v54  ;;  %v1137_v51 = vpop.f32.mrf.mxu1 }
 0x166   :  { %v12562_v8 = vld [vmem:[#allocation12 + $0xf20] sm:$0xf0]  ;;  %v11064_v51 = vld [vmem:[#allocation12 + $0x348] sm:$0xf] }
 0x167   :  { %v15918_v55 = vld [vmem:[#allocation12 + $0x1104] sm:$0xf]  ;;  %v12565_v61 = vor.u32 %v15854_v52, %v12562_v8  ;;  %5270 = vmatpush.bf16.msra.mxu0 %v12309_v58  ;;  %v1172_v8 = vmax.f32 %v1162_v42, 0.0  ;;  %v11608_v42 = vld [vmem:[#allocation12 + $0x788] sm:$0xf] }
 0x168   :  { %v12818_v56 = vld [vmem:[#allocation12 + $0x1120] sm:$0xf0] }
 0x169   :  { %v15982_v9 = vld [vmem:[#allocation12 + $0x1304] sm:$0xf]  ;;  %v12821_v62 = vor.u32 %v15918_v55, %v12818_v56  ;;  %5283 = vmatpush.bf16.msra.mxu1 %v12565_v61 }
 0x16a   :  { %v13074_v57 = vld [vmem:[#allocation12 + $0x1320] sm:$0xf0] }
 0x16b   :  { %v15782_v59 = vld [vmem:[#allocation12 + $0xcc4] sm:$0xf]  ;;  %v13077_v15 = vor.u32 %v15982_v9, %v13074_v57  ;;  %5296 = vmatpush.bf16.msra.mxu2 %v12821_v62 }
 0x16c   :  { %v12274_v1 = vld [vmem:[#allocation12 + $0xce0] sm:$0xf0] }
 0x16d   :  { %v15846_v2 = vld [vmem:[#allocation12 + $0xec4] sm:$0xf]  ;;  %v12277_v23 = vor.u32 %v15782_v59, %v12274_v1  ;;  %5309 = vmatpush.bf16.msra.mxu3 %v13077_v15  ;;  %v16964_v59 = vpack.c.bf16 %v1172_v8, %v1171_v41  ;;  %v15555_v41 = vld [vmem:[#allocation12 + $0x5a4] sm:$0xf0] }
 0x16e   :  { %v12530_v10 = vld [vmem:[#allocation12 + $0xee0] sm:$0xf0]  ;;  %v15547_v8 = vld [vmem:[#allocation12 + $0x564] sm:$0xf0] }
 0x16f   :  { %v15910_v16 = vld [vmem:[#allocation12 + $0x10c4] sm:$0xf]  ;;  %v12533_v24 = vor.u32 %v15846_v2, %v12530_v10  ;;  %5271 = vmatpush.bf16.msra.mxu0 %v12277_v23  ;;  %v1150_v10 = vpop.f32.mrf.mxu2  ;;  %v15499_v23 = vld [vmem:[#allocation12 + $0x3e4] sm:$0xf0] }
 0x170   :  { %v12786_v18 = vld [vmem:[#allocation12 + $0x10e0] sm:$0xf0] }
 0x171   :  { %v15974_v20 = vld [vmem:[#allocation12 + $0x12c4] sm:$0xf]  ;;  %v12789_v25 = vor.u32 %v15910_v16, %v12786_v18  ;;  %5284 = vmatpush.bf16.msra.mxu1 %v12533_v24  ;;  %v1163_v18 = vpop.f32.mrf.mxu3  ;;  %v11384_v24 = vld [vmem:[#allocation12 + $0x5c8] sm:$0xf] }
 0x172   :  { %v13042_v21 = vld [vmem:[#allocation12 + $0x12e0] sm:$0xf0]  ;;  %v15603_v18 = vld [vmem:[#allocation12 + $0x724] sm:$0xf0] }
 0x173   :  { %v15774_v26 = vld [vmem:[#allocation12 + $0xc84] sm:$0xf]  ;;  %v13045_v31 = vor.u32 %v15974_v20, %v13042_v21  ;;  %5297 = vmatpush.bf16.msra.mxu2 %v12789_v25  ;;  %v15435_v20 = vld [vmem:[#allocation12 + $0x1e4] sm:$0xf0] }
 0x174   :  { %v12242_v27 = vld [vmem:[#allocation12 + $0xca0] sm:$0xf0]  ;;  %v11128_v21 = vld [vmem:[#allocation12 + $0x3c8] sm:$0xf] }
 0x175   :  { %v15838_v28 = vld [vmem:[#allocation12 + $0xe84] sm:$0xf]  ;;  %v12245_v39 = vor.u32 %v15774_v26, %v12242_v27  ;;  %5310 = vmatpush.bf16.msra.mxu3 %v13045_v31  ;;  %v15563_v25 = vld [vmem:[#allocation12 + $0x5e4] sm:$0xf0] }
 0x176   :  { %v12498_v32 = vld [vmem:[#allocation12 + $0xea0] sm:$0xf0] }
 0x177   :  { %v15902_v33 = vld [vmem:[#allocation12 + $0x1084] sm:$0xf]  ;;  %v12501_v44 = vor.u32 %v15838_v28, %v12498_v32  ;;  %5272 = vmatpush.bf16.msra.mxu0 %v12245_v39  ;;  %v11640_v28 = vld [vmem:[#allocation12 + $0x7c8] sm:$0xf]  ;;  %v10873_v32 = vor.u32 %v15435_v20, %v10872_v19  ;;  %v5068_v20 = vpop.f32.mrf.mxu0 }
 0x178   :  { %v12754_v34 = vld [vmem:[#allocation12 + $0x10a0] sm:$0xf0]  ;;  %v15491_v39 = vld [vmem:[#allocation12 + $0x3a4] sm:$0xf0] }
 0x179   :  { %v15966_v37 = vld [vmem:[#allocation12 + $0x1284] sm:$0xf]  ;;  %v12757_v45 = vor.u32 %v15902_v33, %v12754_v34  ;;  %5285 = vmatpush.bf16.msra.mxu1 %v12501_v44  ;;  %v11129_v33 = vor.u32 %v15499_v23, %v11128_v21  ;;  %v11385_v34 = vor.u32 %v15563_v25, %v11384_v24  ;;  %v10841_v44 = vor.u32 %v15427_v30, %v10840_v36  ;;  %v10744_v23 = vld [vmem:[#allocation12 + $0xc8] sm:$0xf] }
 0x17a   :  { %v13010_v38 = vld [vmem:[#allocation12 + $0x12a0] sm:$0xf0]  ;;  %v15403_v24 = vld [vmem:[#allocation12 + $0xe4] sm:$0xf0] }
 0x17b   :  { %v15766_v40 = vld [vmem:[#allocation12 + $0xc44] sm:$0xf]  ;;  %v13013_v52 = vor.u32 %v15966_v37, %v13010_v38  ;;  %5298 = vmatpush.bf16.msra.mxu2 %v12757_v45  ;;  %v11096_v37 = vld [vmem:[#allocation12 + $0x388] sm:$0xf]  ;;  %v11641_v38 = vor.u32 %v15627_v29, %v11640_v28  ;;  %v10745_v30 = vor.u32 %v15403_v24, %v10744_v23 }
 0x17c   :  { %v12210_v46 = vld [vmem:[#allocation12 + $0xc60] sm:$0xf0]  ;;  %v10808_v45 = vld [vmem:[#allocation12 + $0x148] sm:$0xf] }
 0x17d   :  { %v15830_v47 = vld [vmem:[#allocation12 + $0xe44] sm:$0xf]  ;;  %v12213_v9 = vor.u32 %v15766_v40, %v12210_v46  ;;  %5311 = vmatpush.bf16.msra.mxu3 %v13013_v52  ;;  %v11352_v40 = vld [vmem:[#allocation12 + $0x588] sm:$0xf]  ;;  %v11097_v46 = vor.u32 %v15491_v39, %v11096_v37 }
 0x17e   :  { %v12466_v50 = vld [vmem:[#allocation12 + $0xe60] sm:$0xf0]  ;;  %v15483_v52 = vld [vmem:[#allocation12 + $0x364] sm:$0xf0] }
 0x17f   :  { %v15894_v53 = vld [vmem:[#allocation12 + $0x1044] sm:$0xf]  ;;  %v12469_v60 = vor.u32 %v15830_v47, %v12466_v50  ;;  %5273 = vmatpush.bf16.msra.mxu0 %v12213_v9  ;;  %v11353_v47 = vor.u32 %v15555_v41, %v11352_v40  ;;  %v15419_v50 = vld [vmem:[#allocation12 + $0x164] sm:$0xf0] }
 0x180   :  { %v12722_v54 = vld [vmem:[#allocation12 + $0x1060] sm:$0xf0]  ;;  %v15611_v9 = vld [vmem:[#allocation12 + $0x764] sm:$0xf0] }
 0x181   :  { %v15958_v55 = vld [vmem:[#allocation12 + $0x1244] sm:$0xf]  ;;  %v12725_v61 = vor.u32 %v15894_v53, %v12722_v54  ;;  %5286 = vmatpush.bf16.msra.mxu1 %v12469_v60  ;;  %v11609_v53 = vor.u32 %v15619_v43, %v11608_v42  ;;  %v11320_v54 = vld [vmem:[#allocation12 + $0x548] sm:$0xf]  ;;  %v11065_v60 = vor.u32 %v15483_v52, %v11064_v51  ;;  %v5094_v42 = vpop.f32.mrf.mxu2 }
 0x182   :  { %v12978_v56 = vld [vmem:[#allocation12 + $0x1260] sm:$0xf0]  ;;  %v11000_v25 = vld [vmem:[#allocation12 + $0x2c8] sm:$0xf] }
 0x183   :  { %v15758_v57 = vld [vmem:[#allocation12 + $0xc04] sm:$0xf]  ;;  %v12981_v12 = vor.u32 %v15958_v55, %v12978_v56  ;;  %5299 = vmatpush.bf16.msra.mxu2 %v12725_v61  ;;  %v11576_v56 = vld [vmem:[#allocation12 + $0x748] sm:$0xf]  ;;  %v11321_v61 = vor.u32 %v15547_v8, %v11320_v54  ;;  %v5070_v8 = vpop.f32.mrf.mxu0 }
 0x184   :  { %v12178_v58 = vld [vmem:[#allocation12 + $0xc20] sm:$0xf0]  ;;  %v11577_v10 = vor.u32 %v15611_v9, %v11576_v56  ;;  %v15467_v29 = vld [vmem:[#allocation12 + $0x2e4] sm:$0xf0] }
 0x185   :  { %v15822_v62 = vld [vmem:[#allocation12 + $0xe04] sm:$0xf]  ;;  %v12181_v22 = vor.u32 %v15758_v57, %v12178_v58  ;;  %5312 = vmatpush.bf16.msra.mxu3 %v12981_v12  ;;  %v10809_v57 = vor.u32 %v15419_v50, %v10808_v45  ;;  %v10776_v58 = vld [vmem:[#allocation12 + $0x108] sm:$0xf]  ;;  %v11001_v37 = vor.u32 %v15467_v29, %v11000_v25  ;;  %v5107_v50 = vpop.f32.mrf.mxu3 }
 0x186   :  { %v12434_v1 = vld [vmem:[#allocation12 + $0xe20] sm:$0xf0]  ;;  %v15475_v12 = vld [vmem:[#allocation12 + $0x324] sm:$0xf0] }
 0x187   :  { %v15886_v2 = vld [vmem:[#allocation12 + $0x1004] sm:$0xf]  ;;  %v12437_v26 = vor.u32 %v15822_v62, %v12434_v1  ;;  %5274 = vmatpush.bf16.msra.mxu0 %v12181_v22  ;;  %v15411_v62 = vld [vmem:[#allocation12 + $0x124] sm:$0xf0] }
 0x188   :  { %v12690_v14 = vld [vmem:[#allocation12 + $0x1020] sm:$0xf0]  ;;  %v11032_v1 = vld [vmem:[#allocation12 + $0x308] sm:$0xf]  ;;  %v10777_v19 = vor.u32 %v15411_v62, %v10776_v58 }
 0x189   :  { %v15950_v15 = vld [vmem:[#allocation12 + $0x1204] sm:$0xf]  ;;  %v12693_v27 = vor.u32 %v15886_v2, %v12690_v14  ;;  %5287 = vmatpush.bf16.msra.mxu1 %v12437_v26  ;;  %v11288_v14 = vld [vmem:[#allocation12 + $0x508] sm:$0xf]  ;;  %v11033_v21 = vor.u32 %v15475_v12, %v11032_v1  ;;  %v5096_v24 = vpop.f32.mrf.mxu2 }
 0x18a   :  { %v12946_v16 = vld [vmem:[#allocation12 + $0x1220] sm:$0xf0]  ;;  %5275 = vmatmul.bf16.vlgmr.msra.gmra.mxu0 %v16930_v63  ;;  %v10712_v39 = vld [vmem:[#allocation12 + $0x88] sm:$0xf] }
 0x18b   :  { %v12949_v31 = vor.u32 %v15950_v15, %v12946_v16  ;;  %5300 = vmatpush.bf16.msra.mxu2 %v12693_v27  ;;  %5319 = vmatpush.bf16.msrb.mxu0 %v10873_v32  ;;  %v16967_v55 = vld [vmem:[#allocation13] sm:$0xff]  ;;  %v15539_v15 = vld [vmem:[#allocation12 + $0x524] sm:$0xf0]  ;;  %v5081_v27 = vpop.f32.mrf.mxu1 }
 0x18c   :  { %5288 = vmatmul.bf16.vlgmr.msra.gmra.mxu1 %v16934_v7  ;;  %v1843_v2 = vperm.slane %v16967_v55, 0  ;;  %v11544_v16 = vld [vmem:[#allocation12 + $0x708] sm:$0xf]  ;;  %v11289_v22 = vor.u32 %v15539_v15, %v11288_v14 }
 0x18d   :  { %5313 = vmatpush.bf16.msra.mxu3 %v12949_v31  ;;  %5332 = vmatpush.bf16.msrb.mxu1 %v11129_v33  ;;  %v11545_v28 = vor.u32 %v15603_v18, %v11544_v16  ;;  %v11256_v31 = vld [vmem:[#allocation12 + $0x4c8] sm:$0xf]  ;;  %v5109_v29 = vpop.f32.mrf.mxu3 }
 0x18e   :  { %5301 = vmatmul.bf16.vlgmr.msra.gmra.mxu2 %v16946_v13  ;;  %v5069_v26 = vadd.f32 %v5068_v20, %v1843_v2  ;;  %v15531_v32 = vld [vmem:[#allocation12 + $0x4e4] sm:$0xf0] }
 0x18f   :  { %5345 = vmatpush.bf16.msrb.mxu2 %v11385_v34  ;;  %5320 = vmatpush.bf16.msrb.mxu0 %v10841_v44  ;;  %v11512_v33 = vld [vmem:[#allocation12 + $0x6c8] sm:$0xf] }
 0x190   :  { %5314 = vmatmul.bf16.vlgmr.msra.gmra.mxu3 %v16948_v17  ;;  %v15595_v34 = vld [vmem:[#allocation12 + $0x6e4] sm:$0xf0]  ;;  %v5082_v36 = vadd.f32 %v5081_v27, %v5069_v26 }
 0x191   :  { %5358 = vmatpush.bf16.msrb.mxu3 %v11641_v38  ;;  %5333 = vmatpush.bf16.msrb.mxu1 %v11097_v46  ;;  %v11257_v38 = vor.u32 %v15531_v32, %v11256_v31  ;;  %v15395_v40 = vld [vmem:[#allocation12 + $0xa4] sm:$0xf0]  ;;  %v11513_v43 = vor.u32 %v15595_v34, %v11512_v33 }
 0x192   :  { %v10968_v41 = vld [vmem:[#allocation12 + $0x288] sm:$0xf] }
 0x193   :  { %5346 = vmatpush.bf16.msrb.mxu2 %v11353_v47  ;;  %5321 = vmatpush.bf16.msrb.mxu0 %v10809_v57  ;;  %v15459_v44 = vld [vmem:[#allocation12 + $0x2a4] sm:$0xf0]  ;;  %v5095_v47 = vadd.f32 %v5094_v42, %v5082_v36 }
 0x194   :  { %v11224_v45 = vld [vmem:[#allocation12 + $0x488] sm:$0xf]  ;;  %v10969_v56 = vor.u32 %v15459_v44, %v10968_v41 }
 0x195   :  { %5359 = vmatpush.bf16.msrb.mxu3 %v11609_v53  ;;  %5334 = vmatpush.bf16.msrb.mxu1 %v11065_v60  ;;  %v15523_v46 = vld [vmem:[#allocation12 + $0x4a4] sm:$0xf0]  ;;  %v10713_v53 = vor.u32 %v15395_v40, %v10712_v39  ;;  %v16973_v54 = vadd.f32 %v5107_v50, %v5095_v47 }
 0x196   :  { %v11480_v51 = vld [vmem:[#allocation12 + $0x688] sm:$0xf]  ;;  %v11225_v9 = vor.u32 %v15523_v46, %v11224_v45 }
 0x197   :  { %5347 = vmatpush.bf16.msrb.mxu2 %v11321_v61  ;;  %5322 = vmatpush.bf16.msrb.mxu0 %v10777_v19  ;;  %v15587_v52 = vld [vmem:[#allocation12 + $0x6a4] sm:$0xf0]  ;;  %v5083_v61 = vpop.f32.mrf.mxu1 }
 0x198   :  { %v10680_v57 = vld [vmem:[#allocation12 + $0x48] sm:$0xf]  ;;  %v11481_v62 = vor.u32 %v15587_v52, %v11480_v51 }
 0x199   :  { %5360 = vmatpush.bf16.msrb.mxu3 %v11577_v10  ;;  %5335 = vmatpush.bf16.msrb.mxu1 %v11033_v21  ;;  %v15387_v58 = vld [vmem:[#allocation12 + $0x64] sm:$0xf0] }
 0x19a   :  { %v10936_v60 = vld [vmem:[#allocation12 + $0x248] sm:$0xf]  ;;  %v10681_v15 = vor.u32 %v15387_v58, %v10680_v57 }
 0x19b   :  { %5348 = vmatpush.bf16.msrb.mxu2 %v11289_v22  ;;  %5323 = vmatpush.bf16.msrb.mxu0 %v10745_v30  ;;  %v15451_v1 = vld [vmem:[#allocation12 + $0x264] sm:$0xf0] }
 0x19c   :  { %v11192_v2 = vld [vmem:[#allocation12 + $0x448] sm:$0xf]  ;;  %v10937_v19 = vor.u32 %v15451_v1, %v10936_v60 }
 0x19d   :  { %5361 = vmatpush.bf16.msrb.mxu3 %v11545_v28  ;;  %5336 = vmatpush.bf16.msrb.mxu1 %v11001_v37  ;;  %v15515_v10 = vld [vmem:[#allocation12 + $0x464] sm:$0xf0] }
 0x19e   :  { %v11448_v12 = vld [vmem:[#allocation12 + $0x648] sm:$0xf]  ;;  %v11193_v20 = vor.u32 %v15515_v10, %v11192_v2 }
 0x19f   :  { %5349 = vmatpush.bf16.msrb.mxu2 %v11257_v38  ;;  %v15579_v14 = vld [vmem:[#allocation12 + $0x664] sm:$0xf0]  ;;  %5324 = vmatpush.bf16.msrb.mxu0 %v10713_v53 }
 0x1a0   :  { %v10648_v16 = vld [vmem:[#allocation12 + $0x8] sm:$0xf]  ;;  %v11449_v25 = vor.u32 %v15579_v14, %v11448_v12 }
 0x1a1   :  { %5362 = vmatpush.bf16.msrb.mxu3 %v11513_v43  ;;  %v15379_v18 = vld [vmem:[#allocation12 + $0x24] sm:$0xf0]  ;;  %5337 = vmatpush.bf16.msrb.mxu1 %v10969_v56 }
 0x1a2   :  { %v10904_v21 = vld [vmem:[#allocation12 + $0x208] sm:$0xf]  ;;  %v10649_v34 = vor.u32 %v15379_v18, %v10648_v16 }
 0x1a3   :  { %5350 = vmatpush.bf16.msrb.mxu2 %v11225_v9  ;;  %v15443_v22 = vld [vmem:[#allocation12 + $0x224] sm:$0xf0]  ;;  %5325 = vmatpush.bf16.msrb.mxu0 %v10681_v15 }
 0x1a4   :  { %v11160_v23 = vld [vmem:[#allocation12 + $0x408] sm:$0xf]  ;;  %v10905_v38 = vor.u32 %v15443_v22, %v10904_v21 }
 0x1a5   :  { %5363 = vmatpush.bf16.msrb.mxu3 %v11481_v62  ;;  %v15507_v26 = vld [vmem:[#allocation12 + $0x424] sm:$0xf0]  ;;  %5338 = vmatpush.bf16.msrb.mxu1 %v10937_v19 }
 0x1a6   :  { %v11416_v27 = vld [vmem:[#allocation12 + $0x608] sm:$0xf]  ;;  %v11161_v39 = vor.u32 %v15507_v26, %v11160_v23 }
 0x1a7   :  { %v15571_v28 = vld [vmem:[#allocation12 + $0x624] sm:$0xf0]  ;;  %5351 = vmatpush.bf16.msrb.mxu2 %v11193_v20  ;;  %5326 = vmatpush.bf16.msrb.mxu0 %v10649_v34 }
 0x1a8   :  { %v11896_v31 = vld [vmem:[#allocation12 + $0x9c8] sm:$0xf]  ;;  %v11417_v42 = vor.u32 %v15571_v28, %v11416_v27 }
 0x1a9   :  { %v15691_v32 = vld [vmem:[#allocation12 + $0x9e4] sm:$0xf0]  ;;  %5364 = vmatpush.bf16.msrb.mxu3 %v11449_v25  ;;  %5339 = vmatpush.bf16.msrb.mxu1 %v10905_v38 }
 0x1aa   :  { %v12152_v33 = vld [vmem:[#allocation12 + $0xbc8] sm:$0xf]  ;;  %v11897_v43 = vor.u32 %v15691_v32, %v11896_v31  ;;  %5327 = vmatmul.bf16.vlgmr.msrb.gmra.mxu0 %v16914_v3  ;;  %v5120_v32 = vpop.f32.mrf.mxu0 }
 0x1ab   :  { %v15755_v36 = vld [vmem:[#allocation12 + $0xbe4] sm:$0xf0]  ;;  %5352 = vmatpush.bf16.msrb.mxu2 %v11161_v39  ;;  %v5121_v38 = vadd.f32 %v5120_v32, %v16973_v54  ;;  %v5133_v39 = vpop.f32.mrf.mxu1 }
 0x1ac   :  { %v12408_v30 = vld [vmem:[#allocation12 + $0xdc8] sm:$0xf]  ;;  %v12153_v44 = vor.u32 %v15755_v36, %v12152_v33  ;;  %5371 = vmatpush.bf16.msra.mxu0 %v11897_v43  ;;  %5340 = vmatmul.bf16.vlgmr.msrb.gmra.mxu1 %v16918_v6 }
 0x1ad   :  { %v15819_v37 = vld [vmem:[#allocation12 + $0xde4] sm:$0xf0]  ;;  %5365 = vmatpush.bf16.msrb.mxu3 %v11417_v42 }
 0x1ae   :  { %v12664_v40 = vld [vmem:[#allocation12 + $0xfc8] sm:$0xf]  ;;  %v12409_v45 = vor.u32 %v15819_v37, %v12408_v30  ;;  %5384 = vmatpush.bf16.msra.mxu1 %v12153_v44  ;;  %5353 = vmatmul.bf16.vlgmr.msrb.gmra.mxu2 %v16912_v0 }
 0x1af   :  { %v15883_v41 = vld [vmem:[#allocation12 + $0xfe4] sm:$0xf0] }
 0x1b0   :  { %v11864_v46 = vld [vmem:[#allocation12 + $0x988] sm:$0xf]  ;;  %v12665_v51 = vor.u32 %v15883_v41, %v12664_v40  ;;  %5397 = vmatpush.bf16.msra.mxu2 %v12409_v45  ;;  %5366 = vmatmul.bf16.vlgmr.msrb.gmra.mxu3 %v16916_v4 }
 0x1b1   :  { %v15683_v47 = vld [vmem:[#allocation12 + $0x9a4] sm:$0xf0] }
 0x1b2   :  { %v12120_v50 = vld [vmem:[#allocation12 + $0xb88] sm:$0xf]  ;;  %v11865_v57 = vor.u32 %v15683_v47, %v11864_v46  ;;  %5410 = vmatpush.bf16.msra.mxu3 %v12665_v51  ;;  %v5134_v46 = vadd.f32 %v5133_v39, %v5121_v38 }
 0x1b3   :  { %v15747_v52 = vld [vmem:[#allocation12 + $0xba4] sm:$0xf0] }
 0x1b4   :  { %v12376_v53 = vld [vmem:[#allocation12 + $0xd88] sm:$0xf]  ;;  %v12121_v58 = vor.u32 %v15747_v52, %v12120_v50  ;;  %5372 = vmatpush.bf16.msra.mxu0 %v11865_v57 }
 0x1b5   :  { %v15811_v8 = vld [vmem:[#allocation12 + $0xda4] sm:$0xf0] }
 0x1b6   :  { %v12632_v56 = vld [vmem:[#allocation12 + $0xf88] sm:$0xf]  ;;  %v12377_v60 = vor.u32 %v15811_v8, %v12376_v53  ;;  %5385 = vmatpush.bf16.msra.mxu1 %v12121_v58 }
 0x1b7   :  { %v15875_v9 = vld [vmem:[#allocation12 + $0xfa4] sm:$0xf0] }
 0x1b8   :  { %v11832_v61 = vld [vmem:[#allocation12 + $0x948] sm:$0xf]  ;;  %v12633_v2 = vor.u32 %v15875_v9, %v12632_v56  ;;  %5398 = vmatpush.bf16.msra.mxu2 %v12377_v60  ;;  %v5146_v56 = vpop.f32.mrf.mxu2 }
 0x1b9   :  { %v15675_v62 = vld [vmem:[#allocation12 + $0x964] sm:$0xf0]  ;;  %v5147_v60 = vadd.f32 %v5146_v56, %v5134_v46 }
 0x1ba   :  { %v12088_v1 = vld [vmem:[#allocation12 + $0xb48] sm:$0xf]  ;;  %v11833_v18 = vor.u32 %v15675_v62, %v11832_v61  ;;  %5411 = vmatpush.bf16.msra.mxu3 %v12633_v2  ;;  %v5159_v61 = vpop.f32.mrf.mxu3 }
 0x1bb   :  { %v15739_v10 = vld [vmem:[#allocation12 + $0xb64] sm:$0xf0] }
 0x1bc   :  { %v12344_v12 = vld [vmem:[#allocation12 + $0xd48] sm:$0xf]  ;;  %v12089_v19 = vor.u32 %v15739_v10, %v12088_v1  ;;  %5373 = vmatpush.bf16.msra.mxu0 %v11833_v18  ;;  %v16980_v10 = vadd.f32 %v5159_v61, %v5147_v60 }
 0x1bd   :  { %v15803_v14 = vld [vmem:[#allocation12 + $0xd64] sm:$0xf0] }
 0x1be   :  { %v12600_v15 = vld [vmem:[#allocation12 + $0xf48] sm:$0xf]  ;;  %v12345_v20 = vor.u32 %v15803_v14, %v12344_v12  ;;  %5386 = vmatpush.bf16.msra.mxu1 %v12089_v19  ;;  %v5122_v12 = vpop.f32.mrf.mxu0 }
 0x1bf   :  { %v15867_v16 = vld [vmem:[#allocation12 + $0xf64] sm:$0xf0]  ;;  %v10842_v12 = vld [vmem:[#allocation12 + $0x1a8] sm:$0xf0] }
 0x1c0   :  { %v11800_v21 = vld [vmem:[#allocation12 + $0x908] sm:$0xf]  ;;  %v12601_v24 = vor.u32 %v15867_v16, %v12600_v15  ;;  %5399 = vmatpush.bf16.msra.mxu2 %v12345_v20  ;;  %v5135_v20 = vpop.f32.mrf.mxu1 }
 0x1c1   :  { %v15667_v22 = vld [vmem:[#allocation12 + $0x924] sm:$0xf0] }
 0x1c2   :  { %v12056_v23 = vld [vmem:[#allocation12 + $0xb08] sm:$0xf]  ;;  %v11801_v31 = vor.u32 %v15667_v22, %v11800_v21  ;;  %5412 = vmatpush.bf16.msra.mxu3 %v12601_v24 }
 0x1c3   :  { %v15731_v25 = vld [vmem:[#allocation12 + $0xb24] sm:$0xf0] }
 0x1c4   :  { %v12312_v26 = vld [vmem:[#allocation12 + $0xd08] sm:$0xf]  ;;  %v12057_v33 = vor.u32 %v15731_v25, %v12056_v23  ;;  %5374 = vmatpush.bf16.msra.mxu0 %v11801_v31 }
 0x1c5   :  { %v15795_v27 = vld [vmem:[#allocation12 + $0xd24] sm:$0xf0] }
 0x1c6   :  { %v12568_v28 = vld [vmem:[#allocation12 + $0xf08] sm:$0xf]  ;;  %v12313_v34 = vor.u32 %v15795_v27, %v12312_v26  ;;  %5387 = vmatpush.bf16.msra.mxu1 %v12057_v33 }
 0x1c7   :  { %v15859_v29 = vld [vmem:[#allocation12 + $0xf24] sm:$0xf0] }
 0x1c8   :  { %v11768_v36 = vld [vmem:[#allocation12 + $0x8c8] sm:$0xf]  ;;  %v12569_v40 = vor.u32 %v15859_v29, %v12568_v28  ;;  %5400 = vmatpush.bf16.msra.mxu2 %v12313_v34 }
 0x1c9   :  { %v15659_v30 = vld [vmem:[#allocation12 + $0x8e4] sm:$0xf0] }
 0x1ca   :  { %v12024_v37 = vld [vmem:[#allocation12 + $0xac8] sm:$0xf]  ;;  %v11769_v47 = vor.u32 %v15659_v30, %v11768_v36  ;;  %5413 = vmatpush.bf16.msra.mxu3 %v12569_v40  ;;  %v5148_v30 = vpop.f32.mrf.mxu2 }
 0x1cb   :  { %v15723_v41 = vld [vmem:[#allocation12 + $0xae4] sm:$0xf0] }
 0x1cc   :  { %v12280_v42 = vld [vmem:[#allocation12 + $0xcc8] sm:$0xf]  ;;  %v12025_v50 = vor.u32 %v15723_v41, %v12024_v37  ;;  %5375 = vmatpush.bf16.msra.mxu0 %v11769_v47  ;;  %v5161_v41 = vpop.f32.mrf.mxu3  ;;  %v15431_v47 = vld [vmem:[#allocation12 + $0x1cc] sm:$0xf] }
 0x1cd   :  { %v15787_v43 = vld [vmem:[#allocation12 + $0xce4] sm:$0xf0]  ;;  %v15471_v41 = vld [vmem:[#allocation12 + $0x30c] sm:$0xf] }
 0x1ce   :  { %v12536_v44 = vld [vmem:[#allocation12 + $0xec8] sm:$0xf]  ;;  %v12281_v51 = vor.u32 %v15787_v43, %v12280_v42  ;;  %5388 = vmatpush.bf16.msra.mxu1 %v12025_v50  ;;  %v10874_v50 = vld [vmem:[#allocation12 + $0x1e8] sm:$0xf0] }
 0x1cf   :  { %v15851_v45 = vld [vmem:[#allocation12 + $0xee4] sm:$0xf0] }
 0x1d0   :  { %v11736_v52 = vld [vmem:[#allocation12 + $0x888] sm:$0xf]  ;;  %v12537_v54 = vor.u32 %v15851_v45, %v12536_v44  ;;  %5401 = vmatpush.bf16.msra.mxu2 %v12281_v51 }
 0x1d1   :  { %v15651_v53 = vld [vmem:[#allocation12 + $0x8a4] sm:$0xf0] }
 0x1d2   :  { %v11992_v8 = vld [vmem:[#allocation12 + $0xa88] sm:$0xf]  ;;  %v11737_v2 = vor.u32 %v15651_v53, %v11736_v52  ;;  %5414 = vmatpush.bf16.msra.mxu3 %v12537_v54  ;;  %v15495_v53 = vld [vmem:[#allocation12 + $0x3cc] sm:$0xf] }
 0x1d3   :  { %v15715_v9 = vld [vmem:[#allocation12 + $0xaa4] sm:$0xf0] }
 0x1d4   :  { %v12248_v57 = vld [vmem:[#allocation12 + $0xc88] sm:$0xf]  ;;  %v11993_v14 = vor.u32 %v15715_v9, %v11992_v8  ;;  %5376 = vmatpush.bf16.msra.mxu0 %v11737_v2  ;;  %v11130_v8 = vld [vmem:[#allocation12 + $0x3e8] sm:$0xf0] }
 0x1d5   :  { %v15779_v58 = vld [vmem:[#allocation12 + $0xca4] sm:$0xf0]  ;;  %v15423_v2 = vld [vmem:[#allocation12 + $0x18c] sm:$0xf] }
 0x1d6   :  { %v12504_v62 = vld [vmem:[#allocation12 + $0xe88] sm:$0xf]  ;;  %v12249_v15 = vor.u32 %v15779_v58, %v12248_v57  ;;  %5389 = vmatpush.bf16.msra.mxu1 %v11993_v14  ;;  %v10877_v57 = vor.u32 %v15431_v47, %v10874_v50  ;;  %v15487_v14 = vld [vmem:[#allocation12 + $0x38c] sm:$0xf] }
 0x1d7   :  { %v15843_v1 = vld [vmem:[#allocation12 + $0xea4] sm:$0xf0] }
 0x1d8   :  { %v11704_v16 = vld [vmem:[#allocation12 + $0x848] sm:$0xf]  ;;  %v12505_v21 = vor.u32 %v15843_v1, %v12504_v62  ;;  %5402 = vmatpush.bf16.msra.mxu2 %v12249_v15  ;;  %v11133_v62 = vor.u32 %v15495_v53, %v11130_v8  ;;  %v11098_v15 = vld [vmem:[#allocation12 + $0x3a8] sm:$0xf0] }
 0x1d9   :  { %v15643_v18 = vld [vmem:[#allocation12 + $0x864] sm:$0xf0] }
 0x1da   :  { %v11960_v19 = vld [vmem:[#allocation12 + $0xa48] sm:$0xf]  ;;  %v11705_v27 = vor.u32 %v15643_v18, %v11704_v16  ;;  %5415 = vmatpush.bf16.msra.mxu3 %v12505_v21 }
 0x1db   :  { %v15707_v22 = vld [vmem:[#allocation12 + $0xa64] sm:$0xf0] }
 0x1dc   :  { %v12216_v23 = vld [vmem:[#allocation12 + $0xc48] sm:$0xf]  ;;  %v11961_v31 = vor.u32 %v15707_v22, %v11960_v19  ;;  %5377 = vmatpush.bf16.msra.mxu0 %v11705_v27  ;;  %v10845_v19 = vor.u32 %v15423_v2, %v10842_v12  ;;  %v15479_v27 = vld [vmem:[#allocation12 + $0x34c] sm:$0xf] }
 0x1dd   :  { %v15771_v24 = vld [vmem:[#allocation12 + $0xc64] sm:$0xf0] }
 0x1de   :  { %v12472_v25 = vld [vmem:[#allocation12 + $0xe48] sm:$0xf]  ;;  %v12217_v32 = vor.u32 %v15771_v24, %v12216_v23  ;;  %5390 = vmatpush.bf16.msra.mxu1 %v11961_v31  ;;  %v11101_v23 = vor.u32 %v15487_v14, %v11098_v15 }
 0x1df   :  { %v15835_v26 = vld [vmem:[#allocation12 + $0xe64] sm:$0xf0] }
 0x1e0   :  { %v11672_v28 = vld [vmem:[#allocation12 + $0x808] sm:$0xf]  ;;  %v12473_v37 = vor.u32 %v15835_v26, %v12472_v25  ;;  %5403 = vmatpush.bf16.msra.mxu2 %v12217_v32  ;;  %v15415_v25 = vld [vmem:[#allocation12 + $0x14c] sm:$0xf] }
 0x1e1   :  { %v15635_v29 = vld [vmem:[#allocation12 + $0x824] sm:$0xf0]  ;;  %v10810_v26 = vld [vmem:[#allocation12 + $0x168] sm:$0xf0] }
 0x1e2   :  { %v11928_v33 = vld [vmem:[#allocation12 + $0xa08] sm:$0xf]  ;;  %v11673_v45 = vor.u32 %v15635_v29, %v11672_v28  ;;  %5416 = vmatpush.bf16.msra.mxu3 %v12473_v37  ;;  %v11066_v28 = vld [vmem:[#allocation12 + $0x368] sm:$0xf0]  ;;  %v10813_v32 = vor.u32 %v15415_v25, %v10810_v26 }
 0x1e3   :  { %v15699_v34 = vld [vmem:[#allocation12 + $0xa24] sm:$0xf0]  ;;  %v11069_v30 = vor.u32 %v15479_v27, %v11066_v28 }
 0x1e4   :  { %v12184_v36 = vld [vmem:[#allocation12 + $0xc08] sm:$0xf]  ;;  %v11929_v51 = vor.u32 %v15699_v34, %v11928_v33  ;;  %5378 = vmatpush.bf16.msra.mxu0 %v11673_v45  ;;  %v5185_v45 = vpop.f32.mrf.mxu1 }
 0x1e5   :  { %v15763_v38 = vld [vmem:[#allocation12 + $0xc24] sm:$0xf0] }
 0x1e6   :  { %v12440_v39 = vld [vmem:[#allocation12 + $0xe08] sm:$0xf]  ;;  %v12185_v52 = vor.u32 %v15763_v38, %v12184_v36  ;;  %5391 = vmatpush.bf16.msra.mxu1 %v11929_v51  ;;  %v15407_v38 = vld [vmem:[#allocation12 + $0x10c] sm:$0xf] }
 0x1e7   :  { %v15827_v40 = vld [vmem:[#allocation12 + $0xe24] sm:$0xf0]  ;;  %5379 = vmatmul.bf16.vlgmr.msra.gmra.mxu0 %v16932_v5 }
 0x1e8   :  { %v12920_v42 = vld [vmem:[#allocation12 + $0x11c8] sm:$0xf]  ;;  %v12441_v56 = vor.u32 %v15827_v40, %v12440_v39  ;;  %5404 = vmatpush.bf16.msra.mxu2 %v12185_v52  ;;  %v10778_v39 = vld [vmem:[#allocation12 + $0x128] sm:$0xf0]  ;;  %v5172_v40 = vpop.f32.mrf.mxu0 }
 0x1e9   :  { %v15947_v43 = vld [vmem:[#allocation12 + $0x11e4] sm:$0xf0]  ;;  %5392 = vmatmul.bf16.vlgmr.msra.gmra.mxu1 %v16936_v11  ;;  %v10781_v47 = vor.u32 %v15407_v38, %v10778_v39  ;;  %v10938_v38 = vld [vmem:[#allocation12 + $0x268] sm:$0xf0] }
 0x1ea   :  { %v13176_v44 = vld [vmem:[#allocation12 + $0x13c8] sm:$0xf]  ;;  %v12921_v54 = vor.u32 %v15947_v43, %v12920_v42  ;;  %5417 = vmatpush.bf16.msra.mxu3 %v12441_v56  ;;  %v11034_v42 = vld [vmem:[#allocation12 + $0x328] sm:$0xf0]  ;;  %v5173_v43 = vadd.f32 %v5172_v40, %v16980_v10  ;;  %v1844_v10 = vperm.slane %v16967_v55, 1 }
 0x1eb   :  { %v16011_v46 = vld [vmem:[#allocation12 + $0x13e4] sm:$0xf0]  ;;  %5405 = vmatmul.bf16.vlgmr.msra.gmra.mxu2 %v16930_v63  ;;  %v11037_v53 = vor.u32 %v15471_v41, %v11034_v42 }
 0x1ec   :  { %v13177_v9 = vor.u32 %v16011_v46, %v13176_v44  ;;  %v12888_v58 = vld [vmem:[#allocation12 + $0x1188] sm:$0xf]  ;;  %5423 = vmatpush.bf16.msrb.mxu0 %v12921_v54  ;;  %5449 = vmatpush.bf16.msrb.mxu2 %v10877_v57  ;;  %v16987_v8 = vadd.f32 %v5185_v45, %v5173_v43  ;;  %v15399_v54 = vld [vmem:[#allocation12 + $0xcc] sm:$0xf]  ;;  %v5187_v25 = vpop.f32.mrf.mxu1 }
 0x1ed   :  { %v15939_v60 = vld [vmem:[#allocation12 + $0x11a4] sm:$0xf0]  ;;  %5418 = vmatmul.bf16.vlgmr.msra.gmra.mxu3 %v16934_v7  ;;  %v15463_v57 = vld [vmem:[#allocation12 + $0x2cc] sm:$0xf] }
 0x1ee   :  { %v13144_v61 = vld [vmem:[#allocation12 + $0x1388] sm:$0xf]  ;;  %v12889_v16 = vor.u32 %v15939_v60, %v12888_v58  ;;  %5436 = vmatpush.bf16.msrb.mxu1 %v13177_v9  ;;  %5462 = vmatpush.bf16.msrb.mxu3 %v11133_v62  ;;  %v10746_v9 = vld [vmem:[#allocation12 + $0xe8] sm:$0xf0] }
 0x1ef   :  { %v16003_v1 = vld [vmem:[#allocation12 + $0x13a4] sm:$0xf0]  ;;  %v11002_v58 = vld [vmem:[#allocation12 + $0x2e8] sm:$0xf0]  ;;  %v10749_v62 = vor.u32 %v15399_v54, %v10746_v9 }
 0x1f0   :  { %v13145_v18 = vor.u32 %v16003_v1, %v13144_v61  ;;  %v12856_v20 = vld [vmem:[#allocation12 + $0x1148] sm:$0xf]  ;;  %5424 = vmatpush.bf16.msrb.mxu0 %v12889_v16  ;;  %5450 = vmatpush.bf16.msrb.mxu2 %v10845_v19  ;;  %v11005_v14 = vor.u32 %v15463_v57, %v11002_v58  ;;  %v15391_v16 = vld [vmem:[#allocation12 + $0x8c] sm:$0xf]  ;;  %v5198_v19 = vpop.f32.mrf.mxu2  ;;  %v5174_v55 = vpop.f32.mrf.mxu0 }
 0x1f1   :  { %v15931_v21 = vld [vmem:[#allocation12 + $0x1164] sm:$0xf0]  ;;  %v11386_v54 = vld [vmem:[#allocation12 + $0x5e8] sm:$0xf0] }
 0x1f2   :  { %v13112_v22 = vld [vmem:[#allocation12 + $0x1348] sm:$0xf]  ;;  %v12857_v29 = vor.u32 %v15931_v21, %v12856_v20  ;;  %5437 = vmatpush.bf16.msrb.mxu1 %v13145_v18  ;;  %5463 = vmatpush.bf16.msrb.mxu3 %v11101_v23  ;;  %v10714_v18 = vld [vmem:[#allocation12 + $0xa8] sm:$0xf0]  ;;  %v5211_v23 = vpop.f32.mrf.mxu3 }
 0x1f3   :  { %v15995_v24 = vld [vmem:[#allocation12 + $0x1364] sm:$0xf0]  ;;  %v15455_v20 = vld [vmem:[#allocation12 + $0x28c] sm:$0xf]  ;;  %v10717_v27 = vor.u32 %v15391_v16, %v10714_v18 }
 0x1f4   :  { %v13113_v31 = vor.u32 %v15995_v24, %v13112_v22  ;;  %v12824_v33 = vld [vmem:[#allocation12 + $0x1108] sm:$0xf]  ;;  %5425 = vmatpush.bf16.msrb.mxu0 %v12857_v29  ;;  %5451 = vmatpush.bf16.msrb.mxu2 %v10813_v32  ;;  %v10970_v21 = vld [vmem:[#allocation12 + $0x2a8] sm:$0xf0]  ;;  %v5199_v22 = vadd.f32 %v5198_v19, %v1844_v10 }
 0x1f5   :  { %v15923_v34 = vld [vmem:[#allocation12 + $0x1124] sm:$0xf0]  ;;  %v15623_v9 = vld [vmem:[#allocation12 + $0x7cc] sm:$0xf] }
 0x1f6   :  { %v13080_v36 = vld [vmem:[#allocation12 + $0x1308] sm:$0xf]  ;;  %v12825_v44 = vor.u32 %v15923_v34, %v12824_v33  ;;  %5438 = vmatpush.bf16.msrb.mxu1 %v13113_v31  ;;  %5464 = vmatpush.bf16.msrb.mxu3 %v11069_v30  ;;  %v16990_v32 = vadd.f32 %v5211_v23, %v5199_v22  ;;  %v10973_v33 = vor.u32 %v15455_v20, %v10970_v21  ;;  %v10682_v30 = vld [vmem:[#allocation12 + $0x68] sm:$0xf0] }
 0x1f7   :  { %v15987_v37 = vld [vmem:[#allocation12 + $0x1324] sm:$0xf0]  ;;  %v11642_v10 = vld [vmem:[#allocation12 + $0x7e8] sm:$0xf0] }
 0x1f8   :  { %v13081_v46 = vor.u32 %v15987_v37, %v13080_v36  ;;  %v12792_v50 = vld [vmem:[#allocation12 + $0x10c8] sm:$0xf]  ;;  %5426 = vmatpush.bf16.msrb.mxu0 %v12825_v44  ;;  %5452 = vmatpush.bf16.msrb.mxu2 %v10781_v47  ;;  %v15383_v36 = vld [vmem:[#allocation12 + $0x4c] sm:$0xf]  ;;  %v11645_v16 = vor.u32 %v15623_v9, %v11642_v10  ;;  %v5224_v9 = vpop.f32.mrf.mxu0 }
 0x1f9   :  { %v15915_v51 = vld [vmem:[#allocation12 + $0x10e4] sm:$0xf0]  ;;  %v15447_v37 = vld [vmem:[#allocation12 + $0x24c] sm:$0xf]  ;;  %v10685_v43 = vor.u32 %v15383_v36, %v10682_v30 }
 0x1fa   :  { %v13048_v52 = vld [vmem:[#allocation12 + $0x12c8] sm:$0xf]  ;;  %v12793_v60 = vor.u32 %v15915_v51, %v12792_v50  ;;  %5439 = vmatpush.bf16.msrb.mxu1 %v13081_v46  ;;  %5465 = vmatpush.bf16.msrb.mxu3 %v11037_v53  ;;  %v15375_v46 = vld [vmem:[#allocation12 + $0xc] sm:$0xf]  ;;  %v10941_v47 = vor.u32 %v15447_v37, %v10938_v38  ;;  %v5200_v53 = vpop.f32.mrf.mxu2  ;;  %v5213_v57 = vpop.f32.mrf.mxu3 }
 0x1fb   :  { %v15979_v56 = vld [vmem:[#allocation12 + $0x12e4] sm:$0xf0]  ;;  %v10650_v50 = vld [vmem:[#allocation12 + $0x28] sm:$0xf0] }
 0x1fc   :  { %v13049_v61 = vor.u32 %v15979_v56, %v13048_v52  ;;  %v12760_v1 = vld [vmem:[#allocation12 + $0x1088] sm:$0xf]  ;;  %5427 = vmatpush.bf16.msrb.mxu0 %v12793_v60  ;;  %5453 = vmatpush.bf16.msrb.mxu2 %v10749_v62  ;;  %v15439_v51 = vld [vmem:[#allocation12 + $0x20c] sm:$0xf] }
 0x1fd   :  { %v15907_v2 = vld [vmem:[#allocation12 + $0x10a4] sm:$0xf0]  ;;  %v10906_v52 = vld [vmem:[#allocation12 + $0x228] sm:$0xf0] }
 0x1fe   :  { %v13016_v12 = vld [vmem:[#allocation12 + $0x1288] sm:$0xf]  ;;  %v12761_v24 = vor.u32 %v15907_v2, %v12760_v1  ;;  %5440 = vmatpush.bf16.msrb.mxu1 %v13049_v61  ;;  %5466 = vmatpush.bf16.msrb.mxu3 %v11005_v14  ;;  %v15559_v56 = vld [vmem:[#allocation12 + $0x5cc] sm:$0xf]  ;;  %v10653_v1 = vor.u32 %v15375_v46, %v10650_v50  ;;  %v10909_v14 = vor.u32 %v15439_v51, %v10906_v52 }
 0x1ff   :  { %v15971_v15 = vld [vmem:[#allocation12 + $0x12a4] sm:$0xf0]  ;;  %v15687_v60 = vld [vmem:[#allocation12 + $0x9cc] sm:$0xf] }
 0x200   :  { %v13017_v26 = vor.u32 %v15971_v15, %v13016_v12  ;;  %v12728_v28 = vld [vmem:[#allocation12 + $0x1048] sm:$0xf]  ;;  %5428 = vmatpush.bf16.msrb.mxu0 %v12761_v24  ;;  %5454 = vmatpush.bf16.msrb.mxu2 %v10717_v27  ;;  %v11898_v61 = vld [vmem:[#allocation12 + $0x9e8] sm:$0xf0]  ;;  %v11389_v15 = vor.u32 %v15559_v56, %v11386_v54 }
 0x201   :  { %v15899_v29 = vld [vmem:[#allocation12 + $0x1064] sm:$0xf0]  ;;  %v15751_v2 = vld [vmem:[#allocation12 + $0xbcc] sm:$0xf]  ;;  %v11901_v18 = vor.u32 %v15687_v60, %v11898_v61 }
 0x202   :  { %v12984_v31 = vld [vmem:[#allocation12 + $0x1248] sm:$0xf]  ;;  %v12729_v39 = vor.u32 %v15899_v29, %v12728_v28  ;;  %5441 = vmatpush.bf16.msrb.mxu1 %v13017_v26  ;;  %5467 = vmatpush.bf16.msrb.mxu3 %v10973_v33  ;;  %v12154_v12 = vld [vmem:[#allocation12 + $0xbe8] sm:$0xf0] }
 0x203   :  { %v15963_v34 = vld [vmem:[#allocation12 + $0x1264] sm:$0xf0]  ;;  %v15551_v19 = vld [vmem:[#allocation12 + $0x58c] sm:$0xf]  ;;  %v12157_v22 = vor.u32 %v15751_v2, %v12154_v12 }
 0x204   :  { %v12696_v40 = vld [vmem:[#allocation12 + $0x1008] sm:$0xf]  ;;  %v12985_v42 = vor.u32 %v15963_v34, %v12984_v31  ;;  %5429 = vmatpush.bf16.msrb.mxu0 %v12729_v39  ;;  %5455 = vmatpush.bf16.msrb.mxu2 %v10685_v43  ;;  %v11354_v20 = vld [vmem:[#allocation12 + $0x5a8] sm:$0xf0] }
 0x205   :  { %v15891_v41 = vld [vmem:[#allocation12 + $0x1024] sm:$0xf0]  ;;  %v15615_v21 = vld [vmem:[#allocation12 + $0x78c] sm:$0xf]  ;;  %v11357_v27 = vor.u32 %v15551_v19, %v11354_v20 }
 0x206   :  { %v12952_v44 = vld [vmem:[#allocation12 + $0x1208] sm:$0xf]  ;;  %v12697_v58 = vor.u32 %v15891_v41, %v12696_v40  ;;  %5442 = vmatpush.bf16.msrb.mxu1 %v12985_v42  ;;  %5468 = vmatpush.bf16.msrb.mxu3 %v10941_v47  ;;  %v11610_v23 = vld [vmem:[#allocation12 + $0x7a8] sm:$0xf0] }
 0x207   :  { %v15955_v45 = vld [vmem:[#allocation12 + $0x1224] sm:$0xf0]  ;;  %v15679_v55 = vld [vmem:[#allocation12 + $0x98c] sm:$0xf]  ;;  %v11613_v28 = vor.u32 %v15615_v21, %v11610_v23 }
 0x208   :  { %v12953_v62 = vor.u32 %v15955_v45, %v12952_v44  ;;  %5430 = vmatpush.bf16.msrb.mxu0 %v12697_v58  ;;  %v11866_v24 = vld [vmem:[#allocation12 + $0x9a8] sm:$0xf0]  ;;  %5456 = vmatpush.bf16.msrb.mxu2 %v10653_v1  ;;  %v5237_v1 = vpop.f32.mrf.mxu1 }
 0x209   :  { %v15743_v25 = vld [vmem:[#allocation12 + $0xb8c] sm:$0xf]  ;;  %v11869_v29 = vor.u32 %v15679_v55, %v11866_v24 }
 0x20a   :  { %5443 = vmatpush.bf16.msrb.mxu1 %v12953_v62  ;;  %v12122_v26 = vld [vmem:[#allocation12 + $0xba8] sm:$0xf0]  ;;  %5469 = vmatpush.bf16.msrb.mxu3 %v10909_v14  ;;  %v5225_v62 = vadd.f32 %v5224_v9, %v16990_v32 }
 0x20b   :  { %v15543_v31 = vld [vmem:[#allocation12 + $0x54c] sm:$0xf]  ;;  %5431 = vmatmul.bf16.vlgmr.msrb.gmra.mxu0 %v16946_v13  ;;  %v12125_v36 = vor.u32 %v15743_v25, %v12122_v26  ;;  %5457 = vmatmul.bf16.vlgmr.msrb.gmra.mxu2 %v16914_v3  ;;  %v5250_v25 = vpop.f32.mrf.mxu2 }
 0x20c   :  { %5475 = vmatpush.bf16.msra.mxu0 %v11389_v15  ;;  %5501 = vmatpush.bf16.msra.mxu2 %v11901_v18  ;;  %v11322_v33 = vld [vmem:[#allocation12 + $0x568] sm:$0xf0]  ;;  %v5238_v19 = vadd.f32 %v5237_v1, %v5225_v62 }
 0x20d   :  { %v15607_v34 = vld [vmem:[#allocation12 + $0x74c] sm:$0xf]  ;;  %5444 = vmatmul.bf16.vlgmr.msrb.gmra.mxu1 %v16948_v17  ;;  %v11325_v41 = vor.u32 %v15543_v31, %v11322_v33  ;;  %5470 = vmatmul.bf16.vlgmr.msrb.gmra.mxu3 %v16918_v6  ;;  %v5263_v31 = vpop.f32.mrf.mxu3 }
 0x20e   :  { %5488 = vmatpush.bf16.msra.mxu1 %v11645_v16  ;;  %5514 = vmatpush.bf16.msra.mxu3 %v12157_v22  ;;  %v11578_v30 = vld [vmem:[#allocation12 + $0x768] sm:$0xf0] }
 0x20f   :  { %v15671_v37 = vld [vmem:[#allocation12 + $0x94c] sm:$0xf]  ;;  %v11581_v42 = vor.u32 %v15607_v34, %v11578_v30 }
 0x210   :  { %v11834_v38 = vld [vmem:[#allocation12 + $0x968] sm:$0xf0]  ;;  %5476 = vmatpush.bf16.msra.mxu0 %v11357_v27  ;;  %5502 = vmatpush.bf16.msra.mxu2 %v11869_v29  ;;  %v5251_v29 = vadd.f32 %v5250_v25, %v5238_v19 }
 0x211   :  { %v15735_v39 = vld [vmem:[#allocation12 + $0xb4c] sm:$0xf]  ;;  %v11837_v43 = vor.u32 %v15671_v37, %v11834_v38  ;;  %v5226_v37 = vpop.f32.mrf.mxu0 }
 0x212   :  { %v12090_v40 = vld [vmem:[#allocation12 + $0xb68] sm:$0xf0]  ;;  %5489 = vmatpush.bf16.msra.mxu1 %v11613_v28  ;;  %5515 = vmatpush.bf16.msra.mxu3 %v12125_v36  ;;  %v16997_v30 = vadd.f32 %v5263_v31, %v5251_v29 }
 0x213   :  { %v15535_v44 = vld [vmem:[#allocation12 + $0x50c] sm:$0xf]  ;;  %v12093_v47 = vor.u32 %v15735_v39, %v12090_v40 }
 0x214   :  { %v11290_v45 = vld [vmem:[#allocation12 + $0x528] sm:$0xf0]  ;;  %5477 = vmatpush.bf16.msra.mxu0 %v11325_v41  ;;  %5503 = vmatpush.bf16.msra.mxu2 %v11837_v43  ;;  %v5239_v43 = vpop.f32.mrf.mxu1 }
 0x215   :  { %v15599_v46 = vld [vmem:[#allocation12 + $0x70c] sm:$0xf]  ;;  %v11293_v54 = vor.u32 %v15535_v44, %v11290_v45 }
 0x216   :  { %v11546_v50 = vld [vmem:[#allocation12 + $0x728] sm:$0xf0]  ;;  %5490 = vmatpush.bf16.msra.mxu1 %v11581_v42  ;;  %5516 = vmatpush.bf16.msra.mxu3 %v12093_v47 }
 0x217   :  { %v15663_v51 = vld [vmem:[#allocation12 + $0x90c] sm:$0xf]  ;;  %v11549_v57 = vor.u32 %v15599_v46, %v11546_v50 }
 0x218   :  { %v11802_v52 = vld [vmem:[#allocation12 + $0x928] sm:$0xf0]  ;;  %5478 = vmatpush.bf16.msra.mxu0 %v11293_v54 }
 0x219   :  { %v15727_v53 = vld [vmem:[#allocation12 + $0xb0c] sm:$0xf]  ;;  %v11805_v58 = vor.u32 %v15663_v51, %v11802_v52 }
 0x21a   :  { %v12058_v56 = vld [vmem:[#allocation12 + $0xb28] sm:$0xf0]  ;;  %5491 = vmatpush.bf16.msra.mxu1 %v11549_v57 }
 0x21b   :  { %v15527_v10 = vld [vmem:[#allocation12 + $0x4cc] sm:$0xf]  ;;  %v12061_v2 = vor.u32 %v15727_v53, %v12058_v56  ;;  %5504 = vmatpush.bf16.msra.mxu2 %v11805_v58 }
 0x21c   :  { %v11258_v60 = vld [vmem:[#allocation12 + $0x4e8] sm:$0xf0] }
 0x21d   :  { %v15591_v61 = vld [vmem:[#allocation12 + $0x6cc] sm:$0xf]  ;;  %v11261_v20 = vor.u32 %v15527_v10, %v11258_v60  ;;  %5517 = vmatpush.bf16.msra.mxu3 %v12061_v2  ;;  %v5252_v60 = vpop.f32.mrf.mxu2 }
 0x21e   :  { %v11514_v12 = vld [vmem:[#allocation12 + $0x6e8] sm:$0xf0] }
 0x21f   :  { %v15655_v14 = vld [vmem:[#allocation12 + $0x8cc] sm:$0xf]  ;;  %v11517_v21 = vor.u32 %v15591_v61, %v11514_v12  ;;  %5479 = vmatpush.bf16.msra.mxu0 %v11261_v20  ;;  %v5265_v12 = vpop.f32.mrf.mxu3 }
 0x220   :  { %v11770_v15 = vld [vmem:[#allocation12 + $0x8e8] sm:$0xf0] }
 0x221   :  { %v15719_v16 = vld [vmem:[#allocation12 + $0xacc] sm:$0xf]  ;;  %v11773_v22 = vor.u32 %v15655_v14, %v11770_v15  ;;  %5492 = vmatpush.bf16.msra.mxu1 %v11517_v21 }
 0x222   :  { %v12026_v18 = vld [vmem:[#allocation12 + $0xae8] sm:$0xf0] }
 0x223   :  { %v15519_v23 = vld [vmem:[#allocation12 + $0x48c] sm:$0xf]  ;;  %v12029_v32 = vor.u32 %v15719_v16, %v12026_v18  ;;  %5505 = vmatpush.bf16.msra.mxu2 %v11773_v22 }
 0x224   :  { %v11226_v55 = vld [vmem:[#allocation12 + $0x4a8] sm:$0xf0] }
 0x225   :  { %v15583_v24 = vld [vmem:[#allocation12 + $0x68c] sm:$0xf]  ;;  %v11229_v36 = vor.u32 %v15519_v23, %v11226_v55  ;;  %5518 = vmatpush.bf16.msra.mxu3 %v12029_v32 }
 0x226   :  { %v11482_v26 = vld [vmem:[#allocation12 + $0x6a8] sm:$0xf0] }
 0x227   :  { %v15647_v27 = vld [vmem:[#allocation12 + $0x88c] sm:$0xf]  ;;  %v11485_v38 = vor.u32 %v15583_v24, %v11482_v26  ;;  %5480 = vmatpush.bf16.msra.mxu0 %v11229_v36 }
 0x228   :  { %v11738_v28 = vld [vmem:[#allocation12 + $0x8a8] sm:$0xf0] }
 0x229   :  { %v15711_v33 = vld [vmem:[#allocation12 + $0xa8c] sm:$0xf]  ;;  %v11741_v39 = vor.u32 %v15647_v27, %v11738_v28  ;;  %5493 = vmatpush.bf16.msra.mxu1 %v11485_v38 }
 0x22a   :  { %v11994_v34 = vld [vmem:[#allocation12 + $0xaa8] sm:$0xf0] }
 0x22b   :  { %v15511_v40 = vld [vmem:[#allocation12 + $0x44c] sm:$0xf]  ;;  %v11997_v44 = vor.u32 %v15711_v33, %v11994_v34  ;;  %5506 = vmatpush.bf16.msra.mxu2 %v11741_v39 }
 0x22c   :  { %v11194_v41 = vld [vmem:[#allocation12 + $0x468] sm:$0xf0] }
 0x22d   :  { %v15575_v42 = vld [vmem:[#allocation12 + $0x64c] sm:$0xf]  ;;  %v11197_v52 = vor.u32 %v15511_v40, %v11194_v41  ;;  %5519 = vmatpush.bf16.msra.mxu3 %v11997_v44 }
 0x22e   :  { %v11450_v45 = vld [vmem:[#allocation12 + $0x668] sm:$0xf0] }
 0x22f   :  { %v15639_v46 = vld [vmem:[#allocation12 + $0x84c] sm:$0xf]  ;;  %v11453_v54 = vor.u32 %v15575_v42, %v11450_v45  ;;  %5481 = vmatpush.bf16.msra.mxu0 %v11197_v52 }
 0x230   :  { %v11706_v47 = vld [vmem:[#allocation12 + $0x868] sm:$0xf0] }
 0x231   :  { %v15703_v50 = vld [vmem:[#allocation12 + $0xa4c] sm:$0xf]  ;;  %v11709_v9 = vor.u32 %v15639_v46, %v11706_v47  ;;  %5494 = vmatpush.bf16.msra.mxu1 %v11453_v54 }
 0x232   :  { %v11962_v51 = vld [vmem:[#allocation12 + $0xa68] sm:$0xf0] }
 0x233   :  { %v15503_v53 = vld [vmem:[#allocation12 + $0x40c] sm:$0xf]  ;;  %v11965_v61 = vor.u32 %v15703_v50, %v11962_v51  ;;  %5507 = vmatpush.bf16.msra.mxu2 %v11709_v9 }
 0x234   :  { %v11162_v56 = vld [vmem:[#allocation12 + $0x428] sm:$0xf0] }
 0x235   :  { %v15567_v57 = vld [vmem:[#allocation12 + $0x60c] sm:$0xf]  ;;  %v11165_v18 = vor.u32 %v15503_v53, %v11162_v56  ;;  %5520 = vmatpush.bf16.msra.mxu3 %v11965_v61 }
 0x236   :  { %v11418_v58 = vld [vmem:[#allocation12 + $0x628] sm:$0xf0] }
 0x237   :  { %v15631_v10 = vld [vmem:[#allocation12 + $0x80c] sm:$0xf]  ;;  %v11421_v22 = vor.u32 %v15567_v57, %v11418_v58  ;;  %5482 = vmatpush.bf16.msra.mxu0 %v11165_v18  ;;  %v5289_v18 = vpop.f32.mrf.mxu1 }
 0x238   :  { %v11674_v62 = vld [vmem:[#allocation12 + $0x828] sm:$0xf0] }
 0x239   :  { %v15695_v1 = vld [vmem:[#allocation12 + $0xa0c] sm:$0xf]  ;;  %v11677_v23 = vor.u32 %v15631_v10, %v11674_v62  ;;  %5495 = vmatpush.bf16.msra.mxu1 %v11421_v22 }
 0x23a   :  { %v11930_v2 = vld [vmem:[#allocation12 + $0xa28] sm:$0xf0]  ;;  %5483 = vmatmul.bf16.vlgmr.msra.gmra.mxu0 %v16912_v0 }
 0x23b   :  { %v15815_v14 = vld [vmem:[#allocation12 + $0xdcc] sm:$0xf]  ;;  %v11933_v25 = vor.u32 %v15695_v1, %v11930_v2  ;;  %5508 = vmatpush.bf16.msra.mxu2 %v11677_v23  ;;  %v5276_v2 = vpop.f32.mrf.mxu0 }
 0x23c   :  { %v12410_v15 = vld [vmem:[#allocation12 + $0xde8] sm:$0xf0]  ;;  %5496 = vmatmul.bf16.vlgmr.msra.gmra.mxu1 %v16916_v4 }
 0x23d   :  { %v15879_v16 = vld [vmem:[#allocation12 + $0xfcc] sm:$0xf]  ;;  %v12413_v32 = vor.u32 %v15815_v14, %v12410_v15  ;;  %5521 = vmatpush.bf16.msra.mxu3 %v11933_v25  ;;  %v5277_v15 = vadd.f32 %v5276_v2, %v16997_v30 }
 0x23e   :  { %v12666_v19 = vld [vmem:[#allocation12 + $0xfe8] sm:$0xf0]  ;;  %5509 = vmatmul.bf16.vlgmr.msra.gmra.mxu2 %v16932_v5 }
 0x23f   :  { %v15943_v20 = vld [vmem:[#allocation12 + $0x11cc] sm:$0xf]  ;;  %v12669_v26 = vor.u32 %v15879_v16, %v12666_v19  ;;  %5527 = vmatpush.bf16.msrb.mxu0 %v12413_v32 }
 0x240   :  { %v12922_v21 = vld [vmem:[#allocation12 + $0x11e8] sm:$0xf0]  ;;  %5522 = vmatmul.bf16.vlgmr.msra.gmra.mxu3 %v16936_v11 }
 0x241   :  { %v16007_v55 = vld [vmem:[#allocation12 + $0x13cc] sm:$0xf]  ;;  %v12925_v27 = vor.u32 %v15943_v20, %v12922_v21  ;;  %5540 = vmatpush.bf16.msrb.mxu1 %v12669_v26 }
 0x242   :  { %v13178_v24 = vld [vmem:[#allocation12 + $0x13e8] sm:$0xf0] }
 0x243   :  { %v15807_v28 = vld [vmem:[#allocation12 + $0xd8c] sm:$0xf]  ;;  %v13181_v33 = vor.u32 %v16007_v55, %v13178_v24  ;;  %5553 = vmatpush.bf16.msrb.mxu2 %v12925_v27  ;;  %v5290_v24 = vadd.f32 %v5289_v18, %v5277_v15 }
 0x244   :  { %v12378_v29 = vld [vmem:[#allocation12 + $0xda8] sm:$0xf0] }
 0x245   :  { %v15871_v31 = vld [vmem:[#allocation12 + $0xf8c] sm:$0xf]  ;;  %v12381_v40 = vor.u32 %v15807_v28, %v12378_v29  ;;  %5566 = vmatpush.bf16.msrb.mxu3 %v13181_v33 }
 0x246   :  { %v12634_v34 = vld [vmem:[#allocation12 + $0xfa8] sm:$0xf0] }
 0x247   :  { %v15935_v36 = vld [vmem:[#allocation12 + $0x118c] sm:$0xf]  ;;  %v12637_v41 = vor.u32 %v15871_v31, %v12634_v34  ;;  %5528 = vmatpush.bf16.msrb.mxu0 %v12381_v40 }
 0x248   :  { %v12890_v37 = vld [vmem:[#allocation12 + $0x11a8] sm:$0xf0] }
 0x249   :  { %v15999_v38 = vld [vmem:[#allocation12 + $0x138c] sm:$0xf]  ;;  %v12893_v42 = vor.u32 %v15935_v36, %v12890_v37  ;;  %5541 = vmatpush.bf16.msrb.mxu1 %v12637_v41 }
 0x24a   :  { %v13146_v39 = vld [vmem:[#allocation12 + $0x13a8] sm:$0xf0] }
 0x24b   :  { %v15799_v43 = vld [vmem:[#allocation12 + $0xd4c] sm:$0xf]  ;;  %v13149_v46 = vor.u32 %v15999_v38, %v13146_v39  ;;  %5554 = vmatpush.bf16.msrb.mxu2 %v12893_v42  ;;  %v5302_v38 = vpop.f32.mrf.mxu2 }
 0x24c   :  { %v12346_v44 = vld [vmem:[#allocation12 + $0xd68] sm:$0xf0]  ;;  %v5303_v42 = vadd.f32 %v5302_v38, %v5290_v24  ;;  %v15628_v38 = vld [vmem:[#allocation12 + $0x7ec] sm:$0xf0] }
 0x24d   :  { %v15863_v45 = vld [vmem:[#allocation12 + $0xf4c] sm:$0xf]  ;;  %v12349_v56 = vor.u32 %v15799_v43, %v12346_v44  ;;  %5567 = vmatpush.bf16.msrb.mxu3 %v13149_v46  ;;  %v5315_v43 = vpop.f32.mrf.mxu3  ;;  %v5278_v46 = vpop.f32.mrf.mxu0 }
 0x24e   :  { %v12602_v47 = vld [vmem:[#allocation12 + $0xf68] sm:$0xf0] }
 0x24f   :  { %v15927_v50 = vld [vmem:[#allocation12 + $0x114c] sm:$0xf]  ;;  %v12605_v54 = vor.u32 %v15863_v45, %v12602_v47  ;;  %5529 = vmatpush.bf16.msrb.mxu0 %v12349_v56 }
 0x250   :  { %v12858_v51 = vld [vmem:[#allocation12 + $0x1168] sm:$0xf0] }
 0x251   :  { %v15991_v52 = vld [vmem:[#allocation12 + $0x134c] sm:$0xf]  ;;  %v12861_v9 = vor.u32 %v15927_v50, %v12858_v51  ;;  %5542 = vmatpush.bf16.msrb.mxu1 %v12605_v54  ;;  %v5291_v50 = vpop.f32.mrf.mxu1  ;;  %v5316_v51 = vadd.f32 %v5315_v43, %v5303_v42  ;;  %v10848_v43 = vld [vmem:[#allocation12 + $0x190] sm:$0xf] }
 0x252   :  { %v13114_v53 = vld [vmem:[#allocation12 + $0x1368] sm:$0xf0]  ;;  %v11360_v50 = vld [vmem:[#allocation12 + $0x590] sm:$0xf] }
 0x253   :  { %v15791_v57 = vld [vmem:[#allocation12 + $0xd0c] sm:$0xf]  ;;  %v13117_v60 = vor.u32 %v15991_v52, %v13114_v53  ;;  %5555 = vmatpush.bf16.msrb.mxu2 %v12861_v9 }
 0x254   :  { %v12314_v58 = vld [vmem:[#allocation12 + $0xd28] sm:$0xf0] }
 0x255   :  { %v15855_v10 = vld [vmem:[#allocation12 + $0xf0c] sm:$0xf]  ;;  %v12317_v16 = vor.u32 %v15791_v57, %v12314_v58  ;;  %5568 = vmatpush.bf16.msrb.mxu3 %v13117_v60 }
 0x256   :  { %v12570_v61 = vld [vmem:[#allocation12 + $0xf28] sm:$0xf0] }
 0x257   :  { %v15919_v62 = vld [vmem:[#allocation12 + $0x110c] sm:$0xf]  ;;  %v12573_v19 = vor.u32 %v15855_v10, %v12570_v61  ;;  %5530 = vmatpush.bf16.msrb.mxu0 %v12317_v16  ;;  %v6099_v61 = vmax.f32 %v16987_v8, 0.0 }
 0x258   :  { %v12826_v1 = vld [vmem:[#allocation12 + $0x1128] sm:$0xf0] }
 0x259   :  { %v15983_v12 = vld [vmem:[#allocation12 + $0x130c] sm:$0xf]  ;;  %v12829_v20 = vor.u32 %v15919_v62, %v12826_v1  ;;  %5543 = vmatpush.bf16.msrb.mxu1 %v12573_v19  ;;  %v6100_v62 = vmax.f32 %v5316_v51, 0.0  ;;  %v15556_v51 = vld [vmem:[#allocation12 + $0x5ac] sm:$0xf0] }
 0x25a   :  { %v13082_v14 = vld [vmem:[#allocation12 + $0x1328] sm:$0xf0] }
 0x25b   :  { %v15783_v21 = vld [vmem:[#allocation12 + $0xccc] sm:$0xf]  ;;  %v13085_v55 = vor.u32 %v15983_v12, %v13082_v14  ;;  %5556 = vmatpush.bf16.msrb.mxu2 %v12829_v20  ;;  %v17005_v16 = vpack.c.bf16 %v6100_v62, %v6099_v61  ;;  %v15484_v61 = vld [vmem:[#allocation12 + $0x36c] sm:$0xf0] }
 0x25c   :  { %v12282_v22 = vld [vmem:[#allocation12 + $0xce8] sm:$0xf0]  ;;  %v11328_v62 = vld [vmem:[#allocation12 + $0x550] sm:$0xf] }
 0x25d   :  { %v15847_v23 = vld [vmem:[#allocation12 + $0xecc] sm:$0xf]  ;;  %v12285_v29 = vor.u32 %v15783_v21, %v12282_v22  ;;  %5569 = vmatpush.bf16.msrb.mxu3 %v13085_v55 }
 0x25e   :  { %v12538_v25 = vld [vmem:[#allocation12 + $0xee8] sm:$0xf0] }
 0x25f   :  { %v15911_v32 = vld [vmem:[#allocation12 + $0x10cc] sm:$0xf]  ;;  %v12541_v30 = vor.u32 %v15847_v23, %v12538_v25  ;;  %5531 = vmatpush.bf16.msrb.mxu0 %v12285_v29  ;;  %v5304_v25 = vpop.f32.mrf.mxu2 }
 0x260   :  { %v12794_v26 = vld [vmem:[#allocation12 + $0x10e8] sm:$0xf0]  ;;  %v15540_v25 = vld [vmem:[#allocation12 + $0x52c] sm:$0xf0] }
 0x261   :  { %v15975_v27 = vld [vmem:[#allocation12 + $0x12cc] sm:$0xf]  ;;  %v12797_v31 = vor.u32 %v15911_v32, %v12794_v26  ;;  %5544 = vmatpush.bf16.msrb.mxu1 %v12541_v30  ;;  %v10880_v32 = vld [vmem:[#allocation12 + $0x1d0] sm:$0xf] }
 0x262   :  { %v13050_v28 = vld [vmem:[#allocation12 + $0x12e8] sm:$0xf0]  ;;  %v15436_v26 = vld [vmem:[#allocation12 + $0x1ec] sm:$0xf0] }
 0x263   :  { %v15775_v33 = vld [vmem:[#allocation12 + $0xc8c] sm:$0xf]  ;;  %v13053_v37 = vor.u32 %v15975_v27, %v13050_v28  ;;  %5557 = vmatpush.bf16.msrb.mxu2 %v12797_v31  ;;  %v11136_v27 = vld [vmem:[#allocation12 + $0x3d0] sm:$0xf]  ;;  %v5317_v28 = vpop.f32.mrf.mxu3 }
 0x264   :  { %v12250_v34 = vld [vmem:[#allocation12 + $0xca8] sm:$0xf0]  ;;  %v15500_v30 = vld [vmem:[#allocation12 + $0x3ec] sm:$0xf0]  ;;  %v5328_v28 = vpop.f32.mrf.mxu0 }
 0x265   :  { %v15839_v36 = vld [vmem:[#allocation12 + $0xe8c] sm:$0xf]  ;;  %v12253_v47 = vor.u32 %v15775_v33, %v12250_v34  ;;  %5570 = vmatpush.bf16.msrb.mxu3 %v13053_v37  ;;  %v11392_v31 = vld [vmem:[#allocation12 + $0x5d0] sm:$0xf] }
 0x266   :  { %v12506_v39 = vld [vmem:[#allocation12 + $0xea8] sm:$0xf0]  ;;  %v15564_v33 = vld [vmem:[#allocation12 + $0x5ec] sm:$0xf0] }
 0x267   :  { %v15903_v40 = vld [vmem:[#allocation12 + $0x108c] sm:$0xf]  ;;  %v12509_v52 = vor.u32 %v15839_v36, %v12506_v39  ;;  %5532 = vmatpush.bf16.msrb.mxu0 %v12253_v47  ;;  %v11648_v37 = vld [vmem:[#allocation12 + $0x7d0] sm:$0xf]  ;;  %v11393_v42 = vor.u32 %v15564_v33, %v11392_v31 }
 0x268   :  { %v12762_v41 = vld [vmem:[#allocation12 + $0x10a8] sm:$0xf0]  ;;  %v11649_v46 = vor.u32 %v15628_v38, %v11648_v37  ;;  %v15492_v47 = vld [vmem:[#allocation12 + $0x3ac] sm:$0xf0]  ;;  %v5341_v37 = vpop.f32.mrf.mxu1 }
 0x269   :  { %v15967_v44 = vld [vmem:[#allocation12 + $0x128c] sm:$0xf]  ;;  %v12765_v53 = vor.u32 %v15903_v40, %v12762_v41  ;;  %5545 = vmatpush.bf16.msrb.mxu1 %v12509_v52  ;;  %v10881_v40 = vor.u32 %v15436_v26, %v10880_v32  ;;  %v11137_v41 = vor.u32 %v15500_v30, %v11136_v27  ;;  %v11616_v52 = vld [vmem:[#allocation12 + $0x790] sm:$0xf] }
 0x26a   :  { %v13018_v45 = vld [vmem:[#allocation12 + $0x12a8] sm:$0xf0]  ;;  %v11552_v32 = vld [vmem:[#allocation12 + $0x710] sm:$0xf] }
 0x26b   :  { %v15767_v56 = vld [vmem:[#allocation12 + $0xc4c] sm:$0xf]  ;;  %v13021_v57 = vor.u32 %v15967_v44, %v13018_v45  ;;  %5558 = vmatpush.bf16.msrb.mxu2 %v12765_v53  ;;  %v15428_v44 = vld [vmem:[#allocation12 + $0x1ac] sm:$0xf0] }
 0x26c   :  { %v12218_v54 = vld [vmem:[#allocation12 + $0xc68] sm:$0xf0]  ;;  %v11104_v45 = vld [vmem:[#allocation12 + $0x390] sm:$0xf] }
 0x26d   :  { %v15831_v9 = vld [vmem:[#allocation12 + $0xe4c] sm:$0xf]  ;;  %v12221_v12 = vor.u32 %v15767_v56, %v12218_v54  ;;  %5571 = vmatpush.bf16.msrb.mxu3 %v13021_v57  ;;  %v15620_v53 = vld [vmem:[#allocation12 + $0x7ac] sm:$0xf0]  ;;  %v10849_v56 = vor.u32 %v15428_v44, %v10848_v43  ;;  %v11105_v54 = vor.u32 %v15492_v47, %v11104_v45 }
 0x26e   :  { %v12474_v58 = vld [vmem:[#allocation12 + $0xe68] sm:$0xf0]  ;;  %v10816_v57 = vld [vmem:[#allocation12 + $0x150] sm:$0xf] }
 0x26f   :  { %v15895_v10 = vld [vmem:[#allocation12 + $0x104c] sm:$0xf]  ;;  %v12477_v18 = vor.u32 %v15831_v9, %v12474_v58  ;;  %5533 = vmatpush.bf16.msrb.mxu0 %v12221_v12  ;;  %v11361_v9 = vor.u32 %v15556_v51, %v11360_v50  ;;  %v15420_v58 = vld [vmem:[#allocation12 + $0x16c] sm:$0xf0] }
 0x270   :  { %v12730_v60 = vld [vmem:[#allocation12 + $0x1068] sm:$0xf0]  ;;  %v15612_v12 = vld [vmem:[#allocation12 + $0x76c] sm:$0xf0] }
 0x271   :  { %v15959_v1 = vld [vmem:[#allocation12 + $0x124c] sm:$0xf]  ;;  %v12733_v19 = vor.u32 %v15895_v10, %v12730_v60  ;;  %5546 = vmatpush.bf16.msrb.mxu1 %v12477_v18  ;;  %v11072_v10 = vld [vmem:[#allocation12 + $0x350] sm:$0xf]  ;;  %v11617_v60 = vor.u32 %v15620_v53, %v11616_v52  ;;  %v5354_v53 = vpop.f32.mrf.mxu2 }
 0x272   :  { %v12986_v2 = vld [vmem:[#allocation12 + $0x1268] sm:$0xf0]  ;;  %v11073_v18 = vor.u32 %v15484_v61, %v11072_v10  ;;  %v15604_v26 = vld [vmem:[#allocation12 + $0x72c] sm:$0xf0]  ;;  %v5367_v10 = vpop.f32.mrf.mxu3 }
 0x273   :  { %v15759_v14 = vld [vmem:[#allocation12 + $0xc0c] sm:$0xf]  ;;  %v12989_v23 = vor.u32 %v15959_v1, %v12986_v2  ;;  %5559 = vmatpush.bf16.msrb.mxu2 %v12733_v19  ;;  %v15548_v1 = vld [vmem:[#allocation12 + $0x56c] sm:$0xf0]  ;;  %v11553_v38 = vor.u32 %v15604_v26, %v11552_v32 }
 0x274   :  { %v12186_v15 = vld [vmem:[#allocation12 + $0xc28] sm:$0xf0]  ;;  %v11584_v2 = vld [vmem:[#allocation12 + $0x750] sm:$0xf]  ;;  %v11329_v19 = vor.u32 %v15548_v1, %v11328_v62 }
 0x275   :  { %v15823_v20 = vld [vmem:[#allocation12 + $0xe0c] sm:$0xf]  ;;  %v12189_v29 = vor.u32 %v15759_v14, %v12186_v15  ;;  %5572 = vmatpush.bf16.msrb.mxu3 %v12989_v23  ;;  %v10817_v14 = vor.u32 %v15420_v58, %v10816_v57  ;;  %v10784_v15 = vld [vmem:[#allocation12 + $0x110] sm:$0xf] }
 0x276   :  { %v12442_v21 = vld [vmem:[#allocation12 + $0xe28] sm:$0xf0]  ;;  %v10752_v31 = vld [vmem:[#allocation12 + $0xd0] sm:$0xf] }
 0x277   :  { %v15887_v22 = vld [vmem:[#allocation12 + $0x100c] sm:$0xf]  ;;  %v12445_v34 = vor.u32 %v15823_v20, %v12442_v21  ;;  %5534 = vmatpush.bf16.msrb.mxu0 %v12189_v29  ;;  %v15412_v20 = vld [vmem:[#allocation12 + $0x12c] sm:$0xf0] }
 0x278   :  { %v12698_v55 = vld [vmem:[#allocation12 + $0x1028] sm:$0xf0]  ;;  %v11040_v21 = vld [vmem:[#allocation12 + $0x310] sm:$0xf]  ;;  %v10785_v27 = vor.u32 %v15412_v20, %v10784_v15  ;;  %v5343_v20 = vpop.f32.mrf.mxu1 }
 0x279   :  { %v15951_v8 = vld [vmem:[#allocation12 + $0x120c] sm:$0xf]  ;;  %v12701_v36 = vor.u32 %v15887_v22, %v12698_v55  ;;  %5547 = vmatpush.bf16.msrb.mxu1 %v12445_v34  ;;  %v17011_v22 = vld [vmem:[#allocation13] sm:$0xff]  ;;  %v11585_v55 = vor.u32 %v15612_v12, %v11584_v2  ;;  %v15404_v33 = vld [vmem:[#allocation12 + $0xec] sm:$0xf0]  ;;  %v5330_v2 = vpop.f32.mrf.mxu0 }
 0x27a   :  { %v12954_v24 = vld [vmem:[#allocation12 + $0x1228] sm:$0xf0]  ;;  %5535 = vmatmul.bf16.vlgmr.msrb.gmra.mxu0 %v16930_v63  ;;  %v1845_v23 = vperm.slane %v17011_v22, 2  ;;  %v11008_v34 = vld [vmem:[#allocation12 + $0x2d0] sm:$0xf]  ;;  %v10753_v45 = vor.u32 %v15404_v33, %v10752_v31 }
 0x27b   :  { %v12957_v39 = vor.u32 %v15951_v8, %v12954_v24  ;;  %5560 = vmatpush.bf16.msrb.mxu2 %v12701_v36  ;;  %5579 = vmatpush.bf16.msra.mxu0 %v10881_v40  ;;  %v15476_v8 = vld [vmem:[#allocation12 + $0x32c] sm:$0xf0] }
 0x27c   :  { %5548 = vmatmul.bf16.vlgmr.msrb.gmra.mxu1 %v16934_v7  ;;  %v11296_v24 = vld [vmem:[#allocation12 + $0x510] sm:$0xf]  ;;  %v11041_v29 = vor.u32 %v15476_v8, %v11040_v21  ;;  %v5329_v36 = vadd.f32 %v5328_v28, %v1845_v23 }
 0x27d   :  { %5573 = vmatpush.bf16.msrb.mxu3 %v12957_v39  ;;  %5592 = vmatpush.bf16.msra.mxu1 %v11137_v41  ;;  %v11297_v30 = vor.u32 %v15540_v25, %v11296_v24  ;;  %v15468_v39 = vld [vmem:[#allocation12 + $0x2ec] sm:$0xf0] }
 0x27e   :  { %5561 = vmatmul.bf16.vlgmr.msrb.gmra.mxu2 %v16946_v13  ;;  %v11264_v40 = vld [vmem:[#allocation12 + $0x4d0] sm:$0xf]  ;;  %v5342_v44 = vadd.f32 %v5341_v37, %v5329_v36 }
 0x27f   :  { %5605 = vmatpush.bf16.msra.mxu2 %v11393_v42  ;;  %5580 = vmatpush.bf16.msra.mxu0 %v10849_v56  ;;  %v15532_v41 = vld [vmem:[#allocation12 + $0x4ec] sm:$0xf0] }
 0x280   :  { %5574 = vmatmul.bf16.vlgmr.msrb.gmra.mxu3 %v16948_v17  ;;  %v11520_v42 = vld [vmem:[#allocation12 + $0x6d0] sm:$0xf]  ;;  %v11265_v47 = vor.u32 %v15532_v41, %v11264_v40  ;;  %v5355_v58 = vadd.f32 %v5354_v53, %v5342_v44  ;;  %v5369_v40 = vpop.f32.mrf.mxu3 }
 0x281   :  { %5618 = vmatpush.bf16.msra.mxu3 %v11649_v46  ;;  %5593 = vmatpush.bf16.msra.mxu1 %v11105_v54  ;;  %v15596_v43 = vld [vmem:[#allocation12 + $0x6ec] sm:$0xf0]  ;;  %v11009_v46 = vor.u32 %v15468_v39, %v11008_v34  ;;  %v5356_v34 = vpop.f32.mrf.mxu2 }
 0x282   :  { %v10720_v50 = vld [vmem:[#allocation12 + $0x90] sm:$0xf]  ;;  %v11521_v56 = vor.u32 %v15596_v43, %v11520_v42  ;;  %v17014_v1 = vadd.f32 %v5367_v10, %v5355_v58 }
 0x283   :  { %5606 = vmatpush.bf16.msra.mxu2 %v11361_v9  ;;  %5581 = vmatpush.bf16.msra.mxu0 %v10817_v14  ;;  %v15396_v51 = vld [vmem:[#allocation12 + $0xac] sm:$0xf0] }
 0x284   :  { %v10976_v52 = vld [vmem:[#allocation12 + $0x290] sm:$0xf]  ;;  %v10721_v62 = vor.u32 %v15396_v51, %v10720_v50 }
 0x285   :  { %5619 = vmatpush.bf16.msra.mxu3 %v11617_v60  ;;  %5594 = vmatpush.bf16.msra.mxu1 %v11073_v18  ;;  %v15460_v54 = vld [vmem:[#allocation12 + $0x2ac] sm:$0xf0] }
 0x286   :  { %v11232_v9 = vld [vmem:[#allocation12 + $0x490] sm:$0xf]  ;;  %v10977_v12 = vor.u32 %v15460_v54, %v10976_v52 }
 0x287   :  { %5607 = vmatpush.bf16.msra.mxu2 %v11329_v19  ;;  %5582 = vmatpush.bf16.msra.mxu0 %v10785_v27  ;;  %v15524_v57 = vld [vmem:[#allocation12 + $0x4ac] sm:$0xf0] }
 0x288   :  { %v11488_v60 = vld [vmem:[#allocation12 + $0x690] sm:$0xf]  ;;  %v11233_v14 = vor.u32 %v15524_v57, %v11232_v9 }
 0x289   :  { %5620 = vmatpush.bf16.msra.mxu3 %v11585_v55  ;;  %5595 = vmatpush.bf16.msra.mxu1 %v11041_v29  ;;  %v15588_v61 = vld [vmem:[#allocation12 + $0x6ac] sm:$0xf0] }
 0x28a   :  { %v10688_v15 = vld [vmem:[#allocation12 + $0x50] sm:$0xf]  ;;  %v11489_v21 = vor.u32 %v15588_v61, %v11488_v60 }
 0x28b   :  { %5608 = vmatpush.bf16.msra.mxu2 %v11297_v30  ;;  %5583 = vmatpush.bf16.msra.mxu0 %v10753_v45  ;;  %v15388_v18 = vld [vmem:[#allocation12 + $0x6c] sm:$0xf0] }
 0x28c   :  { %v10944_v19 = vld [vmem:[#allocation12 + $0x250] sm:$0xf]  ;;  %v10689_v32 = vor.u32 %v15388_v18, %v10688_v15 }
 0x28d   :  { %5621 = vmatpush.bf16.msra.mxu3 %v11553_v38  ;;  %5596 = vmatpush.bf16.msra.mxu1 %v11009_v46  ;;  %v15452_v23 = vld [vmem:[#allocation12 + $0x26c] sm:$0xf0] }
 0x28e   :  { %v11200_v55 = vld [vmem:[#allocation12 + $0x450] sm:$0xf]  ;;  %v10945_v28 = vor.u32 %v15452_v23, %v10944_v19 }
 0x28f   :  { %5609 = vmatpush.bf16.msra.mxu2 %v11265_v47  ;;  %v15516_v8 = vld [vmem:[#allocation12 + $0x46c] sm:$0xf0]  ;;  %5584 = vmatpush.bf16.msra.mxu0 %v10721_v62 }
 0x290   :  { %v11456_v24 = vld [vmem:[#allocation12 + $0x650] sm:$0xf]  ;;  %v11201_v29 = vor.u32 %v15516_v8, %v11200_v55 }
 0x291   :  { %5622 = vmatpush.bf16.msra.mxu3 %v11521_v56  ;;  %v15580_v25 = vld [vmem:[#allocation12 + $0x66c] sm:$0xf0]  ;;  %5597 = vmatpush.bf16.msra.mxu1 %v10977_v12 }
 0x292   :  { %v10656_v26 = vld [vmem:[#allocation12 + $0x10] sm:$0xf]  ;;  %v11457_v36 = vor.u32 %v15580_v25, %v11456_v24 }
 0x293   :  { %v15380_v27 = vld [vmem:[#allocation12 + $0x2c] sm:$0xf0]  ;;  %5610 = vmatpush.bf16.msra.mxu2 %v11233_v14  ;;  %5585 = vmatpush.bf16.msra.mxu0 %v10689_v32 }
 0x294   :  { %v10912_v30 = vld [vmem:[#allocation12 + $0x210] sm:$0xf]  ;;  %v10657_v44 = vor.u32 %v15380_v27, %v10656_v26 }
 0x295   :  { %v15444_v31 = vld [vmem:[#allocation12 + $0x22c] sm:$0xf0]  ;;  %5623 = vmatpush.bf16.msra.mxu3 %v11489_v21  ;;  %5598 = vmatpush.bf16.msra.mxu1 %v10945_v28 }
 0x296   :  { %v11168_v33 = vld [vmem:[#allocation12 + $0x410] sm:$0xf]  ;;  %v10913_v50 = vor.u32 %v15444_v31, %v10912_v30 }
 0x297   :  { %v15508_v37 = vld [vmem:[#allocation12 + $0x42c] sm:$0xf0]  ;;  %5611 = vmatpush.bf16.msra.mxu2 %v11201_v29  ;;  %5586 = vmatpush.bf16.msra.mxu0 %v10657_v44 }
 0x298   :  { %v11424_v38 = vld [vmem:[#allocation12 + $0x610] sm:$0xf]  ;;  %v11169_v51 = vor.u32 %v15508_v37, %v11168_v33 }
 0x299   :  { %v15572_v39 = vld [vmem:[#allocation12 + $0x62c] sm:$0xf0]  ;;  %5624 = vmatpush.bf16.msra.mxu3 %v11457_v36  ;;  %5599 = vmatpush.bf16.msra.mxu1 %v10913_v50 }
 0x29a   :  { %v11904_v41 = vld [vmem:[#allocation12 + $0x9d0] sm:$0xf]  ;;  %v11425_v56 = vor.u32 %v15572_v39, %v11424_v38  ;;  %5587 = vmatmul.bf16.vlgmr.msra.gmra.mxu0 %v16914_v3 }
 0x29b   :  { %v15692_v42 = vld [vmem:[#allocation12 + $0x9ec] sm:$0xf0]  ;;  %5612 = vmatpush.bf16.msra.mxu2 %v11169_v51 }
 0x29c   :  { %v12160_v43 = vld [vmem:[#allocation12 + $0xbd0] sm:$0xf]  ;;  %v11905_v54 = vor.u32 %v15692_v42, %v11904_v41  ;;  %5600 = vmatmul.bf16.vlgmr.msra.gmra.mxu1 %v16918_v6 }
 0x29d   :  { %v15756_v45 = vld [vmem:[#allocation12 + $0xbec] sm:$0xf0]  ;;  %5625 = vmatpush.bf16.msra.mxu3 %v11425_v56 }
 0x29e   :  { %v12416_v46 = vld [vmem:[#allocation12 + $0xdd0] sm:$0xf]  ;;  %v12161_v9 = vor.u32 %v15756_v45, %v12160_v43  ;;  %5631 = vmatpush.bf16.msrb.mxu0 %v11905_v54  ;;  %5613 = vmatmul.bf16.vlgmr.msra.gmra.mxu2 %v16912_v0  ;;  %v5380_v43 = vpop.f32.mrf.mxu0 }
 0x29f   :  { %v15820_v47 = vld [vmem:[#allocation12 + $0xdec] sm:$0xf0]  ;;  %v5381_v51 = vadd.f32 %v5380_v43, %v17014_v1 }
 0x2a0   :  { %v12672_v52 = vld [vmem:[#allocation12 + $0xfd0] sm:$0xf]  ;;  %v12417_v57 = vor.u32 %v15820_v47, %v12416_v46  ;;  %5644 = vmatpush.bf16.msrb.mxu1 %v12161_v9  ;;  %5626 = vmatmul.bf16.vlgmr.msra.gmra.mxu3 %v16916_v4 }
 0x2a1   :  { %v15884_v53 = vld [vmem:[#allocation12 + $0xfec] sm:$0xf0] }
 0x2a2   :  { %v11872_v58 = vld [vmem:[#allocation12 + $0x990] sm:$0xf]  ;;  %v12673_v61 = vor.u32 %v15884_v53, %v12672_v52  ;;  %5657 = vmatpush.bf16.msrb.mxu2 %v12417_v57  ;;  %v5393_v52 = vpop.f32.mrf.mxu1 }
 0x2a3   :  { %v15684_v10 = vld [vmem:[#allocation12 + $0x9ac] sm:$0xf0] }
 0x2a4   :  { %v12128_v60 = vld [vmem:[#allocation12 + $0xb90] sm:$0xf]  ;;  %v11873_v18 = vor.u32 %v15684_v10, %v11872_v58  ;;  %5670 = vmatpush.bf16.msrb.mxu3 %v12673_v61  ;;  %v5394_v10 = vadd.f32 %v5393_v52, %v5381_v51 }
 0x2a5   :  { %v15748_v62 = vld [vmem:[#allocation12 + $0xbac] sm:$0xf0] }
 0x2a6   :  { %v12384_v2 = vld [vmem:[#allocation12 + $0xd90] sm:$0xf]  ;;  %v12129_v19 = vor.u32 %v15748_v62, %v12128_v60  ;;  %5632 = vmatpush.bf16.msrb.mxu0 %v11873_v18 }
 0x2a7   :  { %v15812_v12 = vld [vmem:[#allocation12 + $0xdac] sm:$0xf0] }
 0x2a8   :  { %v12640_v14 = vld [vmem:[#allocation12 + $0xf90] sm:$0xf]  ;;  %v12385_v20 = vor.u32 %v15812_v12, %v12384_v2  ;;  %5645 = vmatpush.bf16.msrb.mxu1 %v12129_v19 }
 0x2a9   :  { %v15876_v15 = vld [vmem:[#allocation12 + $0xfac] sm:$0xf0] }
 0x2aa   :  { %v11840_v21 = vld [vmem:[#allocation12 + $0x950] sm:$0xf]  ;;  %v12641_v8 = vor.u32 %v15876_v15, %v12640_v14  ;;  %5658 = vmatpush.bf16.msrb.mxu2 %v12385_v20  ;;  %v5406_v15 = vpop.f32.mrf.mxu2 }
 0x2ab   :  { %v15676_v23 = vld [vmem:[#allocation12 + $0x96c] sm:$0xf0] }
 0x2ac   :  { %v12096_v55 = vld [vmem:[#allocation12 + $0xb50] sm:$0xf]  ;;  %v11841_v28 = vor.u32 %v15676_v23, %v11840_v21  ;;  %5671 = vmatpush.bf16.msrb.mxu3 %v12641_v8  ;;  %v5407_v21 = vadd.f32 %v5406_v15, %v5394_v10  ;;  %v5419_v23 = vpop.f32.mrf.mxu3  ;;  %v11138_v15 = vld [vmem:[#allocation12 + $0x3f0] sm:$0xf0] }
 0x2ad   :  { %v15740_v24 = vld [vmem:[#allocation12 + $0xb6c] sm:$0xf0] }
 0x2ae   :  { %v12352_v25 = vld [vmem:[#allocation12 + $0xd50] sm:$0xf]  ;;  %v12097_v29 = vor.u32 %v15740_v24, %v12096_v55  ;;  %5633 = vmatpush.bf16.msrb.mxu0 %v11841_v28 }
 0x2af   :  { %v15804_v32 = vld [vmem:[#allocation12 + $0xd6c] sm:$0xf0] }
 0x2b0   :  { %v12608_v26 = vld [vmem:[#allocation12 + $0xf50] sm:$0xf]  ;;  %v12353_v30 = vor.u32 %v15804_v32, %v12352_v25  ;;  %5646 = vmatpush.bf16.msrb.mxu1 %v12097_v29  ;;  %v17021_v25 = vadd.f32 %v5419_v23, %v5407_v21  ;;  %v5382_v32 = vpop.f32.mrf.mxu0 }
 0x2b1   :  { %v15868_v27 = vld [vmem:[#allocation12 + $0xf6c] sm:$0xf0]  ;;  %v15424_v32 = vld [vmem:[#allocation12 + $0x194] sm:$0xf] }
 0x2b2   :  { %v11808_v31 = vld [vmem:[#allocation12 + $0x910] sm:$0xf]  ;;  %v12609_v36 = vor.u32 %v15868_v27, %v12608_v26  ;;  %5659 = vmatpush.bf16.msrb.mxu2 %v12353_v30 }
 0x2b3   :  { %v15668_v33 = vld [vmem:[#allocation12 + $0x92c] sm:$0xf0] }
 0x2b4   :  { %v12064_v34 = vld [vmem:[#allocation12 + $0xb10] sm:$0xf]  ;;  %v11809_v42 = vor.u32 %v15668_v33, %v11808_v31  ;;  %5672 = vmatpush.bf16.msrb.mxu3 %v12609_v36  ;;  %v5395_v31 = vpop.f32.mrf.mxu1 }
 0x2b5   :  { %v15732_v37 = vld [vmem:[#allocation12 + $0xb2c] sm:$0xf0] }
 0x2b6   :  { %v12320_v38 = vld [vmem:[#allocation12 + $0xd10] sm:$0xf]  ;;  %v12065_v44 = vor.u32 %v15732_v37, %v12064_v34  ;;  %5634 = vmatpush.bf16.msrb.mxu0 %v11809_v42 }
 0x2b7   :  { %v15796_v39 = vld [vmem:[#allocation12 + $0xd2c] sm:$0xf0] }
 0x2b8   :  { %v12576_v40 = vld [vmem:[#allocation12 + $0xf10] sm:$0xf]  ;;  %v12321_v45 = vor.u32 %v15796_v39, %v12320_v38  ;;  %5647 = vmatpush.bf16.msrb.mxu1 %v12065_v44 }
 0x2b9   :  { %v15860_v41 = vld [vmem:[#allocation12 + $0xf2c] sm:$0xf0] }
 0x2ba   :  { %v11776_v46 = vld [vmem:[#allocation12 + $0x8d0] sm:$0xf]  ;;  %v12577_v53 = vor.u32 %v15860_v41, %v12576_v40  ;;  %5660 = vmatpush.bf16.msrb.mxu2 %v12321_v45 }
 0x2bb   :  { %v15660_v47 = vld [vmem:[#allocation12 + $0x8ec] sm:$0xf0] }
 0x2bc   :  { %v12032_v50 = vld [vmem:[#allocation12 + $0xad0] sm:$0xf]  ;;  %v11777_v60 = vor.u32 %v15660_v47, %v11776_v46  ;;  %5673 = vmatpush.bf16.msrb.mxu3 %v12577_v53 }
 0x2bd   :  { %v15724_v56 = vld [vmem:[#allocation12 + $0xaec] sm:$0xf0] }
 0x2be   :  { %v12288_v54 = vld [vmem:[#allocation12 + $0xcd0] sm:$0xf]  ;;  %v12033_v61 = vor.u32 %v15724_v56, %v12032_v50  ;;  %5635 = vmatpush.bf16.msrb.mxu0 %v11777_v60  ;;  %v5408_v50 = vpop.f32.mrf.mxu2 }
 0x2bf   :  { %v15788_v9 = vld [vmem:[#allocation12 + $0xcec] sm:$0xf0] }
 0x2c0   :  { %v12544_v57 = vld [vmem:[#allocation12 + $0xed0] sm:$0xf]  ;;  %v12289_v62 = vor.u32 %v15788_v9, %v12288_v54  ;;  %5648 = vmatpush.bf16.msrb.mxu1 %v12033_v61  ;;  %v5421_v54 = vpop.f32.mrf.mxu3  ;;  %v15432_v61 = vld [vmem:[#allocation12 + $0x1d4] sm:$0xf] }
 0x2c1   :  { %v15852_v58 = vld [vmem:[#allocation12 + $0xeec] sm:$0xf0]  ;;  %v5432_v54 = vpop.f32.mrf.mxu0 }
 0x2c2   :  { %v11744_v2 = vld [vmem:[#allocation12 + $0x890] sm:$0xf]  ;;  %v12545_v1 = vor.u32 %v15852_v58, %v12544_v57  ;;  %5661 = vmatpush.bf16.msrb.mxu2 %v12289_v62  ;;  %v10882_v62 = vld [vmem:[#allocation12 + $0x1f0] sm:$0xf0] }
 0x2c3   :  { %v15652_v12 = vld [vmem:[#allocation12 + $0x8ac] sm:$0xf0] }
 0x2c4   :  { %v12000_v14 = vld [vmem:[#allocation12 + $0xa90] sm:$0xf]  ;;  %v11745_v24 = vor.u32 %v15652_v12, %v11744_v2  ;;  %5674 = vmatpush.bf16.msrb.mxu3 %v12545_v1 }
 0x2c5   :  { %v15716_v18 = vld [vmem:[#allocation12 + $0xaac] sm:$0xf0] }
 0x2c6   :  { %v12256_v19 = vld [vmem:[#allocation12 + $0xc90] sm:$0xf]  ;;  %v12001_v26 = vor.u32 %v15716_v18, %v12000_v14  ;;  %5636 = vmatpush.bf16.msrb.mxu0 %v11745_v24  ;;  %v15496_v14 = vld [vmem:[#allocation12 + $0x3d4] sm:$0xf] }
 0x2c7   :  { %v15780_v20 = vld [vmem:[#allocation12 + $0xcac] sm:$0xf0] }
 0x2c8   :  { %v12512_v55 = vld [vmem:[#allocation12 + $0xe90] sm:$0xf]  ;;  %v12257_v27 = vor.u32 %v15780_v20, %v12256_v19  ;;  %5649 = vmatpush.bf16.msrb.mxu1 %v12001_v26  ;;  %v10885_v20 = vor.u32 %v15432_v61, %v10882_v62  ;;  %v10850_v26 = vld [vmem:[#allocation12 + $0x1b0] sm:$0xf0] }
 0x2c9   :  { %v15844_v8 = vld [vmem:[#allocation12 + $0xeac] sm:$0xf0]  ;;  %v10853_v31 = vor.u32 %v15424_v32, %v10850_v26 }
 0x2ca   :  { %v11712_v28 = vld [vmem:[#allocation12 + $0x850] sm:$0xf]  ;;  %v12513_v33 = vor.u32 %v15844_v8, %v12512_v55  ;;  %5662 = vmatpush.bf16.msrb.mxu2 %v12257_v27  ;;  %v11141_v8 = vor.u32 %v15496_v14, %v11138_v15  ;;  %v15488_v27 = vld [vmem:[#allocation12 + $0x394] sm:$0xf] }
 0x2cb   :  { %v15644_v29 = vld [vmem:[#allocation12 + $0x86c] sm:$0xf0] }
 0x2cc   :  { %v11968_v30 = vld [vmem:[#allocation12 + $0xa50] sm:$0xf]  ;;  %v11713_v40 = vor.u32 %v15644_v29, %v11712_v28  ;;  %5675 = vmatpush.bf16.msrb.mxu3 %v12513_v33  ;;  %v11106_v28 = vld [vmem:[#allocation12 + $0x3b0] sm:$0xf0] }
 0x2cd   :  { %v15708_v34 = vld [vmem:[#allocation12 + $0xa6c] sm:$0xf0] }
 0x2ce   :  { %v12224_v36 = vld [vmem:[#allocation12 + $0xc50] sm:$0xf]  ;;  %v11969_v43 = vor.u32 %v15708_v34, %v11968_v30  ;;  %5637 = vmatpush.bf16.msrb.mxu0 %v11713_v40  ;;  %v10818_v40 = vld [vmem:[#allocation12 + $0x170] sm:$0xf0] }
 0x2cf   :  { %v15772_v37 = vld [vmem:[#allocation12 + $0xc6c] sm:$0xf0] }
 0x2d0   :  { %v12480_v38 = vld [vmem:[#allocation12 + $0xe50] sm:$0xf]  ;;  %v12225_v44 = vor.u32 %v15772_v37, %v12224_v36  ;;  %5650 = vmatpush.bf16.msrb.mxu1 %v11969_v43  ;;  %v11109_v37 = vor.u32 %v15488_v27, %v11106_v28 }
 0x2d1   :  { %v15836_v39 = vld [vmem:[#allocation12 + $0xe6c] sm:$0xf0] }
 0x2d2   :  { %v11680_v41 = vld [vmem:[#allocation12 + $0x810] sm:$0xf]  ;;  %v12481_v51 = vor.u32 %v15836_v39, %v12480_v38  ;;  %5663 = vmatpush.bf16.msrb.mxu2 %v12225_v44  ;;  %v15416_v39 = vld [vmem:[#allocation12 + $0x154] sm:$0xf] }
 0x2d3   :  { %v15636_v42 = vld [vmem:[#allocation12 + $0x82c] sm:$0xf0] }
 0x2d4   :  { %v11936_v45 = vld [vmem:[#allocation12 + $0xa10] sm:$0xf]  ;;  %v11681_v10 = vor.u32 %v15636_v42, %v11680_v41  ;;  %5676 = vmatpush.bf16.msrb.mxu3 %v12481_v51  ;;  %v15480_v41 = vld [vmem:[#allocation12 + $0x354] sm:$0xf] }
 0x2d5   :  { %v15700_v46 = vld [vmem:[#allocation12 + $0xa2c] sm:$0xf0]  ;;  %v11074_v42 = vld [vmem:[#allocation12 + $0x370] sm:$0xf0] }
 0x2d6   :  { %v12192_v47 = vld [vmem:[#allocation12 + $0xc10] sm:$0xf]  ;;  %v11937_v2 = vor.u32 %v15700_v46, %v11936_v45  ;;  %5638 = vmatpush.bf16.msrb.mxu0 %v11681_v10  ;;  %v10821_v45 = vor.u32 %v15416_v39, %v10818_v40  ;;  %v11077_v51 = vor.u32 %v15480_v41, %v11074_v42 }
 0x2d7   :  { %v15764_v52 = vld [vmem:[#allocation12 + $0xc2c] sm:$0xf0] }
 0x2d8   :  { %v12448_v53 = vld [vmem:[#allocation12 + $0xe10] sm:$0xf]  ;;  %v12193_v12 = vor.u32 %v15764_v52, %v12192_v47  ;;  %5651 = vmatpush.bf16.msrb.mxu1 %v11937_v2 }
 0x2d9   :  { %v15828_v56 = vld [vmem:[#allocation12 + $0xe2c] sm:$0xf0]  ;;  %5639 = vmatmul.bf16.vlgmr.msrb.gmra.mxu0 %v16932_v5 }
 0x2da   :  { %v12928_v9 = vld [vmem:[#allocation12 + $0x11d0] sm:$0xf]  ;;  %v12449_v1 = vor.u32 %v15828_v56, %v12448_v53  ;;  %5664 = vmatpush.bf16.msrb.mxu2 %v12193_v12  ;;  %v15408_v53 = vld [vmem:[#allocation12 + $0x114] sm:$0xf] }
 0x2db   :  { %v15948_v57 = vld [vmem:[#allocation12 + $0x11ec] sm:$0xf0]  ;;  %5652 = vmatmul.bf16.vlgmr.msrb.gmra.mxu1 %v16936_v11  ;;  %v10786_v56 = vld [vmem:[#allocation12 + $0x130] sm:$0xf0] }
 0x2dc   :  { %v13184_v58 = vld [vmem:[#allocation12 + $0x13d0] sm:$0xf]  ;;  %v12929_v18 = vor.u32 %v15948_v57, %v12928_v9  ;;  %5677 = vmatpush.bf16.msrb.mxu3 %v12449_v1  ;;  %v15472_v9 = vld [vmem:[#allocation12 + $0x314] sm:$0xf]  ;;  %v10789_v62 = vor.u32 %v15408_v53, %v10786_v56 }
 0x2dd   :  { %v16012_v60 = vld [vmem:[#allocation12 + $0x13ec] sm:$0xf0]  ;;  %5665 = vmatmul.bf16.vlgmr.msrb.gmra.mxu2 %v16930_v63  ;;  %v11042_v57 = vld [vmem:[#allocation12 + $0x330] sm:$0xf0] }
 0x2de   :  { %v13185_v19 = vor.u32 %v16012_v60, %v13184_v58  ;;  %v12896_v21 = vld [vmem:[#allocation12 + $0x1190] sm:$0xf]  ;;  %5683 = vmatpush.bf16.msra.mxu0 %v12929_v18  ;;  %5709 = vmatpush.bf16.msra.mxu2 %v10885_v20  ;;  %v5433_v58 = vadd.f32 %v5432_v54, %v17021_v25  ;;  %v5445_v60 = vpop.f32.mrf.mxu1  ;;  %v11045_v15 = vor.u32 %v15472_v9, %v11042_v57  ;;  %v10754_v20 = vld [vmem:[#allocation12 + $0xf0] sm:$0xf0]  ;;  %v1846_v25 = vperm.slane %v17011_v22, 3  ;;  %v5434_v22 = vpop.f32.mrf.mxu0 }
 0x2df   :  { %v15940_v23 = vld [vmem:[#allocation12 + $0x11ac] sm:$0xf0]  ;;  %5678 = vmatmul.bf16.vlgmr.msrb.gmra.mxu3 %v16934_v7  ;;  %v15448_v53 = vld [vmem:[#allocation12 + $0x254] sm:$0xf] }
 0x2e0   :  { %v13152_v55 = vld [vmem:[#allocation12 + $0x1390] sm:$0xf]  ;;  %v12897_v29 = vor.u32 %v15940_v23, %v12896_v21  ;;  %5696 = vmatpush.bf16.msra.mxu1 %v13185_v19  ;;  %5722 = vmatpush.bf16.msra.mxu3 %v11141_v8  ;;  %v17028_v1 = vadd.f32 %v5445_v60, %v5433_v58  ;;  %v15400_v19 = vld [vmem:[#allocation12 + $0xd4] sm:$0xf] }
 0x2e1   :  { %v16004_v24 = vld [vmem:[#allocation12 + $0x13ac] sm:$0xf0]  ;;  %v15464_v21 = vld [vmem:[#allocation12 + $0x2d4] sm:$0xf] }
 0x2e2   :  { %v13153_v30 = vor.u32 %v16004_v24, %v13152_v55  ;;  %v12864_v33 = vld [vmem:[#allocation12 + $0x1150] sm:$0xf]  ;;  %5684 = vmatpush.bf16.msra.mxu0 %v12897_v29  ;;  %5710 = vmatpush.bf16.msra.mxu2 %v10853_v31  ;;  %v11010_v23 = vld [vmem:[#allocation12 + $0x2f0] sm:$0xf0]  ;;  %v10757_v24 = vor.u32 %v15400_v19, %v10754_v20 }
 0x2e3   :  { %v15932_v34 = vld [vmem:[#allocation12 + $0x116c] sm:$0xf0]  ;;  %v11013_v28 = vor.u32 %v15464_v21, %v11010_v23  ;;  %v10722_v31 = vld [vmem:[#allocation12 + $0xb0] sm:$0xf0] }
 0x2e4   :  { %v13120_v36 = vld [vmem:[#allocation12 + $0x1350] sm:$0xf]  ;;  %v12865_v43 = vor.u32 %v15932_v34, %v12864_v33  ;;  %5697 = vmatpush.bf16.msra.mxu1 %v13153_v30  ;;  %5723 = vmatpush.bf16.msra.mxu3 %v11109_v37  ;;  %v15392_v30 = vld [vmem:[#allocation12 + $0x94] sm:$0xf]  ;;  %v5458_v33 = vpop.f32.mrf.mxu2 }
 0x2e5   :  { %v15996_v38 = vld [vmem:[#allocation12 + $0x136c] sm:$0xf0]  ;;  %v15456_v34 = vld [vmem:[#allocation12 + $0x294] sm:$0xf]  ;;  %v5459_v37 = vadd.f32 %v5458_v33, %v1846_v25  ;;  %v10725_v42 = vor.u32 %v15392_v30, %v10722_v31 }
 0x2e6   :  { %v13121_v44 = vor.u32 %v15996_v38, %v13120_v36  ;;  %v12832_v46 = vld [vmem:[#allocation12 + $0x1110] sm:$0xf]  ;;  %5685 = vmatpush.bf16.msra.mxu0 %v12865_v43  ;;  %5711 = vmatpush.bf16.msra.mxu2 %v10821_v45  ;;  %v10978_v36 = vld [vmem:[#allocation12 + $0x2b0] sm:$0xf0]  ;;  %v5471_v38 = vpop.f32.mrf.mxu3  ;;  %v5447_v40 = vpop.f32.mrf.mxu1 }
 0x2e7   :  { %v15924_v47 = vld [vmem:[#allocation12 + $0x112c] sm:$0xf0]  ;;  %v10946_v56 = vld [vmem:[#allocation12 + $0x270] sm:$0xf0] }
 0x2e8   :  { %v13088_v50 = vld [vmem:[#allocation12 + $0x1310] sm:$0xf]  ;;  %v12833_v10 = vor.u32 %v15924_v47, %v12832_v46  ;;  %5698 = vmatpush.bf16.msra.mxu1 %v13121_v44  ;;  %5724 = vmatpush.bf16.msra.mxu3 %v11077_v51  ;;  %v17031_v46 = vadd.f32 %v5471_v38, %v5459_v37  ;;  %v10981_v47 = vor.u32 %v15456_v34, %v10978_v36  ;;  %v15384_v51 = vld [vmem:[#allocation12 + $0x54] sm:$0xf] }
 0x2e9   :  { %v15988_v52 = vld [vmem:[#allocation12 + $0x132c] sm:$0xf0]  ;;  %v15560_v19 = vld [vmem:[#allocation12 + $0x5d4] sm:$0xf] }
 0x2ea   :  { %v13089_v61 = vor.u32 %v15988_v52, %v13088_v50  ;;  %v12800_v2 = vld [vmem:[#allocation12 + $0x10d0] sm:$0xf]  ;;  %5686 = vmatpush.bf16.msra.mxu0 %v12833_v10  ;;  %5712 = vmatpush.bf16.msra.mxu2 %v10789_v62  ;;  %v10690_v52 = vld [vmem:[#allocation12 + $0x70] sm:$0xf0] }
 0x2eb   :  { %v15916_v12 = vld [vmem:[#allocation12 + $0x10ec] sm:$0xf0]  ;;  %v10693_v10 = vor.u32 %v15384_v51, %v10690_v52  ;;  %v15376_v62 = vld [vmem:[#allocation12 + $0x14] sm:$0xf] }
 0x2ec   :  { %v13056_v14 = vld [vmem:[#allocation12 + $0x12d0] sm:$0xf]  ;;  %v12801_v55 = vor.u32 %v15916_v12, %v12800_v2  ;;  %5699 = vmatpush.bf16.msra.mxu1 %v13089_v61  ;;  %5725 = vmatpush.bf16.msra.mxu3 %v11045_v15  ;;  %v10949_v2 = vor.u32 %v15448_v53, %v10946_v56  ;;  %v10658_v12 = vld [vmem:[#allocation12 + $0x30] sm:$0xf0] }
 0x2ed   :  { %v15980_v18 = vld [vmem:[#allocation12 + $0x12ec] sm:$0xf0]  ;;  %v10914_v15 = vld [vmem:[#allocation12 + $0x230] sm:$0xf0] }
 0x2ee   :  { %v13057_v8 = vor.u32 %v15980_v18, %v13056_v14  ;;  %v12768_v32 = vld [vmem:[#allocation12 + $0x1090] sm:$0xf]  ;;  %5687 = vmatpush.bf16.msra.mxu0 %v12801_v55  ;;  %5713 = vmatpush.bf16.msra.mxu2 %v10757_v24  ;;  %v15440_v14 = vld [vmem:[#allocation12 + $0x214] sm:$0xf]  ;;  %v5460_v18 = vpop.f32.mrf.mxu2  ;;  %v5473_v23 = vpop.f32.mrf.mxu3 }
 0x2ef   :  { %v15908_v26 = vld [vmem:[#allocation12 + $0x10ac] sm:$0xf0]  ;;  %v11394_v20 = vld [vmem:[#allocation12 + $0x5f0] sm:$0xf0]  ;;  %v5484_v23 = vpop.f32.mrf.mxu0 }
 0x2f0   :  { %v13024_v27 = vld [vmem:[#allocation12 + $0x1290] sm:$0xf]  ;;  %v12769_v39 = vor.u32 %v15908_v26, %v12768_v32  ;;  %5700 = vmatpush.bf16.msra.mxu1 %v13057_v8  ;;  %5726 = vmatpush.bf16.msra.mxu3 %v11013_v28  ;;  %v15624_v21 = vld [vmem:[#allocation12 + $0x7d4] sm:$0xf]  ;;  %v10661_v26 = vor.u32 %v15376_v62, %v10658_v12  ;;  %v11397_v30 = vor.u32 %v15560_v19, %v11394_v20 }
 0x2f1   :  { %v15972_v29 = vld [vmem:[#allocation12 + $0x12ac] sm:$0xf0]  ;;  %v11650_v55 = vld [vmem:[#allocation12 + $0x7f0] sm:$0xf0] }
 0x2f2   :  { %v13025_v41 = vor.u32 %v15972_v29, %v13024_v27  ;;  %v12736_v43 = vld [vmem:[#allocation12 + $0x1050] sm:$0xf]  ;;  %5688 = vmatpush.bf16.msra.mxu0 %v12769_v39  ;;  %5714 = vmatpush.bf16.msra.mxu2 %v10725_v42  ;;  %v15688_v8 = vld [vmem:[#allocation12 + $0x9d4] sm:$0xf]  ;;  %v10917_v29 = vor.u32 %v15440_v14, %v10914_v15  ;;  %v11653_v31 = vor.u32 %v15624_v21, %v11650_v55 }
 0x2f3   :  { %v15900_v44 = vld [vmem:[#allocation12 + $0x106c] sm:$0xf0]  ;;  %v11906_v24 = vld [vmem:[#allocation12 + $0x9f0] sm:$0xf0] }
 0x2f4   :  { %v12992_v45 = vld [vmem:[#allocation12 + $0x1250] sm:$0xf]  ;;  %v12737_v54 = vor.u32 %v15900_v44, %v12736_v43  ;;  %5701 = vmatpush.bf16.msra.mxu1 %v13025_v41  ;;  %5727 = vmatpush.bf16.msra.mxu3 %v10981_v47  ;;  %v15752_v27 = vld [vmem:[#allocation12 + $0xbd4] sm:$0xf]  ;;  %v11909_v33 = vor.u32 %v15688_v8, %v11906_v24 }
 0x2f5   :  { %v15964_v50 = vld [vmem:[#allocation12 + $0x126c] sm:$0xf0]  ;;  %v12162_v28 = vld [vmem:[#allocation12 + $0xbf0] sm:$0xf0] }
 0x2f6   :  { %v12704_v9 = vld [vmem:[#allocation12 + $0x1010] sm:$0xf]  ;;  %v12993_v58 = vor.u32 %v15964_v50, %v12992_v45  ;;  %5689 = vmatpush.bf16.msra.mxu0 %v12737_v54  ;;  %5715 = vmatpush.bf16.msra.mxu2 %v10693_v10  ;;  %v15552_v34 = vld [vmem:[#allocation12 + $0x594] sm:$0xf]  ;;  %v12165_v38 = vor.u32 %v15752_v27, %v12162_v28  ;;  %v5497_v27 = vpop.f32.mrf.mxu1 }
 0x2f7   :  { %v15892_v57 = vld [vmem:[#allocation12 + $0x102c] sm:$0xf0]  ;;  %v11362_v36 = vld [vmem:[#allocation12 + $0x5b0] sm:$0xf0] }
 0x2f8   :  { %v12960_v60 = vld [vmem:[#allocation12 + $0x1210] sm:$0xf]  ;;  %v12705_v25 = vor.u32 %v15892_v57, %v12704_v9  ;;  %5702 = vmatpush.bf16.msra.mxu1 %v12993_v58  ;;  %5728 = vmatpush.bf16.msra.mxu3 %v10949_v2  ;;  %v15616_v37 = vld [vmem:[#allocation12 + $0x794] sm:$0xf]  ;;  %v11365_v43 = vor.u32 %v15552_v34, %v11362_v36 }
 0x2f9   :  { %v15956_v61 = vld [vmem:[#allocation12 + $0x122c] sm:$0xf0]  ;;  %v11618_v22 = vld [vmem:[#allocation12 + $0x7b0] sm:$0xf0] }
 0x2fa   :  { %v12961_v32 = vor.u32 %v15956_v61, %v12960_v60  ;;  %5690 = vmatpush.bf16.msra.mxu0 %v12705_v25  ;;  %v15680_v39 = vld [vmem:[#allocation12 + $0x994] sm:$0xf]  ;;  %5716 = vmatpush.bf16.msra.mxu2 %v10661_v26  ;;  %v11621_v44 = vor.u32 %v15616_v37, %v11618_v22  ;;  %v5485_v26 = vadd.f32 %v5484_v23, %v17031_v46 }
 0x2fb   :  { %v11874_v40 = vld [vmem:[#allocation12 + $0x9b0] sm:$0xf0] }
 0x2fc   :  { %5703 = vmatpush.bf16.msra.mxu1 %v12961_v32  ;;  %v15744_v41 = vld [vmem:[#allocation12 + $0xb94] sm:$0xf]  ;;  %5729 = vmatpush.bf16.msra.mxu3 %v10917_v29  ;;  %v11877_v45 = vor.u32 %v15680_v39, %v11874_v40  ;;  %v5498_v36 = vadd.f32 %v5497_v27, %v5485_v26 }
 0x2fd   :  { %v12130_v42 = vld [vmem:[#allocation12 + $0xbb0] sm:$0xf0]  ;;  %5691 = vmatmul.bf16.vlgmr.msra.gmra.mxu0 %v16946_v13  ;;  %5717 = vmatmul.bf16.vlgmr.msra.gmra.mxu2 %v16914_v3 }
 0x2fe   :  { %5735 = vmatpush.bf16.msrb.mxu0 %v11397_v30  ;;  %5761 = vmatpush.bf16.msrb.mxu2 %v11909_v33  ;;  %v15544_v47 = vld [vmem:[#allocation12 + $0x554] sm:$0xf]  ;;  %v12133_v52 = vor.u32 %v15744_v41, %v12130_v42  ;;  %v5510_v42 = vpop.f32.mrf.mxu2 }
 0x2ff   :  { %v11330_v50 = vld [vmem:[#allocation12 + $0x570] sm:$0xf0]  ;;  %5704 = vmatmul.bf16.vlgmr.msra.gmra.mxu1 %v16948_v17  ;;  %5730 = vmatmul.bf16.vlgmr.msra.gmra.mxu3 %v16918_v6 }
 0x300   :  { %5748 = vmatpush.bf16.msrb.mxu1 %v11653_v31  ;;  %v15608_v51 = vld [vmem:[#allocation12 + $0x754] sm:$0xf]  ;;  %5774 = vmatpush.bf16.msrb.mxu3 %v12165_v38  ;;  %v11333_v58 = vor.u32 %v15544_v47, %v11330_v50  ;;  %v5511_v47 = vadd.f32 %v5510_v42, %v5498_v36  ;;  %v5523_v50 = vpop.f32.mrf.mxu3 }
 0x301   :  { %v11586_v53 = vld [vmem:[#allocation12 + $0x770] sm:$0xf0] }
 0x302   :  { %v15672_v56 = vld [vmem:[#allocation12 + $0x954] sm:$0xf]  ;;  %5736 = vmatpush.bf16.msrb.mxu0 %v11365_v43  ;;  %5762 = vmatpush.bf16.msrb.mxu2 %v11877_v45  ;;  %v11589_v10 = vor.u32 %v15608_v51, %v11586_v53 }
 0x303   :  { %v11842_v54 = vld [vmem:[#allocation12 + $0x970] sm:$0xf0] }
 0x304   :  { %v15736_v9 = vld [vmem:[#allocation12 + $0xb54] sm:$0xf]  ;;  %5749 = vmatpush.bf16.msrb.mxu1 %v11621_v44  ;;  %v11845_v60 = vor.u32 %v15672_v56, %v11842_v54  ;;  %5775 = vmatpush.bf16.msrb.mxu3 %v12133_v52  ;;  %v17038_v56 = vadd.f32 %v5523_v50, %v5511_v47  ;;  %v5486_v54 = vpop.f32.mrf.mxu0 }
 0x305   :  { %v12098_v57 = vld [vmem:[#allocation12 + $0xb70] sm:$0xf0] }
 0x306   :  { %v15536_v61 = vld [vmem:[#allocation12 + $0x514] sm:$0xf]  ;;  %v12101_v12 = vor.u32 %v15736_v9, %v12098_v57  ;;  %5737 = vmatpush.bf16.msrb.mxu0 %v11333_v58  ;;  %5763 = vmatpush.bf16.msrb.mxu2 %v11845_v60 }
 0x307   :  { %v11298_v62 = vld [vmem:[#allocation12 + $0x530] sm:$0xf0] }
 0x308   :  { %v15600_v2 = vld [vmem:[#allocation12 + $0x714] sm:$0xf]  ;;  %v11301_v21 = vor.u32 %v15536_v61, %v11298_v62  ;;  %5750 = vmatpush.bf16.msrb.mxu1 %v11589_v10  ;;  %5776 = vmatpush.bf16.msrb.mxu3 %v12101_v12  ;;  %v5499_v61 = vpop.f32.mrf.mxu1 }
 0x309   :  { %v11554_v14 = vld [vmem:[#allocation12 + $0x730] sm:$0xf0] }
 0x30a   :  { %v15664_v15 = vld [vmem:[#allocation12 + $0x914] sm:$0xf]  ;;  %v11557_v25 = vor.u32 %v15600_v2, %v11554_v14  ;;  %5738 = vmatpush.bf16.msrb.mxu0 %v11301_v21 }
 0x30b   :  { %v11810_v18 = vld [vmem:[#allocation12 + $0x930] sm:$0xf0] }
 0x30c   :  { %v15728_v19 = vld [vmem:[#allocation12 + $0xb14] sm:$0xf]  ;;  %v11813_v55 = vor.u32 %v15664_v15, %v11810_v18  ;;  %5751 = vmatpush.bf16.msrb.mxu1 %v11557_v25 }
 0x30d   :  { %v12066_v20 = vld [vmem:[#allocation12 + $0xb30] sm:$0xf0] }
 0x30e   :  { %v15528_v8 = vld [vmem:[#allocation12 + $0x4d4] sm:$0xf]  ;;  %v12069_v28 = vor.u32 %v15728_v19, %v12066_v20  ;;  %5764 = vmatpush.bf16.msrb.mxu2 %v11813_v55 }
 0x30f   :  { %v11266_v24 = vld [vmem:[#allocation12 + $0x4f0] sm:$0xf0] }
 0x310   :  { %v15592_v32 = vld [vmem:[#allocation12 + $0x6d4] sm:$0xf]  ;;  %v11269_v37 = vor.u32 %v15528_v8, %v11266_v24  ;;  %5777 = vmatpush.bf16.msrb.mxu3 %v12069_v28 }
 0x311   :  { %v11522_v29 = vld [vmem:[#allocation12 + $0x6f0] sm:$0xf0] }
 0x312   :  { %v15656_v30 = vld [vmem:[#allocation12 + $0x8d4] sm:$0xf]  ;;  %v11525_v38 = vor.u32 %v15592_v32, %v11522_v29  ;;  %5739 = vmatpush.bf16.msrb.mxu0 %v11269_v37  ;;  %v5512_v32 = vpop.f32.mrf.mxu2 }
 0x313   :  { %v11778_v31 = vld [vmem:[#allocation12 + $0x8f0] sm:$0xf0] }
 0x314   :  { %v15720_v33 = vld [vmem:[#allocation12 + $0xad4] sm:$0xf]  ;;  %v11781_v22 = vor.u32 %v15656_v30, %v11778_v31  ;;  %5752 = vmatpush.bf16.msrb.mxu1 %v11525_v38  ;;  %v5525_v30 = vpop.f32.mrf.mxu3 }
 0x315   :  { %v12034_v34 = vld [vmem:[#allocation12 + $0xaf0] sm:$0xf0]  ;;  %v5536_v30 = vpop.f32.mrf.mxu0 }
 0x316   :  { %v15520_v39 = vld [vmem:[#allocation12 + $0x494] sm:$0xf]  ;;  %v12037_v46 = vor.u32 %v15720_v33, %v12034_v34  ;;  %5765 = vmatpush.bf16.msrb.mxu2 %v11781_v22 }
 0x317   :  { %v11234_v40 = vld [vmem:[#allocation12 + $0x4b0] sm:$0xf0] }
 0x318   :  { %v15584_v41 = vld [vmem:[#allocation12 + $0x694] sm:$0xf]  ;;  %v11237_v53 = vor.u32 %v15520_v39, %v11234_v40  ;;  %5778 = vmatpush.bf16.msrb.mxu3 %v12037_v46 }
 0x319   :  { %v11490_v43 = vld [vmem:[#allocation12 + $0x6b0] sm:$0xf0] }
 0x31a   :  { %v15648_v44 = vld [vmem:[#allocation12 + $0x894] sm:$0xf]  ;;  %v11493_v9 = vor.u32 %v15584_v41, %v11490_v43  ;;  %5740 = vmatpush.bf16.msrb.mxu0 %v11237_v53 }
 0x31b   :  { %v11746_v45 = vld [vmem:[#allocation12 + $0x8b0] sm:$0xf0] }
 0x31c   :  { %v15712_v51 = vld [vmem:[#allocation12 + $0xa94] sm:$0xf]  ;;  %v11749_v57 = vor.u32 %v15648_v44, %v11746_v45  ;;  %5753 = vmatpush.bf16.msrb.mxu1 %v11493_v9 }
 0x31d   :  { %v12002_v52 = vld [vmem:[#allocation12 + $0xab0] sm:$0xf0] }
 0x31e   :  { %v15512_v58 = vld [vmem:[#allocation12 + $0x454] sm:$0xf]  ;;  %v12005_v62 = vor.u32 %v15712_v51, %v12002_v52  ;;  %5766 = vmatpush.bf16.msrb.mxu2 %v11749_v57 }
 0x31f   :  { %v11202_v10 = vld [vmem:[#allocation12 + $0x470] sm:$0xf0] }
 0x320   :  { %v15576_v60 = vld [vmem:[#allocation12 + $0x654] sm:$0xf]  ;;  %v11205_v19 = vor.u32 %v15512_v58, %v11202_v10  ;;  %5779 = vmatpush.bf16.msrb.mxu3 %v12005_v62 }
 0x321   :  { %v11458_v2 = vld [vmem:[#allocation12 + $0x670] sm:$0xf0] }
 0x322   :  { %v15640_v12 = vld [vmem:[#allocation12 + $0x854] sm:$0xf]  ;;  %v11461_v23 = vor.u32 %v15576_v60, %v11458_v2  ;;  %5741 = vmatpush.bf16.msrb.mxu0 %v11205_v19 }
 0x323   :  { %v11714_v14 = vld [vmem:[#allocation12 + $0x870] sm:$0xf0] }
 0x324   :  { %v15704_v15 = vld [vmem:[#allocation12 + $0xa54] sm:$0xf]  ;;  %v11717_v25 = vor.u32 %v15640_v12, %v11714_v14  ;;  %5754 = vmatpush.bf16.msrb.mxu1 %v11461_v23 }
 0x325   :  { %v11970_v18 = vld [vmem:[#allocation12 + $0xa70] sm:$0xf0] }
 0x326   :  { %v15504_v20 = vld [vmem:[#allocation12 + $0x414] sm:$0xf]  ;;  %v11973_v26 = vor.u32 %v15704_v15, %v11970_v18  ;;  %5767 = vmatpush.bf16.msrb.mxu2 %v11717_v25 }
 0x327   :  { %v11170_v21 = vld [vmem:[#allocation12 + $0x430] sm:$0xf0] }
 0x328   :  { %v15568_v55 = vld [vmem:[#allocation12 + $0x614] sm:$0xf]  ;;  %v11173_v36 = vor.u32 %v15504_v20, %v11170_v21  ;;  %5780 = vmatpush.bf16.msrb.mxu3 %v11973_v26 }
 0x329   :  { %v11426_v8 = vld [vmem:[#allocation12 + $0x630] sm:$0xf0] }
 0x32a   :  { %v15632_v24 = vld [vmem:[#allocation12 + $0x814] sm:$0xf]  ;;  %v11429_v39 = vor.u32 %v15568_v55, %v11426_v8  ;;  %5742 = vmatpush.bf16.msrb.mxu0 %v11173_v36 }
 0x32b   :  { %v11682_v27 = vld [vmem:[#allocation12 + $0x830] sm:$0xf0] }
 0x32c   :  { %v15696_v28 = vld [vmem:[#allocation12 + $0xa14] sm:$0xf]  ;;  %v11685_v40 = vor.u32 %v15632_v24, %v11682_v27  ;;  %5755 = vmatpush.bf16.msrb.mxu1 %v11429_v39 }
 0x32d   :  { %v11938_v29 = vld [vmem:[#allocation12 + $0xa30] sm:$0xf0]  ;;  %5743 = vmatmul.bf16.vlgmr.msrb.gmra.mxu0 %v16912_v0 }
 0x32e   :  { %v15816_v31 = vld [vmem:[#allocation12 + $0xdd4] sm:$0xf]  ;;  %v11941_v46 = vor.u32 %v15696_v28, %v11938_v29  ;;  %5768 = vmatpush.bf16.msrb.mxu2 %v11685_v40 }
 0x32f   :  { %v12418_v33 = vld [vmem:[#allocation12 + $0xdf0] sm:$0xf0]  ;;  %5756 = vmatmul.bf16.vlgmr.msrb.gmra.mxu1 %v16916_v4 }
 0x330   :  { %v15880_v34 = vld [vmem:[#allocation12 + $0xfd4] sm:$0xf]  ;;  %v12421_v43 = vor.u32 %v15816_v31, %v12418_v33  ;;  %5781 = vmatpush.bf16.msrb.mxu3 %v11941_v46 }
 0x331   :  { %v12674_v37 = vld [vmem:[#allocation12 + $0xff0] sm:$0xf0]  ;;  %5769 = vmatmul.bf16.vlgmr.msrb.gmra.mxu2 %v16932_v5 }
 0x332   :  { %v15944_v38 = vld [vmem:[#allocation12 + $0x11d4] sm:$0xf]  ;;  %v12677_v44 = vor.u32 %v15880_v34, %v12674_v37  ;;  %5787 = vmatpush.bf16.msra.mxu0 %v12421_v43  ;;  %v5537_v34 = vadd.f32 %v5536_v30, %v17038_v56  ;;  %v5549_v37 = vpop.f32.mrf.mxu1 }
 0x333   :  { %v12930_v22 = vld [vmem:[#allocation12 + $0x11f0] sm:$0xf0]  ;;  %5782 = vmatmul.bf16.vlgmr.msrb.gmra.mxu3 %v16936_v11 }
 0x334   :  { %v16008_v41 = vld [vmem:[#allocation12 + $0x13d4] sm:$0xf]  ;;  %v12933_v45 = vor.u32 %v15944_v38, %v12930_v22  ;;  %5800 = vmatpush.bf16.msra.mxu1 %v12677_v44  ;;  %v5550_v46 = vadd.f32 %v5549_v37, %v5537_v34 }
 0x335   :  { %v13186_v42 = vld [vmem:[#allocation12 + $0x13f0] sm:$0xf0] }
 0x336   :  { %v15808_v47 = vld [vmem:[#allocation12 + $0xd94] sm:$0xf]  ;;  %v13189_v52 = vor.u32 %v16008_v41, %v13186_v42  ;;  %5813 = vmatpush.bf16.msra.mxu2 %v12933_v45 }
 0x337   :  { %v12386_v50 = vld [vmem:[#allocation12 + $0xdb0] sm:$0xf0] }
 0x338   :  { %v15872_v51 = vld [vmem:[#allocation12 + $0xf94] sm:$0xf]  ;;  %v12389_v10 = vor.u32 %v15808_v47, %v12386_v50  ;;  %5826 = vmatpush.bf16.msra.mxu3 %v13189_v52 }
 0x339   :  { %v12642_v53 = vld [vmem:[#allocation12 + $0xfb0] sm:$0xf0] }
 0x33a   :  { %v15936_v54 = vld [vmem:[#allocation12 + $0x1194] sm:$0xf]  ;;  %v12645_v60 = vor.u32 %v15872_v51, %v12642_v53  ;;  %5788 = vmatpush.bf16.msra.mxu0 %v12389_v10 }
 0x33b   :  { %v12898_v9 = vld [vmem:[#allocation12 + $0x11b0] sm:$0xf0] }
 0x33c   :  { %v16000_v57 = vld [vmem:[#allocation12 + $0x1394] sm:$0xf]  ;;  %v12901_v61 = vor.u32 %v15936_v54, %v12898_v9  ;;  %5801 = vmatpush.bf16.msra.mxu1 %v12645_v60 }
 0x33d   :  { %v13154_v58 = vld [vmem:[#allocation12 + $0x13b0] sm:$0xf0] }
 0x33e   :  { %v15800_v62 = vld [vmem:[#allocation12 + $0xd54] sm:$0xf]  ;;  %v13157_v14 = vor.u32 %v16000_v57, %v13154_v58  ;;  %5814 = vmatpush.bf16.msra.mxu2 %v12901_v61  ;;  %v5562_v58 = vpop.f32.mrf.mxu2 }
 0x33f   :  { %v12354_v2 = vld [vmem:[#allocation12 + $0xd70] sm:$0xf0] }
 0x340   :  { %v15864_v12 = vld [vmem:[#allocation12 + $0xf54] sm:$0xf]  ;;  %v12357_v23 = vor.u32 %v15800_v62, %v12354_v2  ;;  %5827 = vmatpush.bf16.msra.mxu3 %v13157_v14  ;;  %v5563_v62 = vadd.f32 %v5562_v58, %v5550_v46  ;;  %v5575_v2 = vpop.f32.mrf.mxu3  ;;  %v11656_v58 = vld [vmem:[#allocation12 + $0x7d8] sm:$0xf] }
 0x341   :  { %v12610_v15 = vld [vmem:[#allocation12 + $0xf70] sm:$0xf0] }
 0x342   :  { %v15928_v18 = vld [vmem:[#allocation12 + $0x1154] sm:$0xf]  ;;  %v12613_v25 = vor.u32 %v15864_v12, %v12610_v15  ;;  %5789 = vmatpush.bf16.msra.mxu0 %v12357_v23  ;;  %v5538_v15 = vpop.f32.mrf.mxu0 }
 0x343   :  { %v12866_v19 = vld [vmem:[#allocation12 + $0x1170] sm:$0xf0]  ;;  %v11112_v15 = vld [vmem:[#allocation12 + $0x398] sm:$0xf] }
 0x344   :  { %v15992_v20 = vld [vmem:[#allocation12 + $0x1354] sm:$0xf]  ;;  %v12869_v55 = vor.u32 %v15928_v18, %v12866_v19  ;;  %5802 = vmatpush.bf16.msra.mxu1 %v12613_v25  ;;  %v5551_v19 = vpop.f32.mrf.mxu1 }
 0x345   :  { %v13122_v21 = vld [vmem:[#allocation12 + $0x1370] sm:$0xf0]  ;;  %v15493_v19 = vld [vmem:[#allocation12 + $0x3b4] sm:$0xf0] }
 0x346   :  { %v15792_v8 = vld [vmem:[#allocation12 + $0xd14] sm:$0xf]  ;;  %v13125_v26 = vor.u32 %v15992_v20, %v13122_v21  ;;  %5815 = vmatpush.bf16.msra.mxu2 %v12869_v55  ;;  %v5576_v20 = vadd.f32 %v5575_v2, %v5563_v62 }
 0x347   :  { %v12322_v24 = vld [vmem:[#allocation12 + $0xd30] sm:$0xf0] }
 0x348   :  { %v15856_v32 = vld [vmem:[#allocation12 + $0xf14] sm:$0xf]  ;;  %v12325_v36 = vor.u32 %v15792_v8, %v12322_v24  ;;  %5828 = vmatpush.bf16.msra.mxu3 %v13125_v26 }
 0x349   :  { %v12578_v27 = vld [vmem:[#allocation12 + $0xf30] sm:$0xf0] }
 0x34a   :  { %v15920_v28 = vld [vmem:[#allocation12 + $0x1114] sm:$0xf]  ;;  %v12581_v38 = vor.u32 %v15856_v32, %v12578_v27  ;;  %5790 = vmatpush.bf16.msra.mxu0 %v12325_v36 }
 0x34b   :  { %v12834_v29 = vld [vmem:[#allocation12 + $0x1130] sm:$0xf0] }
 0x34c   :  { %v15984_v31 = vld [vmem:[#allocation12 + $0x1314] sm:$0xf]  ;;  %v12837_v22 = vor.u32 %v15920_v28, %v12834_v29  ;;  %5803 = vmatpush.bf16.msra.mxu1 %v12581_v38  ;;  %v6101_v28 = vmax.f32 %v17028_v1, 0.0  ;;  %v6102_v29 = vmax.f32 %v5576_v20, 0.0  ;;  %v11368_v20 = vld [vmem:[#allocation12 + $0x598] sm:$0xf] }
 0x34d   :  { %v13090_v33 = vld [vmem:[#allocation12 + $0x1330] sm:$0xf0] }
 0x34e   :  { %v15784_v39 = vld [vmem:[#allocation12 + $0xcd4] sm:$0xf]  ;;  %v13093_v42 = vor.u32 %v15984_v31, %v13090_v33  ;;  %5816 = vmatpush.bf16.msra.mxu2 %v12837_v22  ;;  %v17046_v37 = vpack.c.bf16 %v6102_v29, %v6101_v28  ;;  %v15485_v29 = vld [vmem:[#allocation12 + $0x374] sm:$0xf0] }
 0x34f   :  { %v12290_v40 = vld [vmem:[#allocation12 + $0xcf0] sm:$0xf0] }
 0x350   :  { %v15848_v41 = vld [vmem:[#allocation12 + $0xed4] sm:$0xf]  ;;  %v12293_v51 = vor.u32 %v15784_v39, %v12290_v40  ;;  %5829 = vmatpush.bf16.msra.mxu3 %v13093_v42 }
 0x351   :  { %v12546_v43 = vld [vmem:[#allocation12 + $0xef0] sm:$0xf0] }
 0x352   :  { %v15912_v44 = vld [vmem:[#allocation12 + $0x10d4] sm:$0xf]  ;;  %v12549_v56 = vor.u32 %v15848_v41, %v12546_v43  ;;  %5791 = vmatpush.bf16.msra.mxu0 %v12293_v51  ;;  %v5577_v51 = vpop.f32.mrf.mxu3 }
 0x353   :  { %v12802_v45 = vld [vmem:[#allocation12 + $0x10f0] sm:$0xf0] }
 0x354   :  { %v15976_v47 = vld [vmem:[#allocation12 + $0x12d4] sm:$0xf]  ;;  %v12805_v52 = vor.u32 %v15912_v44, %v12802_v45  ;;  %5804 = vmatpush.bf16.msra.mxu1 %v12549_v56  ;;  %v5564_v44 = vpop.f32.mrf.mxu2  ;;  %v10888_v45 = vld [vmem:[#allocation12 + $0x1d8] sm:$0xf] }
 0x355   :  { %v13058_v50 = vld [vmem:[#allocation12 + $0x12f0] sm:$0xf0]  ;;  %v11304_v44 = vld [vmem:[#allocation12 + $0x518] sm:$0xf] }
 0x356   :  { %v15776_v53 = vld [vmem:[#allocation12 + $0xc94] sm:$0xf]  ;;  %v13061_v57 = vor.u32 %v15976_v47, %v13058_v50  ;;  %5817 = vmatpush.bf16.msra.mxu2 %v12805_v52  ;;  %v15437_v47 = vld [vmem:[#allocation12 + $0x1f4] sm:$0xf0] }
 0x357   :  { %v12258_v54 = vld [vmem:[#allocation12 + $0xcb0] sm:$0xf0]  ;;  %v11144_v50 = vld [vmem:[#allocation12 + $0x3d8] sm:$0xf] }
 0x358   :  { %v15840_v9 = vld [vmem:[#allocation12 + $0xe94] sm:$0xf]  ;;  %v12261_v18 = vor.u32 %v15776_v53, %v12258_v54  ;;  %5830 = vmatpush.bf16.msra.mxu3 %v13061_v57  ;;  %v15501_v52 = vld [vmem:[#allocation12 + $0x3f4] sm:$0xf0] }
 0x359   :  { %v12514_v10 = vld [vmem:[#allocation12 + $0xeb0] sm:$0xf0]  ;;  %v11400_v53 = vld [vmem:[#allocation12 + $0x5d8] sm:$0xf]  ;;  %v11145_v62 = vor.u32 %v15501_v52, %v11144_v50 }
 0x35a   :  { %v15904_v60 = vld [vmem:[#allocation12 + $0x1094] sm:$0xf]  ;;  %v12517_v21 = vor.u32 %v15840_v9, %v12514_v10  ;;  %5792 = vmatpush.bf16.msra.mxu0 %v12261_v18  ;;  %v15565_v54 = vld [vmem:[#allocation12 + $0x5f4] sm:$0xf0] }
 0x35b   :  { %v12770_v61 = vld [vmem:[#allocation12 + $0x10b0] sm:$0xf0]  ;;  %v15629_v10 = vld [vmem:[#allocation12 + $0x7f4] sm:$0xf0]  ;;  %v11401_v2 = vor.u32 %v15565_v54, %v11400_v53 }
 0x35c   :  { %v15968_v12 = vld [vmem:[#allocation12 + $0x1294] sm:$0xf]  ;;  %v12773_v23 = vor.u32 %v15904_v60, %v12770_v61  ;;  %5805 = vmatpush.bf16.msra.mxu1 %v12517_v21  ;;  %v10889_v61 = vor.u32 %v15437_v47, %v10888_v45  ;;  %v11657_v18 = vor.u32 %v15629_v10, %v11656_v58  ;;  %v15557_v21 = vld [vmem:[#allocation12 + $0x5b4] sm:$0xf0]  ;;  %v5601_v10 = vpop.f32.mrf.mxu1 }
 0x35d   :  { %v13026_v14 = vld [vmem:[#allocation12 + $0x12b0] sm:$0xf0]  ;;  %v15541_v45 = vld [vmem:[#allocation12 + $0x534] sm:$0xf0] }
 0x35e   :  { %v15768_v25 = vld [vmem:[#allocation12 + $0xc54] sm:$0xf]  ;;  %v13029_v24 = vor.u32 %v15968_v12, %v13026_v14  ;;  %5818 = vmatpush.bf16.msra.mxu2 %v12773_v23  ;;  %v10856_v12 = vld [vmem:[#allocation12 + $0x198] sm:$0xf]  ;;  %v11305_v53 = vor.u32 %v15541_v45, %v11304_v44 }
 0x35f   :  { %v12226_v55 = vld [vmem:[#allocation12 + $0xc70] sm:$0xf0]  ;;  %v15429_v14 = vld [vmem:[#allocation12 + $0x1b4] sm:$0xf0] }
 0x360   :  { %v15832_v8 = vld [vmem:[#allocation12 + $0xe54] sm:$0xf]  ;;  %v12229_v33 = vor.u32 %v15768_v25, %v12226_v55  ;;  %5831 = vmatpush.bf16.msra.mxu3 %v13029_v24  ;;  %v11624_v23 = vld [vmem:[#allocation12 + $0x798] sm:$0xf]  ;;  %v10857_v55 = vor.u32 %v15429_v14, %v10856_v12  ;;  %v11369_v24 = vor.u32 %v15557_v21, %v11368_v20 }
 0x361   :  { %v12482_v32 = vld [vmem:[#allocation12 + $0xe70] sm:$0xf0]  ;;  %v15621_v25 = vld [vmem:[#allocation12 + $0x7b4] sm:$0xf0] }
 0x362   :  { %v15896_v26 = vld [vmem:[#allocation12 + $0x1054] sm:$0xf]  ;;  %v12485_v38 = vor.u32 %v15832_v8, %v12482_v32  ;;  %5793 = vmatpush.bf16.msra.mxu0 %v12229_v33  ;;  %v11113_v8 = vor.u32 %v15493_v19, %v11112_v15  ;;  %v10824_v32 = vld [vmem:[#allocation12 + $0x158] sm:$0xf]  ;;  %v11625_v28 = vor.u32 %v15621_v25, %v11624_v23 }
 0x363   :  { %v12738_v27 = vld [vmem:[#allocation12 + $0x1070] sm:$0xf0]  ;;  %v11592_v33 = vld [vmem:[#allocation12 + $0x758] sm:$0xf] }
 0x364   :  { %v15960_v30 = vld [vmem:[#allocation12 + $0x1254] sm:$0xf]  ;;  %v12741_v22 = vor.u32 %v15896_v26, %v12738_v27  ;;  %5806 = vmatpush.bf16.msra.mxu1 %v12485_v38  ;;  %v15421_v26 = vld [vmem:[#allocation12 + $0x174] sm:$0xf0] }
 0x365   :  { %v12994_v31 = vld [vmem:[#allocation12 + $0x1270] sm:$0xf0]  ;;  %v11080_v27 = vld [vmem:[#allocation12 + $0x358] sm:$0xf] }
 0x366   :  { %v15760_v34 = vld [vmem:[#allocation12 + $0xc14] sm:$0xf]  ;;  %v12997_v42 = vor.u32 %v15960_v30, %v12994_v31  ;;  %5819 = vmatpush.bf16.msra.mxu2 %v12741_v22  ;;  %v11336_v30 = vld [vmem:[#allocation12 + $0x558] sm:$0xf]  ;;  %v11081_v22 = vor.u32 %v15485_v29, %v11080_v27 }
 0x367   :  { %v12194_v36 = vld [vmem:[#allocation12 + $0xc30] sm:$0xf0]  ;;  %v15549_v31 = vld [vmem:[#allocation12 + $0x574] sm:$0xf0] }
 0x368   :  { %v15824_v39 = vld [vmem:[#allocation12 + $0xe14] sm:$0xf]  ;;  %v12197_v56 = vor.u32 %v15760_v34, %v12194_v36  ;;  %5832 = vmatpush.bf16.msra.mxu3 %v12997_v42  ;;  %v15613_v34 = vld [vmem:[#allocation12 + $0x774] sm:$0xf0]  ;;  %v10825_v36 = vor.u32 %v15421_v26, %v10824_v32  ;;  %v17052_v42 = vld [vmem:[#allocation13] sm:$0xff] }
 0x369   :  { %v12450_v40 = vld [vmem:[#allocation12 + $0xe30] sm:$0xf0]  ;;  %v10792_v38 = vld [vmem:[#allocation12 + $0x118] sm:$0xf] }
 0x36a   :  { %v15888_v41 = vld [vmem:[#allocation12 + $0x1014] sm:$0xf]  ;;  %v12453_v9 = vor.u32 %v15824_v39, %v12450_v40  ;;  %5794 = vmatpush.bf16.msra.mxu0 %v12197_v56  ;;  %v11337_v39 = vor.u32 %v15549_v31, %v11336_v30  ;;  %v15413_v40 = vld [vmem:[#allocation12 + $0x134] sm:$0xf0]  ;;  %v5588_v56 = vpop.f32.mrf.mxu0 }
 0x36b   :  { %v12706_v46 = vld [vmem:[#allocation12 + $0x1030] sm:$0xf0]  ;;  %v11560_v47 = vld [vmem:[#allocation12 + $0x718] sm:$0xf]  ;;  %v10793_v51 = vor.u32 %v15413_v40, %v10792_v38 }
 0x36c   :  { %v15952_v1 = vld [vmem:[#allocation12 + $0x1214] sm:$0xf]  ;;  %v12709_v57 = vor.u32 %v15888_v41, %v12706_v46  ;;  %5807 = vmatpush.bf16.msra.mxu1 %v12453_v9  ;;  %v11048_v41 = vld [vmem:[#allocation12 + $0x318] sm:$0xf]  ;;  %v1847_v46 = vperm.slane %v17052_v42, 4 }
 0x36d   :  { %v12962_v43 = vld [vmem:[#allocation12 + $0x1230] sm:$0xf0]  ;;  %5795 = vmatmul.bf16.vlgmr.msra.gmra.mxu0 %v16930_v63  ;;  %v15605_v50 = vld [vmem:[#allocation12 + $0x734] sm:$0xf0] }
 0x36e   :  { %v12965_v60 = vor.u32 %v15952_v1, %v12962_v43  ;;  %5820 = vmatpush.bf16.msra.mxu2 %v12709_v57  ;;  %5839 = vmatpush.bf16.msrb.mxu0 %v10889_v61  ;;  %v11593_v1 = vor.u32 %v15613_v34, %v11592_v33  ;;  %v15477_v43 = vld [vmem:[#allocation12 + $0x334] sm:$0xf0]  ;;  %v5589_v58 = vadd.f32 %v5588_v56, %v1847_v46 }
 0x36f   :  { %5808 = vmatmul.bf16.vlgmr.msra.gmra.mxu1 %v16934_v7  ;;  %v11049_v52 = vor.u32 %v15477_v43, %v11048_v41  ;;  %v10760_v54 = vld [vmem:[#allocation12 + $0xd8] sm:$0xf]  ;;  %v5603_v41 = vpop.f32.mrf.mxu1 }
 0x370   :  { %5833 = vmatpush.bf16.msra.mxu3 %v12965_v60  ;;  %5852 = vmatpush.bf16.msrb.mxu1 %v11145_v62  ;;  %v15405_v9 = vld [vmem:[#allocation12 + $0xf4] sm:$0xf0]  ;;  %v11561_v60 = vor.u32 %v15605_v50, %v11560_v47  ;;  %v5602_v15 = vadd.f32 %v5601_v10, %v5589_v58 }
 0x371   :  { %5821 = vmatmul.bf16.vlgmr.msra.gmra.mxu2 %v16946_v13  ;;  %v11016_v57 = vld [vmem:[#allocation12 + $0x2d8] sm:$0xf] }
 0x372   :  { %5865 = vmatpush.bf16.msrb.mxu2 %v11401_v2  ;;  %5840 = vmatpush.bf16.msrb.mxu0 %v10857_v55  ;;  %v15469_v61 = vld [vmem:[#allocation12 + $0x2f4] sm:$0xf0]  ;;  %v5614_v55 = vpop.f32.mrf.mxu2  ;;  %v5590_v34 = vpop.f32.mrf.mxu0 }
 0x373   :  { %5834 = vmatmul.bf16.vlgmr.msra.gmra.mxu3 %v16948_v17  ;;  %v11272_v62 = vld [vmem:[#allocation12 + $0x4d8] sm:$0xf]  ;;  %v11017_v19 = vor.u32 %v15469_v61, %v11016_v57  ;;  %v5615_v27 = vadd.f32 %v5614_v55, %v5602_v15 }
 0x374   :  { %5878 = vmatpush.bf16.msrb.mxu3 %v11657_v18  ;;  %5853 = vmatpush.bf16.msrb.mxu1 %v11113_v8  ;;  %v15533_v2 = vld [vmem:[#allocation12 + $0x4f4] sm:$0xf0]  ;;  %v10761_v18 = vor.u32 %v15405_v9, %v10760_v54 }
 0x375   :  { %v11528_v12 = vld [vmem:[#allocation12 + $0x6d8] sm:$0xf]  ;;  %v11273_v20 = vor.u32 %v15533_v2, %v11272_v62 }
 0x376   :  { %5866 = vmatpush.bf16.msrb.mxu2 %v11369_v24  ;;  %5841 = vmatpush.bf16.msrb.mxu0 %v10825_v36  ;;  %v15597_v14 = vld [vmem:[#allocation12 + $0x6f4] sm:$0xf0] }
 0x377   :  { %v10728_v21 = vld [vmem:[#allocation12 + $0x98] sm:$0xf]  ;;  %v11529_v8 = vor.u32 %v15597_v14, %v11528_v12 }
 0x378   :  { %5879 = vmatpush.bf16.msrb.mxu3 %v11625_v28  ;;  %5854 = vmatpush.bf16.msrb.mxu1 %v11081_v22  ;;  %v15397_v23 = vld [vmem:[#allocation12 + $0xb4] sm:$0xf0]  ;;  %v5627_v28 = vpop.f32.mrf.mxu3 }
 0x379   :  { %v10984_v25 = vld [vmem:[#allocation12 + $0x298] sm:$0xf]  ;;  %v10729_v31 = vor.u32 %v15397_v23, %v10728_v21  ;;  %v17055_v33 = vadd.f32 %v5627_v28, %v5615_v27 }
 0x37a   :  { %5867 = vmatpush.bf16.msrb.mxu2 %v11337_v39  ;;  %5842 = vmatpush.bf16.msrb.mxu0 %v10793_v51  ;;  %v15461_v24 = vld [vmem:[#allocation12 + $0x2b4] sm:$0xf0]  ;;  %v5616_v58 = vpop.f32.mrf.mxu2 }
 0x37b   :  { %v11240_v32 = vld [vmem:[#allocation12 + $0x498] sm:$0xf]  ;;  %v10985_v36 = vor.u32 %v15461_v24, %v10984_v25 }
 0x37c   :  { %5880 = vmatpush.bf16.msrb.mxu3 %v11593_v1  ;;  %5855 = vmatpush.bf16.msrb.mxu1 %v11049_v52  ;;  %v15525_v26 = vld [vmem:[#allocation12 + $0x4b4] sm:$0xf0] }
 0x37d   :  { %v11496_v29 = vld [vmem:[#allocation12 + $0x698] sm:$0xf]  ;;  %v11241_v38 = vor.u32 %v15525_v26, %v11240_v32 }
 0x37e   :  { %5868 = vmatpush.bf16.msrb.mxu2 %v11305_v53  ;;  %v15589_v30 = vld [vmem:[#allocation12 + $0x6b4] sm:$0xf0]  ;;  %5843 = vmatpush.bf16.msrb.mxu0 %v10761_v18 }
 0x37f   :  { %v10696_v22 = vld [vmem:[#allocation12 + $0x58] sm:$0xf]  ;;  %v11497_v46 = vor.u32 %v15589_v30, %v11496_v29 }
 0x380   :  { %5881 = vmatpush.bf16.msrb.mxu3 %v11561_v60  ;;  %5856 = vmatpush.bf16.msrb.mxu1 %v11017_v19  ;;  %v15389_v39 = vld [vmem:[#allocation12 + $0x74] sm:$0xf0]  ;;  %v5629_v2 = vpop.f32.mrf.mxu3 }
 0x381   :  { %v10952_v40 = vld [vmem:[#allocation12 + $0x258] sm:$0xf]  ;;  %v10697_v50 = vor.u32 %v15389_v39, %v10696_v22 }
 0x382   :  { %5869 = vmatpush.bf16.msrb.mxu2 %v11273_v20  ;;  %v15453_v1 = vld [vmem:[#allocation12 + $0x274] sm:$0xf0]  ;;  %5844 = vmatpush.bf16.msrb.mxu0 %v10729_v31 }
 0x383   :  { %v11208_v43 = vld [vmem:[#allocation12 + $0x458] sm:$0xf]  ;;  %v10953_v52 = vor.u32 %v15453_v1, %v10952_v40 }
 0x384   :  { %5882 = vmatpush.bf16.msrb.mxu3 %v11529_v8  ;;  %v15517_v44 = vld [vmem:[#allocation12 + $0x474] sm:$0xf0]  ;;  %5857 = vmatpush.bf16.msrb.mxu1 %v10985_v36 }
 0x385   :  { %v11464_v45 = vld [vmem:[#allocation12 + $0x658] sm:$0xf]  ;;  %v11209_v53 = vor.u32 %v15517_v44, %v11208_v43 }
 0x386   :  { %v15581_v47 = vld [vmem:[#allocation12 + $0x674] sm:$0xf0]  ;;  %5870 = vmatpush.bf16.msrb.mxu2 %v11241_v38  ;;  %5845 = vmatpush.bf16.msrb.mxu0 %v10697_v50 }
 0x387   :  { %v10664_v51 = vld [vmem:[#allocation12 + $0x18] sm:$0xf]  ;;  %v11465_v10 = vor.u32 %v15581_v47, %v11464_v45 }
 0x388   :  { %v15381_v56 = vld [vmem:[#allocation12 + $0x34] sm:$0xf0]  ;;  %5883 = vmatpush.bf16.msrb.mxu3 %v11497_v46  ;;  %5858 = vmatpush.bf16.msrb.mxu1 %v10953_v52 }
 0x389   :  { %v10920_v54 = vld [vmem:[#allocation12 + $0x218] sm:$0xf]  ;;  %v10665_v18 = vor.u32 %v15381_v56, %v10664_v51 }
 0x38a   :  { %v15445_v9 = vld [vmem:[#allocation12 + $0x234] sm:$0xf0]  ;;  %5871 = vmatpush.bf16.msrb.mxu2 %v11209_v53 }
 0x38b   :  { %v11176_v57 = vld [vmem:[#allocation12 + $0x418] sm:$0xf]  ;;  %v10921_v23 = vor.u32 %v15445_v9, %v10920_v54  ;;  %5846 = vmatpush.bf16.msrb.mxu0 %v10665_v18  ;;  %v5640_v18 = vpop.f32.mrf.mxu0 }
 0x38c   :  { %v15509_v60 = vld [vmem:[#allocation12 + $0x434] sm:$0xf0]  ;;  %5884 = vmatpush.bf16.msrb.mxu3 %v11465_v10 }
 0x38d   :  { %v11432_v61 = vld [vmem:[#allocation12 + $0x618] sm:$0xf]  ;;  %v11177_v25 = vor.u32 %v15509_v60, %v11176_v57  ;;  %5859 = vmatpush.bf16.msrb.mxu1 %v10921_v23 }
 0x38e   :  { %v15573_v62 = vld [vmem:[#allocation12 + $0x634] sm:$0xf0]  ;;  %5847 = vmatmul.bf16.vlgmr.msrb.gmra.mxu0 %v16914_v3 }
 0x38f   :  { %v11912_v12 = vld [vmem:[#allocation12 + $0x9d8] sm:$0xf]  ;;  %v11433_v24 = vor.u32 %v15573_v62, %v11432_v61  ;;  %5872 = vmatpush.bf16.msrb.mxu2 %v11177_v25 }
 0x390   :  { %v15693_v14 = vld [vmem:[#allocation12 + $0x9f4] sm:$0xf0]  ;;  %5860 = vmatmul.bf16.vlgmr.msrb.gmra.mxu1 %v16918_v6 }
 0x391   :  { %v12168_v15 = vld [vmem:[#allocation12 + $0xbd8] sm:$0xf]  ;;  %v11913_v32 = vor.u32 %v15693_v14, %v11912_v12  ;;  %5885 = vmatpush.bf16.msrb.mxu3 %v11433_v24 }
 0x392   :  { %v15757_v19 = vld [vmem:[#allocation12 + $0xbf4] sm:$0xf0]  ;;  %5873 = vmatmul.bf16.vlgmr.msrb.gmra.mxu2 %v16912_v0 }
 0x393   :  { %v12424_v20 = vld [vmem:[#allocation12 + $0xdd8] sm:$0xf]  ;;  %v12169_v26 = vor.u32 %v15757_v19, %v12168_v15  ;;  %5891 = vmatpush.bf16.msra.mxu0 %v11913_v32 }
 0x394   :  { %v15821_v21 = vld [vmem:[#allocation12 + $0xdf4] sm:$0xf0]  ;;  %5886 = vmatmul.bf16.vlgmr.msrb.gmra.mxu3 %v16916_v4 }
 0x395   :  { %v12680_v55 = vld [vmem:[#allocation12 + $0xfd8] sm:$0xf]  ;;  %v12425_v27 = vor.u32 %v15821_v21, %v12424_v20  ;;  %5904 = vmatpush.bf16.msra.mxu1 %v12169_v26 }
 0x396   :  { %v15885_v8 = vld [vmem:[#allocation12 + $0xff4] sm:$0xf0] }
 0x397   :  { %v11880_v28 = vld [vmem:[#allocation12 + $0x998] sm:$0xf]  ;;  %v12681_v31 = vor.u32 %v15885_v8, %v12680_v55  ;;  %5917 = vmatpush.bf16.msra.mxu2 %v12425_v27  ;;  %v5641_v55 = vadd.f32 %v5640_v18, %v17055_v33  ;;  %v5653_v8 = vpop.f32.mrf.mxu1 }
 0x398   :  { %v15685_v29 = vld [vmem:[#allocation12 + $0x9b4] sm:$0xf0] }
 0x399   :  { %v12136_v30 = vld [vmem:[#allocation12 + $0xb98] sm:$0xf]  ;;  %v11881_v40 = vor.u32 %v15685_v29, %v11880_v28  ;;  %5930 = vmatpush.bf16.msra.mxu3 %v12681_v31 }
 0x39a   :  { %v15749_v34 = vld [vmem:[#allocation12 + $0xbb4] sm:$0xf0] }
 0x39b   :  { %v12392_v36 = vld [vmem:[#allocation12 + $0xd98] sm:$0xf]  ;;  %v12137_v41 = vor.u32 %v15749_v34, %v12136_v30  ;;  %5892 = vmatpush.bf16.msra.mxu0 %v11881_v40  ;;  %v5654_v30 = vadd.f32 %v5653_v8, %v5641_v55  ;;  %v5666_v40 = vpop.f32.mrf.mxu2 }
 0x39c   :  { %v15813_v38 = vld [vmem:[#allocation12 + $0xdb4] sm:$0xf0] }
 0x39d   :  { %v12648_v22 = vld [vmem:[#allocation12 + $0xf98] sm:$0xf]  ;;  %v12393_v46 = vor.u32 %v15813_v38, %v12392_v36  ;;  %5905 = vmatpush.bf16.msra.mxu1 %v12137_v41 }
 0x39e   :  { %v15877_v39 = vld [vmem:[#allocation12 + $0xfb4] sm:$0xf0] }
 0x39f   :  { %v11848_v1 = vld [vmem:[#allocation12 + $0x958] sm:$0xf]  ;;  %v12649_v45 = vor.u32 %v15877_v39, %v12648_v22  ;;  %5918 = vmatpush.bf16.msra.mxu2 %v12393_v46 }
 0x3a0   :  { %v15677_v43 = vld [vmem:[#allocation12 + $0x974] sm:$0xf0] }
 0x3a1   :  { %v12104_v44 = vld [vmem:[#allocation12 + $0xb58] sm:$0xf]  ;;  %v11849_v53 = vor.u32 %v15677_v43, %v11848_v1  ;;  %5931 = vmatpush.bf16.msra.mxu3 %v12649_v45  ;;  %v5667_v43 = vadd.f32 %v5666_v40, %v5654_v30  ;;  %v15497_v40 = vld [vmem:[#allocation12 + $0x3dc] sm:$0xf] }
 0x3a2   :  { %v15741_v47 = vld [vmem:[#allocation12 + $0xb74] sm:$0xf0] }
 0x3a3   :  { %v12360_v50 = vld [vmem:[#allocation12 + $0xd58] sm:$0xf]  ;;  %v12105_v54 = vor.u32 %v15741_v47, %v12104_v44  ;;  %5893 = vmatpush.bf16.msra.mxu0 %v11849_v53  ;;  %v5679_v44 = vpop.f32.mrf.mxu3  ;;  %v5668_v55 = vpop.f32.mrf.mxu2 }
 0x3a4   :  { %v15805_v51 = vld [vmem:[#allocation12 + $0xd74] sm:$0xf0] }
 0x3a5   :  { %v12616_v56 = vld [vmem:[#allocation12 + $0xf58] sm:$0xf]  ;;  %v12361_v9 = vor.u32 %v15805_v51, %v12360_v50  ;;  %5906 = vmatpush.bf16.msra.mxu1 %v12105_v54  ;;  %v17062_v51 = vadd.f32 %v5679_v44, %v5667_v43 }
 0x3a6   :  { %v15869_v52 = vld [vmem:[#allocation12 + $0xf74] sm:$0xf0] }
 0x3a7   :  { %v11816_v57 = vld [vmem:[#allocation12 + $0x918] sm:$0xf]  ;;  %v12617_v60 = vor.u32 %v15869_v52, %v12616_v56  ;;  %5919 = vmatpush.bf16.msra.mxu2 %v12361_v9  ;;  %v5642_v56 = vpop.f32.mrf.mxu0 }
 0x3a8   :  { %v15669_v58 = vld [vmem:[#allocation12 + $0x934] sm:$0xf0] }
 0x3a9   :  { %v12072_v10 = vld [vmem:[#allocation12 + $0xb18] sm:$0xf]  ;;  %v11817_v15 = vor.u32 %v15669_v58, %v11816_v57  ;;  %5932 = vmatpush.bf16.msra.mxu3 %v12617_v60  ;;  %v5655_v58 = vpop.f32.mrf.mxu1 }
 0x3aa   :  { %v15733_v61 = vld [vmem:[#allocation12 + $0xb34] sm:$0xf0] }
 0x3ab   :  { %v12328_v62 = vld [vmem:[#allocation12 + $0xd18] sm:$0xf]  ;;  %v12073_v19 = vor.u32 %v15733_v61, %v12072_v10  ;;  %5894 = vmatpush.bf16.msra.mxu0 %v11817_v15 }
 0x3ac   :  { %v15797_v2 = vld [vmem:[#allocation12 + $0xd34] sm:$0xf0] }
 0x3ad   :  { %v12584_v12 = vld [vmem:[#allocation12 + $0xf18] sm:$0xf]  ;;  %v12329_v20 = vor.u32 %v15797_v2, %v12328_v62  ;;  %5907 = vmatpush.bf16.msra.mxu1 %v12073_v19 }
 0x3ae   :  { %v15861_v14 = vld [vmem:[#allocation12 + $0xf34] sm:$0xf0] }
 0x3af   :  { %v11784_v21 = vld [vmem:[#allocation12 + $0x8d8] sm:$0xf]  ;;  %v12585_v24 = vor.u32 %v15861_v14, %v12584_v12  ;;  %5920 = vmatpush.bf16.msra.mxu2 %v12329_v20 }
 0x3b0   :  { %v15661_v23 = vld [vmem:[#allocation12 + $0x8f4] sm:$0xf0] }
 0x3b1   :  { %v12040_v25 = vld [vmem:[#allocation12 + $0xad8] sm:$0xf]  ;;  %v11785_v31 = vor.u32 %v15661_v23, %v11784_v21  ;;  %5933 = vmatpush.bf16.msra.mxu3 %v12585_v24 }
 0x3b2   :  { %v15725_v32 = vld [vmem:[#allocation12 + $0xaf4] sm:$0xf0] }
 0x3b3   :  { %v12296_v26 = vld [vmem:[#allocation12 + $0xcd8] sm:$0xf]  ;;  %v12041_v34 = vor.u32 %v15725_v32, %v12040_v25  ;;  %5895 = vmatpush.bf16.msra.mxu0 %v11785_v31 }
 0x3b4   :  { %v15789_v27 = vld [vmem:[#allocation12 + $0xcf4] sm:$0xf0] }
 0x3b5   :  { %v12552_v28 = vld [vmem:[#allocation12 + $0xed8] sm:$0xf]  ;;  %v12297_v36 = vor.u32 %v15789_v27, %v12296_v26  ;;  %5908 = vmatpush.bf16.msra.mxu1 %v12041_v34  ;;  %v5681_v27 = vpop.f32.mrf.mxu3 }
 0x3b6   :  { %v15853_v29 = vld [vmem:[#allocation12 + $0xef4] sm:$0xf0]  ;;  %v10794_v27 = vld [vmem:[#allocation12 + $0x138] sm:$0xf0] }
 0x3b7   :  { %v11752_v38 = vld [vmem:[#allocation12 + $0x898] sm:$0xf]  ;;  %v12553_v33 = vor.u32 %v15853_v29, %v12552_v28  ;;  %5921 = vmatpush.bf16.msra.mxu2 %v12297_v36  ;;  %v15433_v36 = vld [vmem:[#allocation12 + $0x1dc] sm:$0xf] }
 0x3b8   :  { %v15653_v22 = vld [vmem:[#allocation12 + $0x8b4] sm:$0xf0] }
 0x3b9   :  { %v12008_v39 = vld [vmem:[#allocation12 + $0xa98] sm:$0xf]  ;;  %v11753_v50 = vor.u32 %v15653_v22, %v11752_v38  ;;  %5934 = vmatpush.bf16.msra.mxu3 %v12553_v33  ;;  %v10890_v38 = vld [vmem:[#allocation12 + $0x1f8] sm:$0xf0] }
 0x3ba   :  { %v15717_v41 = vld [vmem:[#allocation12 + $0xab4] sm:$0xf0]  ;;  %v11146_v33 = vld [vmem:[#allocation12 + $0x3f8] sm:$0xf0]  ;;  %v10893_v43 = vor.u32 %v15433_v36, %v10890_v38  ;;  %v5705_v36 = vpop.f32.mrf.mxu1 }
 0x3bb   :  { %v12264_v46 = vld [vmem:[#allocation12 + $0xc98] sm:$0xf]  ;;  %v12009_v52 = vor.u32 %v15717_v41, %v12008_v39  ;;  %5896 = vmatpush.bf16.msra.mxu0 %v11753_v50  ;;  %v11149_v50 = vor.u32 %v15497_v40, %v11146_v33 }
 0x3bc   :  { %v15781_v1 = vld [vmem:[#allocation12 + $0xcb4] sm:$0xf0] }
 0x3bd   :  { %v12520_v45 = vld [vmem:[#allocation12 + $0xe98] sm:$0xf]  ;;  %v12265_v53 = vor.u32 %v15781_v1, %v12264_v46  ;;  %5909 = vmatpush.bf16.msra.mxu1 %v12009_v52  ;;  %v15425_v52 = vld [vmem:[#allocation12 + $0x19c] sm:$0xf] }
 0x3be   :  { %v15845_v47 = vld [vmem:[#allocation12 + $0xeb4] sm:$0xf0] }
 0x3bf   :  { %v11720_v54 = vld [vmem:[#allocation12 + $0x858] sm:$0xf]  ;;  %v12521_v10 = vor.u32 %v15845_v47, %v12520_v45  ;;  %5922 = vmatpush.bf16.msra.mxu2 %v12265_v53  ;;  %v10858_v53 = vld [vmem:[#allocation12 + $0x1b8] sm:$0xf0] }
 0x3c0   :  { %v15645_v9 = vld [vmem:[#allocation12 + $0x874] sm:$0xf0] }
 0x3c1   :  { %v11976_v57 = vld [vmem:[#allocation12 + $0xa58] sm:$0xf]  ;;  %v11721_v14 = vor.u32 %v15645_v9, %v11720_v54  ;;  %5935 = vmatpush.bf16.msra.mxu3 %v12521_v10  ;;  %v15489_v54 = vld [vmem:[#allocation12 + $0x39c] sm:$0xf]  ;;  %v10861_v10 = vor.u32 %v15425_v52, %v10858_v53 }
 0x3c2   :  { %v15709_v60 = vld [vmem:[#allocation12 + $0xa74] sm:$0xf0]  ;;  %v11114_v9 = vld [vmem:[#allocation12 + $0x3b8] sm:$0xf0] }
 0x3c3   :  { %v12232_v61 = vld [vmem:[#allocation12 + $0xc58] sm:$0xf]  ;;  %v11977_v19 = vor.u32 %v15709_v60, %v11976_v57  ;;  %5897 = vmatpush.bf16.msra.mxu0 %v11721_v14  ;;  %v15417_v14 = vld [vmem:[#allocation12 + $0x15c] sm:$0xf] }
 0x3c4   :  { %v15773_v62 = vld [vmem:[#allocation12 + $0xc74] sm:$0xf0] }
 0x3c5   :  { %v12488_v2 = vld [vmem:[#allocation12 + $0xe58] sm:$0xf]  ;;  %v12233_v20 = vor.u32 %v15773_v62, %v12232_v61  ;;  %5910 = vmatpush.bf16.msra.mxu1 %v11977_v19  ;;  %v11082_v19 = vld [vmem:[#allocation12 + $0x378] sm:$0xf0] }
 0x3c6   :  { %v15837_v12 = vld [vmem:[#allocation12 + $0xe74] sm:$0xf0] }
 0x3c7   :  { %v11688_v15 = vld [vmem:[#allocation12 + $0x818] sm:$0xf]  ;;  %v12489_v8 = vor.u32 %v15837_v12, %v12488_v2  ;;  %5923 = vmatpush.bf16.msra.mxu2 %v12233_v20  ;;  %v11117_v2 = vor.u32 %v15489_v54, %v11114_v9 }
 0x3c8   :  { %v15637_v18 = vld [vmem:[#allocation12 + $0x834] sm:$0xf0] }
 0x3c9   :  { %v11944_v21 = vld [vmem:[#allocation12 + $0xa18] sm:$0xf]  ;;  %v11689_v31 = vor.u32 %v15637_v18, %v11688_v15  ;;  %5936 = vmatpush.bf16.msra.mxu3 %v12489_v8  ;;  %v10826_v15 = vld [vmem:[#allocation12 + $0x178] sm:$0xf0] }
 0x3ca   :  { %v15701_v23 = vld [vmem:[#allocation12 + $0xa34] sm:$0xf0]  ;;  %v15481_v18 = vld [vmem:[#allocation12 + $0x35c] sm:$0xf] }
 0x3cb   :  { %v12200_v25 = vld [vmem:[#allocation12 + $0xc18] sm:$0xf]  ;;  %v11945_v22 = vor.u32 %v15701_v23, %v11944_v21  ;;  %5898 = vmatpush.bf16.msra.mxu0 %v11689_v31  ;;  %v10829_v23 = vor.u32 %v15417_v14, %v10826_v15  ;;  %v5731_v14 = vpop.f32.mrf.mxu3 }
 0x3cc   :  { %v15765_v24 = vld [vmem:[#allocation12 + $0xc34] sm:$0xf0] }
 0x3cd   :  { %v12456_v32 = vld [vmem:[#allocation12 + $0xe18] sm:$0xf]  ;;  %v12201_v39 = vor.u32 %v15765_v24, %v12200_v25  ;;  %5911 = vmatpush.bf16.msra.mxu1 %v11945_v22  ;;  %v11085_v24 = vor.u32 %v15481_v18, %v11082_v19  ;;  %v5707_v18 = vpop.f32.mrf.mxu1 }
 0x3ce   :  { %v15829_v26 = vld [vmem:[#allocation12 + $0xe34] sm:$0xf0]  ;;  %5899 = vmatmul.bf16.vlgmr.msra.gmra.mxu0 %v16932_v5  ;;  %v15681_v18 = vld [vmem:[#allocation12 + $0x99c] sm:$0xf] }
 0x3cf   :  { %v12936_v28 = vld [vmem:[#allocation12 + $0x11d8] sm:$0xf]  ;;  %v12457_v41 = vor.u32 %v15829_v26, %v12456_v32  ;;  %5924 = vmatpush.bf16.msra.mxu2 %v12201_v39  ;;  %v15409_v26 = vld [vmem:[#allocation12 + $0x11c] sm:$0xf] }
 0x3d0   :  { %v15949_v29 = vld [vmem:[#allocation12 + $0x11f4] sm:$0xf0]  ;;  %5912 = vmatmul.bf16.vlgmr.msra.gmra.mxu1 %v16936_v11  ;;  %v10797_v22 = vor.u32 %v15409_v26, %v10794_v27  ;;  %v10698_v26 = vld [vmem:[#allocation12 + $0x78] sm:$0xf0] }
 0x3d1   :  { %v13192_v30 = vld [vmem:[#allocation12 + $0x13d8] sm:$0xf]  ;;  %v12937_v46 = vor.u32 %v15949_v29, %v12936_v28  ;;  %5937 = vmatpush.bf16.msra.mxu3 %v12457_v41  ;;  %v5692_v28 = vpop.f32.mrf.mxu0  ;;  %v15473_v29 = vld [vmem:[#allocation12 + $0x31c] sm:$0xf] }
 0x3d2   :  { %v16013_v34 = vld [vmem:[#allocation12 + $0x13f4] sm:$0xf0]  ;;  %5925 = vmatmul.bf16.vlgmr.msra.gmra.mxu2 %v16930_v63  ;;  %v5693_v31 = vadd.f32 %v5692_v28, %v17062_v51  ;;  %v1848_v51 = vperm.slane %v17052_v42, 5  ;;  %v15449_v27 = vld [vmem:[#allocation12 + $0x25c] sm:$0xf] }
 0x3d3   :  { %v13193_v1 = vor.u32 %v16013_v34, %v13192_v30  ;;  %v12904_v44 = vld [vmem:[#allocation12 + $0x1198] sm:$0xf]  ;;  %5943 = vmatpush.bf16.msrb.mxu0 %v12937_v46  ;;  %5969 = vmatpush.bf16.msrb.mxu2 %v10893_v43  ;;  %v11050_v30 = vld [vmem:[#allocation12 + $0x338] sm:$0xf0] }
 0x3d4   :  { %v15941_v45 = vld [vmem:[#allocation12 + $0x11b4] sm:$0xf0]  ;;  %5938 = vmatmul.bf16.vlgmr.msra.gmra.mxu3 %v16934_v7  ;;  %v11053_v41 = vor.u32 %v15473_v29, %v11050_v30  ;;  %v17069_v46 = vadd.f32 %v5705_v36, %v5693_v31  ;;  %v15401_v43 = vld [vmem:[#allocation12 + $0xdc] sm:$0xf] }
 0x3d5   :  { %v13160_v47 = vld [vmem:[#allocation12 + $0x1398] sm:$0xf]  ;;  %v12905_v57 = vor.u32 %v15941_v45, %v12904_v44  ;;  %5956 = vmatpush.bf16.msrb.mxu1 %v13193_v1  ;;  %5982 = vmatpush.bf16.msrb.mxu3 %v11149_v50  ;;  %v10762_v44 = vld [vmem:[#allocation12 + $0xf8] sm:$0xf0] }
 0x3d6   :  { %v16005_v56 = vld [vmem:[#allocation12 + $0x13b4] sm:$0xf0]  ;;  %v15465_v45 = vld [vmem:[#allocation12 + $0x2dc] sm:$0xf]  ;;  %v10765_v52 = vor.u32 %v15401_v43, %v10762_v44 }
 0x3d7   :  { %v13161_v58 = vor.u32 %v16005_v56, %v13160_v47  ;;  %v12872_v60 = vld [vmem:[#allocation12 + $0x1158] sm:$0xf]  ;;  %5944 = vmatpush.bf16.msrb.mxu0 %v12905_v57  ;;  %5970 = vmatpush.bf16.msrb.mxu2 %v10861_v10  ;;  %v11018_v47 = vld [vmem:[#allocation12 + $0x2f8] sm:$0xf0] }
 0x3d8   :  { %v15933_v61 = vld [vmem:[#allocation12 + $0x1174] sm:$0xf0]  ;;  %v11021_v57 = vor.u32 %v15465_v45, %v11018_v47  ;;  %v15393_v10 = vld [vmem:[#allocation12 + $0x9c] sm:$0xf] }
 0x3d9   :  { %v13128_v62 = vld [vmem:[#allocation12 + $0x1358] sm:$0xf]  ;;  %v12873_v20 = vor.u32 %v15933_v61, %v12872_v60  ;;  %5957 = vmatpush.bf16.msrb.mxu1 %v13161_v58  ;;  %5983 = vmatpush.bf16.msrb.mxu3 %v11117_v2  ;;  %v10730_v60 = vld [vmem:[#allocation12 + $0xb8] sm:$0xf0]  ;;  %v5718_v61 = vpop.f32.mrf.mxu2  ;;  %v5694_v42 = vpop.f32.mrf.mxu0 }
 0x3da   :  { %v15997_v12 = vld [vmem:[#allocation12 + $0x1374] sm:$0xf0]  ;;  %v10986_v2 = vld [vmem:[#allocation12 + $0x2b8] sm:$0xf0] }
 0x3db   :  { %v13129_v21 = vor.u32 %v15997_v12, %v13128_v62  ;;  %v12840_v25 = vld [vmem:[#allocation12 + $0x1118] sm:$0xf]  ;;  %5945 = vmatpush.bf16.msrb.mxu0 %v12873_v20  ;;  %5971 = vmatpush.bf16.msrb.mxu2 %v10829_v23  ;;  %v15457_v62 = vld [vmem:[#allocation12 + $0x29c] sm:$0xf]  ;;  %v5719_v12 = vadd.f32 %v5718_v61, %v1848_v51  ;;  %v10733_v20 = vor.u32 %v15393_v10, %v10730_v60  ;;  %v5733_v51 = vpop.f32.mrf.mxu3 }
 0x3dc   :  { %v15925_v55 = vld [vmem:[#allocation12 + $0x1134] sm:$0xf0]  ;;  %v10954_v28 = vld [vmem:[#allocation12 + $0x278] sm:$0xf0] }
 0x3dd   :  { %v13096_v8 = vld [vmem:[#allocation12 + $0x1318] sm:$0xf]  ;;  %v12841_v34 = vor.u32 %v15925_v55, %v12840_v25  ;;  %5958 = vmatpush.bf16.msrb.mxu1 %v13129_v21  ;;  %5984 = vmatpush.bf16.msrb.mxu3 %v11085_v24  ;;  %v17072_v55 = vadd.f32 %v5731_v14, %v5719_v12  ;;  %v15561_v44 = vld [vmem:[#allocation12 + $0x5dc] sm:$0xf] }
 0x3de   :  { %v15989_v32 = vld [vmem:[#allocation12 + $0x1334] sm:$0xf0]  ;;  %v11402_v45 = vld [vmem:[#allocation12 + $0x5f8] sm:$0xf0] }
 0x3df   :  { %v13097_v38 = vor.u32 %v15989_v32, %v13096_v8  ;;  %v12808_v39 = vld [vmem:[#allocation12 + $0x10d8] sm:$0xf]  ;;  %5946 = vmatpush.bf16.msrb.mxu0 %v12841_v34  ;;  %5972 = vmatpush.bf16.msrb.mxu2 %v10797_v22  ;;  %v10989_v8 = vor.u32 %v15457_v62, %v10986_v2  ;;  %v15385_v32 = vld [vmem:[#allocation12 + $0x5c] sm:$0xf]  ;;  %v11405_v60 = vor.u32 %v15561_v44, %v11402_v45 }
 0x3e0   :  { %v15917_v40 = vld [vmem:[#allocation12 + $0x10f4] sm:$0xf0]  ;;  %v10701_v36 = vor.u32 %v15385_v32, %v10698_v26  ;;  %v15625_v47 = vld [vmem:[#allocation12 + $0x7dc] sm:$0xf] }
 0x3e1   :  { %v13064_v33 = vld [vmem:[#allocation12 + $0x12d8] sm:$0xf]  ;;  %v12809_v50 = vor.u32 %v15917_v40, %v12808_v39  ;;  %5959 = vmatpush.bf16.msrb.mxu1 %v13097_v38  ;;  %5985 = vmatpush.bf16.msrb.mxu3 %v11053_v41  ;;  %v15377_v39 = vld [vmem:[#allocation12 + $0x1c] sm:$0xf]  ;;  %v10957_v40 = vor.u32 %v15449_v27, %v10954_v28  ;;  %v5720_v43 = vpop.f32.mrf.mxu2  ;;  %v5744_v51 = vpop.f32.mrf.mxu0 }
 0x3e2   :  { %v15981_v1 = vld [vmem:[#allocation12 + $0x12f4] sm:$0xf0]  ;;  %v15441_v41 = vld [vmem:[#allocation12 + $0x21c] sm:$0xf] }
 0x3e3   :  { %v13065_v56 = vor.u32 %v15981_v1, %v13064_v33  ;;  %v12776_v53 = vld [vmem:[#allocation12 + $0x1098] sm:$0xf]  ;;  %5947 = vmatpush.bf16.msrb.mxu0 %v12809_v50  ;;  %5973 = vmatpush.bf16.msrb.mxu2 %v10765_v52  ;;  %v10666_v33 = vld [vmem:[#allocation12 + $0x38] sm:$0xf0] }
 0x3e4   :  { %v15909_v54 = vld [vmem:[#allocation12 + $0x10b4] sm:$0xf0]  ;;  %v10922_v1 = vld [vmem:[#allocation12 + $0x238] sm:$0xf0] }
 0x3e5   :  { %v13032_v9 = vld [vmem:[#allocation12 + $0x1298] sm:$0xf]  ;;  %v12777_v15 = vor.u32 %v15909_v54, %v12776_v53  ;;  %5960 = vmatpush.bf16.msrb.mxu1 %v13065_v56  ;;  %5986 = vmatpush.bf16.msrb.mxu3 %v11021_v57  ;;  %v11658_v56 = vld [vmem:[#allocation12 + $0x7f8] sm:$0xf0]  ;;  %v10925_v10 = vor.u32 %v15441_v41, %v10922_v1 }
 0x3e6   :  { %v15973_v58 = vld [vmem:[#allocation12 + $0x12b4] sm:$0xf0]  ;;  %v15689_v52 = vld [vmem:[#allocation12 + $0x9dc] sm:$0xf]  ;;  %v11661_v61 = vor.u32 %v15625_v47, %v11658_v56 }
 0x3e7   :  { %v13033_v19 = vor.u32 %v15973_v58, %v13032_v9  ;;  %v12744_v21 = vld [vmem:[#allocation12 + $0x1058] sm:$0xf]  ;;  %5948 = vmatpush.bf16.msrb.mxu0 %v12777_v15  ;;  %5974 = vmatpush.bf16.msrb.mxu2 %v10733_v20  ;;  %v11914_v53 = vld [vmem:[#allocation12 + $0x9f8] sm:$0xf0]  ;;  %v10669_v9 = vor.u32 %v15377_v39, %v10666_v33 }
 0x3e8   :  { %v15901_v23 = vld [vmem:[#allocation12 + $0x1074] sm:$0xf0]  ;;  %v15753_v57 = vld [vmem:[#allocation12 + $0xbdc] sm:$0xf]  ;;  %v11917_v62 = vor.u32 %v15689_v52, %v11914_v53 }
 0x3e9   :  { %v13000_v25 = vld [vmem:[#allocation12 + $0x1258] sm:$0xf]  ;;  %v12745_v29 = vor.u32 %v15901_v23, %v12744_v21  ;;  %5961 = vmatpush.bf16.msrb.mxu1 %v13033_v19  ;;  %5987 = vmatpush.bf16.msrb.mxu3 %v10989_v8  ;;  %v12170_v58 = vld [vmem:[#allocation12 + $0xbf8] sm:$0xf0] }
 0x3ea   :  { %v15965_v24 = vld [vmem:[#allocation12 + $0x1274] sm:$0xf0]  ;;  %v15553_v2 = vld [vmem:[#allocation12 + $0x59c] sm:$0xf]  ;;  %v12173_v42 = vor.u32 %v15753_v57, %v12170_v58 }
 0x3eb   :  { %v12712_v30 = vld [vmem:[#allocation12 + $0x1018] sm:$0xf]  ;;  %v13001_v34 = vor.u32 %v15965_v24, %v13000_v25  ;;  %5949 = vmatpush.bf16.msrb.mxu0 %v12745_v29  ;;  %5975 = vmatpush.bf16.msrb.mxu2 %v10701_v36  ;;  %v11370_v12 = vld [vmem:[#allocation12 + $0x5b8] sm:$0xf0] }
 0x3ec   :  { %v15893_v31 = vld [vmem:[#allocation12 + $0x1034] sm:$0xf0]  ;;  %v15617_v14 = vld [vmem:[#allocation12 + $0x79c] sm:$0xf]  ;;  %v11373_v23 = vor.u32 %v15553_v2, %v11370_v12 }
 0x3ed   :  { %v12968_v38 = vld [vmem:[#allocation12 + $0x1218] sm:$0xf]  ;;  %v12713_v50 = vor.u32 %v15893_v31, %v12712_v30  ;;  %5962 = vmatpush.bf16.msrb.mxu1 %v13001_v34  ;;  %5988 = vmatpush.bf16.msrb.mxu3 %v10957_v40  ;;  %v11626_v15 = vld [vmem:[#allocation12 + $0x7b8] sm:$0xf0] }
 0x3ee   :  { %v15957_v22 = vld [vmem:[#allocation12 + $0x1234] sm:$0xf0]  ;;  %v11882_v19 = vld [vmem:[#allocation12 + $0x9b8] sm:$0xf0]  ;;  %v11629_v25 = vor.u32 %v15617_v14, %v11626_v15 }
 0x3ef   :  { %v12969_v54 = vor.u32 %v15957_v22, %v12968_v38  ;;  %5950 = vmatpush.bf16.msrb.mxu0 %v12713_v50  ;;  %5976 = vmatpush.bf16.msrb.mxu2 %v10669_v9  ;;  %v15745_v20 = vld [vmem:[#allocation12 + $0xb9c] sm:$0xf]  ;;  %v11885_v8 = vor.u32 %v15681_v18, %v11882_v19  ;;  %v5757_v9 = vpop.f32.mrf.mxu1 }
 0x3f0   :  { %v12138_v21 = vld [vmem:[#allocation12 + $0xbb8] sm:$0xf0] }
 0x3f1   :  { %5963 = vmatpush.bf16.msrb.mxu1 %v12969_v54  ;;  %5989 = vmatpush.bf16.msrb.mxu3 %v10925_v10  ;;  %v15545_v24 = vld [vmem:[#allocation12 + $0x55c] sm:$0xf]  ;;  %v12141_v27 = vor.u32 %v15745_v20, %v12138_v21  ;;  %v5745_v54 = vadd.f32 %v5744_v51, %v17072_v55  ;;  %v5770_v20 = vpop.f32.mrf.mxu2 }
 0x3f2   :  { %v11338_v32 = vld [vmem:[#allocation12 + $0x578] sm:$0xf0]  ;;  %5951 = vmatmul.bf16.vlgmr.msrb.gmra.mxu0 %v16946_v13  ;;  %5977 = vmatmul.bf16.vlgmr.msrb.gmra.mxu2 %v16914_v3 }
 0x3f3   :  { %5995 = vmatpush.bf16.msra.mxu0 %v11405_v60  ;;  %6021 = vmatpush.bf16.msra.mxu2 %v11917_v62  ;;  %v15609_v26 = vld [vmem:[#allocation12 + $0x75c] sm:$0xf]  ;;  %v11341_v36 = vor.u32 %v15545_v24, %v11338_v32  ;;  %v5758_v2 = vadd.f32 %v5757_v9, %v5745_v54  ;;  %v5783_v24 = vpop.f32.mrf.mxu3 }
 0x3f4   :  { %v11594_v28 = vld [vmem:[#allocation12 + $0x778] sm:$0xf0]  ;;  %5964 = vmatmul.bf16.vlgmr.msrb.gmra.mxu1 %v16948_v17  ;;  %5990 = vmatmul.bf16.vlgmr.msrb.gmra.mxu3 %v16918_v6 }
 0x3f5   :  { %6008 = vmatpush.bf16.msra.mxu1 %v11661_v61  ;;  %6034 = vmatpush.bf16.msra.mxu3 %v12173_v42  ;;  %v15673_v29 = vld [vmem:[#allocation12 + $0x95c] sm:$0xf]  ;;  %v11597_v38 = vor.u32 %v15609_v26, %v11594_v28 }
 0x3f6   :  { %v11850_v30 = vld [vmem:[#allocation12 + $0x978] sm:$0xf0] }
 0x3f7   :  { %v15737_v31 = vld [vmem:[#allocation12 + $0xb5c] sm:$0xf]  ;;  %5996 = vmatpush.bf16.msra.mxu0 %v11373_v23  ;;  %6022 = vmatpush.bf16.msra.mxu2 %v11885_v8  ;;  %v11853_v22 = vor.u32 %v15673_v29, %v11850_v30  ;;  %v5771_v8 = vadd.f32 %v5770_v20, %v5758_v2  ;;  %v5746_v29 = vpop.f32.mrf.mxu0 }
 0x3f8   :  { %v12106_v34 = vld [vmem:[#allocation12 + $0xb78] sm:$0xf0] }
 0x3f9   :  { %6009 = vmatpush.bf16.msra.mxu1 %v11629_v25  ;;  %v15537_v39 = vld [vmem:[#allocation12 + $0x51c] sm:$0xf]  ;;  %6035 = vmatpush.bf16.msra.mxu3 %v12141_v27  ;;  %v12109_v41 = vor.u32 %v15737_v31, %v12106_v34  ;;  %v17079_v28 = vadd.f32 %v5783_v24, %v5771_v8 }
 0x3fa   :  { %v11306_v40 = vld [vmem:[#allocation12 + $0x538] sm:$0xf0] }
 0x3fb   :  { %v15601_v33 = vld [vmem:[#allocation12 + $0x71c] sm:$0xf]  ;;  %5997 = vmatpush.bf16.msra.mxu0 %v11341_v36  ;;  %v11309_v3 = vor.u32 %v15537_v39, %v11306_v40  ;;  %6023 = vmatpush.bf16.msra.mxu2 %v11853_v22  ;;  %v5759_v22 = vpop.f32.mrf.mxu1 }
 0x3fc   :  { %v11562_v1 = vld [vmem:[#allocation12 + $0x738] sm:$0xf0] }
 0x3fd   :  { %v15665_v43 = vld [vmem:[#allocation12 + $0x91c] sm:$0xf]  ;;  %6010 = vmatpush.bf16.msra.mxu1 %v11597_v38  ;;  %v11565_v6 = vor.u32 %v15601_v33, %v11562_v1  ;;  %6036 = vmatpush.bf16.msra.mxu3 %v12109_v41 }
 0x3fe   :  { %v11818_v44 = vld [vmem:[#allocation12 + $0x938] sm:$0xf0] }
 0x3ff   :  { %v15729_v45 = vld [vmem:[#allocation12 + $0xb1c] sm:$0xf]  ;;  %v11821_v50 = vor.u32 %v15665_v43, %v11818_v44  ;;  %5998 = vmatpush.bf16.msra.mxu0 %v11309_v3 }
 0x400   :  { %v12074_v47 = vld [vmem:[#allocation12 + $0xb38] sm:$0xf0] }
 0x401   :  { %v15529_v56 = vld [vmem:[#allocation12 + $0x4dc] sm:$0xf]  ;;  %v12077_v57 = vor.u32 %v15729_v45, %v12074_v47  ;;  %6011 = vmatpush.bf16.msra.mxu1 %v11565_v6  ;;  %6024 = vmatpush.bf16.msra.mxu2 %v11821_v50 }
 0x402   :  { %v11274_v52 = vld [vmem:[#allocation12 + $0x4f8] sm:$0xf0] }
 0x403   :  { %v15593_v53 = vld [vmem:[#allocation12 + $0x6dc] sm:$0xf]  ;;  %v11277_v12 = vor.u32 %v15529_v56, %v11274_v52  ;;  %6037 = vmatpush.bf16.msra.mxu3 %v12077_v57  ;;  %v5772_v52 = vpop.f32.mrf.mxu2 }
 0x404   :  { %v11530_v58 = vld [vmem:[#allocation12 + $0x6f8] sm:$0xf0] }
 0x405   :  { %v15657_v10 = vld [vmem:[#allocation12 + $0x8dc] sm:$0xf]  ;;  %v11533_v14 = vor.u32 %v15593_v53, %v11530_v58  ;;  %5999 = vmatpush.bf16.msra.mxu0 %v11277_v12  ;;  %v5785_v58 = vpop.f32.mrf.mxu3 }
 0x406   :  { %v11786_v60 = vld [vmem:[#allocation12 + $0x8f8] sm:$0xf0] }
 0x407   :  { %v15721_v61 = vld [vmem:[#allocation12 + $0xadc] sm:$0xf]  ;;  %v11789_v42 = vor.u32 %v15657_v10, %v11786_v60  ;;  %6012 = vmatpush.bf16.msra.mxu1 %v11533_v14 }
 0x408   :  { %v12042_v62 = vld [vmem:[#allocation12 + $0xaf8] sm:$0xf0] }
 0x409   :  { %v15521_v15 = vld [vmem:[#allocation12 + $0x49c] sm:$0xf]  ;;  %v12045_v55 = vor.u32 %v15721_v61, %v12042_v62  ;;  %6025 = vmatpush.bf16.msra.mxu2 %v11789_v42 }
 0x40a   :  { %v11242_v18 = vld [vmem:[#allocation12 + $0x4b8] sm:$0xf0] }
 0x40b   :  { %v15585_v19 = vld [vmem:[#allocation12 + $0x69c] sm:$0xf]  ;;  %v11245_v27 = vor.u32 %v15521_v15, %v11242_v18  ;;  %6038 = vmatpush.bf16.msra.mxu3 %v12045_v55 }
 0x40c   :  { %v11498_v21 = vld [vmem:[#allocation12 + $0x6b8] sm:$0xf0] }
 0x40d   :  { %v15649_v23 = vld [vmem:[#allocation12 + $0x89c] sm:$0xf]  ;;  %v11501_v30 = vor.u32 %v15585_v19, %v11498_v21  ;;  %6000 = vmatpush.bf16.msra.mxu0 %v11245_v27 }
 0x40e   :  { %v11754_v25 = vld [vmem:[#allocation12 + $0x8b8] sm:$0xf0] }
 0x40f   :  { %v15713_v32 = vld [vmem:[#allocation12 + $0xa9c] sm:$0xf]  ;;  %v11757_v31 = vor.u32 %v15649_v23, %v11754_v25  ;;  %6013 = vmatpush.bf16.msra.mxu1 %v11501_v30 }
 0x410   :  { %v12010_v26 = vld [vmem:[#allocation12 + $0xab8] sm:$0xf0] }
 0x411   :  { %v15513_v34 = vld [vmem:[#allocation12 + $0x45c] sm:$0xf]  ;;  %v12013_v39 = vor.u32 %v15713_v32, %v12010_v26  ;;  %6026 = vmatpush.bf16.msra.mxu2 %v11757_v31 }
 0x412   :  { %v11210_v36 = vld [vmem:[#allocation12 + $0x478] sm:$0xf0] }
 0x413   :  { %v15577_v38 = vld [vmem:[#allocation12 + $0x65c] sm:$0xf]  ;;  %v11213_v44 = vor.u32 %v15513_v34, %v11210_v36  ;;  %6039 = vmatpush.bf16.msra.mxu3 %v12013_v39 }
 0x414   :  { %v11466_v40 = vld [vmem:[#allocation12 + $0x678] sm:$0xf0] }
 0x415   :  { %v15641_v33 = vld [vmem:[#allocation12 + $0x85c] sm:$0xf]  ;;  %v11469_v3 = vor.u32 %v15577_v38, %v11466_v40  ;;  %6001 = vmatpush.bf16.msra.mxu0 %v11213_v44 }
 0x416   :  { %v11722_v41 = vld [vmem:[#allocation12 + $0x878] sm:$0xf0] }
 0x417   :  { %v15705_v1 = vld [vmem:[#allocation12 + $0xa5c] sm:$0xf]  ;;  %v11725_v51 = vor.u32 %v15641_v33, %v11722_v41  ;;  %6014 = vmatpush.bf16.msra.mxu1 %v11469_v3 }
 0x418   :  { %v11978_v43 = vld [vmem:[#allocation12 + $0xa78] sm:$0xf0] }
 0x419   :  { %v15505_v45 = vld [vmem:[#allocation12 + $0x41c] sm:$0xf]  ;;  %v11981_v53 = vor.u32 %v15705_v1, %v11978_v43  ;;  %6027 = vmatpush.bf16.msra.mxu2 %v11725_v51 }
 0x41a   :  { %v11178_v47 = vld [vmem:[#allocation12 + $0x438] sm:$0xf0] }
 0x41b   :  { %v15569_v6 = vld [vmem:[#allocation12 + $0x61c] sm:$0xf]  ;;  %v11181_v62 = vor.u32 %v15505_v45, %v11178_v47  ;;  %6040 = vmatpush.bf16.msra.mxu3 %v11981_v53 }
 0x41c   :  { %v11434_v50 = vld [vmem:[#allocation12 + $0x638] sm:$0xf0] }
 0x41d   :  { %v15633_v56 = vld [vmem:[#allocation12 + $0x81c] sm:$0xf]  ;;  %v11437_v42 = vor.u32 %v15569_v6, %v11434_v50  ;;  %6002 = vmatpush.bf16.msra.mxu0 %v11181_v62 }
 0x41e   :  { %v11690_v54 = vld [vmem:[#allocation12 + $0x838] sm:$0xf0] }
 0x41f   :  { %v15697_v9 = vld [vmem:[#allocation12 + $0xa1c] sm:$0xf]  ;;  %v11693_v15 = vor.u32 %v15633_v56, %v11690_v54  ;;  %6015 = vmatpush.bf16.msra.mxu1 %v11437_v42 }
 0x420   :  { %v11946_v57 = vld [vmem:[#allocation12 + $0xa38] sm:$0xf0]  ;;  %6003 = vmatmul.bf16.vlgmr.msra.gmra.mxu0 %v16912_v0 }
 0x421   :  { %v15817_v10 = vld [vmem:[#allocation12 + $0xddc] sm:$0xf]  ;;  %v11949_v20 = vor.u32 %v15697_v9, %v11946_v57  ;;  %6028 = vmatpush.bf16.msra.mxu2 %v11693_v15  ;;  %v5796_v9 = vpop.f32.mrf.mxu0 }
 0x422   :  { %v12426_v60 = vld [vmem:[#allocation12 + $0xdf8] sm:$0xf0]  ;;  %6016 = vmatmul.bf16.vlgmr.msra.gmra.mxu1 %v16916_v4  ;;  %v5809_v4 = vpop.f32.mrf.mxu1 }
 0x423   :  { %v15881_v61 = vld [vmem:[#allocation12 + $0xfdc] sm:$0xf]  ;;  %v12429_v55 = vor.u32 %v15817_v10, %v12426_v60  ;;  %6041 = vmatpush.bf16.msra.mxu3 %v11949_v20 }
 0x424   :  { %v12682_v2 = vld [vmem:[#allocation12 + $0xff8] sm:$0xf0]  ;;  %6029 = vmatmul.bf16.vlgmr.msra.gmra.mxu2 %v16932_v5 }
 0x425   :  { %v15945_v12 = vld [vmem:[#allocation12 + $0x11dc] sm:$0xf]  ;;  %v12685_v21 = vor.u32 %v15881_v61, %v12682_v2  ;;  %6047 = vmatpush.bf16.msrb.mxu0 %v12429_v55 }
 0x426   :  { %v12938_v14 = vld [vmem:[#allocation12 + $0x11f8] sm:$0xf0]  ;;  %6042 = vmatmul.bf16.vlgmr.msra.gmra.mxu3 %v16936_v11  ;;  %v5797_v11 = vadd.f32 %v5796_v9, %v17079_v28 }
 0x427   :  { %v16009_v18 = vld [vmem:[#allocation12 + $0x13dc] sm:$0xf]  ;;  %v12941_v23 = vor.u32 %v15945_v12, %v12938_v14  ;;  %6060 = vmatpush.bf16.msrb.mxu1 %v12685_v21 }
 0x428   :  { %v13194_v19 = vld [vmem:[#allocation12 + $0x13f8] sm:$0xf0]  ;;  %v5810_v14 = vadd.f32 %v5809_v4, %v5797_v11 }
 0x429   :  { %v15809_v25 = vld [vmem:[#allocation12 + $0xd9c] sm:$0xf]  ;;  %v13197_v32 = vor.u32 %v16009_v18, %v13194_v19  ;;  %6073 = vmatpush.bf16.msrb.mxu2 %v12941_v23 }
 0x42a   :  { %v12394_v8 = vld [vmem:[#allocation12 + $0xdb8] sm:$0xf0] }
 0x42b   :  { %v15873_v24 = vld [vmem:[#allocation12 + $0xf9c] sm:$0xf]  ;;  %v12397_v34 = vor.u32 %v15809_v25, %v12394_v8  ;;  %6086 = vmatpush.bf16.msrb.mxu3 %v13197_v32  ;;  %v5822_v32 = vpop.f32.mrf.mxu2 }
 0x42c   :  { %v12650_v26 = vld [vmem:[#allocation12 + $0xfb8] sm:$0xf0] }
 0x42d   :  { %v15937_v27 = vld [vmem:[#allocation12 + $0x119c] sm:$0xf]  ;;  %v12653_v36 = vor.u32 %v15873_v24, %v12650_v26  ;;  %6048 = vmatpush.bf16.msrb.mxu0 %v12397_v34 }
 0x42e   :  { %v12906_v29 = vld [vmem:[#allocation12 + $0x11b8] sm:$0xf0] }
 0x42f   :  { %v16001_v30 = vld [vmem:[#allocation12 + $0x139c] sm:$0xf]  ;;  %v12909_v38 = vor.u32 %v15937_v27, %v12906_v29  ;;  %6061 = vmatpush.bf16.msrb.mxu1 %v12653_v36 }
 0x430   :  { %v13162_v31 = vld [vmem:[#allocation12 + $0x13b8] sm:$0xf0] }
 0x431   :  { %v15801_v22 = vld [vmem:[#allocation12 + $0xd5c] sm:$0xf]  ;;  %v13165_v33 = vor.u32 %v16001_v30, %v13162_v31  ;;  %6074 = vmatpush.bf16.msrb.mxu2 %v12909_v38  ;;  %v5823_v30 = vadd.f32 %v5822_v32, %v5810_v14  ;;  %v5835_v31 = vpop.f32.mrf.mxu3  ;;  %v5798_v38 = vpop.f32.mrf.mxu0  ;;  %v13440_v14 = vld [vmem:[#allocation16 + $0x1e0] sm:$0xf] }
 0x432   :  { %v12362_v39 = vld [vmem:[#allocation12 + $0xd78] sm:$0xf0]  ;;  %v13680_v38 = vld [vmem:[#allocation16 + $0x3c0] sm:$0xf] }
 0x433   :  { %v15865_v40 = vld [vmem:[#allocation12 + $0xf5c] sm:$0xf]  ;;  %v12365_v47 = vor.u32 %v15801_v22, %v12362_v39  ;;  %6087 = vmatpush.bf16.msrb.mxu3 %v13165_v33  ;;  %v5811_v39 = vpop.f32.mrf.mxu1 }
 0x434   :  { %v12618_v41 = vld [vmem:[#allocation12 + $0xf78] sm:$0xf0] }
 0x435   :  { %v15929_v1 = vld [vmem:[#allocation12 + $0x115c] sm:$0xf]  ;;  %v12621_v3 = vor.u32 %v15865_v40, %v12618_v41  ;;  %6049 = vmatpush.bf16.msrb.mxu0 %v12365_v47  ;;  %v5836_v40 = vadd.f32 %v5835_v31, %v5823_v30  ;;  %v16328_v31 = vld [vmem:[#allocation16 + $0x1cc] sm:$0xf0] }
 0x436   :  { %v12874_v43 = vld [vmem:[#allocation12 + $0x1178] sm:$0xf0] }
 0x437   :  { %v15993_v44 = vld [vmem:[#allocation12 + $0x135c] sm:$0xf]  ;;  %v12877_v51 = vor.u32 %v15929_v1, %v12874_v43  ;;  %6062 = vmatpush.bf16.msrb.mxu1 %v12621_v3 }
 0x438   :  { %v13130_v45 = vld [vmem:[#allocation12 + $0x1378] sm:$0xf0] }
 0x439   :  { %v15793_v6 = vld [vmem:[#allocation12 + $0xd1c] sm:$0xf]  ;;  %v13133_v56 = vor.u32 %v15993_v44, %v13130_v45  ;;  %6075 = vmatpush.bf16.msrb.mxu2 %v12877_v51 }
 0x43a   :  { %v12330_v50 = vld [vmem:[#allocation12 + $0xd38] sm:$0xf0] }
 0x43b   :  { %v15857_v5 = vld [vmem:[#allocation12 + $0xf1c] sm:$0xf]  ;;  %v12333_v58 = vor.u32 %v15793_v6, %v12330_v50  ;;  %6088 = vmatpush.bf16.msrb.mxu3 %v13133_v56  ;;  %v6103_v6 = vmax.f32 %v17069_v46, 0.0  ;;  %v6104_v50 = vmax.f32 %v5836_v40, 0.0 }
 0x43c   :  { %v12586_v52 = vld [vmem:[#allocation12 + $0xf38] sm:$0xf0] }
 0x43d   :  { %v15921_v53 = vld [vmem:[#allocation12 + $0x111c] sm:$0xf]  ;;  %v12589_v10 = vor.u32 %v15857_v5, %v12586_v52  ;;  %6050 = vmatpush.bf16.msrb.mxu0 %v12333_v58  ;;  %v17087_v9 = vpack.c.bf16 %v6104_v50, %v6103_v6  ;;  %v16388_v6 = vld [vmem:[#allocation16 + $0x3ac] sm:$0xf0] }
 0x43e   :  { %v12842_v54 = vld [vmem:[#allocation12 + $0x1138] sm:$0xf0] }
 0x43f   :  { %v15985_v0 = vld [vmem:[#allocation12 + $0x131c] sm:$0xf]  ;;  %v12845_v60 = vor.u32 %v15921_v53, %v12842_v54  ;;  %6063 = vmatpush.bf16.msrb.mxu1 %v12589_v10 }
 0x440   :  { %v13098_v57 = vld [vmem:[#allocation12 + $0x1338] sm:$0xf0] }
 0x441   :  { %v15785_v61 = vld [vmem:[#allocation12 + $0xcdc] sm:$0xf]  ;;  %v13101_v12 = vor.u32 %v15985_v0, %v13098_v57  ;;  %6076 = vmatpush.bf16.msrb.mxu2 %v12845_v60 }
 0x442   :  { %v12298_v62 = vld [vmem:[#allocation12 + $0xcf8] sm:$0xf0] }
 0x443   :  { %v15849_v2 = vld [vmem:[#allocation12 + $0xedc] sm:$0xf]  ;;  %v12301_v55 = vor.u32 %v15785_v61, %v12298_v62  ;;  %6089 = vmatpush.bf16.msrb.mxu3 %v13101_v12  ;;  %v5824_v62 = vpop.f32.mrf.mxu2  ;;  %v16300_v12 = vld [vmem:[#allocation16 + $0xec] sm:$0xf0] }
 0x444   :  { %v12554_v42 = vld [vmem:[#allocation12 + $0xef8] sm:$0xf0]  ;;  %v16284_v62 = vld [vmem:[#allocation16 + $0x6c] sm:$0xf0] }
 0x445   :  { %v15913_v15 = vld [vmem:[#allocation12 + $0x10dc] sm:$0xf]  ;;  %v12557_v28 = vor.u32 %v15849_v2, %v12554_v42  ;;  %6051 = vmatpush.bf16.msrb.mxu0 %v12301_v55  ;;  %v13312_v2 = vld [vmem:[#allocation16 + $0xe0] sm:$0xf]  ;;  %v5837_v42 = vpop.f32.mrf.mxu3 }
 0x446   :  { %v12810_v18 = vld [vmem:[#allocation12 + $0x10f8] sm:$0xf0] }
 0x447   :  { %v15977_v19 = vld [vmem:[#allocation12 + $0x12dc] sm:$0xf]  ;;  %v12813_v21 = vor.u32 %v15913_v15, %v12810_v18  ;;  %6064 = vmatpush.bf16.msrb.mxu1 %v12557_v28  ;;  %v16332_v18 = vld [vmem:[#allocation16 + $0x1ec] sm:$0xf0] }
 0x448   :  { %v13066_v20 = vld [vmem:[#allocation12 + $0x12f8] sm:$0xf0] }
 0x449   :  { %v15777_v23 = vld [vmem:[#allocation12 + $0xc9c] sm:$0xf]  ;;  %v13069_v24 = vor.u32 %v15977_v19, %v13066_v20  ;;  %6077 = vmatpush.bf16.msrb.mxu2 %v12813_v21  ;;  %v13568_v19 = vld [vmem:[#allocation16 + $0x2e0] sm:$0xf]  ;;  %v16364_v20 = vld [vmem:[#allocation16 + $0x2ec] sm:$0xf0] }
 0x44a   :  { %v12266_v25 = vld [vmem:[#allocation12 + $0xcb8] sm:$0xf0]  ;;  %v13696_v21 = vld [vmem:[#allocation16 + $0x3e0] sm:$0xf]  ;;  %v13569_v32 = vor.u32 %v16364_v20, %v13568_v19  ;;  %v16348_v19 = vld [vmem:[#allocation16 + $0x26c] sm:$0xf0] }
 0x44b   :  { %v15841_v8 = vld [vmem:[#allocation12 + $0xe9c] sm:$0xf]  ;;  %v12269_v22 = vor.u32 %v15777_v23, %v12266_v25  ;;  %6090 = vmatpush.bf16.msrb.mxu3 %v13069_v24  ;;  %v16396_v23 = vld [vmem:[#allocation16 + $0x3ec] sm:$0xf0]  ;;  %v13441_v24 = vor.u32 %v16332_v18, %v13440_v14  ;;  %v5861_v14 = vpop.f32.mrf.mxu1  ;;  %v13504_v18 = vld [vmem:[#allocation16 + $0x260] sm:$0xf] }
 0x44c   :  { %v12522_v26 = vld [vmem:[#allocation12 + $0xeb8] sm:$0xf0]  ;;  %v13697_v30 = vor.u32 %v16396_v23, %v13696_v21  ;;  %v13632_v20 = vld [vmem:[#allocation16 + $0x360] sm:$0xf] }
 0x44d   :  { %v15905_v27 = vld [vmem:[#allocation12 + $0x109c] sm:$0xf]  ;;  %v12525_v33 = vor.u32 %v15841_v8, %v12522_v26  ;;  %6052 = vmatpush.bf16.msrb.mxu0 %v12269_v22  ;;  %v13313_v8 = vor.u32 %v16300_v12, %v13312_v2  ;;  %v13296_v26 = vld [vmem:[#allocation16 + $0xc0] sm:$0xf]  ;;  %v16392_v22 = vld [vmem:[#allocation16 + $0x3cc] sm:$0xf0] }
 0x44e   :  { %v12778_v29 = vld [vmem:[#allocation12 + $0x10b8] sm:$0xf0]  ;;  %v13376_v2 = vld [vmem:[#allocation16 + $0x160] sm:$0xf] }
 0x44f   :  { %v15969_v34 = vld [vmem:[#allocation12 + $0x129c] sm:$0xf]  ;;  %v12781_v41 = vor.u32 %v15905_v27, %v12778_v29  ;;  %6065 = vmatpush.bf16.msrb.mxu1 %v12525_v33  ;;  %v16296_v27 = vld [vmem:[#allocation16 + $0xcc] sm:$0xf0]  ;;  %v13424_v29 = vld [vmem:[#allocation16 + $0x1c0] sm:$0xf] }
 0x450   :  { %v13034_v36 = vld [vmem:[#allocation12 + $0x12b8] sm:$0xf0]  ;;  %v13297_v39 = vor.u32 %v16296_v27, %v13296_v26  ;;  %v13425_v40 = vor.u32 %v16328_v31, %v13424_v29  ;;  %v5874_v26 = vpop.f32.mrf.mxu2  ;;  %v16312_v29 = vld [vmem:[#allocation16 + $0x14c] sm:$0xf0] }
 0x451   :  { %v15769_v1 = vld [vmem:[#allocation12 + $0xc5c] sm:$0xf]  ;;  %v13037_v45 = vor.u32 %v15969_v34, %v13034_v36  ;;  %6078 = vmatpush.bf16.msrb.mxu2 %v12781_v41  ;;  %v13552_v34 = vld [vmem:[#allocation16 + $0x2c0] sm:$0xf]  ;;  %v16360_v36 = vld [vmem:[#allocation16 + $0x2cc] sm:$0xf0] }
 0x452   :  { %v12234_v43 = vld [vmem:[#allocation12 + $0xc78] sm:$0xf0]  ;;  %v13553_v33 = vor.u32 %v16360_v36, %v13552_v34  ;;  %v13280_v41 = vld [vmem:[#allocation16 + $0xa0] sm:$0xf]  ;;  %v16344_v31 = vld [vmem:[#allocation16 + $0x24c] sm:$0xf0]  ;;  %v5887_v36 = vpop.f32.mrf.mxu3 }
 0x453   :  { %v15833_v44 = vld [vmem:[#allocation12 + $0xe5c] sm:$0xf]  ;;  %v12237_v52 = vor.u32 %v15769_v1, %v12234_v43  ;;  %6091 = vmatpush.bf16.msrb.mxu3 %v13037_v45  ;;  %v16292_v1 = vld [vmem:[#allocation16 + $0xac] sm:$0xf0]  ;;  %v13408_v43 = vld [vmem:[#allocation16 + $0x1a0] sm:$0xf] }
 0x454   :  { %v12490_v47 = vld [vmem:[#allocation12 + $0xe78] sm:$0xf0]  ;;  %v16324_v45 = vld [vmem:[#allocation16 + $0x1ac] sm:$0xf0]  ;;  %v13281_v50 = vor.u32 %v16292_v1, %v13280_v41 }
 0x455   :  { %v15897_v3 = vld [vmem:[#allocation12 + $0x105c] sm:$0xf]  ;;  %v12493_v0 = vor.u32 %v15833_v44, %v12490_v47  ;;  %6053 = vmatpush.bf16.msrb.mxu0 %v12237_v52  ;;  %v13681_v44 = vor.u32 %v16392_v22, %v13680_v38  ;;  %v13536_v47 = vld [vmem:[#allocation16 + $0x2a0] sm:$0xf]  ;;  %v16376_v22 = vld [vmem:[#allocation16 + $0x34c] sm:$0xf0] }
 0x456   :  { %v12746_v51 = vld [vmem:[#allocation12 + $0x1078] sm:$0xf0]  ;;  %v13616_v38 = vld [vmem:[#allocation16 + $0x340] sm:$0xf] }
 0x457   :  { %v15961_v5 = vld [vmem:[#allocation12 + $0x125c] sm:$0xf]  ;;  %v12749_v57 = vor.u32 %v15897_v3, %v12746_v51  ;;  %6066 = vmatpush.bf16.msrb.mxu1 %v12493_v0  ;;  %v16356_v3 = vld [vmem:[#allocation16 + $0x2ac] sm:$0xf0]  ;;  %v13664_v51 = vld [vmem:[#allocation16 + $0x3a0] sm:$0xf] }
 0x458   :  { %v13002_v56 = vld [vmem:[#allocation12 + $0x1278] sm:$0xf0]  ;;  %v13537_v52 = vor.u32 %v16356_v3, %v13536_v47  ;;  %v5863_v47 = vpop.f32.mrf.mxu1  ;;  %v13617_v3 = vor.u32 %v16376_v22, %v13616_v38  ;;  %v16452_v38 = vld [vmem:[#allocation16 + $0x5ac] sm:$0xf0] }
 0x459   :  { %v15761_v53 = vld [vmem:[#allocation12 + $0xc1c] sm:$0xf]  ;;  %v13005_v10 = vor.u32 %v15961_v5, %v13002_v56  ;;  %6079 = vmatpush.bf16.msrb.mxu2 %v12749_v57  ;;  %v13264_v5 = vld [vmem:[#allocation16 + $0x80] sm:$0xf]  ;;  %v13409_v56 = vor.u32 %v16324_v45, %v13408_v43 }
 0x45a   :  { %v12202_v54 = vld [vmem:[#allocation12 + $0xc38] sm:$0xf0]  ;;  %v13520_v57 = vld [vmem:[#allocation16 + $0x280] sm:$0xf] }
 0x45b   :  { %v15825_v11 = vld [vmem:[#allocation12 + $0xe1c] sm:$0xf]  ;;  %v12205_v15 = vor.u32 %v15761_v53, %v12202_v54  ;;  %6092 = vmatpush.bf16.msrb.mxu3 %v13005_v10  ;;  %v13392_v53 = vld [vmem:[#allocation16 + $0x180] sm:$0xf]  ;;  %v17093_v54 = vld [vmem:[#allocation13] sm:$0xff]  ;;  %v5848_v10 = vpop.f32.mrf.mxu0 }
 0x45c   :  { %v12458_v58 = vld [vmem:[#allocation12 + $0xe38] sm:$0xf0]  ;;  %v1849_v0 = vperm.slane %v17093_v54, 6  ;;  %v13216_v43 = vld [vmem:[#allocation16 + $0x20] sm:$0xf] }
 0x45d   :  { %v15889_v4 = vld [vmem:[#allocation12 + $0x101c] sm:$0xf]  ;;  %v12461_v55 = vor.u32 %v15825_v11, %v12458_v58  ;;  %6054 = vmatpush.bf16.msrb.mxu0 %v12205_v15  ;;  %v16352_v11 = vld [vmem:[#allocation16 + $0x28c] sm:$0xf0]  ;;  %v13648_v58 = vld [vmem:[#allocation16 + $0x380] sm:$0xf] }
 0x45e   :  { %v12714_v60 = vld [vmem:[#allocation12 + $0x1038] sm:$0xf0]  ;;  %v5849_v12 = vadd.f32 %v5848_v10, %v1849_v0  ;;  %v16316_v15 = vld [vmem:[#allocation16 + $0x16c] sm:$0xf0]  ;;  %v13344_v45 = vld [vmem:[#allocation16 + $0x120] sm:$0xf] }
 0x45f   :  { %v15953_v46 = vld [vmem:[#allocation12 + $0x121c] sm:$0xf]  ;;  %v12717_v28 = vor.u32 %v15889_v4, %v12714_v60  ;;  %6067 = vmatpush.bf16.msrb.mxu1 %v12461_v55  ;;  %v16380_v55 = vld [vmem:[#allocation16 + $0x36c] sm:$0xf0]  ;;  %v13377_v23 = vor.u32 %v16316_v15, %v13376_v2  ;;  %v13584_v10 = vld [vmem:[#allocation16 + $0x300] sm:$0xf] }
 0x460   :  { %v12970_v61 = vld [vmem:[#allocation12 + $0x1238] sm:$0xf0]  ;;  %6055 = vmatmul.bf16.vlgmr.msrb.gmra.mxu0 %v16930_v63  ;;  %v16288_v63 = vld [vmem:[#allocation16 + $0x8c] sm:$0xf0]  ;;  %v13633_v27 = vor.u32 %v16380_v55, %v13632_v20  ;;  %v6641_v20 = vunpack.c.l.b16 %v17046_v37 }
 0x461   :  { %v12973_v25 = vor.u32 %v15953_v46, %v12970_v61  ;;  %6080 = vmatpush.bf16.msrb.mxu2 %v12717_v28  ;;  %7943 = vmatpush.bf16.msra.mxu0 %v13313_v8  ;;  %v13265_v4 = vor.u32 %v16288_v63, %v13264_v5  ;;  %v13521_v46 = vor.u32 %v16352_v11, %v13520_v57  ;;  %v13248_v61 = vld [vmem:[#allocation16 + $0x60] sm:$0xf]  ;;  %v16304_v57 = vld [vmem:[#allocation16 + $0x10c] sm:$0xf0]  ;;  %v5876_v11 = vpop.f32.mrf.mxu2 }
 0x462   :  { %6068 = vmatmul.bf16.vlgmr.msrb.gmra.mxu1 %v16934_v7  ;;  %v13665_v7 = vor.u32 %v16388_v6, %v13664_v51  ;;  %v5862_v28 = vadd.f32 %v5861_v14, %v5849_v12  ;;  %v13249_v21 = vor.u32 %v16284_v62, %v13248_v61  ;;  %v13232_v8 = vld [vmem:[#allocation16 + $0x40] sm:$0xf]  ;;  %v16308_v51 = vld [vmem:[#allocation16 + $0x12c] sm:$0xf0] }
 0x463   :  { %6093 = vmatpush.bf16.msrb.mxu3 %v12973_v25  ;;  %7956 = vmatpush.bf16.msra.mxu1 %v13441_v24  ;;  %v13505_v25 = vor.u32 %v16348_v19, %v13504_v18  ;;  %v16280_v24 = vld [vmem:[#allocation16 + $0x4c] sm:$0xf0]  ;;  %v13472_v6 = vld [vmem:[#allocation16 + $0x220] sm:$0xf]  ;;  %v6640_v19 = vunpack.c.h.b16 %v17005_v16 }
 0x464   :  { %6081 = vmatmul.bf16.vlgmr.msrb.gmra.mxu2 %v16946_v13  ;;  %v16320_v13 = vld [vmem:[#allocation16 + $0x18c] sm:$0xf0]  ;;  %v5875_v34 = vadd.f32 %v5874_v26, %v5862_v28  ;;  %v13600_v5 = vld [vmem:[#allocation16 + $0x320] sm:$0xf] }
 0x465   :  { %7969 = vmatpush.bf16.msra.mxu2 %v13569_v32  ;;  %7944 = vmatpush.bf16.msra.mxu0 %v13297_v39  ;;  %v13393_v60 = vor.u32 %v16320_v13, %v13392_v53  ;;  %v13360_v32 = vld [vmem:[#allocation16 + $0x140] sm:$0xf]  ;;  %v13233_v39 = vor.u32 %v16280_v24, %v13232_v8  ;;  %v13345_v53 = vor.u32 %v16308_v51, %v13344_v45  ;;  %v16428_v62 = vld [vmem:[#allocation16 + $0x4ec] sm:$0xf0] }
 0x466   :  { %6094 = vmatmul.bf16.vlgmr.msrb.gmra.mxu3 %v16948_v17  ;;  %v16384_v17 = vld [vmem:[#allocation16 + $0x38c] sm:$0xf0]  ;;  %v13361_v41 = vor.u32 %v16312_v29, %v13360_v32  ;;  %v13200_v63 = vld [vmem:[#allocation16] sm:$0xf] }
 0x467   :  { %7982 = vmatpush.bf16.msra.mxu3 %v13697_v30  ;;  %7957 = vmatpush.bf16.msra.mxu1 %v13425_v40  ;;  %v13649_v42 = vor.u32 %v16384_v17, %v13648_v58  ;;  %v13488_v30 = vld [vmem:[#allocation16 + $0x240] sm:$0xf]  ;;  %v17096_v40 = vadd.f32 %v5887_v36, %v5875_v34  ;;  %v16460_v14 = vld [vmem:[#allocation16 + $0x5ec] sm:$0xf0] }
 0x468   :  { %v13489_v1 = vor.u32 %v16344_v31, %v13488_v30  ;;  %v13328_v13 = vld [vmem:[#allocation16 + $0x100] sm:$0xf]  ;;  %v16424_v8 = vld [vmem:[#allocation16 + $0x4cc] sm:$0xf0] }
 0x469   :  { %7970 = vmatpush.bf16.msra.mxu2 %v13553_v33  ;;  %7945 = vmatpush.bf16.msra.mxu0 %v13281_v50  ;;  %v5850_v33 = vpop.f32.mrf.mxu0  ;;  %v16340_v50 = vld [vmem:[#allocation16 + $0x22c] sm:$0xf0]  ;;  %v13456_v17 = vld [vmem:[#allocation16 + $0x200] sm:$0xf]  ;;  %v13329_v15 = vor.u32 %v16304_v57, %v13328_v13  ;;  %v5926_v13 = vpop.f32.mrf.mxu2 }
 0x46a   :  { %v13473_v0 = vor.u32 %v16340_v50, %v13472_v6  ;;  %v13824_v61 = vld [vmem:[#allocation16 + $0x4e0] sm:$0xf]  ;;  %v16456_v32 = vld [vmem:[#allocation16 + $0x5cc] sm:$0xf0]  ;;  %v5913_v50 = vpop.f32.mrf.mxu1 }
 0x46b   :  { %7983 = vmatpush.bf16.msra.mxu3 %v13681_v44  ;;  %7958 = vmatpush.bf16.msra.mxu1 %v13409_v56  ;;  %v16276_v44 = vld [vmem:[#allocation16 + $0x2c] sm:$0xf0]  ;;  %v13952_v12 = vld [vmem:[#allocation16 + $0x5e0] sm:$0xf]  ;;  %v13825_v28 = vor.u32 %v16428_v62, %v13824_v61 }
 0x46c   :  { %v16372_v56 = vld [vmem:[#allocation16 + $0x32c] sm:$0xf0]  ;;  %v13936_v24 = vld [vmem:[#allocation16 + $0x5c0] sm:$0xf] }
 0x46d   :  { %7971 = vmatpush.bf16.msra.mxu2 %v13537_v52  ;;  %7946 = vmatpush.bf16.msra.mxu0 %v13265_v4  ;;  %v13217_v52 = vor.u32 %v16276_v44, %v13216_v43  ;;  %v13601_v58 = vor.u32 %v16372_v56, %v13600_v5  ;;  %v16336_v4 = vld [vmem:[#allocation16 + $0x20c] sm:$0xf0]  ;;  %v13792_v31 = vld [vmem:[#allocation16 + $0x4a0] sm:$0xf] }
 0x46e   :  { %v13457_v18 = vor.u32 %v16336_v4, %v13456_v17  ;;  %v16420_v34 = vld [vmem:[#allocation16 + $0x4ac] sm:$0xf0]  ;;  %v13920_v36 = vld [vmem:[#allocation16 + $0x5a0] sm:$0xf] }
 0x46f   :  { %7984 = vmatpush.bf16.msra.mxu3 %v13665_v7  ;;  %7959 = vmatpush.bf16.msra.mxu1 %v13393_v60  ;;  %v16272_v7 = vld [vmem:[#allocation16 + $0xc] sm:$0xf0]  ;;  %v5889_v60 = vpop.f32.mrf.mxu3  ;;  %v13793_v22 = vor.u32 %v16420_v34, %v13792_v31  ;;  %v13776_v33 = vld [vmem:[#allocation16 + $0x480] sm:$0xf]  ;;  %v16294_v31 = vld [vmem:[#allocation16 + $0xc4] sm:$0xf] }
 0x470   :  { %v13201_v2 = vor.u32 %v16272_v7, %v13200_v63  ;;  %v16448_v43 = vld [vmem:[#allocation16 + $0x58c] sm:$0xf0]  ;;  %v13888_v5 = vld [vmem:[#allocation16 + $0x560] sm:$0xf] }
 0x471   :  { %7972 = vmatpush.bf16.msra.mxu2 %v13521_v46  ;;  %7947 = vmatpush.bf16.msra.mxu0 %v13249_v21  ;;  %v16368_v46 = vld [vmem:[#allocation16 + $0x30c] sm:$0xf0]  ;;  %v6642_v21 = vunpack.c.h.b16 %v17046_v37  ;;  %v13937_v37 = vor.u32 %v16456_v32, %v13936_v24  ;;  %v5900_v45 = vpop.f32.mrf.mxu0  ;;  %v13872_v57 = vld [vmem:[#allocation16 + $0x540] sm:$0xf]  ;;  %v6643_v32 = vunpack.c.l.b16 %v17087_v9 }
 0x472   :  { %v13585_v55 = vor.u32 %v16368_v46, %v13584_v10  ;;  %v16412_v51 = vld [vmem:[#allocation16 + $0x46c] sm:$0xf0]  ;;  %v5901_v6 = vadd.f32 %v5900_v45, %v17096_v40  ;;  %v13728_v46 = vld [vmem:[#allocation16 + $0x420] sm:$0xf]  ;;  %v5915_v62 = vpop.f32.mrf.mxu1 }
 0x473   :  { %7985 = vmatpush.bf16.msra.mxu3 %v13649_v42  ;;  %7960 = vmatpush.bf16.msra.mxu1 %v13377_v23  ;;  %v6639_v42 = vunpack.c.l.b16 %v17005_v16  ;;  %v13953_v23 = vor.u32 %v16460_v14, %v13952_v12  ;;  %v17106_v16 = vpack.c.b16 %v6641_v20, %v6641_v20  ;;  %v17108_v30 = vpack.c.b16 %v6642_v21, %v6642_v21  ;;  %v16444_v56 = vld [vmem:[#allocation16 + $0x56c] sm:$0xf0]  ;;  %v5928_v20 = vpop.f32.mrf.mxu2  ;;  %v13314_v21 = vld [vmem:[#allocation16 + $0xf0] sm:$0xf0]  ;;  %v14080_v34 = vld [vmem:[#allocation16 + $0x6e0] sm:$0xf] }
 0x474   :  { %v16408_v7 = vld [vmem:[#allocation16 + $0x44c] sm:$0xf0]  ;;  %v16318_v62 = vld [vmem:[#allocation16 + $0x184] sm:$0xf] }
 0x475   :  { %7973 = vmatpush.bf16.msra.mxu2 %v13505_v25  ;;  %7948 = vmatpush.bf16.msra.mxu0 %v13233_v39  ;;  %v13808_v25 = vld [vmem:[#allocation16 + $0x4c0] sm:$0xf]  ;;  %v17102_v26 = vpack.c.b16 %v6639_v42, %v6639_v42  ;;  %v13921_v39 = vor.u32 %v16452_v38, %v13920_v36  ;;  %v16440_v11 = vld [vmem:[#allocation16 + $0x54c] sm:$0xf0]  ;;  %v6644_v38 = vunpack.c.h.b16 %v17087_v9 }
 0x476   :  { %v13809_v29 = vor.u32 %v16424_v8, %v13808_v25  ;;  %v13873_v60 = vor.u32 %v16440_v11, %v13872_v57  ;;  %v16404_v61 = vld [vmem:[#allocation16 + $0x42c] sm:$0xf0]  ;;  %v16330_v25 = vld [vmem:[#allocation16 + $0x1e4] sm:$0xf]  ;;  %v13442_v8 = vld [vmem:[#allocation16 + $0x1f0] sm:$0xf0] }
 0x477   :  { %7986 = vmatpush.bf16.msra.mxu3 %v13633_v27  ;;  %7961 = vmatpush.bf16.msra.mxu1 %v13361_v41  ;;  %v17104_v27 = vpack.c.b16 %v6640_v19, %v6640_v19  ;;  %v16416_v41 = vld [vmem:[#allocation16 + $0x48c] sm:$0xf0]  ;;  %v5939_v17 = vpop.f32.mrf.mxu3  ;;  %v13729_v14 = vor.u32 %v16404_v61, %v13728_v46  ;;  %v13840_v19 = vld [vmem:[#allocation16 + $0x500] sm:$0xf] }
 0x478   :  { %v13777_v44 = vor.u32 %v16416_v41, %v13776_v33  ;;  %v16436_v12 = vld [vmem:[#allocation16 + $0x52c] sm:$0xf0]  ;;  %v14208_v41 = vld [vmem:[#allocation16 + $0x7e0] sm:$0xf] }
 0x479   :  { %7974 = vmatpush.bf16.msra.mxu2 %v13489_v1  ;;  %7949 = vmatpush.bf16.msra.mxu0 %v13217_v52  ;;  %v13904_v1 = vld [vmem:[#allocation16 + $0x580] sm:$0xf]  ;;  %v5914_v52 = vadd.f32 %v5913_v50, %v5901_v6  ;;  %v5902_v40 = vpop.f32.mrf.mxu0  ;;  %v16492_v36 = vld [vmem:[#allocation16 + $0x6ec] sm:$0xf0] }
 0x47a   :  { %v13905_v47 = vor.u32 %v16448_v43, %v13904_v1  ;;  %v14081_v33 = vor.u32 %v16492_v36, %v14080_v34  ;;  %v16524_v1 = vld [vmem:[#allocation16 + $0x7ec] sm:$0xf0]  ;;  %v16326_v43 = vld [vmem:[#allocation16 + $0x1c4] sm:$0xf]  ;;  %v14064_v6 = vld [vmem:[#allocation16 + $0x6c0] sm:$0xf] }
 0x47b   :  { %7987 = vmatpush.bf16.msra.mxu3 %v13617_v3  ;;  %7962 = vmatpush.bf16.msra.mxu1 %v13345_v53  ;;  %v13760_v3 = vld [vmem:[#allocation16 + $0x460] sm:$0xf]  ;;  %v13889_v53 = vor.u32 %v16444_v56, %v13888_v5  ;;  %v14209_v45 = vor.u32 %v16524_v1, %v14208_v41  ;;  %v16488_v50 = vld [vmem:[#allocation16 + $0x6cc] sm:$0xf0]  ;;  %v17121_v5 = vpack.c.b16 %v6644_v38, %v6644_v38  ;;  %v13282_v56 = vld [vmem:[#allocation16 + $0xb0] sm:$0xf0] }
 0x47c   :  { %v13761_v63 = vor.u32 %v16412_v51, %v13760_v3  ;;  %v16290_v51 = vld [vmem:[#allocation16 + $0xa4] sm:$0xf]  ;;  %v14048_v11 = vld [vmem:[#allocation16 + $0x6a0] sm:$0xf]  ;;  %v16516_v61 = vld [vmem:[#allocation16 + $0x7ac] sm:$0xf0] }
 0x47d   :  { %7975 = vmatpush.bf16.msra.mxu2 %v13473_v0  ;;  %7950 = vmatpush.bf16.msra.mxu0 %v13201_v2  ;;  %v13744_v0 = vld [vmem:[#allocation16 + $0x440] sm:$0xf]  ;;  %v13285_v57 = vor.u32 %v16290_v51, %v13282_v56  ;;  %v16286_v40 = vld [vmem:[#allocation16 + $0x84] sm:$0xf]  ;;  %v16476_v36 = vld [vmem:[#allocation16 + $0x66c] sm:$0xf0] }
 0x47e   :  { %v13745_v4 = vor.u32 %v16408_v7, %v13744_v0  ;;  %v13856_v2 = vld [vmem:[#allocation16 + $0x520] sm:$0xf]  ;;  %v16322_v0 = vld [vmem:[#allocation16 + $0x1a4] sm:$0xf]  ;;  %v13410_v7 = vld [vmem:[#allocation16 + $0x1b0] sm:$0xf0] }
 0x47f   :  { %7988 = vmatpush.bf16.msra.mxu3 %v13601_v58  ;;  %7963 = vmatpush.bf16.msra.mxu1 %v13329_v15  ;;  %v5927_v58 = vadd.f32 %v5926_v13, %v5914_v52  ;;  %v13857_v42 = vor.u32 %v16436_v12, %v13856_v2  ;;  %v13712_v15 = vld [vmem:[#allocation16 + $0x400] sm:$0xf]  ;;  %v14065_v52 = vor.u32 %v16488_v50, %v14064_v6  ;;  %v13394_v2 = vld [vmem:[#allocation16 + $0x190] sm:$0xf0]  ;;  %v16508_v41 = vld [vmem:[#allocation16 + $0x76c] sm:$0xf0] }
 0x480   :  { %7951 = vmatmul.bf16.vlgmr.msra.gmra.mxu0 %v17102_v26  ;;  %v14016_v34 = vld [vmem:[#allocation16 + $0x660] sm:$0xf]  ;;  %v16310_v1 = vld [vmem:[#allocation16 + $0x144] sm:$0xf] }
 0x481   :  { %7976 = vmatpush.bf16.msra.mxu2 %v13457_v18  ;;  %7995 = vmatpush.bf16.msrb.mxu0 %v13825_v28  ;;  %v17115_v10 = vadd.f32 %v5939_v17, %v5927_v58  ;;  %v16400_v18 = vld [vmem:[#allocation16 + $0x40c] sm:$0xf0]  ;;  %v16298_v28 = vld [vmem:[#allocation16 + $0xe4] sm:$0xf]  ;;  %v14176_v17 = vld [vmem:[#allocation16 + $0x7a0] sm:$0xf] }
 0x482   :  { %7964 = vmatmul.bf16.vlgmr.msra.gmra.mxu1 %v17104_v27  ;;  %v13713_v24 = vor.u32 %v16400_v18, %v13712_v15  ;;  %v16484_v58 = vld [vmem:[#allocation16 + $0x6ac] sm:$0xf0]  ;;  %v14177_v12 = vor.u32 %v16516_v61, %v14176_v17  ;;  %v14032_v15 = vld [vmem:[#allocation16 + $0x680] sm:$0xf]  ;;  %v16270_v17 = vld [vmem:[#allocation16 + $0x4] sm:$0xf] }
 0x483   :  { %7989 = vmatpush.bf16.msra.mxu3 %v13585_v55  ;;  %8008 = vmatpush.bf16.msrb.mxu1 %v13953_v23  ;;  %v16432_v55 = vld [vmem:[#allocation16 + $0x50c] sm:$0xf0]  ;;  %v5941_v23 = vpop.f32.mrf.mxu3  ;;  %v14049_v46 = vor.u32 %v16484_v58, %v14048_v11  ;;  %v14144_v38 = vld [vmem:[#allocation16 + $0x760] sm:$0xf]  ;;  %v13346_v11 = vld [vmem:[#allocation16 + $0x130] sm:$0xf0] }
 0x484   :  { %7977 = vmatmul.bf16.vlgmr.msra.gmra.mxu2 %v17106_v16  ;;  %v16480_v18 = vld [vmem:[#allocation16 + $0x68c] sm:$0xf0]  ;;  %v13250_v23 = vld [vmem:[#allocation16 + $0x70] sm:$0xf0]  ;;  %v14000_v50 = vld [vmem:[#allocation16 + $0x640] sm:$0xf] }
 0x485   :  { %7996 = vmatpush.bf16.msrb.mxu0 %v13809_v29  ;;  %v13841_v29 = vor.u32 %v16432_v55, %v13840_v19  ;;  %8021 = vmatpush.bf16.msrb.mxu2 %v14081_v33  ;;  %v14160_v19 = vld [vmem:[#allocation16 + $0x780] sm:$0xf]  ;;  %v13397_v55 = vor.u32 %v16318_v62, %v13394_v2  ;;  %v14017_v33 = vor.u32 %v16476_v36, %v14016_v34  ;;  %v13202_v62 = vld [vmem:[#allocation16 + $0x10] sm:$0xf0]  ;;  %v16302_v2 = vld [vmem:[#allocation16 + $0x104] sm:$0xf] }
 0x486   :  { %7990 = vmatmul.bf16.vlgmr.msra.gmra.mxu3 %v17108_v30  ;;  %v14128_v56 = vld [vmem:[#allocation16 + $0x740] sm:$0xf]  ;;  %v13810_v34 = vld [vmem:[#allocation16 + $0x4d0] sm:$0xf0] }
 0x487   :  { %8009 = vmatpush.bf16.msrb.mxu1 %v13937_v37  ;;  %v13317_v37 = vor.u32 %v16298_v28, %v13314_v21  ;;  %8034 = vmatpush.bf16.msrb.mxu3 %v14209_v45  ;;  %v5965_v28 = vpop.f32.mrf.mxu1  ;;  %v16282_v21 = vld [vmem:[#allocation16 + $0x64] sm:$0xf]  ;;  %v17128_v45 = vpop.f32.mrf.mxu2 }
 0x489   :  { %7997 = vmatpush.bf16.msrb.mxu0 %v13793_v22  ;;  %v13445_v22 = vor.u32 %v16330_v25, %v13442_v8  ;;  %8022 = vmatpush.bf16.msrb.mxu2 %v14065_v52  ;;  %v14033_v25 = vor.u32 %v16480_v18, %v14032_v15  ;;  %v16512_v8 = vld [vmem:[#allocation16 + $0x78c] sm:$0xf0]  ;;  %v16426_v15 = vld [vmem:[#allocation16 + $0x4e4] sm:$0xf]  ;;  %v13826_v18 = vld [vmem:[#allocation16 + $0x4f0] sm:$0xf0] }
 0x48b   :  { %8010 = vmatpush.bf16.msrb.mxu1 %v13921_v39  ;;  %v13298_v39 = vld [vmem:[#allocation16 + $0xd0] sm:$0xf0]  ;;  %v17130_v51 = vpop.f32.mrf.mxu3 }
 0x48c   :  { %v13301_v3 = vor.u32 %v16294_v31, %v13298_v39  ;;  %v13253_v31 = vor.u32 %v16282_v21, %v13250_v23  ;;  %v13234_v39 = vld [vmem:[#allocation16 + $0x50] sm:$0xf0]  ;;  %v13205_v21 = vor.u32 %v16270_v17, %v13202_v62 }
 0x48d   :  { %7998 = vmatpush.bf16.msrb.mxu0 %v13777_v44  ;;  %v13426_v44 = vld [vmem:[#allocation16 + $0x1d0] sm:$0xf0]  ;;  %8023 = vmatpush.bf16.msrb.mxu2 %v14049_v46  ;;  %v14112_v46 = vld [vmem:[#allocation16 + $0x720] sm:$0xf] }
 0x48e   :  { %v13429_v9 = vor.u32 %v16326_v43, %v13426_v44  ;;  %v13362_v43 = vld [vmem:[#allocation16 + $0x150] sm:$0xf0]  ;;  %v14145_v44 = vor.u32 %v16508_v41, %v14144_v38  ;;  %v16496_v38 = vld [vmem:[#allocation16 + $0x70c] sm:$0xf0]  ;;  %v16362_v41 = vld [vmem:[#allocation16 + $0x2e4] sm:$0xf] }
 0x48f   :  { %8011 = vmatpush.bf16.msrb.mxu1 %v13905_v47  ;;  %v17119_v47 = vpack.c.b16 %v6643_v32, %v6643_v32  ;;  %v13378_v32 = vld [vmem:[#allocation16 + $0x170] sm:$0xf0]  ;;  %v13365_v52 = vor.u32 %v16310_v1, %v13362_v43  ;;  %v16394_v43 = vld [vmem:[#allocation16 + $0x3e4] sm:$0xf] }
 0x490   :  { %v13570_v1 = vld [vmem:[#allocation16 + $0x2f0] sm:$0xf0] }
 0x491   :  { %7999 = vmatpush.bf16.msrb.mxu0 %v13761_v63  ;;  %v14192_v63 = vld [vmem:[#allocation16 + $0x7c0] sm:$0xf]  ;;  %8024 = vmatpush.bf16.msrb.mxu2 %v14033_v25  ;;  %v13778_v62 = vld [vmem:[#allocation16 + $0x490] sm:$0xf0] }
 0x492   :  { %v13968_v25 = vld [vmem:[#allocation16 + $0x600] sm:$0xf] }
 0x493   :  { %8012 = vmatpush.bf16.msrb.mxu1 %v13889_v53  ;;  %v16520_v53 = vld [vmem:[#allocation16 + $0x7cc] sm:$0xf0]  ;;  %v5993_v23 = vpop.f32.mrf.mxu3 }
 0x494   :  { %v14193_v13 = vor.u32 %v16520_v53, %v14192_v63  ;;  %v16274_v63 = vld [vmem:[#allocation16 + $0x24] sm:$0xf]  ;;  %v13218_v53 = vld [vmem:[#allocation16 + $0x30] sm:$0xf0] }
 0x495   :  { %8000 = vmatpush.bf16.msrb.mxu0 %v13745_v4  ;;  %v13413_v4 = vor.u32 %v16322_v0, %v13410_v7  ;;  %8025 = vmatpush.bf16.msrb.mxu2 %v14017_v33  ;;  %v5967_v0 = vpop.f32.mrf.mxu1  ;;  %v16382_v23 = vld [vmem:[#allocation16 + $0x384] sm:$0xf] }
 0x496   :  { %8035 = vmatpush.bf16.msrb.mxu3 %v14193_v13  ;;  %v16504_v13 = vld [vmem:[#allocation16 + $0x74c] sm:$0xf0]  ;;  %v16390_v0 = vld [vmem:[#allocation16 + $0x3c4] sm:$0xf] }
 0x497   :  { %8013 = vmatpush.bf16.msrb.mxu1 %v13873_v60  ;;  %v13266_v60 = vld [vmem:[#allocation16 + $0x90] sm:$0xf0]  ;;  %v14129_v58 = vor.u32 %v16504_v13, %v14128_v56  ;;  %v16358_v56 = vld [vmem:[#allocation16 + $0x2c4] sm:$0xf] }
 0x498   :  { %v16450_v13 = vld [vmem:[#allocation16 + $0x5a4] sm:$0xf] }
 0x499   :  { %8001 = vmatpush.bf16.msrb.mxu0 %v13729_v14  ;;  %v5952_v14 = vpop.f32.mrf.mxu0 }
 0x49a   :  { %v5953_v20 = vadd.f32 %v5952_v14, %v17115_v10  ;;  %8036 = vmatpush.bf16.msrb.mxu3 %v14177_v12  ;;  %v16500_v14 = vld [vmem:[#allocation16 + $0x72c] sm:$0xf0] }
 0x49b   :  { %8014 = vmatpush.bf16.msrb.mxu1 %v13857_v42  ;;  %v13269_v42 = vor.u32 %v16286_v40, %v13266_v60  ;;  %v13984_v40 = vld [vmem:[#allocation16 + $0x620] sm:$0xf]  ;;  %v16468_v60 = vld [vmem:[#allocation16 + $0x62c] sm:$0xf0] }
 0x49c   :  { %v13985_v12 = vor.u32 %v16468_v60, %v13984_v40  ;;  %v13538_v40 = vld [vmem:[#allocation16 + $0x2b0] sm:$0xf0]  ;;  %v16386_v60 = vld [vmem:[#allocation16 + $0x3a4] sm:$0xf] }
 0x49d   :  { %8002 = vmatpush.bf16.msrb.mxu0 %v13713_v24  ;;  %v16314_v24 = vld [vmem:[#allocation16 + $0x164] sm:$0xf] }
 0x49e   :  { %v13381_v10 = vor.u32 %v16314_v24, %v13378_v32  ;;  %v14096_v24 = vld [vmem:[#allocation16 + $0x700] sm:$0xf] }
 0x49f   :  { %8015 = vmatpush.bf16.msrb.mxu1 %v13841_v29  ;;  %v14161_v29 = vor.u32 %v16512_v8, %v14160_v19  ;;  %v14113_v19 = vor.u32 %v16500_v14, %v14112_v46  ;;  %v16464_v8 = vld [vmem:[#allocation16 + $0x60c] sm:$0xf0]  ;;  %v14097_v33 = vor.u32 %v16496_v38, %v14096_v24  ;;  %v13906_v14 = vld [vmem:[#allocation16 + $0x590] sm:$0xf0]  ;;  %v16346_v38 = vld [vmem:[#allocation16 + $0x264] sm:$0xf] }
 0x4a0   :  { %8003 = vmatmul.bf16.vlgmr.msrb.gmra.mxu0 %v17119_v47  ;;  %v13969_v36 = vor.u32 %v16464_v8, %v13968_v25  ;;  %v13650_v25 = vld [vmem:[#allocation16 + $0x390] sm:$0xf0]  ;;  %v16442_v8 = vld [vmem:[#allocation16 + $0x564] sm:$0xf] }
 0x4a1   :  { %8047 = vmatpush.bf16.msra.mxu0 %v13317_v37  ;;  %v17126_v37 = vadd.f32 %v5965_v28, %v5953_v20  ;;  %8037 = vmatpush.bf16.msrb.mxu3 %v14161_v29  ;;  %v5954_v6 = vpop.f32.mrf.mxu0  ;;  %v16458_v20 = vld [vmem:[#allocation16 + $0x5e4] sm:$0xf]  ;;  %v5980_v28 = vpop.f32.mrf.mxu2  ;;  %v13829_v29 = vor.u32 %v16426_v15, %v13826_v18  ;;  %v13890_v24 = vld [vmem:[#allocation16 + $0x570] sm:$0xf0] }
 0x4a2   :  { %8016 = vmatmul.bf16.vlgmr.msrb.gmra.mxu1 %v17121_v5 }
 0x4a3   :  { %8060 = vmatpush.bf16.msra.mxu1 %v13445_v22  ;;  %v16278_v22 = vld [vmem:[#allocation16 + $0x44] sm:$0xf] }
 0x4a5   :  { %8048 = vmatpush.bf16.msra.mxu0 %v13301_v3  ;;  %v13237_v3 = vor.u32 %v16278_v22, %v13234_v39  ;;  %8038 = vmatpush.bf16.msrb.mxu3 %v14145_v44  ;;  %v16454_v22 = vld [vmem:[#allocation16 + $0x5c4] sm:$0xf]  ;;  %v13938_v39 = vld [vmem:[#allocation16 + $0x5d0] sm:$0xf0] }
 0x4a6   :  { %v13698_v44 = vld [vmem:[#allocation16 + $0x3f0] sm:$0xf0] }
 0x4a7   :  { %8061 = vmatpush.bf16.msra.mxu1 %v13429_v9  ;;  %v16472_v9 = vld [vmem:[#allocation16 + $0x64c] sm:$0xf0]  ;;  %v13701_v6 = vor.u32 %v16394_v43, %v13698_v44  ;;  %v16438_v43 = vld [vmem:[#allocation16 + $0x544] sm:$0xf]  ;;  %v13874_v44 = vld [vmem:[#allocation16 + $0x550] sm:$0xf0] }
 0x4a8   :  { %v14001_v7 = vor.u32 %v16472_v9, %v14000_v50  ;;  %v16418_v9 = vld [vmem:[#allocation16 + $0x4a4] sm:$0xf] }
 0x4a9   :  { %8049 = vmatpush.bf16.msra.mxu0 %v13285_v57  ;;  %v16306_v57 = vld [vmem:[#allocation16 + $0x124] sm:$0xf]  ;;  %8039 = vmatpush.bf16.msrb.mxu3 %v14129_v58 }
 0x4aa   :  { %8026 = vmatpush.bf16.msrb.mxu2 %v14001_v7  ;;  %v13349_v61 = vor.u32 %v16306_v57, %v13346_v11  ;;  %v13682_v7 = vld [vmem:[#allocation16 + $0x3d0] sm:$0xf0] }
 0x4ab   :  { %8062 = vmatpush.bf16.msra.mxu1 %v13413_v4  ;;  %v13221_v4 = vor.u32 %v16274_v63, %v13218_v53  ;;  %v13941_v63 = vor.u32 %v16454_v22, %v13938_v39  ;;  %v13794_v53 = vld [vmem:[#allocation16 + $0x4b0] sm:$0xf0]  ;;  %v13685_v58 = vor.u32 %v16390_v0, %v13682_v7  ;;  %v16378_v22 = vld [vmem:[#allocation16 + $0x364] sm:$0xf]  ;;  %v13893_v39 = vor.u32 %v16442_v8, %v13890_v24 }
 0x4ac   :  { %v13922_v57 = vld [vmem:[#allocation16 + $0x5b0] sm:$0xf0]  ;;  %v13797_v17 = vor.u32 %v16418_v9, %v13794_v53  ;;  %v16342_v53 = vld [vmem:[#allocation16 + $0x244] sm:$0xf]  ;;  %v13877_v7 = vor.u32 %v16438_v43, %v13874_v44  ;;  %v16297_v43 = vld [vmem:[#allocation16 + $0xd4] sm:$0xf0] }
 0x4ad   :  { %8050 = vmatpush.bf16.msra.mxu0 %v13269_v42  ;;  %v13330_v42 = vld [vmem:[#allocation16 + $0x110] sm:$0xf0]  ;;  %8040 = vmatpush.bf16.msrb.mxu3 %v14113_v19  ;;  %v13925_v46 = vor.u32 %v16450_v13, %v13922_v57  ;;  %v16410_v19 = vld [vmem:[#allocation16 + $0x464] sm:$0xf] }
 0x4ae   :  { %8027 = vmatpush.bf16.msrb.mxu2 %v13985_v12  ;;  %v13333_v32 = vor.u32 %v16302_v2, %v13330_v42  ;;  %v13666_v2 = vld [vmem:[#allocation16 + $0x3b0] sm:$0xf0]  ;;  %v16446_v12 = vld [vmem:[#allocation16 + $0x584] sm:$0xf] }
 0x4af   :  { %8063 = vmatpush.bf16.msra.mxu1 %v13397_v55  ;;  %v13954_v55 = vld [vmem:[#allocation16 + $0x5f0] sm:$0xf0]  ;;  %v13669_v15 = vor.u32 %v16386_v60, %v13666_v2  ;;  %v13909_v28 = vor.u32 %v16446_v12, %v13906_v14  ;;  %v16374_v57 = vld [vmem:[#allocation16 + $0x344] sm:$0xf] }
 0x4b0   :  { %v13490_v0 = vld [vmem:[#allocation16 + $0x250] sm:$0xf0]  ;;  %v16338_v12 = vld [vmem:[#allocation16 + $0x224] sm:$0xf] }
 0x4b1   :  { %8051 = vmatpush.bf16.msra.mxu0 %v13253_v31  ;;  %v16422_v31 = vld [vmem:[#allocation16 + $0x4c4] sm:$0xf]  ;;  %8041 = vmatpush.bf16.msrb.mxu3 %v14097_v33  ;;  %v13730_v13 = vld [vmem:[#allocation16 + $0x430] sm:$0xf0] }
 0x4b2   :  { %8028 = vmatpush.bf16.msrb.mxu2 %v13969_v36  ;;  %v13813_v50 = vor.u32 %v16422_v31, %v13810_v34  ;;  %v17136_v31 = vpop.f32.mrf.mxu1  ;;  %v13653_v34 = vor.u32 %v16382_v23, %v13650_v25  ;;  %v16406_v33 = vld [vmem:[#allocation16 + $0x444] sm:$0xf]  ;;  %v13714_v2 = vld [vmem:[#allocation16 + $0x410] sm:$0xf0]  ;;  %v13448_v23 = vld [vmem:[#allocation16 + $0x1e8] sm:$0xf] }
 0x4b3   :  { %8064 = vmatpush.bf16.msra.mxu1 %v13381_v10  ;;  %v13957_v10 = vor.u32 %v16458_v20, %v13954_v55  ;;  %v16350_v20 = vld [vmem:[#allocation16 + $0x284] sm:$0xf]  ;;  %v13522_v55 = vld [vmem:[#allocation16 + $0x290] sm:$0xf0]  ;;  %v16333_v25 = vld [vmem:[#allocation16 + $0x1f4] sm:$0xf0] }
 0x4b4   :  { %v13474_v14 = vld [vmem:[#allocation16 + $0x230] sm:$0xf0] }
 0x4b5   :  { %8052 = vmatpush.bf16.msra.mxu0 %v13237_v3  ;;  %v13573_v3 = vor.u32 %v16362_v41, %v13570_v1  ;;  %8086 = vmatpush.bf16.msra.mxu3 %v13701_v6  ;;  %v13746_v41 = vld [vmem:[#allocation16 + $0x450] sm:$0xf0]  ;;  %v1850_v6 = vperm.slane %v17093_v54, 7  ;;  %v13493_v54 = vor.u32 %v16342_v53, %v13490_v0  ;;  %v13288_v53 = vld [vmem:[#allocation16 + $0xa8] sm:$0xf] }
 0x4b6   :  { %v13634_v1 = vld [vmem:[#allocation16 + $0x370] sm:$0xf0]  ;;  %v16293_v0 = vld [vmem:[#allocation16 + $0xb4] sm:$0xf0] }
 0x4b7   :  { %8065 = vmatpush.bf16.msra.mxu1 %v13365_v52  ;;  %v13554_v52 = vld [vmem:[#allocation16 + $0x2d0] sm:$0xf0]  ;;  %8073 = vmatpush.bf16.msra.mxu2 %v13573_v3  ;;  %v13637_v9 = vor.u32 %v16378_v22, %v13634_v1  ;;  %v13304_v1 = vld [vmem:[#allocation16 + $0xc8] sm:$0xf] }
 0x4b8   :  { %v13557_v11 = vor.u32 %v16358_v56, %v13554_v52  ;;  %v13749_v56 = vor.u32 %v16406_v33, %v13746_v41  ;;  %v17141_v52 = vpop.f32.mrf.mxu3  ;;  %v13586_v33 = vld [vmem:[#allocation16 + $0x310] sm:$0xf0]  ;;  %v13449_v41 = vor.u32 %v16333_v25, %v13448_v23 }
 0x4b9   :  { %8053 = vmatpush.bf16.msra.mxu0 %v13221_v4  ;;  %v16354_v4 = vld [vmem:[#allocation16 + $0x2a4] sm:$0xf]  ;;  %8087 = vmatpush.bf16.msra.mxu3 %v13685_v58 }
 0x4ba   :  { %v13541_v42 = vor.u32 %v16354_v4, %v13538_v40  ;;  %v16434_v58 = vld [vmem:[#allocation16 + $0x524] sm:$0xf]  ;;  %v5979_v40 = vadd.f32 %v17128_v45, %v1850_v6  ;;  %v6019_v60 = vpop.f32.mrf.mxu1  ;;  %v16329_v6 = vld [vmem:[#allocation16 + $0x1d4] sm:$0xf0] }
 0x4bb   :  { %8066 = vmatpush.bf16.msra.mxu1 %v13349_v61  ;;  %v16414_v61 = vld [vmem:[#allocation16 + $0x484] sm:$0xf]  ;;  %8074 = vmatpush.bf16.msra.mxu2 %v13557_v11  ;;  %v13618_v11 = vld [vmem:[#allocation16 + $0x350] sm:$0xf0] }
 0x4bc   :  { %v13781_v18 = vor.u32 %v16414_v61, %v13778_v62  ;;  %v13621_v61 = vor.u32 %v16374_v57, %v13618_v11  ;;  %v5992_v45 = vadd.f32 %v17130_v51, %v5979_v40  ;;  %v16325_v57 = vld [vmem:[#allocation16 + $0x1b4] sm:$0xf0] }
 0x4bd   :  { %8054 = vmatpush.bf16.msra.mxu0 %v13205_v21  ;;  %v13762_v21 = vld [vmem:[#allocation16 + $0x470] sm:$0xf0]  ;;  %8088 = vmatpush.bf16.msra.mxu3 %v13669_v15  ;;  %v16430_v15 = vld [vmem:[#allocation16 + $0x504] sm:$0xf]  ;;  %v16321_v40 = vld [vmem:[#allocation16 + $0x194] sm:$0xf0] }
 0x4be   :  { %v13765_v36 = vor.u32 %v16410_v19, %v13762_v21  ;;  %v13602_v19 = vld [vmem:[#allocation16 + $0x330] sm:$0xf0]  ;;  %v13477_v21 = vor.u32 %v16338_v12, %v13474_v14  ;;  %v13384_v12 = vld [vmem:[#allocation16 + $0x168] sm:$0xf]  ;;  %v16317_v14 = vld [vmem:[#allocation16 + $0x174] sm:$0xf0] }
 0x4bf   :  { %8067 = vmatpush.bf16.msra.mxu1 %v13333_v32  ;;  %v17134_v32 = vpop.f32.mrf.mxu0  ;;  %8075 = vmatpush.bf16.msra.mxu2 %v13541_v42 }
 0x4c0   :  { %8055 = vmatmul.bf16.vlgmr.msra.gmra.mxu0 %v17102_v26  ;;  %v6005_v44 = vadd.f32 %v17134_v32, %v5992_v45  ;;  %v13289_v32 = vor.u32 %v16293_v0, %v13288_v53 }
 0x4c1   :  { %8099 = vmatpush.bf16.msrb.mxu0 %v13829_v29  ;;  %v13525_v29 = vor.u32 %v16350_v20, %v13522_v55  ;;  %8089 = vmatpush.bf16.msra.mxu3 %v13653_v34  ;;  %v13842_v20 = vld [vmem:[#allocation16 + $0x510] sm:$0xf0]  ;;  %v13320_v55 = vld [vmem:[#allocation16 + $0xe8] sm:$0xf]  ;;  %v6045_v34 = vpop.f32.mrf.mxu3 }
 0x4c2   :  { %8068 = vmatmul.bf16.vlgmr.msra.gmra.mxu1 %v17104_v27 }
 0x4c3   :  { %8112 = vmatpush.bf16.msrb.mxu1 %v13957_v10  ;;  %v13506_v10 = vld [vmem:[#allocation16 + $0x270] sm:$0xf0]  ;;  %8076 = vmatpush.bf16.msra.mxu2 %v13525_v29 }
 0x4c4   :  { %v13509_v3 = vor.u32 %v16346_v38, %v13506_v10  ;;  %v13458_v38 = vld [vmem:[#allocation16 + $0x210] sm:$0xf0]  ;;  %v13845_v10 = vor.u32 %v16430_v15, %v13842_v20  ;;  %v16281_v20 = vld [vmem:[#allocation16 + $0x54] sm:$0xf0] }
 0x4c5   :  { %8100 = vmatpush.bf16.msrb.mxu0 %v13813_v50  ;;  %v17139_v50 = vpop.f32.mrf.mxu2  ;;  %8090 = vmatpush.bf16.msra.mxu3 %v13637_v9 }
 0x4c7   :  { %8113 = vmatpush.bf16.msrb.mxu1 %v13941_v63  ;;  %v16402_v63 = vld [vmem:[#allocation16 + $0x424] sm:$0xf]  ;;  %v6006_v4 = vpop.f32.mrf.mxu0  ;;  %8077 = vmatpush.bf16.msra.mxu2 %v13509_v3  ;;  %v13432_v3 = vld [vmem:[#allocation16 + $0x1c8] sm:$0xf] }
 0x4c8   :  { %v13733_v62 = vor.u32 %v16402_v63, %v13730_v13  ;;  %v13433_v63 = vor.u32 %v16329_v6, %v13432_v3  ;;  %v13416_v13 = vld [vmem:[#allocation16 + $0x1a8] sm:$0xf] }
 0x4c9   :  { %8101 = vmatpush.bf16.msrb.mxu0 %v13797_v17  ;;  %v13858_v17 = vld [vmem:[#allocation16 + $0x530] sm:$0xf0]  ;;  %8091 = vmatpush.bf16.msra.mxu3 %v13621_v61  ;;  %v13417_v11 = vor.u32 %v16325_v57, %v13416_v13  ;;  %v16285_v61 = vld [vmem:[#allocation16 + $0x74] sm:$0xf0]  ;;  %v13832_v6 = vld [vmem:[#allocation16 + $0x4e8] sm:$0xf] }
 0x4ca   :  { %v13861_v42 = vor.u32 %v16434_v58, %v13858_v17  ;;  %v13272_v58 = vld [vmem:[#allocation16 + $0x88] sm:$0xf]  ;;  %v16289_v17 = vld [vmem:[#allocation16 + $0x94] sm:$0xf0]  ;;  %v14082_v13 = vld [vmem:[#allocation16 + $0x6f0] sm:$0xf0] }
 0x4cb   :  { %8114 = vmatpush.bf16.msrb.mxu1 %v13925_v46  ;;  %v16398_v46 = vld [vmem:[#allocation16 + $0x404] sm:$0xf]  ;;  %8078 = vmatpush.bf16.msra.mxu2 %v13493_v54  ;;  %v13400_v54 = vld [vmem:[#allocation16 + $0x188] sm:$0xf]  ;;  %v13273_v60 = vor.u32 %v16289_v17, %v13272_v58  ;;  %v14210_v17 = vld [vmem:[#allocation16 + $0x7f0] sm:$0xf0] }
 0x4cc   :  { %v13717_v29 = vor.u32 %v16398_v46, %v13714_v2  ;;  %v13256_v46 = vld [vmem:[#allocation16 + $0x68] sm:$0xf]  ;;  %v16522_v58 = vld [vmem:[#allocation16 + $0x7e4] sm:$0xf] }
 0x4cd   :  { %8102 = vmatpush.bf16.msrb.mxu0 %v13781_v18  ;;  %v16370_v18 = vld [vmem:[#allocation16 + $0x324] sm:$0xf]  ;;  %v6032_v8 = vpop.f32.mrf.mxu2 }
 0x4ce   :  { %v13605_v24 = vor.u32 %v16370_v18, %v13602_v19  ;;  %v13257_v18 = vor.u32 %v16285_v61, %v13256_v46  ;;  %v13385_v19 = vor.u32 %v16317_v14, %v13384_v12  ;;  %v16277_v8 = vld [vmem:[#allocation16 + $0x34] sm:$0xf0]  ;;  %v13944_v61 = vld [vmem:[#allocation16 + $0x5c8] sm:$0xf]  ;;  %v14213_v14 = vor.u32 %v16522_v58, %v14210_v17 }
 0x4cf   :  { %8115 = vmatpush.bf16.msrb.mxu1 %v13909_v28  ;;  %v16301_v28 = vld [vmem:[#allocation16 + $0xf4] sm:$0xf0]  ;;  %8079 = vmatpush.bf16.msra.mxu2 %v13477_v21 }
 0x4d0   :  { %v13321_v22 = vor.u32 %v16301_v28, %v13320_v55  ;;  %8092 = vmatpush.bf16.msra.mxu3 %v13605_v24  ;;  %v13368_v55 = vld [vmem:[#allocation16 + $0x148] sm:$0xf]  ;;  %v16313_v28 = vld [vmem:[#allocation16 + $0x154] sm:$0xf0] }
 0x4d1   :  { %8103 = vmatpush.bf16.msrb.mxu0 %v13765_v36  ;;  %v16334_v36 = vld [vmem:[#allocation16 + $0x204] sm:$0xf]  ;;  %v13369_v25 = vor.u32 %v16313_v28, %v13368_v55  ;;  %v13800_v55 = vld [vmem:[#allocation16 + $0x4a8] sm:$0xf]  ;;  %v16421_v28 = vld [vmem:[#allocation16 + $0x4b4] sm:$0xf0] }
 0x4d2   :  { %v13461_v51 = vor.u32 %v16334_v36, %v13458_v38  ;;  %v13352_v36 = vld [vmem:[#allocation16 + $0x128] sm:$0xf]  ;;  %v16309_v38 = vld [vmem:[#allocation16 + $0x134] sm:$0xf0] }
 0x4d3   :  { %8116 = vmatpush.bf16.msrb.mxu1 %v13893_v39  ;;  %v16366_v39 = vld [vmem:[#allocation16 + $0x304] sm:$0xf] }
 0x4d4   :  { %v13589_v9 = vor.u32 %v16366_v39, %v13586_v33  ;;  %8080 = vmatpush.bf16.msra.mxu2 %v13461_v51  ;;  %v13208_v33 = vld [vmem:[#allocation16 + $0x8] sm:$0xf]  ;;  %v16305_v51 = vld [vmem:[#allocation16 + $0x114] sm:$0xf0] }
 0x4d5   :  { %8104 = vmatpush.bf16.msrb.mxu0 %v13749_v56  ;;  %v13305_v56 = vor.u32 %v16297_v43, %v13304_v1  ;;  %v16273_v1 = vld [vmem:[#allocation16 + $0x14] sm:$0xf0]  ;;  %v13336_v43 = vld [vmem:[#allocation16 + $0x108] sm:$0xf] }
 0x4d6   :  { %8093 = vmatpush.bf16.msra.mxu3 %v13589_v9  ;;  %v16429_v9 = vld [vmem:[#allocation16 + $0x4f4] sm:$0xf0]  ;;  %v13209_v0 = vor.u32 %v16273_v1, %v13208_v33  ;;  %v16478_v1 = vld [vmem:[#allocation16 + $0x684] sm:$0xf] }
 0x4d7   :  { %8117 = vmatpush.bf16.msrb.mxu1 %v13877_v7  ;;  %v6018_v7 = vadd.f32 %v17136_v31, %v6005_v44  ;;  %v13401_v31 = vor.u32 %v16321_v40, %v13400_v54  ;;  %v6105_v44 = vmax.f32 %v17126_v37, 0.0  ;;  %v16449_v33 = vld [vmem:[#allocation16 + $0x594] sm:$0xf0] }
 0x4d9   :  { %8105 = vmatpush.bf16.msrb.mxu0 %v13733_v62  ;;  %v6031_v4 = vadd.f32 %v17139_v50, %v6018_v7  ;;  %v13240_v50 = vld [vmem:[#allocation16 + $0x48] sm:$0xf]  ;;  %v16490_v7 = vld [vmem:[#allocation16 + $0x6e4] sm:$0xf] }
 0x4da   :  { %v13241_v45 = vor.u32 %v16281_v20, %v13240_v50  ;;  %v14085_v46 = vor.u32 %v16490_v7, %v14082_v13  ;;  %v14194_v50 = vld [vmem:[#allocation16 + $0x7d0] sm:$0xf0]  ;;  %v16445_v7 = vld [vmem:[#allocation16 + $0x574] sm:$0xf0] }
 0x4db   :  { %8118 = vmatpush.bf16.msrb.mxu1 %v13861_v42  ;;  %v6044_v62 = vadd.f32 %v17141_v52, %v6031_v4  ;;  %v13224_v52 = vld [vmem:[#allocation16 + $0x28] sm:$0xf] }
 0x4dc   :  { %v13225_v39 = vor.u32 %v16277_v8, %v13224_v52  ;;  %v16482_v52 = vld [vmem:[#allocation16 + $0x6a4] sm:$0xf]  ;;  %v14050_v8 = vld [vmem:[#allocation16 + $0x6b0] sm:$0xf0] }
 0x4dd   :  { %8106 = vmatpush.bf16.msrb.mxu0 %v13717_v29  ;;  %v6056_v2 = vpop.f32.mrf.mxu0 }
 0x4de   :  { %v6057_v15 = vadd.f32 %v6056_v2, %v6044_v62  ;;  %v16457_v62 = vld [vmem:[#allocation16 + $0x5d4] sm:$0xf0] }
 0x4df   :  { %8119 = vmatpush.bf16.msrb.mxu1 %v13845_v10  ;;  %v6069_v42 = vpop.f32.mrf.mxu1  ;;  %v13945_v20 = vor.u32 %v16457_v62, %v13944_v61  ;;  %v16441_v61 = vld [vmem:[#allocation16 + $0x554] sm:$0xf0] }
 0x4e0   :  { %8107 = vmatmul.bf16.vlgmr.msrb.gmra.mxu0 %v17119_v47  ;;  %v6070_v21 = vadd.f32 %v6069_v42, %v6057_v15  ;;  %v16486_v42 = vld [vmem:[#allocation16 + $0x6c4] sm:$0xf]  ;;  %v14066_v15 = vld [vmem:[#allocation16 + $0x6d0] sm:$0xf0] }
 0x4e1   :  { %8151 = vmatpush.bf16.msra.mxu0 %v13321_v22 }
 0x4e2   :  { %8120 = vmatmul.bf16.vlgmr.msrb.gmra.mxu1 %v17121_v5 }
 0x4e3   :  { %8164 = vmatpush.bf16.msra.mxu1 %v13449_v41  ;;  %v13353_v41 = vor.u32 %v16309_v38, %v13352_v36  ;;  %v13784_v38 = vld [vmem:[#allocation16 + $0x488] sm:$0xf] }
 0x4e5   :  { %8152 = vmatpush.bf16.msra.mxu0 %v13305_v56  ;;  %v6058_v34 = vpop.f32.mrf.mxu0  ;;  %v13960_v56 = vld [vmem:[#allocation16 + $0x5e8] sm:$0xf] }
 0x4e6   :  { %v14178_v34 = vld [vmem:[#allocation16 + $0x7b0] sm:$0xf0] }
 0x4e7   :  { %8165 = vmatpush.bf16.msra.mxu1 %v13433_v63  ;;  %v6082_v23 = vpop.f32.mrf.mxu2  ;;  %v6071_v10 = vpop.f32.mrf.mxu1  ;;  %v16461_v63 = vld [vmem:[#allocation16 + $0x5f4] sm:$0xf0] }
 0x4e8   :  { %v6083_v24 = vadd.f32 %v6082_v23, %v6070_v21  ;;  %v13961_v37 = vor.u32 %v16461_v63, %v13960_v56  ;;  %v14069_v21 = vor.u32 %v16486_v42, %v14066_v15  ;;  %v16453_v23 = vld [vmem:[#allocation16 + $0x5b4] sm:$0xf0]  ;;  %v14002_v42 = vld [vmem:[#allocation16 + $0x650] sm:$0xf0] }
 0x4e9   :  { %8153 = vmatpush.bf16.msra.mxu0 %v13289_v32  ;;  %v6095_v29 = vpop.f32.mrf.mxu3  ;;  %v13337_v32 = vor.u32 %v16305_v51, %v13336_v43  ;;  %v16417_v10 = vld [vmem:[#allocation16 + $0x494] sm:$0xf0]  ;;  %v14034_v43 = vld [vmem:[#allocation16 + $0x690] sm:$0xf0] }
 0x4ea   :  { %v6096_v22 = vadd.f32 %v6095_v29, %v6083_v24  ;;  %v13801_v24 = vor.u32 %v16421_v28, %v13800_v55  ;;  %v16514_v29 = vld [vmem:[#allocation16 + $0x7a4] sm:$0xf]  ;;  %v13785_v51 = vor.u32 %v16417_v10, %v13784_v38  ;;  %v16413_v56 = vld [vmem:[#allocation16 + $0x474] sm:$0xf0]  ;;  %v13736_v55 = vld [vmem:[#allocation16 + $0x428] sm:$0xf] }
 0x4eb   :  { %8166 = vmatpush.bf16.msra.mxu1 %v13417_v11  ;;  %v13833_v11 = vor.u32 %v16429_v9, %v13832_v6  ;;  %v13768_v9 = vld [vmem:[#allocation16 + $0x468] sm:$0xf]  ;;  %v16405_v28 = vld [vmem:[#allocation16 + $0x434] sm:$0xf0]  ;;  %v16498_v38 = vld [vmem:[#allocation16 + $0x724] sm:$0xf] }
 0x4ec   :  { %v6106_v3 = vmax.f32 %v6096_v22, 0.0  ;;  %v14053_v22 = vor.u32 %v16482_v52, %v14050_v8  ;;  %v13769_v17 = vor.u32 %v16413_v56, %v13768_v9  ;;  %v13864_v52 = vld [vmem:[#allocation16 + $0x528] sm:$0xf]  ;;  %v16437_v8 = vld [vmem:[#allocation16 + $0x534] sm:$0xf0] }
 0x4ed   :  { %8154 = vmatpush.bf16.msra.mxu0 %v13273_v60  ;;  %v13816_v60 = vld [vmem:[#allocation16 + $0x4c8] sm:$0xf]  ;;  %v16299_v9 = vld [vmem:[#allocation16 + $0xec] sm:$0xf]  ;;  %v13322_v56 = vld [vmem:[#allocation16 + $0xf8] sm:$0xf0] }
 0x4ee   :  { %v6110_v53 = vpack.c.bf16 %v6106_v3, %v6105_v44  ;;  %v16510_v44 = vld [vmem:[#allocation16 + $0x784] sm:$0xf]  ;;  %v14162_v3 = vld [vmem:[#allocation16 + $0x790] sm:$0xf0] }
 0x4ef   :  { %8167 = vmatpush.bf16.msra.mxu1 %v13401_v31  ;;  %v6084_v57 = vpop.f32.mrf.mxu2  ;;  %v16425_v31 = vld [vmem:[#allocation16 + $0x4d4] sm:$0xf0] }
 0x4f0   :  { %v6645_v4 = vunpack.c.l.b16 %v6110_v53  ;;  %v6646_v54 = vunpack.c.h.b16 %v6110_v53  ;;  %v14037_v53 = vor.u32 %v16478_v1, %v14034_v43  ;;  %v14165_v57 = vor.u32 %v16510_v44, %v14162_v3  ;;  %v13848_v43 = vld [vmem:[#allocation16 + $0x508] sm:$0xf]  ;;  %v16462_v44 = vld [vmem:[#allocation16 + $0x604] sm:$0xf] }
 0x4f1   :  { %8155 = vmatpush.bf16.msra.mxu0 %v13257_v18  ;;  %v6097_v40 = vpop.f32.mrf.mxu3  ;;  %v13817_v18 = vor.u32 %v16425_v31, %v13816_v60  ;;  %v16409_v60 = vld [vmem:[#allocation16 + $0x454] sm:$0xf0]  ;;  %v13865_v1 = vor.u32 %v16437_v8, %v13864_v52  ;;  %v16323_v52 = vld [vmem:[#allocation16 + $0x1ac] sm:$0xf] }
 0x4f2   :  { %v17152_v2 = vpack.c.b16 %v6645_v4, %v6645_v4  ;;  %v17154_v12 = vpack.c.b16 %v6646_v54, %v6646_v54  ;;  %v16506_v4 = vld [vmem:[#allocation16 + $0x764] sm:$0xf]  ;;  %v14146_v54 = vld [vmem:[#allocation16 + $0x770] sm:$0xf0] }
 0x4f3   :  { %8168 = vmatpush.bf16.msra.mxu1 %v13385_v19  ;;  %v16518_v19 = vld [vmem:[#allocation16 + $0x7c4] sm:$0xf]  ;;  %v14149_v62 = vor.u32 %v16506_v4, %v14146_v54  ;;  %v13325_v4 = vor.u32 %v16299_v9, %v13322_v56  ;;  %v13704_v54 = vld [vmem:[#allocation16 + $0x3e8] sm:$0xf]  ;;  %v16385_v56 = vld [vmem:[#allocation16 + $0x394] sm:$0xf0] }
 0x4f4   :  { %8029 = vmatmul.bf16.vlgmr.msrb.gmra.mxu2 %v17152_v2  ;;  %8042 = vmatmul.bf16.vlgmr.msrb.gmra.mxu3 %v17154_v12  ;;  %v13656_v9 = vld [vmem:[#allocation16 + $0x388] sm:$0xf] }
 0x4f5   :  { %8156 = vmatpush.bf16.msra.mxu0 %v13241_v45  ;;  %8125 = vmatpush.bf16.msrb.mxu2 %v14085_v46  ;;  %v13928_v45 = vld [vmem:[#allocation16 + $0x5a8] sm:$0xf] }
 0x4f6   :  { %8138 = vmatpush.bf16.msrb.mxu3 %v14213_v14  ;;  %v13929_v36 = vor.u32 %v16453_v23, %v13928_v45  ;;  %v13880_v46 = vld [vmem:[#allocation16 + $0x548] sm:$0xf]  ;;  %v16470_v14 = vld [vmem:[#allocation16 + $0x644] sm:$0xf] }
 0x4f7   :  { %8169 = vmatpush.bf16.msra.mxu1 %v13369_v25  ;;  %v14197_v25 = vor.u32 %v16518_v19, %v14194_v50  ;;  %v14130_v19 = vld [vmem:[#allocation16 + $0x750] sm:$0xf0] }
 0x4f9   :  { %8157 = vmatpush.bf16.msra.mxu0 %v13225_v39  ;;  %8126 = vmatpush.bf16.msrb.mxu2 %v14069_v21  ;;  %v13912_v39 = vld [vmem:[#allocation16 + $0x588] sm:$0xf] }
 0x4fa   :  { %8139 = vmatpush.bf16.msrb.mxu3 %v14197_v25  ;;  %v13913_v6 = vor.u32 %v16449_v33, %v13912_v39  ;;  %v14005_v25 = vor.u32 %v16470_v14, %v14002_v42  ;;  %v14114_v39 = vld [vmem:[#allocation16 + $0x730] sm:$0xf0]  ;;  %v13720_v33 = vld [vmem:[#allocation16 + $0x408] sm:$0xf]  ;;  %v13306_v14 = vld [vmem:[#allocation16 + $0xd8] sm:$0xf0] }
 0x4fb   :  { %8170 = vmatpush.bf16.msra.mxu1 %v13353_v41  ;;  %v14181_v41 = vor.u32 %v16514_v29, %v14178_v34  ;;  %v16466_v34 = vld [vmem:[#allocation16 + $0x624] sm:$0xf]  ;;  %v16327_v42 = vld [vmem:[#allocation16 + $0x1cc] sm:$0xf] }
 0x4fd   :  { %8158 = vmatpush.bf16.msra.mxu0 %v13209_v0  ;;  %8127 = vmatpush.bf16.msrb.mxu2 %v14053_v22  ;;  %v7952_v63 = vpop.f32.mrf.mxu0  ;;  %v13896_v0 = vld [vmem:[#allocation16 + $0x568] sm:$0xf]  ;;  %v13737_v22 = vor.u32 %v16405_v28, %v13736_v55  ;;  %v16393_v55 = vld [vmem:[#allocation16 + $0x3d4] sm:$0xf0] }
 0x4fe   :  { %8140 = vmatpush.bf16.msrb.mxu3 %v14181_v41  ;;  %v13897_v40 = vor.u32 %v16445_v7, %v13896_v0  ;;  %v16401_v41 = vld [vmem:[#allocation16 + $0x414] sm:$0xf0]  ;;  %v16331_v0 = vld [vmem:[#allocation16 + $0x1ec] sm:$0xf]  ;;  %v13450_v7 = vld [vmem:[#allocation16 + $0x1f8] sm:$0xf0] }
 0x4ff   :  { %8171 = vmatpush.bf16.msra.mxu1 %v13337_v32  ;;  %v7965_v13 = vpop.f32.mrf.mxu1  ;;  %v16474_v32 = vld [vmem:[#allocation16 + $0x664] sm:$0xf] }
 0x500   :  { %8159 = vmatmul.bf16.vlgmr.msra.gmra.mxu0 %v17102_v26  ;;  %v7966_v58 = vadd.f32 %v7965_v13, %v7952_v63  ;;  %v14117_v63 = vor.u32 %v16498_v38, %v14114_v39  ;;  %v13721_v13 = vor.u32 %v16401_v41, %v13720_v33  ;;  %v16389_v38 = vld [vmem:[#allocation16 + $0x3b4] sm:$0xf0]  ;;  %v16287_v41 = vld [vmem:[#allocation16 + $0x8c] sm:$0xf] }
 0x501   :  { %8203 = vmatpush.bf16.msrb.mxu0 %v13833_v11  ;;  %v14018_v11 = vld [vmem:[#allocation16 + $0x670] sm:$0xf0]  ;;  %8128 = vmatpush.bf16.msrb.mxu2 %v14037_v53  ;;  %v16494_v53 = vld [vmem:[#allocation16 + $0x704] sm:$0xf] }
 0x502   :  { %8172 = vmatmul.bf16.vlgmr.msra.gmra.mxu1 %v17104_v27  ;;  %v14021_v31 = vor.u32 %v16474_v32, %v14018_v11  ;;  %8141 = vmatpush.bf16.msrb.mxu3 %v14165_v57  ;;  %v14098_v57 = vld [vmem:[#allocation16 + $0x710] sm:$0xf0]  ;;  %v13576_v32 = vld [vmem:[#allocation16 + $0x2e8] sm:$0xf]  ;;  %v16365_v11 = vld [vmem:[#allocation16 + $0x2f4] sm:$0xf0] }
 0x503   :  { %8216 = vmatpush.bf16.msrb.mxu1 %v13961_v37  ;;  %v13752_v37 = vld [vmem:[#allocation16 + $0x448] sm:$0xf] }
 0x504   :  { %v13753_v15 = vor.u32 %v16409_v60, %v13752_v37  ;;  %8081 = vmatmul.bf16.vlgmr.msra.gmra.mxu2 %v17106_v16  ;;  %8094 = vmatmul.bf16.vlgmr.msra.gmra.mxu3 %v17108_v30 }
 0x505   :  { %8204 = vmatpush.bf16.msrb.mxu0 %v13817_v18  ;;  %v16502_v18 = vld [vmem:[#allocation16 + $0x744] sm:$0xf]  ;;  %8129 = vmatpush.bf16.msrb.mxu2 %v14021_v31  ;;  %v7954_v23 = vpop.f32.mrf.mxu0  ;;  %v13453_v31 = vor.u32 %v16331_v0, %v13450_v7  ;;  %v16283_v7 = vld [vmem:[#allocation16 + $0x6c] sm:$0xf] }
 0x506   :  { %8142 = vmatpush.bf16.msrb.mxu3 %v14149_v62  ;;  %v14133_v29 = vor.u32 %v16502_v18, %v14130_v19  ;;  %v16295_v62 = vld [vmem:[#allocation16 + $0xcc] sm:$0xf]  ;;  %v13434_v18 = vld [vmem:[#allocation16 + $0x1d8] sm:$0xf0]  ;;  %v13560_v19 = vld [vmem:[#allocation16 + $0x2c8] sm:$0xf] }
 0x507   :  { %8217 = vmatpush.bf16.msrb.mxu1 %v13945_v20  ;;  %v7978_v50 = vpop.f32.mrf.mxu2  ;;  %v13881_v20 = vor.u32 %v16441_v61, %v13880_v46  ;;  %v14101_v46 = vor.u32 %v16494_v53, %v14098_v57  ;;  %v13577_v61 = vor.u32 %v16365_v11, %v13576_v32  ;;  %v13309_v28 = vor.u32 %v16295_v62, %v13306_v14  ;;  %v16291_v23 = vld [vmem:[#allocation16 + $0xac] sm:$0xf] }
 0x508   :  { %v7979_v21 = vadd.f32 %v7978_v50, %v7966_v58  ;;  %v16361_v50 = vld [vmem:[#allocation16 + $0x2d4] sm:$0xf0]  ;;  %v16315_v57 = vld [vmem:[#allocation16 + $0x16c] sm:$0xf]  ;;  %v13657_v11 = vor.u32 %v16385_v56, %v13656_v9 }
 0x509   :  { %8205 = vmatpush.bf16.msrb.mxu0 %v13801_v24  ;;  %v7991_v45 = vpop.f32.mrf.mxu3  ;;  %v7967_v24 = vpop.f32.mrf.mxu1  ;;  %8130 = vmatpush.bf16.msrb.mxu2 %v14005_v25  ;;  %v13290_v25 = vld [vmem:[#allocation16 + $0xb8] sm:$0xf0]  ;;  %v16279_v14 = vld [vmem:[#allocation16 + $0x4c] sm:$0xf]  ;;  %v16337_v56 = vld [vmem:[#allocation16 + $0x214] sm:$0xf0] }
 0x50a   :  { %v17162_v10 = vadd.f32 %v7991_v45, %v7979_v21  ;;  %8143 = vmatpush.bf16.msrb.mxu3 %v14133_v29  ;;  %v13437_v21 = vor.u32 %v16327_v42, %v13434_v18  ;;  %v13561_v45 = vor.u32 %v16361_v50, %v13560_v19  ;;  %v13418_v24 = vld [vmem:[#allocation16 + $0x1b8] sm:$0xf0]  ;;  %v13544_v29 = vld [vmem:[#allocation16 + $0x2a8] sm:$0xf] }
 0x50b   :  { %8218 = vmatpush.bf16.msrb.mxu1 %v13929_v36  ;;  %v13986_v36 = vld [vmem:[#allocation16 + $0x630] sm:$0xf0]  ;;  %v13421_v39 = vor.u32 %v16323_v52, %v13418_v24  ;;  %v13242_v42 = vld [vmem:[#allocation16 + $0x58] sm:$0xf0]  ;;  %v13496_v50 = vld [vmem:[#allocation16 + $0x248] sm:$0xf] }
 0x50c   :  { %v13989_v3 = vor.u32 %v16466_v34, %v13986_v36  ;;  %v16357_v34 = vld [vmem:[#allocation16 + $0x2b4] sm:$0xf0]  ;;  %v13672_v36 = vld [vmem:[#allocation16 + $0x3a8] sm:$0xf]  ;;  %v13370_v19 = vld [vmem:[#allocation16 + $0x158] sm:$0xf0] }
 0x50d   :  { %8206 = vmatpush.bf16.msrb.mxu0 %v13785_v51  ;;  %v16433_v51 = vld [vmem:[#allocation16 + $0x514] sm:$0xf0]  ;;  %v13545_v33 = vor.u32 %v16357_v34, %v13544_v29  ;;  %v16307_v52 = vld [vmem:[#allocation16 + $0x12c] sm:$0xf]  ;;  %v13354_v29 = vld [vmem:[#allocation16 + $0x138] sm:$0xf0] }
 0x50e   :  { %8131 = vmatpush.bf16.msrb.mxu2 %v13989_v3  ;;  %8144 = vmatpush.bf16.msrb.mxu3 %v14117_v63  ;;  %v13528_v3 = vld [vmem:[#allocation16 + $0x288] sm:$0xf] }
 0x50f   :  { %8219 = vmatpush.bf16.msrb.mxu1 %v13913_v6  ;;  %v13970_v6 = vld [vmem:[#allocation16 + $0x610] sm:$0xf0]  ;;  %v7980_v58 = vpop.f32.mrf.mxu2  ;;  %v13480_v34 = vld [vmem:[#allocation16 + $0x228] sm:$0xf] }
 0x510   :  { %v13973_v60 = vor.u32 %v16462_v44, %v13970_v6  ;;  %v13402_v44 = vld [vmem:[#allocation16 + $0x198] sm:$0xf0]  ;;  %v16353_v6 = vld [vmem:[#allocation16 + $0x294] sm:$0xf0] }
 0x511   :  { %8207 = vmatpush.bf16.msrb.mxu0 %v13769_v17  ;;  %v13849_v17 = vor.u32 %v16433_v51, %v13848_v43  ;;  %v7993_v37 = vpop.f32.mrf.mxu3  ;;  %v16319_v43 = vld [vmem:[#allocation16 + $0x18c] sm:$0xf]  ;;  %v13673_v51 = vor.u32 %v16389_v38, %v13672_v36  ;;  %v13529_v0 = vor.u32 %v16353_v6, %v13528_v3  ;;  %v13386_v58 = vld [vmem:[#allocation16 + $0x178] sm:$0xf0]  ;;  %v16341_v36 = vld [vmem:[#allocation16 + $0x234] sm:$0xf0] }
 0x512   :  { %8132 = vmatpush.bf16.msrb.mxu2 %v13973_v60  ;;  %8145 = vmatpush.bf16.msrb.mxu3 %v14101_v46  ;;  %v13405_v53 = vor.u32 %v16319_v43, %v13402_v44  ;;  %v13640_v37 = vld [vmem:[#allocation16 + $0x368] sm:$0xf]  ;;  %v16381_v60 = vld [vmem:[#allocation16 + $0x374] sm:$0xf0]  ;;  %v13357_v43 = vor.u32 %v16307_v52, %v13354_v29  ;;  %v16303_v44 = vld [vmem:[#allocation16 + $0x10c] sm:$0xf] }
 0x513   :  { %8220 = vmatpush.bf16.msrb.mxu1 %v13897_v40  ;;  %v16397_v40 = vld [vmem:[#allocation16 + $0x3f4] sm:$0xf0]  ;;  %v13641_v18 = vor.u32 %v16381_v60, %v13640_v37  ;;  %v13338_v3 = vld [vmem:[#allocation16 + $0x118] sm:$0xf0]  ;;  %v13464_v6 = vld [vmem:[#allocation16 + $0x208] sm:$0xf] }
 0x514   :  { %v16485_v29 = vld [vmem:[#allocation16 + $0x6b4] sm:$0xf0] }
 0x515   :  { %8208 = vmatpush.bf16.msrb.mxu0 %v13753_v15  ;;  %v13705_v15 = vor.u32 %v16397_v40, %v13704_v54  ;;  %8133 = vmatmul.bf16.vlgmr.msrb.gmra.mxu2 %v17152_v2 }
 0x516   :  { %8177 = vmatpush.bf16.msra.mxu2 %v13577_v61  ;;  %8146 = vmatmul.bf16.vlgmr.msrb.gmra.mxu3 %v17154_v12  ;;  %v13389_v61 = vor.u32 %v16315_v57, %v13386_v58  ;;  %v16493_v58 = vld [vmem:[#allocation16 + $0x6f4] sm:$0xf0] }
 0x517   :  { %8221 = vmatpush.bf16.msrb.mxu1 %v13881_v20  ;;  %v13688_v20 = vld [vmem:[#allocation16 + $0x3c8] sm:$0xf]  ;;  %8190 = vmatpush.bf16.msra.mxu3 %v13705_v15  ;;  %v16311_v15 = vld [vmem:[#allocation16 + $0x14c] sm:$0xf] }
 0x518   :  { %v13689_v8 = vor.u32 %v16393_v55, %v13688_v20  ;;  %v16345_v20 = vld [vmem:[#allocation16 + $0x254] sm:$0xf0] }
 0x519   :  { %8209 = vmatpush.bf16.msrb.mxu0 %v13737_v22  ;;  %v13293_v22 = vor.u32 %v16291_v23, %v13290_v25  ;;  %v16377_v55 = vld [vmem:[#allocation16 + $0x354] sm:$0xf0]  ;;  %v16275_v23 = vld [vmem:[#allocation16 + $0x2c] sm:$0xf]  ;;  %v13226_v25 = vld [vmem:[#allocation16 + $0x38] sm:$0xf0] }
 0x51a   :  { %8178 = vmatpush.bf16.msra.mxu2 %v13561_v45  ;;  %v13497_v45 = vor.u32 %v16345_v20, %v13496_v50  ;;  %v16489_v50 = vld [vmem:[#allocation16 + $0x6d4] sm:$0xf0]  ;;  %v14200_v20 = vld [vmem:[#allocation16 + $0x7c8] sm:$0xf] }
 0x51b   :  { %8222 = vmatpush.bf16.msrb.mxu1 %v13865_v1  ;;  %v13274_v1 = vld [vmem:[#allocation16 + $0x98] sm:$0xf0]  ;;  %8191 = vmatpush.bf16.msra.mxu3 %v13689_v8 }
 0x51c   :  { %v13277_v63 = vor.u32 %v16287_v41, %v13274_v1  ;;  %v16271_v41 = vld [vmem:[#allocation16 + $0xc] sm:$0xf]  ;;  %v13210_v1 = vld [vmem:[#allocation16 + $0x18] sm:$0xf0] }
 0x51d   :  { %8210 = vmatpush.bf16.msrb.mxu0 %v13721_v13  ;;  %v13258_v13 = vld [vmem:[#allocation16 + $0x78] sm:$0xf0]  ;;  %v8004_v32 = vpop.f32.mrf.mxu0  ;;  %v13213_v57 = vor.u32 %v16271_v41, %v13210_v1  ;;  %v16447_v41 = vld [vmem:[#allocation16 + $0x58c] sm:$0xf] }
 0x51e   :  { %8179 = vmatpush.bf16.msra.mxu2 %v13545_v33  ;;  %v8005_v54 = vadd.f32 %v8004_v32, %v17162_v10  ;;  %v13624_v10 = vld [vmem:[#allocation16 + $0x348] sm:$0xf]  ;;  %v13229_v33 = vor.u32 %v16275_v23, %v13226_v25  ;;  %v13962_v32 = vld [vmem:[#allocation16 + $0x5f8] sm:$0xf0]  ;;  %v16451_v25 = vld [vmem:[#allocation16 + $0x5ac] sm:$0xf] }
 0x51f   :  { %8223 = vmatpush.bf16.msrb.mxu1 %v13849_v17  ;;  %8192 = vmatpush.bf16.msra.mxu3 %v13673_v51  ;;  %v13512_v17 = vld [vmem:[#allocation16 + $0x268] sm:$0xf]  ;;  %v8017_v40 = vpop.f32.mrf.mxu1  ;;  %v13625_v24 = vor.u32 %v16377_v55, %v13624_v10  ;;  %v13481_v51 = vor.u32 %v16341_v36, %v13480_v34  ;;  %v16521_v10 = vld [vmem:[#allocation16 + $0x7d4] sm:$0xf0]  ;;  %v13802_v23 = vld [vmem:[#allocation16 + $0x4b8] sm:$0xf0] }
 0x520   :  { %8211 = vmatmul.bf16.vlgmr.msrb.gmra.mxu0 %v17119_v47  ;;  %v17169_v46 = vadd.f32 %v8017_v40, %v8005_v54  ;;  %v14216_v54 = vld [vmem:[#allocation16 + $0x7e8] sm:$0xf]  ;;  %v16525_v40 = vld [vmem:[#allocation16 + $0x7f4] sm:$0xf0]  ;;  %v14201_v52 = vor.u32 %v16521_v10, %v14200_v20 }
 0x521   :  { %8255 = vmatpush.bf16.msra.mxu0 %v13325_v4  ;;  %v16349_v4 = vld [vmem:[#allocation16 + $0x274] sm:$0xf0]  ;;  %v14184_v34 = vld [vmem:[#allocation16 + $0x7a8] sm:$0xf] }
 0x522   :  { %8224 = vmatmul.bf16.vlgmr.msrb.gmra.mxu1 %v17121_v5  ;;  %8180 = vmatpush.bf16.msra.mxu2 %v13529_v0  ;;  %v13513_v62 = vor.u32 %v16349_v4, %v13512_v17  ;;  %v16427_v0 = vld [vmem:[#allocation16 + $0x4ec] sm:$0xf]  ;;  %v13341_v17 = vor.u32 %v16303_v44, %v13338_v3  ;;  %v13465_v4 = vor.u32 %v16337_v56, %v13464_v6  ;;  %v16517_v36 = vld [vmem:[#allocation16 + $0x7b4] sm:$0xf0]  ;;  %v14168_v44 = vld [vmem:[#allocation16 + $0x788] sm:$0xf] }
 0x523   :  { %8268 = vmatpush.bf16.msra.mxu1 %v13453_v31  ;;  %v13261_v31 = vor.u32 %v16283_v7, %v13258_v13  ;;  %8193 = vmatpush.bf16.msra.mxu3 %v13657_v11  ;;  %v13834_v7 = vld [vmem:[#allocation16 + $0x4f8] sm:$0xf0]  ;;  %v16459_v13 = vld [vmem:[#allocation16 + $0x5ec] sm:$0xf]  ;;  %v14088_v11 = vld [vmem:[#allocation16 + $0x6e8] sm:$0xf]  ;;  %v14185_v1 = vor.u32 %v16517_v36, %v14184_v34 }
 0x524   :  { %v13837_v60 = vor.u32 %v16427_v0, %v13834_v7  ;;  %v16513_v3 = vld [vmem:[#allocation16 + $0x794] sm:$0xf0]  ;;  %v13770_v0 = vld [vmem:[#allocation16 + $0x478] sm:$0xf0]  ;;  %v16443_v7 = vld [vmem:[#allocation16 + $0x56c] sm:$0xf] }
 0x525   :  { %8256 = vmatpush.bf16.msra.mxu0 %v13309_v28  ;;  %v13245_v28 = vor.u32 %v16279_v14, %v13242_v42  ;;  %v8006_v8 = vpop.f32.mrf.mxu0  ;;  %v13818_v14 = vld [vmem:[#allocation16 + $0x4d8] sm:$0xf0]  ;;  %v16455_v42 = vld [vmem:[#allocation16 + $0x5cc] sm:$0xf]  ;;  %v14120_v34 = vld [vmem:[#allocation16 + $0x728] sm:$0xf] }
 0x526   :  { %8181 = vmatpush.bf16.msra.mxu2 %v13513_v62  ;;  %v16423_v62 = vld [vmem:[#allocation16 + $0x4cc] sm:$0xf]  ;;  %v13930_v8 = vld [vmem:[#allocation16 + $0x5b8] sm:$0xf0]  ;;  %v16501_v36 = vld [vmem:[#allocation16 + $0x734] sm:$0xf0] }
 0x527   :  { %8269 = vmatpush.bf16.msra.mxu1 %v13437_v21  ;;  %v13373_v21 = vor.u32 %v16311_v15, %v13370_v19  ;;  %8194 = vmatpush.bf16.msra.mxu3 %v13641_v18  ;;  %v8019_v38 = vpop.f32.mrf.mxu1  ;;  %v14217_v15 = vor.u32 %v16525_v40, %v14216_v54  ;;  %v13946_v18 = vld [vmem:[#allocation16 + $0x5d8] sm:$0xf0]  ;;  %v14072_v19 = vld [vmem:[#allocation16 + $0x6c8] sm:$0xf]  ;;  %v13821_v55 = vor.u32 %v16423_v62, %v13818_v14  ;;  %v16509_v54 = vld [vmem:[#allocation16 + $0x774] sm:$0xf0] }
 0x528   :  { %v16439_v62 = vld [vmem:[#allocation16 + $0x54c] sm:$0xf] }
 0x529   :  { %8257 = vmatpush.bf16.msra.mxu0 %v13293_v22  ;;  %v13608_v22 = vld [vmem:[#allocation16 + $0x328] sm:$0xf] }
 0x52a   :  { %8182 = vmatpush.bf16.msra.mxu2 %v13497_v45  ;;  %v16419_v45 = vld [vmem:[#allocation16 + $0x4ac] sm:$0xf] }
 0x52b   :  { %8270 = vmatpush.bf16.msra.mxu1 %v13421_v39  ;;  %v16373_v39 = vld [vmem:[#allocation16 + $0x334] sm:$0xf0]  ;;  %8195 = vmatpush.bf16.msra.mxu3 %v13625_v24  ;;  %v14056_v24 = vld [vmem:[#allocation16 + $0x6a8] sm:$0xf]  ;;  %v13805_v38 = vor.u32 %v16419_v45, %v13802_v23  ;;  %v13738_v45 = vld [vmem:[#allocation16 + $0x438] sm:$0xf0] }
 0x52c   :  { %v13609_v9 = vor.u32 %v16373_v39, %v13608_v22  ;;  %v13933_v22 = vor.u32 %v16451_v25, %v13930_v8  ;;  %v14057_v39 = vor.u32 %v16485_v29, %v14056_v24  ;;  %v16435_v23 = vld [vmem:[#allocation16 + $0x52c] sm:$0xf]  ;;  %v13866_v8 = vld [vmem:[#allocation16 + $0x538] sm:$0xf0]  ;;  %v13992_v24 = vld [vmem:[#allocation16 + $0x628] sm:$0xf] }
 0x52d   :  { %8258 = vmatpush.bf16.msra.mxu0 %v13277_v63  ;;  %v13592_v63 = vld [vmem:[#allocation16 + $0x308] sm:$0xf]  ;;  %v16469_v29 = vld [vmem:[#allocation16 + $0x634] sm:$0xf0] }
 0x52e   :  { %8183 = vmatpush.bf16.msra.mxu2 %v13481_v51  ;;  %v14040_v51 = vld [vmem:[#allocation16 + $0x688] sm:$0xf] }
 0x52f   :  { %8271 = vmatpush.bf16.msra.mxu1 %v13405_v53  ;;  %v16369_v53 = vld [vmem:[#allocation16 + $0x314] sm:$0xf0]  ;;  %8196 = vmatpush.bf16.msra.mxu3 %v13609_v9 }
 0x530   :  { %v13593_v37 = vor.u32 %v16369_v53, %v13592_v63  ;;  %v16411_v53 = vld [vmem:[#allocation16 + $0x46c] sm:$0xf] }
 0x531   :  { %8259 = vmatpush.bf16.msra.mxu0 %v13261_v31  ;;  %v13965_v31 = vor.u32 %v16459_v13, %v13962_v32  ;;  %v13898_v32 = vld [vmem:[#allocation16 + $0x578] sm:$0xf0]  ;;  %v13773_v40 = vor.u32 %v16411_v53, %v13770_v0  ;;  %v16076_v53 = vld [vmem:[#allocation15 + $0x1ec] sm:$0xf0]  ;;  %v16363_v0 = vld [vmem:[#allocation16 + $0x2ec] sm:$0xf] }
 0x532   :  { %8184 = vmatpush.bf16.msra.mxu2 %v13465_v4  ;;  %v14152_v4 = vld [vmem:[#allocation16 + $0x768] sm:$0xf] }
 0x533   :  { %8272 = vmatpush.bf16.msra.mxu1 %v13389_v61  ;;  %v14089_v61 = vor.u32 %v16493_v58, %v14088_v11  ;;  %8197 = vmatpush.bf16.msra.mxu3 %v13593_v37  ;;  %v14024_v11 = vld [vmem:[#allocation16 + $0x668] sm:$0xf]  ;;  %v16477_v58 = vld [vmem:[#allocation16 + $0x674] sm:$0xf0]  ;;  %v13901_v37 = vor.u32 %v16443_v7, %v13898_v32  ;;  %v14153_v14 = vor.u32 %v16509_v54, %v14152_v4  ;;  %v13578_v7 = vld [vmem:[#allocation16 + $0x2f8] sm:$0xf0] }
 0x534   :  { %v16395_v32 = vld [vmem:[#allocation16 + $0x3ec] sm:$0xf] }
 0x535   :  { %8260 = vmatpush.bf16.msra.mxu0 %v13245_v28  ;;  %v13949_v28 = vor.u32 %v16455_v42, %v13946_v18  ;;  %8185 = vmatmul.bf16.vlgmr.msra.gmra.mxu2 %v17106_v16  ;;  %v13882_v42 = vld [vmem:[#allocation16 + $0x558] sm:$0xf0]  ;;  %v16473_v18 = vld [vmem:[#allocation16 + $0x654] sm:$0xf0] }
 0x536   :  { %8229 = vmatpush.bf16.msrb.mxu2 %v14089_v61  ;;  %8198 = vmatmul.bf16.vlgmr.msra.gmra.mxu3 %v17108_v30  ;;  %v13754_v61 = vld [vmem:[#allocation16 + $0x458] sm:$0xf0] }
 0x537   :  { %8273 = vmatpush.bf16.msra.mxu1 %v13373_v21  ;;  %v14073_v21 = vor.u32 %v16489_v50, %v14072_v19  ;;  %8242 = vmatpush.bf16.msrb.mxu3 %v14217_v15  ;;  %v14008_v15 = vld [vmem:[#allocation16 + $0x648] sm:$0xf]  ;;  %v16505_v50 = vld [vmem:[#allocation16 + $0x754] sm:$0xf0] }
 0x538   :  { %v14136_v19 = vld [vmem:[#allocation16 + $0x748] sm:$0xf] }
 0x539   :  { %8261 = vmatpush.bf16.msra.mxu0 %v13229_v33  ;;  %v16415_v33 = vld [vmem:[#allocation16 + $0x48c] sm:$0xf] }
 0x53a   :  { %8230 = vmatpush.bf16.msrb.mxu2 %v14073_v21  ;;  %v16403_v21 = vld [vmem:[#allocation16 + $0x42c] sm:$0xf] }
 0x53b   :  { %8274 = vmatpush.bf16.msra.mxu1 %v13357_v43  ;;  %8243 = vmatpush.bf16.msrb.mxu3 %v14201_v52  ;;  %v13914_v43 = vld [vmem:[#allocation16 + $0x598] sm:$0xf0]  ;;  %v14137_v52 = vor.u32 %v16505_v50, %v14136_v19 }
 0x53c   :  { %v13917_v56 = vor.u32 %v16447_v41, %v13914_v43  ;;  %v16431_v41 = vld [vmem:[#allocation16 + $0x50c] sm:$0xf]  ;;  %v13976_v43 = vld [vmem:[#allocation16 + $0x608] sm:$0xf] }
 0x53d   :  { %8262 = vmatpush.bf16.msra.mxu0 %v13213_v57  ;;  %v8056_v9 = vpop.f32.mrf.mxu0  ;;  %v14169_v57 = vor.u32 %v16513_v3, %v14168_v44  ;;  %v14104_v44 = vld [vmem:[#allocation16 + $0x708] sm:$0xf]  ;;  %v16497_v3 = vld [vmem:[#allocation16 + $0x714] sm:$0xf0] }
 0x53e   :  { %8231 = vmatpush.bf16.msrb.mxu2 %v14057_v39  ;;  %v13722_v39 = vld [vmem:[#allocation16 + $0x418] sm:$0xf0] }
 0x53f   :  { %8275 = vmatpush.bf16.msra.mxu1 %v13341_v17  ;;  %8244 = vmatpush.bf16.msrb.mxu3 %v14185_v1  ;;  %v8069_v13 = vpop.f32.mrf.mxu1  ;;  %v13850_v1 = vld [vmem:[#allocation16 + $0x518] sm:$0xf0] }
 0x540   :  { %8263 = vmatmul.bf16.vlgmr.msra.gmra.mxu0 %v17102_v26  ;;  %v13786_v26 = vld [vmem:[#allocation16 + $0x498] sm:$0xf0]  ;;  %v17175_v17 = vadd.f32 %v8069_v13, %v8056_v9  ;;  %v16044_v9 = vld [vmem:[#allocation15 + $0xec] sm:$0xf0]  ;;  %v13853_v13 = vor.u32 %v16431_v41, %v13850_v1 }
 0x541   :  { %8307 = vmatpush.bf16.msrb.mxu0 %v13837_v60  ;;  %v13789_v6 = vor.u32 %v16415_v33, %v13786_v26  ;;  %v14025_v60 = vor.u32 %v16477_v58, %v14024_v11  ;;  %v13869_v33 = vor.u32 %v16435_v23, %v13866_v8  ;;  %v13993_v26 = vor.u32 %v16469_v29, %v13992_v24  ;;  %v13706_v11 = vld [vmem:[#allocation16 + $0x3f8] sm:$0xf0]  ;;  %v16355_v23 = vld [vmem:[#allocation16 + $0x2ac] sm:$0xf] }
 0x542   :  { %8276 = vmatmul.bf16.vlgmr.msra.gmra.mxu1 %v17104_v27  ;;  %v16481_v27 = vld [vmem:[#allocation16 + $0x694] sm:$0xf0]  ;;  %v14105_v58 = vor.u32 %v16497_v3, %v14104_v44  ;;  %v13674_v8 = vld [vmem:[#allocation16 + $0x3b8] sm:$0xf0]  ;;  %v14272_v3 = vld [vmem:[#allocation15 + $0x60] sm:$0xf] }
 0x543   :  { %8320 = vmatpush.bf16.msrb.mxu1 %v13965_v31  ;;  %v14041_v63 = vor.u32 %v16481_v27, %v14040_v51  ;;  %v16407_v31 = vld [vmem:[#allocation16 + $0x44c] sm:$0xf]  ;;  %8245 = vmatpush.bf16.msrb.mxu3 %v14169_v57  ;;  %v14121_v51 = vor.u32 %v16501_v36, %v14120_v34  ;;  %v16465_v27 = vld [vmem:[#allocation16 + $0x614] sm:$0xf0]  ;;  %v14288_v36 = vld [vmem:[#allocation15 + $0x80] sm:$0xf] }
 0x544   :  { %v13757_v20 = vor.u32 %v16407_v31, %v13754_v61  ;;  %v13977_v57 = vor.u32 %v16465_v27, %v13976_v43  ;;  %v14448_v31 = vld [vmem:[#allocation15 + $0x1c0] sm:$0xf]  ;;  %v13709_v61 = vor.u32 %v16395_v32, %v13706_v11  ;;  %v13658_v41 = vld [vmem:[#allocation16 + $0x398] sm:$0xf0] }
 0x545   :  { %8308 = vmatpush.bf16.msrb.mxu0 %v13821_v55  ;;  %8232 = vmatpush.bf16.msrb.mxu2 %v14041_v63  ;;  %v8058_v10 = vpop.f32.mrf.mxu0  ;;  %v13885_v55 = vor.u32 %v16439_v62, %v13882_v42  ;;  %v16072_v62 = vld [vmem:[#allocation15 + $0x1cc] sm:$0xf0]  ;;  %v13562_v42 = vld [vmem:[#allocation16 + $0x2d8] sm:$0xf0] }
 0x546   :  { %v14449_v50 = vor.u32 %v16072_v62, %v14448_v31  ;;  %v14304_v10 = vld [vmem:[#allocation15 + $0xa0] sm:$0xf]  ;;  %v13498_v31 = vld [vmem:[#allocation16 + $0x258] sm:$0xf0] }
 0x547   :  { %8321 = vmatpush.bf16.msrb.mxu1 %v13949_v28  ;;  %v14009_v28 = vor.u32 %v16473_v18, %v14008_v15  ;;  %8246 = vmatpush.bf16.msrb.mxu3 %v14153_v14  ;;  %v8071_v25 = vpop.f32.mrf.mxu1  ;;  %v16359_v14 = vld [vmem:[#allocation16 + $0x2cc] sm:$0xf]  ;;  %v13690_v18 = vld [vmem:[#allocation16 + $0x3d8] sm:$0xf0] }
 0x548   :  { %v16391_v15 = vld [vmem:[#allocation16 + $0x3cc] sm:$0xf]  ;;  %v13546_v25 = vld [vmem:[#allocation16 + $0x2b8] sm:$0xf0] }
 0x549   :  { %8309 = vmatpush.bf16.msrb.mxu0 %v13805_v38  ;;  %8233 = vmatpush.bf16.msrb.mxu2 %v14025_v60  ;;  %v13741_v38 = vor.u32 %v16403_v21, %v13738_v45  ;;  %v16040_v60 = vld [vmem:[#allocation15 + $0xcc] sm:$0xf0]  ;;  %v13693_v21 = vor.u32 %v16391_v15, %v13690_v18  ;;  %v13549_v34 = vor.u32 %v16355_v23, %v13546_v25  ;;  %v13626_v62 = vld [vmem:[#allocation16 + $0x358] sm:$0xf0]  ;;  %v16371_v23 = vld [vmem:[#allocation16 + $0x32c] sm:$0xf] }
 0x54a   :  { %v16068_v45 = vld [vmem:[#allocation15 + $0x1ac] sm:$0xf0]  ;;  %v13610_v25 = vld [vmem:[#allocation16 + $0x338] sm:$0xf0] }
 0x54b   :  { %8322 = vmatpush.bf16.msrb.mxu1 %v13933_v22  ;;  %v16399_v22 = vld [vmem:[#allocation16 + $0x40c] sm:$0xf]  ;;  %8247 = vmatpush.bf16.msrb.mxu3 %v14137_v52 }
 0x54c   :  { %v13725_v63 = vor.u32 %v16399_v22, %v13722_v39  ;;  %v16387_v52 = vld [vmem:[#allocation16 + $0x3ac] sm:$0xf]  ;;  %v16064_v39 = vld [vmem:[#allocation15 + $0x18c] sm:$0xf0] }
 0x54d   :  { %8310 = vmatpush.bf16.msrb.mxu0 %v13789_v6  ;;  %8234 = vmatpush.bf16.msrb.mxu2 %v14009_v28  ;;  %v14336_v6 = vld [vmem:[#allocation15 + $0xe0] sm:$0xf]  ;;  %v13677_v22 = vor.u32 %v16387_v52, %v13674_v8 }
 0x54e   :  { %v14337_v4 = vor.u32 %v16044_v9, %v14336_v6  ;;  %v14432_v28 = vld [vmem:[#allocation15 + $0x1a0] sm:$0xf]  ;;  %v16028_v6 = vld [vmem:[#allocation15 + $0x6c] sm:$0xf0] }
 0x54f   :  { %8323 = vmatpush.bf16.msrb.mxu1 %v13917_v56  ;;  %v14464_v56 = vld [vmem:[#allocation15 + $0x1e0] sm:$0xf]  ;;  %8248 = vmatpush.bf16.msrb.mxu3 %v14121_v51  ;;  %v14433_v29 = vor.u32 %v16068_v45, %v14432_v28  ;;  %v16052_v28 = vld [vmem:[#allocation15 + $0x12c] sm:$0xf0]  ;;  %v13482_v45 = vld [vmem:[#allocation16 + $0x238] sm:$0xf0] }
 0x550   :  { %v14465_v54 = vor.u32 %v16076_v53, %v14464_v56  ;;  %v14400_v9 = vld [vmem:[#allocation15 + $0x160] sm:$0xf]  ;;  %v16347_v53 = vld [vmem:[#allocation16 + $0x26c] sm:$0xf] }
 0x551   :  { %8311 = vmatpush.bf16.msrb.mxu0 %v13773_v40  ;;  %8235 = vmatpush.bf16.msrb.mxu2 %v13993_v26  ;;  %v13581_v40 = vor.u32 %v16363_v0, %v13578_v7  ;;  %v16383_v26 = vld [vmem:[#allocation16 + $0x38c] sm:$0xf]  ;;  %v13514_v0 = vld [vmem:[#allocation16 + $0x278] sm:$0xf0]  ;;  %v14224_v8 = vld [vmem:[#allocation15] sm:$0xf] }
 0x552   :  { %v13661_v56 = vor.u32 %v16383_v26, %v13658_v41  ;;  %v16379_v7 = vld [vmem:[#allocation16 + $0x36c] sm:$0xf]  ;;  %v13517_v11 = vor.u32 %v16347_v53, %v13514_v0  ;;  %v14848_v26 = vld [vmem:[#allocation15 + $0x4e0] sm:$0xf]  ;;  %v16172_v41 = vld [vmem:[#allocation15 + $0x4ec] sm:$0xf0]  ;;  %v8363_v0 = vunpack.c.l.b16 %v16928_v48 }
 0x553   :  { %8324 = vmatpush.bf16.msrb.mxu1 %v13901_v37  ;;  %v14320_v37 = vld [vmem:[#allocation15 + $0xc0] sm:$0xf]  ;;  %8249 = vmatpush.bf16.msrb.mxu3 %v14105_v58  ;;  %v14218_v53 = vld [vmem:[#allocation16 + $0x7f8] sm:$0xf0] }
 0x554   :  { %v14321_v19 = vor.u32 %v16040_v60, %v14320_v37  ;;  %v14256_v58 = vld [vmem:[#allocation15 + $0x40] sm:$0xf]  ;;  %v16056_v37 = vld [vmem:[#allocation15 + $0x14c] sm:$0xf0]  ;;  %v16343_v60 = vld [vmem:[#allocation16 + $0x24c] sm:$0xf] }
 0x555   :  { %8312 = vmatpush.bf16.msrb.mxu0 %v13757_v20  ;;  %8236 = vmatpush.bf16.msrb.mxu2 %v13977_v57  ;;  %v13565_v20 = vor.u32 %v16359_v14, %v13562_v42  ;;  %v14273_v57 = vor.u32 %v16028_v6, %v14272_v3  ;;  %v16491_v3 = vld [vmem:[#allocation16 + $0x6ec] sm:$0xf]  ;;  %v14090_v6 = vld [vmem:[#allocation16 + $0x6f8] sm:$0xf0] }
 0x556   :  { %8250 = vmatmul.bf16.vlgmr.msrb.gmra.mxu3 %v17154_v12 }
 0x557   :  { %8325 = vmatpush.bf16.msrb.mxu1 %v13885_v55  ;;  %v16036_v55 = vld [vmem:[#allocation15 + $0xac] sm:$0xf0]  ;;  %8294 = vmatpush.bf16.msra.mxu3 %v13709_v61  ;;  %v16375_v61 = vld [vmem:[#allocation16 + $0x34c] sm:$0xf] }
 0x558   :  { %8237 = vmatmul.bf16.vlgmr.msrb.gmra.mxu2 %v17152_v2  ;;  %v14305_v24 = vor.u32 %v16036_v55, %v14304_v10  ;;  %v14368_v10 = vld [vmem:[#allocation15 + $0x120] sm:$0xf]  ;;  %v13629_v55 = vor.u32 %v16375_v61, %v13626_v62  ;;  %v16519_v61 = vld [vmem:[#allocation16 + $0x7cc] sm:$0xf]  ;;  %v14202_v62 = vld [vmem:[#allocation16 + $0x7d8] sm:$0xf0] }
 0x559   :  { %8313 = vmatpush.bf16.msrb.mxu0 %v13741_v38  ;;  %8281 = vmatpush.bf16.msra.mxu2 %v13581_v40  ;;  %v14416_v38 = vld [vmem:[#allocation15 + $0x180] sm:$0xf] }
 0x55a   :  { %v14417_v27 = vor.u32 %v16064_v39, %v14416_v38  ;;  %v16335_v38 = vld [vmem:[#allocation16 + $0x20c] sm:$0xf]  ;;  %v13466_v39 = vld [vmem:[#allocation16 + $0x218] sm:$0xf0] }
 0x55b   :  { %8326 = vmatpush.bf16.msrb.mxu1 %v13869_v33  ;;  %8295 = vmatpush.bf16.msra.mxu3 %v13693_v21  ;;  %v16351_v33 = vld [vmem:[#allocation16 + $0x28c] sm:$0xf] }
 0x55c   :  { %v16339_v21 = vld [vmem:[#allocation16 + $0x22c] sm:$0xf] }
 0x55d   :  { %8314 = vmatpush.bf16.msrb.mxu0 %v13725_v63  ;;  %8282 = vmatpush.bf16.msra.mxu2 %v13565_v20  ;;  %v17181_v1 = vpop.f32.mrf.mxu0  ;;  %v16060_v63 = vld [vmem:[#allocation15 + $0x16c] sm:$0xf0] }
 0x55e   :  { %v14401_v32 = vor.u32 %v16060_v63, %v14400_v9  ;;  %v16020_v20 = vld [vmem:[#allocation15 + $0x2c] sm:$0xf0]  ;;  %v16523_v63 = vld [vmem:[#allocation16 + $0x7ec] sm:$0xf] }
 0x55f   :  { %8327 = vmatpush.bf16.msrb.mxu1 %v13853_v13  ;;  %v17183_v51 = vpop.f32.mrf.mxu1  ;;  %8296 = vmatpush.bf16.msra.mxu3 %v13677_v22  ;;  %v13642_v13 = vld [vmem:[#allocation16 + $0x378] sm:$0xf0]  ;;  %v13613_v22 = vor.u32 %v16371_v23, %v13610_v25 }
 0x560   :  { %8315 = vmatmul.bf16.vlgmr.msrb.gmra.mxu0 %v17119_v47  ;;  %v16032_v47 = vld [vmem:[#allocation15 + $0x8c] sm:$0xf0]  ;;  %v13645_v40 = vor.u32 %v16379_v7, %v13642_v13  ;;  %v14849_v13 = vor.u32 %v16172_v41, %v14848_v26  ;;  %v14186_v23 = vld [vmem:[#allocation16 + $0x7b8] sm:$0xf0] }
 0x561   :  { %9667 = vmatpush.bf16.msra.mxu0 %v14337_v4  ;;  %v14289_v43 = vor.u32 %v16032_v47, %v14288_v36  ;;  %8283 = vmatpush.bf16.msra.mxu2 %v13549_v34  ;;  %v16024_v4 = vld [vmem:[#allocation15 + $0x4c] sm:$0xf0]  ;;  %v13485_v34 = vor.u32 %v16339_v21, %v13482_v45  ;;  %v14352_v36 = vld [vmem:[#allocation15 + $0x100] sm:$0xf]  ;;  %v14058_v21 = vld [vmem:[#allocation16 + $0x6b8] sm:$0xf0] }
 0x562   :  { %8328 = vmatmul.bf16.vlgmr.msrb.gmra.mxu1 %v17121_v5  ;;  %v13530_v5 = vld [vmem:[#allocation16 + $0x298] sm:$0xf0]  ;;  %v14257_v42 = vor.u32 %v16024_v4, %v14256_v58  ;;  %v16048_v47 = vld [vmem:[#allocation15 + $0x10c] sm:$0xf0]  ;;  %v14832_v58 = vld [vmem:[#allocation15 + $0x4c0] sm:$0xf] }
 0x563   :  { %9680 = vmatpush.bf16.msra.mxu1 %v14465_v54  ;;  %v13533_v44 = vor.u32 %v16351_v33, %v13530_v5  ;;  %v14384_v54 = vld [vmem:[#allocation15 + $0x140] sm:$0xf]  ;;  %8297 = vmatpush.bf16.msra.mxu3 %v13661_v56  ;;  %v16367_v33 = vld [vmem:[#allocation16 + $0x30c] sm:$0xf]  ;;  %v13594_v5 = vld [vmem:[#allocation16 + $0x318] sm:$0xf0]  ;;  %v14353_v9 = vor.u32 %v16048_v47, %v14352_v36  ;;  %v13469_v56 = vor.u32 %v16335_v38, %v13466_v39 }
 0x564   :  { %v14385_v18 = vor.u32 %v16056_v37, %v14384_v54  ;;  %v13597_v7 = vor.u32 %v16367_v33, %v13594_v5  ;;  %v16168_v4 = vld [vmem:[#allocation15 + $0x4cc] sm:$0xf0]  ;;  %v14960_v54 = vld [vmem:[#allocation15 + $0x5c0] sm:$0xf]  ;;  %v16515_v45 = vld [vmem:[#allocation16 + $0x7ac] sm:$0xf] }
 0x565   :  { %9668 = vmatpush.bf16.msra.mxu0 %v14321_v19  ;;  %8284 = vmatpush.bf16.msra.mxu2 %v13533_v44  ;;  %v8110_v14 = vpop.f32.mrf.mxu0  ;;  %v13501_v19 = vor.u32 %v16343_v60, %v13498_v31  ;;  %v16204_v44 = vld [vmem:[#allocation15 + $0x5ec] sm:$0xf0]  ;;  %v16487_v60 = vld [vmem:[#allocation16 + $0x6cc] sm:$0xf]  ;;  %v14074_v31 = vld [vmem:[#allocation16 + $0x6d8] sm:$0xf0]  ;;  %v14189_v36 = vor.u32 %v16515_v45, %v14186_v23 }
 0x566   :  { %v16200_v37 = vld [vmem:[#allocation15 + $0x5cc] sm:$0xf0]  ;;  %v17187_v14 = vpack.c.b16 %v8363_v0, %v8363_v0  ;;  %v16479_v38 = vld [vmem:[#allocation16 + $0x68c] sm:$0xf]  ;;  %v14154_v0 = vld [vmem:[#allocation16 + $0x778] sm:$0xf0] }
 0x567   :  { %9681 = vmatpush.bf16.msra.mxu1 %v14449_v50  ;;  %v8123_v15 = vpop.f32.mrf.mxu1  ;;  %v14240_v50 = vld [vmem:[#allocation15 + $0x20] sm:$0xf]  ;;  %8298 = vmatpush.bf16.msra.mxu3 %v13645_v40  ;;  %v14221_v40 = vor.u32 %v16523_v63, %v14218_v53  ;;  %v16192_v47 = vld [vmem:[#allocation15 + $0x58c] sm:$0xf0]  ;;  %v16511_v39 = vld [vmem:[#allocation16 + $0x78c] sm:$0xf] }
 0x568   :  { %v14241_v52 = vor.u32 %v16020_v20, %v14240_v50  ;;  %v14961_v15 = vor.u32 %v16200_v37, %v14960_v54  ;;  %v16164_v50 = vld [vmem:[#allocation15 + $0x4ac] sm:$0xf0]  ;;  %v14944_v20 = vld [vmem:[#allocation15 + $0x5a0] sm:$0xf]  ;;  %v14026_v63 = vld [vmem:[#allocation16 + $0x678] sm:$0xf0] }
 0x569   :  { %9669 = vmatpush.bf16.msra.mxu0 %v14305_v24  ;;  %8285 = vmatpush.bf16.msra.mxu2 %v13517_v11  ;;  %v16016_v24 = vld [vmem:[#allocation15 + $0xc] sm:$0xf0]  ;;  %v14093_v11 = vor.u32 %v16491_v3, %v14090_v6  ;;  %v16507_v53 = vld [vmem:[#allocation16 + $0x76c] sm:$0xf] }
 0x56a   :  { %v16152_v54 = vld [vmem:[#allocation15 + $0x44c] sm:$0xf0]  ;;  %v14157_v37 = vor.u32 %v16507_v53, %v14154_v0  ;;  %v16467_v23 = vld [vmem:[#allocation16 + $0x62c] sm:$0xf] }
 0x56b   :  { %9682 = vmatpush.bf16.msra.mxu1 %v14433_v29  ;;  %v14369_v29 = vor.u32 %v16052_v28, %v14368_v10  ;;  %8299 = vmatpush.bf16.msra.mxu3 %v13629_v55  ;;  %v14205_v10 = vor.u32 %v16519_v61, %v14202_v62  ;;  %v16196_v55 = vld [vmem:[#allocation15 + $0x5ac] sm:$0xf0]  ;;  %v16483_v28 = vld [vmem:[#allocation16 + $0x6ac] sm:$0xf]  ;;  %v14010_v61 = vld [vmem:[#allocation16 + $0x658] sm:$0xf0] }
 0x56c   :  { %v16180_v45 = vld [vmem:[#allocation15 + $0x52c] sm:$0xf0] }
 0x56d   :  { %9670 = vmatpush.bf16.msra.mxu0 %v14289_v43  ;;  %8286 = vmatpush.bf16.msra.mxu2 %v13501_v19  ;;  %v14976_v43 = vld [vmem:[#allocation15 + $0x5e0] sm:$0xf] }
 0x56e   :  { %v14816_v19 = vld [vmem:[#allocation15 + $0x4a0] sm:$0xf] }
 0x56f   :  { %9683 = vmatpush.bf16.msra.mxu1 %v14417_v27  ;;  %v14225_v27 = vor.u32 %v16016_v24, %v14224_v8  ;;  %8300 = vmatpush.bf16.msra.mxu3 %v13613_v22  ;;  %v14817_v25 = vor.u32 %v16164_v50, %v14816_v19  ;;  %v14061_v8 = vor.u32 %v16483_v28, %v14058_v21  ;;  %v14800_v24 = vld [vmem:[#allocation15 + $0x480] sm:$0xf]  ;;  %v14042_v22 = vld [vmem:[#allocation16 + $0x698] sm:$0xf0] }
 0x570   :  { %v14045_v41 = vor.u32 %v16479_v38, %v14042_v22  ;;  %v14880_v28 = vld [vmem:[#allocation15 + $0x520] sm:$0xf] }
 0x571   :  { %9671 = vmatpush.bf16.msra.mxu0 %v14273_v57  ;;  %8287 = vmatpush.bf16.msra.mxu2 %v13485_v34  ;;  %v8364_v57 = vunpack.c.h.b16 %v16928_v48  ;;  %v14928_v34 = vld [vmem:[#allocation15 + $0x580] sm:$0xf]  ;;  %v14881_v38 = vor.u32 %v16180_v45, %v14880_v28 }
 0x572   :  { %v14929_v26 = vor.u32 %v16192_v47, %v14928_v34  ;;  %v14736_v34 = vld [vmem:[#allocation15 + $0x400] sm:$0xf] }
 0x573   :  { %9684 = vmatpush.bf16.msra.mxu1 %v14401_v32  ;;  %v14977_v32 = vor.u32 %v16204_v44, %v14976_v43  ;;  %8301 = vmatpush.bf16.msra.mxu3 %v13597_v7  ;;  %v17189_v48 = vpack.c.b16 %v8364_v57, %v8364_v57  ;;  %v14784_v43 = vld [vmem:[#allocation15 + $0x460] sm:$0xf] }
 0x574   :  { %v14912_v44 = vld [vmem:[#allocation15 + $0x560] sm:$0xf] }
 0x575   :  { %9672 = vmatpush.bf16.msra.mxu0 %v14257_v42  ;;  %8288 = vmatpush.bf16.msra.mxu2 %v13469_v56  ;;  %v14833_v42 = vor.u32 %v16168_v4, %v14832_v58  ;;  %v16475_v56 = vld [vmem:[#allocation16 + $0x66c] sm:$0xf]  ;;  %v14768_v4 = vld [vmem:[#allocation15 + $0x440] sm:$0xf] }
 0x576   :  { %8302 = vmatmul.bf16.vlgmr.msra.gmra.mxu3 %v17108_v30  ;;  %v14029_v58 = vor.u32 %v16475_v56, %v14026_v63  ;;  %v14769_v19 = vor.u32 %v16152_v54, %v14768_v4  ;;  %v14592_v56 = vld [vmem:[#allocation15 + $0x2e0] sm:$0xf]  ;;  %v16108_v63 = vld [vmem:[#allocation15 + $0x2ec] sm:$0xf0] }
 0x577   :  { %9685 = vmatpush.bf16.msra.mxu1 %v14385_v18  ;;  %v14077_v18 = vor.u32 %v16487_v60, %v14074_v31  ;;  %8346 = vmatpush.bf16.msrb.mxu3 %v14221_v40  ;;  %v8030_v7 = vpop.f32.mrf.mxu2  ;;  %v14896_v40 = vld [vmem:[#allocation15 + $0x540] sm:$0xf]  ;;  %v16184_v60 = vld [vmem:[#allocation15 + $0x54c] sm:$0xf0]  ;;  %v16471_v31 = vld [vmem:[#allocation16 + $0x64c] sm:$0xf]  ;;  %v14593_v54 = vor.u32 %v16108_v63, %v14592_v56 }
 0x578   :  { %8289 = vmatmul.bf16.vlgmr.msra.gmra.mxu2 %v17106_v16  ;;  %v14170_v16 = vld [vmem:[#allocation16 + $0x798] sm:$0xf0]  ;;  %v8031_v57 = vadd.f32 %v8030_v7, %v17169_v46  ;;  %v14897_v50 = vor.u32 %v16184_v60, %v14896_v40  ;;  %v14720_v7 = vld [vmem:[#allocation15 + $0x3e0] sm:$0xf]  ;;  %v16038_v40 = vld [vmem:[#allocation15 + $0xc4] sm:$0xf] }
 0x579   :  { %9673 = vmatpush.bf16.msra.mxu0 %v14241_v52  ;;  %8333 = vmatpush.bf16.msrb.mxu2 %v14093_v11  ;;  %v14945_v52 = vor.u32 %v16196_v55, %v14944_v20  ;;  %v14173_v6 = vor.u32 %v16511_v39, %v14170_v16  ;;  %v14013_v20 = vor.u32 %v16471_v31, %v14010_v61  ;;  %v16148_v55 = vld [vmem:[#allocation15 + $0x42c] sm:$0xf0]  ;;  %v14864_v39 = vld [vmem:[#allocation15 + $0x500] sm:$0xf]  ;;  %v16070_v60 = vld [vmem:[#allocation15 + $0x1c4] sm:$0xf] }
 0x57a   :  { %v16176_v16 = vld [vmem:[#allocation15 + $0x50c] sm:$0xf0] }
 0x57b   :  { %9686 = vmatpush.bf16.msra.mxu1 %v14369_v29  ;;  %v16160_v29 = vld [vmem:[#allocation15 + $0x48c] sm:$0xf0]  ;;  %8347 = vmatpush.bf16.msrb.mxu3 %v14205_v10  ;;  %v14752_v10 = vld [vmem:[#allocation15 + $0x420] sm:$0xf]  ;;  %v14865_v53 = vor.u32 %v16176_v16, %v14864_v39  ;;  %v16030_v16 = vld [vmem:[#allocation15 + $0x84] sm:$0xf] }
 0x57c   :  { %v14801_v5 = vor.u32 %v16160_v29, %v14800_v24  ;;  %v14753_v29 = vor.u32 %v16148_v55, %v14752_v10 }
 0x57d   :  { %9674 = vmatpush.bf16.msra.mxu0 %v14225_v27  ;;  %8334 = vmatpush.bf16.msrb.mxu2 %v14077_v18  ;;  %v8160_v33 = vpop.f32.mrf.mxu0  ;;  %v16156_v27 = vld [vmem:[#allocation15 + $0x46c] sm:$0xf0] }
 0x57f   :  { %9687 = vmatpush.bf16.msra.mxu1 %v14353_v9  ;;  %v8173_v30 = vpop.f32.mrf.mxu1  ;;  %8348 = vmatpush.bf16.msrb.mxu3 %v14189_v36  ;;  %v16188_v9 = vld [vmem:[#allocation15 + $0x56c] sm:$0xf0]  ;;  %v8032_v24 = vpop.f32.mrf.mxu2 }
 0x580   :  { %9675 = vmatmul.bf16.vlgmr.msra.gmra.mxu0 %v17187_v14  ;;  %v17195_v3 = vadd.f32 %v8173_v30, %v8160_v33  ;;  %v14913_v11 = vor.u32 %v16188_v9, %v14912_v44  ;;  %v16144_v36 = vld [vmem:[#allocation15 + $0x40c] sm:$0xf0]  ;;  %v16463_v33 = vld [vmem:[#allocation16 + $0x60c] sm:$0xf]  ;;  %v13978_v30 = vld [vmem:[#allocation16 + $0x618] sm:$0xf0] }
 0x581   :  { %9719 = vmatpush.bf16.msrb.mxu0 %v14849_v13  ;;  %8335 = vmatpush.bf16.msrb.mxu2 %v14061_v8  ;;  %v14785_v13 = vor.u32 %v16156_v27, %v14784_v43  ;;  %v14122_v8 = vld [vmem:[#allocation16 + $0x738] sm:$0xf0]  ;;  %v16042_v43 = vld [vmem:[#allocation15 + $0xe4] sm:$0xf]  ;;  %v14338_v27 = vld [vmem:[#allocation15 + $0xf0] sm:$0xf0]  ;;  %v13981_v0 = vor.u32 %v16463_v33, %v13978_v30 }
 0x582   :  { %9688 = vmatmul.bf16.vlgmr.msra.gmra.mxu1 %v17189_v48  ;;  %v16074_v44 = vld [vmem:[#allocation15 + $0x1e4] sm:$0xf]  ;;  %v14466_v9 = vld [vmem:[#allocation15 + $0x1f0] sm:$0xf0]  ;;  %v14560_v24 = vld [vmem:[#allocation15 + $0x2a0] sm:$0xf] }
 0x583   :  { %9732 = vmatpush.bf16.msrb.mxu1 %v14977_v32  ;;  %v8043_v32 = vpop.f32.mrf.mxu3  ;;  %8349 = vmatpush.bf16.msrb.mxu3 %v14173_v6  ;;  %v14737_v6 = vor.u32 %v16144_v36, %v14736_v34  ;;  %v14469_v4 = vor.u32 %v16074_v44, %v14466_v9  ;;  %v14688_v36 = vld [vmem:[#allocation15 + $0x3a0] sm:$0xf]  ;;  %v14290_v33 = vld [vmem:[#allocation15 + $0x90] sm:$0xf0] }
 0x584   :  { %v17198_v62 = vadd.f32 %v8043_v32, %v8031_v57  ;;  %v8367_v57 = vunpack.c.l.b16 %v16956_v49  ;;  %v8368_v32 = vunpack.c.h.b16 %v16956_v49  ;;  %v14704_v49 = vld [vmem:[#allocation15 + $0x3c0] sm:$0xf]  ;;  %v14293_v56 = vor.u32 %v16030_v16, %v14290_v33  ;;  %v16014_v33 = vld [vmem:[#allocation15 + $0x4] sm:$0xf] }
 0x585   :  { %9720 = vmatpush.bf16.msrb.mxu0 %v14833_v42  ;;  %8336 = vmatpush.bf16.msrb.mxu2 %v14045_v41  ;;  %v16503_v42 = vld [vmem:[#allocation16 + $0x74c] sm:$0xf]  ;;  %v8162_v18 = vpop.f32.mrf.mxu0  ;;  %v14106_v41 = vld [vmem:[#allocation16 + $0x718] sm:$0xf0] }
 0x586   :  { %v16104_v18 = vld [vmem:[#allocation15 + $0x2cc] sm:$0xf0]  ;;  %v17205_v10 = vpack.c.b16 %v8368_v32, %v8368_v32  ;;  %v14528_v32 = vld [vmem:[#allocation15 + $0x260] sm:$0xf] }
 0x587   :  { %9733 = vmatpush.bf16.msrb.mxu1 %v14961_v15  ;;  %v14138_v15 = vld [vmem:[#allocation16 + $0x758] sm:$0xf0]  ;;  %v8175_v46 = vpop.f32.mrf.mxu1  ;;  %8350 = vmatpush.bf16.msrb.mxu3 %v14157_v37  ;;  %v14322_v37 = vld [vmem:[#allocation15 + $0xd0] sm:$0xf0]  ;;  %v8082_v61 = vpop.f32.mrf.mxu2 }
 0x588   :  { %v14141_v21 = vor.u32 %v16503_v42, %v14138_v15  ;;  %v14450_v42 = vld [vmem:[#allocation15 + $0x1d0] sm:$0xf0]  ;;  %v14576_v15 = vld [vmem:[#allocation15 + $0x2c0] sm:$0xf]  ;;  %v14325_v55 = vor.u32 %v16038_v40, %v14322_v37 }
 0x589   :  { %9721 = vmatpush.bf16.msrb.mxu0 %v14817_v25  ;;  %8337 = vmatpush.bf16.msrb.mxu2 %v14029_v58  ;;  %v13994_v25 = vld [vmem:[#allocation16 + $0x638] sm:$0xf0]  ;;  %v14341_v58 = vor.u32 %v16042_v43, %v14338_v27  ;;  %v14577_v45 = vor.u32 %v16104_v18, %v14576_v15  ;;  %v16096_v43 = vld [vmem:[#allocation15 + $0x28c] sm:$0xf0]  ;;  %v14386_v18 = vld [vmem:[#allocation15 + $0x150] sm:$0xf0] }
 0x58a   :  { %v13997_v22 = vor.u32 %v16467_v23, %v13994_v25  ;;  %v16034_v23 = vld [vmem:[#allocation15 + $0xa4] sm:$0xf]  ;;  %v14306_v25 = vld [vmem:[#allocation15 + $0xb0] sm:$0xf0] }
 0x58b   :  { %9734 = vmatpush.bf16.msrb.mxu1 %v14945_v52  ;;  %v16499_v52 = vld [vmem:[#allocation16 + $0x72c] sm:$0xf]  ;;  %v8045_v47 = vpop.f32.mrf.mxu3  ;;  %8351 = vmatpush.bf16.msrb.mxu3 %v14141_v21  ;;  %v14453_v21 = vor.u32 %v16070_v60, %v14450_v42  ;;  %v16022_v60 = vld [vmem:[#allocation15 + $0x44] sm:$0xf] }
 0x58c   :  { %v16132_v47 = vld [vmem:[#allocation15 + $0x3ac] sm:$0xf0] }
 0x58d   :  { %9722 = vmatpush.bf16.msrb.mxu0 %v14801_v5  ;;  %8338 = vmatpush.bf16.msrb.mxu2 %v14013_v20  ;;  %v14125_v5 = vor.u32 %v16499_v52, %v14122_v8  ;;  %v17203_v20 = vpack.c.b16 %v8367_v57, %v8367_v57  ;;  %v16066_v52 = vld [vmem:[#allocation15 + $0x1a4] sm:$0xf]  ;;  %v14434_v8 = vld [vmem:[#allocation15 + $0x1b0] sm:$0xf0] }
 0x58e   :  { %v14402_v57 = vld [vmem:[#allocation15 + $0x170] sm:$0xf0] }
 0x58f   :  { %9735 = vmatpush.bf16.msrb.mxu1 %v14929_v26  ;;  %v16495_v26 = vld [vmem:[#allocation16 + $0x70c] sm:$0xf]  ;;  %8352 = vmatpush.bf16.msrb.mxu3 %v14125_v5  ;;  %v16062_v5 = vld [vmem:[#allocation15 + $0x184] sm:$0xf] }
 0x591   :  { %9723 = vmatpush.bf16.msrb.mxu0 %v14785_v13  ;;  %8339 = vmatpush.bf16.msrb.mxu2 %v13997_v22  ;;  %v16140_v13 = vld [vmem:[#allocation15 + $0x3ec] sm:$0xf0]  ;;  %v14437_v22 = vor.u32 %v16066_v52, %v14434_v8  ;;  %v16018_v8 = vld [vmem:[#allocation15 + $0x24] sm:$0xf] }
 0x592   :  { %v14721_v31 = vor.u32 %v16140_v13, %v14720_v7  ;;  %v16058_v7 = vld [vmem:[#allocation15 + $0x164] sm:$0xf] }
 0x593   :  { %9736 = vmatpush.bf16.msrb.mxu1 %v14913_v11  ;;  %v14109_v11 = vor.u32 %v16495_v26, %v14106_v41  ;;  %v8095_v46 = vpop.f32.mrf.mxu3  ;;  %v14689_v26 = vor.u32 %v16132_v47, %v14688_v36  ;;  %v14418_v41 = vld [vmem:[#allocation15 + $0x190] sm:$0xf0]  ;;  %v14405_v40 = vor.u32 %v16058_v7, %v14402_v57  ;;  %v14496_v47 = vld [vmem:[#allocation15 + $0x220] sm:$0xf] }
 0x594   :  { %v14421_v63 = vor.u32 %v16062_v5, %v14418_v41  ;;  %v14370_v36 = vld [vmem:[#allocation15 + $0x130] sm:$0xf0]  ;;  %v15104_v57 = vld [vmem:[#allocation15 + $0x6e0] sm:$0xf] }
 0x595   :  { %9724 = vmatpush.bf16.msrb.mxu0 %v14769_v19  ;;  %8340 = vmatpush.bf16.msrb.mxu2 %v13981_v0  ;;  %v8083_v19 = vadd.f32 %v8082_v61, %v17175_v17  ;;  %v14274_v0 = vld [vmem:[#allocation15 + $0x70] sm:$0xf0]  ;;  %v16054_v61 = vld [vmem:[#allocation15 + $0x144] sm:$0xf] }
 0x596   :  { %8353 = vmatpush.bf16.msrb.mxu3 %v14109_v11  ;;  %v16092_v11 = vld [vmem:[#allocation15 + $0x26c] sm:$0xf0]  ;;  %v14389_v52 = vor.u32 %v16054_v61, %v14386_v18  ;;  %v14226_v5 = vld [vmem:[#allocation15 + $0x10] sm:$0xf0]  ;;  %v16198_v18 = vld [vmem:[#allocation15 + $0x5c4] sm:$0xf] }
 0x597   :  { %9737 = vmatpush.bf16.msrb.mxu1 %v14897_v50  ;;  %v16136_v50 = vld [vmem:[#allocation15 + $0x3cc] sm:$0xf0]  ;;  %v8096_v28 = vadd.f32 %v8095_v46, %v8083_v19  ;;  %v14529_v37 = vor.u32 %v16092_v11, %v14528_v32  ;;  %v14512_v19 = vld [vmem:[#allocation15 + $0x240] sm:$0xf]  ;;  %v14354_v41 = vld [vmem:[#allocation15 + $0x110] sm:$0xf0]  ;;  %v14229_v7 = vor.u32 %v16014_v33, %v14226_v5 }
 0x598   :  { %v14705_v17 = vor.u32 %v16136_v50, %v14704_v49  ;;  %8341 = vmatmul.bf16.vlgmr.msrb.gmra.mxu2 %v17152_v2  ;;  %v14544_v2 = vld [vmem:[#allocation15 + $0x280] sm:$0xf]  ;;  %v16088_v46 = vld [vmem:[#allocation15 + $0x24c] sm:$0xf0] }
 0x599   :  { %9725 = vmatpush.bf16.msrb.mxu0 %v14753_v29  ;;  %9693 = vmatpush.bf16.msra.mxu2 %v14593_v54  ;;  %v16100_v29 = vld [vmem:[#allocation15 + $0x2ac] sm:$0xf0]  ;;  %v8109_v34 = vadd.f32 %v17181_v1, %v8096_v28  ;;  %v8084_v1 = vpop.f32.mrf.mxu2  ;;  %v14640_v28 = vld [vmem:[#allocation15 + $0x340] sm:$0xf] }
 0x59a   :  { %9706 = vmatpush.bf16.msra.mxu3 %v14721_v31  ;;  %v14561_v39 = vor.u32 %v16100_v29, %v14560_v24  ;;  %v14258_v31 = vld [vmem:[#allocation15 + $0x50] sm:$0xf0]  ;;  %v16050_v29 = vld [vmem:[#allocation15 + $0x124] sm:$0xf]  ;;  %v16236_v32 = vld [vmem:[#allocation15 + $0x6ec] sm:$0xf0] }
 0x59b   :  { %9738 = vmatpush.bf16.msrb.mxu1 %v14881_v38  ;;  %8354 = vmatmul.bf16.vlgmr.msrb.gmra.mxu3 %v17154_v12  ;;  %v14309_v38 = vor.u32 %v16034_v23, %v14306_v25  ;;  %v8122_v30 = vadd.f32 %v17183_v51, %v8109_v34  ;;  %v8097_v27 = vpop.f32.mrf.mxu3  ;;  %v14672_v12 = vld [vmem:[#allocation15 + $0x380] sm:$0xf]  ;;  %v16026_v51 = vld [vmem:[#allocation15 + $0x64] sm:$0xf]  ;;  %v14261_v23 = vor.u32 %v16022_v60, %v14258_v31  ;;  %v14242_v24 = vld [vmem:[#allocation15 + $0x30] sm:$0xf0]  ;;  %v8365_v60 = vunpack.c.l.b16 %v16944_v35 }
 0x59c   :  { %v14277_v54 = vor.u32 %v16026_v51, %v14274_v0  ;;  %v14245_v16 = vor.u32 %v16018_v8, %v14242_v24  ;;  %v16046_v1 = vld [vmem:[#allocation15 + $0x104] sm:$0xf]  ;;  %v14850_v51 = vld [vmem:[#allocation15 + $0x4f0] sm:$0xf0]  ;;  %v15105_v61 = vor.u32 %v16236_v32, %v15104_v57 }
 0x59d   :  { %9726 = vmatpush.bf16.msrb.mxu0 %v14737_v6  ;;  %9694 = vmatpush.bf16.msra.mxu2 %v14577_v45  ;;  %v17213_v44 = vpop.f32.mrf.mxu0  ;;  %v16128_v6 = vld [vmem:[#allocation15 + $0x38c] sm:$0xf0]  ;;  %v16202_v0 = vld [vmem:[#allocation15 + $0x5e4] sm:$0xf]  ;;  %v14357_v11 = vor.u32 %v16046_v1, %v14354_v41  ;;  %v14786_v57 = vld [vmem:[#allocation15 + $0x470] sm:$0xf0] }
 0x59e   :  { %9707 = vmatpush.bf16.msra.mxu3 %v14705_v17  ;;  %v14673_v13 = vor.u32 %v16128_v6, %v14672_v12  ;;  %v14513_v17 = vor.u32 %v16088_v46, %v14512_v19  ;;  %v16080_v12 = vld [vmem:[#allocation15 + $0x20c] sm:$0xf0]  ;;  %v14608_v6 = vld [vmem:[#allocation15 + $0x300] sm:$0xf]  ;;  %v8366_v19 = vunpack.c.h.b16 %v16944_v35  ;;  %v16162_v8 = vld [vmem:[#allocation15 + $0x4a4] sm:$0xf] }
 0x59f   :  { %9739 = vmatpush.bf16.msrb.mxu1 %v14865_v53  ;;  %v17215_v9 = vpop.f32.mrf.mxu1  ;;  %v14545_v53 = vor.u32 %v16096_v43, %v14544_v2  ;;  %v14480_v2 = vld [vmem:[#allocation15 + $0x200] sm:$0xf]  ;;  %v14818_v35 = vld [vmem:[#allocation15 + $0x4b0] sm:$0xf0]  ;;  %v16194_v24 = vld [vmem:[#allocation15 + $0x5a4] sm:$0xf] }
 0x5a0   :  { %9727 = vmatmul.bf16.vlgmr.msrb.gmra.mxu0 %v17203_v20  ;;  %v16190_v1 = vld [vmem:[#allocation15 + $0x584] sm:$0xf] }
 0x5a1   :  { %9771 = vmatpush.bf16.msra.mxu0 %v14341_v58  ;;  %9695 = vmatpush.bf16.msra.mxu2 %v14561_v39  ;;  %v14656_v58 = vld [vmem:[#allocation15 + $0x360] sm:$0xf]  ;;  %v8134_v15 = vpop.f32.mrf.mxu2  ;;  %v16116_v39 = vld [vmem:[#allocation15 + $0x32c] sm:$0xf0]  ;;  %v16186_v32 = vld [vmem:[#allocation15 + $0x564] sm:$0xf] }
 0x5a2   :  { %9740 = vmatmul.bf16.vlgmr.msrb.gmra.mxu1 %v17205_v10  ;;  %9708 = vmatpush.bf16.msra.mxu3 %v14689_v26  ;;  %v8135_v49 = vadd.f32 %v8134_v15, %v8122_v30  ;;  %v14373_v30 = vor.u32 %v16050_v29, %v14370_v36  ;;  %v14834_v15 = vld [vmem:[#allocation15 + $0x4d0] sm:$0xf0]  ;;  %v17223_v29 = vpack.c.b16 %v8366_v19, %v8366_v19 }
 0x5a3   :  { %9784 = vmatpush.bf16.msra.mxu1 %v14469_v4  ;;  %v16124_v4 = vld [vmem:[#allocation15 + $0x36c] sm:$0xf0]  ;;  %v8147_v50 = vpop.f32.mrf.mxu3  ;;  %v14946_v36 = vld [vmem:[#allocation15 + $0x5b0] sm:$0xf0] }
 0x5a4   :  { %v14657_v42 = vor.u32 %v16124_v4, %v14656_v58  ;;  %v17217_v25 = vadd.f32 %v8147_v50, %v8135_v49  ;;  %v14481_v58 = vor.u32 %v16080_v12, %v14480_v2  ;;  %v15232_v4 = vld [vmem:[#allocation15 + $0x7e0] sm:$0xf]  ;;  %v14962_v49 = vld [vmem:[#allocation15 + $0x5d0] sm:$0xf0]  ;;  %v14949_v33 = vor.u32 %v16194_v24, %v14946_v36 }
 0x5a5   :  { %9772 = vmatpush.bf16.msra.mxu0 %v14325_v55  ;;  %9696 = vmatpush.bf16.msra.mxu2 %v14545_v53  ;;  %v8214_v55 = vpop.f32.mrf.mxu0  ;;  %v16170_v53 = vld [vmem:[#allocation15 + $0x4e4] sm:$0xf]  ;;  %v15088_v50 = vld [vmem:[#allocation15 + $0x6c0] sm:$0xf]  ;;  %v14930_v2 = vld [vmem:[#allocation15 + $0x590] sm:$0xf0] }
 0x5a6   :  { %9709 = vmatpush.bf16.msra.mxu3 %v14673_v13  ;;  %v14978_v13 = vld [vmem:[#allocation15 + $0x5f0] sm:$0xf0]  ;;  %v16232_v55 = vld [vmem:[#allocation15 + $0x6cc] sm:$0xf0] }
 0x5a7   :  { %9785 = vmatpush.bf16.msra.mxu1 %v14453_v21  ;;  %v16120_v21 = vld [vmem:[#allocation15 + $0x34c] sm:$0xf0]  ;;  %v8227_v45 = vpop.f32.mrf.mxu1  ;;  %v14981_v31 = vor.u32 %v16202_v0, %v14978_v13  ;;  %v14933_v0 = vor.u32 %v16190_v1, %v14930_v2  ;;  %v16154_v13 = vld [vmem:[#allocation15 + $0x464] sm:$0xf]  ;;  %v14738_v2 = vld [vmem:[#allocation15 + $0x410] sm:$0xf0] }
 0x5a8   :  { %v14641_v34 = vor.u32 %v16120_v21, %v14640_v28  ;;  %v15216_v28 = vld [vmem:[#allocation15 + $0x7c0] sm:$0xf]  ;;  %v16264_v21 = vld [vmem:[#allocation15 + $0x7cc] sm:$0xf0] }
 0x5a9   :  { %9773 = vmatpush.bf16.msra.mxu0 %v14309_v38  ;;  %9697 = vmatpush.bf16.msra.mxu2 %v14529_v37  ;;  %v16084_v38 = vld [vmem:[#allocation15 + $0x22c] sm:$0xf0]  ;;  %v8136_v27 = vpop.f32.mrf.mxu2  ;;  %v14853_v37 = vor.u32 %v16170_v53, %v14850_v51 }
 0x5aa   :  { %9710 = vmatpush.bf16.msra.mxu3 %v14657_v42  ;;  %v14497_v26 = vor.u32 %v16084_v38, %v14496_v47  ;;  %v16166_v42 = vld [vmem:[#allocation15 + $0x4c4] sm:$0xf]  ;;  %v15072_v47 = vld [vmem:[#allocation15 + $0x6a0] sm:$0xf]  ;;  %v16228_v38 = vld [vmem:[#allocation15 + $0x6ac] sm:$0xf0] }
 0x5ab   :  { %9786 = vmatpush.bf16.msra.mxu1 %v14437_v22  ;;  %v14624_v22 = vld [vmem:[#allocation15 + $0x320] sm:$0xf]  ;;  %v14837_v45 = vor.u32 %v16166_v42, %v14834_v15  ;;  %v15073_v5 = vor.u32 %v16228_v38, %v15072_v47  ;;  %v16224_v27 = vld [vmem:[#allocation15 + $0x68c] sm:$0xf0]  ;;  %v16150_v42 = vld [vmem:[#allocation15 + $0x444] sm:$0xf] }
 0x5ac   :  { %v14625_v43 = vor.u32 %v16116_v39, %v14624_v22  ;;  %v15200_v22 = vld [vmem:[#allocation15 + $0x7a0] sm:$0xf]  ;;  %v16260_v39 = vld [vmem:[#allocation15 + $0x7ac] sm:$0xf0]  ;;  %v14770_v15 = vld [vmem:[#allocation15 + $0x450] sm:$0xf0] }
 0x5ad   :  { %9774 = vmatpush.bf16.msra.mxu0 %v14293_v56  ;;  %9698 = vmatpush.bf16.msra.mxu2 %v14513_v17  ;;  %v16112_v56 = vld [vmem:[#allocation15 + $0x30c] sm:$0xf0]  ;;  %v15089_v17 = vor.u32 %v16232_v55, %v15088_v50  ;;  %v15201_v41 = vor.u32 %v16260_v39, %v15200_v22  ;;  %v15024_v50 = vld [vmem:[#allocation15 + $0x640] sm:$0xf]  ;;  %v16146_v47 = vld [vmem:[#allocation15 + $0x424] sm:$0xf] }
 0x5ae   :  { %9711 = vmatpush.bf16.msra.mxu3 %v14641_v34  ;;  %v15217_v34 = vor.u32 %v16264_v21, %v15216_v28  ;;  %v16216_v55 = vld [vmem:[#allocation15 + $0x64c] sm:$0xf0]  ;;  %v14754_v38 = vld [vmem:[#allocation15 + $0x430] sm:$0xf0]  ;;  %v16178_v22 = vld [vmem:[#allocation15 + $0x524] sm:$0xf] }
 0x5af   :  { %9787 = vmatpush.bf16.msra.mxu1 %v14421_v63  ;;  %v8149_v63 = vpop.f32.mrf.mxu3  ;;  %v15025_v36 = vor.u32 %v16216_v55, %v15024_v50  ;;  %v14757_v1 = vor.u32 %v16146_v47, %v14754_v38  ;;  %v16041_v50 = vld [vmem:[#allocation15 + $0xd4] sm:$0xf0]  ;;  %v14456_v55 = vld [vmem:[#allocation15 + $0x1c8] sm:$0xf] }
 0x5b0   :  { %v14312_v38 = vld [vmem:[#allocation15 + $0xa8] sm:$0xf] }
 0x5b1   :  { %9775 = vmatpush.bf16.msra.mxu0 %v14277_v54  ;;  %9699 = vmatpush.bf16.msra.mxu2 %v14497_v26  ;;  %v16268_v54 = vld [vmem:[#allocation15 + $0x7ec] sm:$0xf0]  ;;  %v14802_v26 = vld [vmem:[#allocation15 + $0x490] sm:$0xf0] }
 0x5b2   :  { %9712 = vmatpush.bf16.msra.mxu3 %v14625_v43  ;;  %v15233_v46 = vor.u32 %v16268_v54, %v15232_v4  ;;  %v15056_v43 = vld [vmem:[#allocation15 + $0x680] sm:$0xf]  ;;  %v16220_v54 = vld [vmem:[#allocation15 + $0x66c] sm:$0xf0] }
 0x5b3   :  { %9788 = vmatpush.bf16.msra.mxu1 %v14405_v40  ;;  %v14609_v40 = vor.u32 %v16112_v56, %v14608_v6  ;;  %v15184_v6 = vld [vmem:[#allocation15 + $0x780] sm:$0xf]  ;;  %v16256_v56 = vld [vmem:[#allocation15 + $0x78c] sm:$0xf0] }
 0x5b4   :  { %v15040_v4 = vld [vmem:[#allocation15 + $0x660] sm:$0xf] }
 0x5b5   :  { %9776 = vmatpush.bf16.msra.mxu0 %v14261_v23  ;;  %9700 = vmatpush.bf16.msra.mxu2 %v14481_v58  ;;  %v17221_v23 = vpack.c.b16 %v8365_v60, %v8365_v60  ;;  %v14914_v58 = vld [vmem:[#allocation15 + $0x570] sm:$0xf0]  ;;  %v14789_v60 = vor.u32 %v16154_v13, %v14786_v57  ;;  %v16240_v13 = vld [vmem:[#allocation15 + $0x70c] sm:$0xf0] }
 0x5b6   :  { %9713 = vmatpush.bf16.msra.mxu3 %v14609_v40  ;;  %v15168_v40 = vld [vmem:[#allocation15 + $0x760] sm:$0xf] }
 0x5b7   :  { %9789 = vmatpush.bf16.msra.mxu1 %v14389_v52  ;;  %v14965_v52 = vor.u32 %v16198_v18, %v14962_v49  ;;  %v16182_v18 = vld [vmem:[#allocation15 + $0x544] sm:$0xf]  ;;  %v14898_v49 = vld [vmem:[#allocation15 + $0x550] sm:$0xf0] }
 0x5b8   :  { %9701 = vmatmul.bf16.vlgmr.msra.gmra.mxu2 %v17221_v23 }
 0x5b9   :  { %9777 = vmatpush.bf16.msra.mxu0 %v14245_v16  ;;  %9745 = vmatpush.bf16.msrb.mxu2 %v15105_v61  ;;  %v14821_v16 = vor.u32 %v16162_v8, %v14818_v35  ;;  %v15041_v61 = vor.u32 %v16220_v54, %v15040_v4  ;;  %v8199_v21 = vpop.f32.mrf.mxu3  ;;  %v14773_v35 = vor.u32 %v16150_v42, %v14770_v15  ;;  %v16077_v54 = vld [vmem:[#allocation15 + $0x1f4] sm:$0xf0] }
 0x5ba   :  { %9758 = vmatpush.bf16.msrb.mxu3 %v15233_v46  ;;  %v8186_v46 = vpop.f32.mrf.mxu2 }
 0x5bb   :  { %9790 = vmatpush.bf16.msra.mxu1 %v14373_v30  ;;  %9714 = vmatmul.bf16.vlgmr.msra.gmra.mxu3 %v17223_v29  ;;  %v16158_v30 = vld [vmem:[#allocation15 + $0x484] sm:$0xf]  ;;  %v8187_v28 = vadd.f32 %v8186_v46, %v17195_v3  ;;  %v16212_v3 = vld [vmem:[#allocation15 + $0x62c] sm:$0xf0] }
 0x5bc   :  { %v14805_v53 = vor.u32 %v16158_v30, %v14802_v26  ;;  %v15136_v30 = vld [vmem:[#allocation15 + $0x720] sm:$0xf]  ;;  %v16244_v26 = vld [vmem:[#allocation15 + $0x72c] sm:$0xf0] }
 0x5bd   :  { %9778 = vmatpush.bf16.msra.mxu0 %v14229_v7  ;;  %9746 = vmatpush.bf16.msrb.mxu2 %v15089_v17  ;;  %v8264_v12 = vpop.f32.mrf.mxu0  ;;  %v15057_v7 = vor.u32 %v16224_v27, %v15056_v43  ;;  %v16248_v17 = vld [vmem:[#allocation15 + $0x74c] sm:$0xf0]  ;;  %v8200_v24 = vadd.f32 %v8199_v21, %v8187_v28  ;;  %v8370_v28 = vunpack.c.h.b16 %v16964_v59 }
 0x5be   :  { %9759 = vmatpush.bf16.msrb.mxu3 %v15217_v34  ;;  %v14901_v34 = vor.u32 %v16182_v18, %v14898_v49  ;;  %v8369_v18 = vunpack.c.l.b16 %v16964_v59  ;;  %v14328_v49 = vld [vmem:[#allocation15 + $0xc8] sm:$0xf]  ;;  %v16037_v59 = vld [vmem:[#allocation15 + $0xb4] sm:$0xf0] }
 0x5bf   :  { %9791 = vmatpush.bf16.msra.mxu1 %v14357_v11  ;;  %v8277_v63 = vpop.f32.mrf.mxu1  ;;  %v15185_v11 = vor.u32 %v16256_v56, %v15184_v6  ;;  %v14866_v6 = vld [vmem:[#allocation15 + $0x510] sm:$0xf0]  ;;  %v14992_v56 = vld [vmem:[#allocation15 + $0x600] sm:$0xf] }
 0x5c0   :  { %9779 = vmatmul.bf16.vlgmr.msra.gmra.mxu0 %v17187_v14  ;;  %v17229_v51 = vadd.f32 %v8277_v63, %v8264_v12  ;;  %v16174_v12 = vld [vmem:[#allocation15 + $0x504] sm:$0xf] }
 0x5c1   :  { %9823 = vmatpush.bf16.msrb.mxu0 %v14853_v37  ;;  %9747 = vmatpush.bf16.msrb.mxu2 %v15073_v5  ;;  %v16252_v37 = vld [vmem:[#allocation15 + $0x76c] sm:$0xf0]  ;;  %v8213_v5 = vadd.f32 %v17213_v44, %v8200_v24  ;;  %v8201_v57 = vpop.f32.mrf.mxu3  ;;  %v14329_v24 = vor.u32 %v16041_v50, %v14328_v49  ;;  %v16025_v49 = vld [vmem:[#allocation15 + $0x54] sm:$0xf0]  ;;  %v14392_v50 = vld [vmem:[#allocation15 + $0x148] sm:$0xf] }
 0x5c2   :  { %9792 = vmatmul.bf16.vlgmr.msra.gmra.mxu1 %v17189_v48  ;;  %9760 = vmatpush.bf16.msrb.mxu3 %v15201_v41  ;;  %v15169_v19 = vor.u32 %v16252_v37, %v15168_v40  ;;  %v16142_v41 = vld [vmem:[#allocation15 + $0x404] sm:$0xf]  ;;  %v16208_v44 = vld [vmem:[#allocation15 + $0x60c] sm:$0xf0]  ;;  %v14594_v37 = vld [vmem:[#allocation15 + $0x2f0] sm:$0xf0] }
 0x5c3   :  { %9836 = vmatpush.bf16.msrb.mxu1 %v14981_v31  ;;  %v14917_v31 = vor.u32 %v16186_v32, %v14914_v58  ;;  %v17234_v63 = vadd.f32 %v17215_v9, %v8213_v5  ;;  %v14344_v32 = vld [vmem:[#allocation15 + $0xe8] sm:$0xf]  ;;  %v14741_v4 = vor.u32 %v16142_v41, %v14738_v2  ;;  %v16106_v40 = vld [vmem:[#allocation15 + $0x2e4] sm:$0xf]  ;;  %v14993_v9 = vor.u32 %v16208_v44, %v14992_v56  ;;  %v14562_v5 = vld [vmem:[#allocation15 + $0x2b0] sm:$0xf0] }
 0x5c4   :  { %v14472_v58 = vld [vmem:[#allocation15 + $0x1e8] sm:$0xf]  ;;  %v14597_v46 = vor.u32 %v16106_v40, %v14594_v37  ;;  %v16065_v56 = vld [vmem:[#allocation15 + $0x194] sm:$0xf0] }
 0x5c5   :  { %9824 = vmatpush.bf16.msrb.mxu0 %v14837_v45  ;;  %9748 = vmatpush.bf16.msrb.mxu2 %v15057_v7  ;;  %v8266_v45 = vpop.f32.mrf.mxu0  ;;  %v15120_v7 = vld [vmem:[#allocation15 + $0x700] sm:$0xf]  ;;  %v14408_v40 = vld [vmem:[#allocation15 + $0x168] sm:$0xf] }
 0x5c6   :  { %9761 = vmatpush.bf16.msrb.mxu3 %v15185_v11  ;;  %v16045_v11 = vld [vmem:[#allocation15 + $0xf4] sm:$0xf0]  ;;  %v15121_v42 = vor.u32 %v16240_v13, %v15120_v7  ;;  %v16126_v7 = vld [vmem:[#allocation15 + $0x384] sm:$0xf]  ;;  %v14674_v13 = vld [vmem:[#allocation15 + $0x390] sm:$0xf0] }
 0x5c7   :  { %9837 = vmatpush.bf16.msrb.mxu1 %v14965_v52  ;;  %v15152_v52 = vld [vmem:[#allocation15 + $0x740] sm:$0xf]  ;;  %v8279_v8 = vpop.f32.mrf.mxu1  ;;  %v14345_v15 = vor.u32 %v16045_v11, %v14344_v32  ;;  %v16073_v45 = vld [vmem:[#allocation15 + $0x1d4] sm:$0xf0]  ;;  %v14677_v37 = vor.u32 %v16126_v7, %v14674_v13  ;;  %v16078_v7 = vld [vmem:[#allocation15 + $0x204] sm:$0xf] }
 0x5c8   :  { %v15153_v39 = vor.u32 %v16248_v17, %v15152_v52  ;;  %v16102_v52 = vld [vmem:[#allocation15 + $0x2c4] sm:$0xf]  ;;  %v14578_v17 = vld [vmem:[#allocation15 + $0x2d0] sm:$0xf0] }
 0x5c9   :  { %9825 = vmatpush.bf16.msrb.mxu0 %v14821_v16  ;;  %9749 = vmatpush.bf16.msrb.mxu2 %v15041_v61  ;;  %v14882_v16 = vld [vmem:[#allocation15 + $0x530] sm:$0xf0]  ;;  %v16134_v8 = vld [vmem:[#allocation15 + $0x3c4] sm:$0xf]  ;;  %v14581_v47 = vor.u32 %v16102_v52, %v14578_v17 }
 0x5ca   :  { %9762 = vmatpush.bf16.msrb.mxu3 %v15169_v19  ;;  %v14885_v43 = vor.u32 %v16178_v22, %v14882_v16  ;;  %v14722_v61 = vld [vmem:[#allocation15 + $0x3f0] sm:$0xf0]  ;;  %v14473_v19 = vor.u32 %v16077_v54, %v14472_v58  ;;  %v14440_v22 = vld [vmem:[#allocation15 + $0x1a8] sm:$0xf]  ;;  %v16029_v54 = vld [vmem:[#allocation15 + $0x74] sm:$0xf0] }
 0x5cb   :  { %9838 = vmatpush.bf16.msrb.mxu1 %v14949_v33  ;;  %v15008_v33 = vld [vmem:[#allocation15 + $0x620] sm:$0xf]  ;;  %v14514_v52 = vld [vmem:[#allocation15 + $0x250] sm:$0xf0] }
 0x5cc   :  { %v15009_v27 = vor.u32 %v16212_v3, %v15008_v33  ;;  %v16069_v33 = vld [vmem:[#allocation15 + $0x1b4] sm:$0xf0]  ;;  %v16098_v3 = vld [vmem:[#allocation15 + $0x2a4] sm:$0xf] }
 0x5cd   :  { %9826 = vmatpush.bf16.msrb.mxu0 %v14805_v53  ;;  %9750 = vmatpush.bf16.msrb.mxu2 %v15025_v36  ;;  %v15137_v53 = vor.u32 %v16244_v26, %v15136_v30  ;;  %v14457_v36 = vor.u32 %v16073_v45, %v14456_v55  ;;  %v16130_v30 = vld [vmem:[#allocation15 + $0x3a4] sm:$0xf]  ;;  %v14690_v26 = vld [vmem:[#allocation15 + $0x3b0] sm:$0xf0]  ;;  %v14441_v41 = vor.u32 %v16069_v33, %v14440_v22  ;;  %v14248_v33 = vld [vmem:[#allocation15 + $0x28] sm:$0xf] }
 0x5ce   :  { %9763 = vmatpush.bf16.msrb.mxu3 %v15153_v39  ;;  %v17240_v39 = vpack.c.b16 %v8370_v28, %v8370_v28  ;;  %v14565_v2 = vor.u32 %v16098_v3, %v14562_v5  ;;  %v16086_v45 = vld [vmem:[#allocation15 + $0x244] sm:$0xf]  ;;  %v16021_v3 = vld [vmem:[#allocation15 + $0x34] sm:$0xf0]  ;;  %v14376_v5 = vld [vmem:[#allocation15 + $0x128] sm:$0xf] }
 0x5cf   :  { %9839 = vmatpush.bf16.msrb.mxu1 %v14933_v0  ;;  %v8188_v0 = vpop.f32.mrf.mxu2 }
 0x5d0   :  { %v14546_v0 = vld [vmem:[#allocation15 + $0x290] sm:$0xf0] }
 0x5d1   :  { %9827 = vmatpush.bf16.msrb.mxu0 %v14789_v60  ;;  %9751 = vmatpush.bf16.msrb.mxu2 %v15009_v27  ;;  %v14869_v60 = vor.u32 %v16174_v12, %v14866_v6  ;;  %v16033_v27 = vld [vmem:[#allocation15 + $0x94] sm:$0xf0]  ;;  %v14424_v12 = vld [vmem:[#allocation15 + $0x188] sm:$0xf]  ;;  %v14693_v6 = vor.u32 %v16130_v30, %v14690_v26 }
 0x5d2   :  { %9764 = vmatpush.bf16.msrb.mxu3 %v15137_v53  ;;  %v16094_v53 = vld [vmem:[#allocation15 + $0x284] sm:$0xf]  ;;  %v14425_v11 = vor.u32 %v16065_v56, %v14424_v12  ;;  %v16053_v26 = vld [vmem:[#allocation15 + $0x134] sm:$0xf0] }
 0x5d3   :  { %9840 = vmatpush.bf16.msrb.mxu1 %v14917_v31  ;;  %v16138_v31 = vld [vmem:[#allocation15 + $0x3e4] sm:$0xf]  ;;  %v14549_v58 = vor.u32 %v16094_v53, %v14546_v0  ;;  %v16017_v12 = vld [vmem:[#allocation15 + $0x14] sm:$0xf0]  ;;  %v14360_v53 = vld [vmem:[#allocation15 + $0x108] sm:$0xf] }
 0x5d4   :  { %v14725_v21 = vor.u32 %v16138_v31, %v14722_v61  ;;  %v14530_v31 = vld [vmem:[#allocation15 + $0x270] sm:$0xf0]  ;;  %v16122_v61 = vld [vmem:[#allocation15 + $0x364] sm:$0xf]  ;;  %v16049_v0 = vld [vmem:[#allocation15 + $0x114] sm:$0xf0] }
 0x5d5   :  { %9828 = vmatpush.bf16.msrb.mxu0 %v14773_v35  ;;  %9752 = vmatpush.bf16.msrb.mxu2 %v14993_v9  ;;  %v14706_v35 = vld [vmem:[#allocation15 + $0x3d0] sm:$0xf0]  ;;  %v16090_v9 = vld [vmem:[#allocation15 + $0x264] sm:$0xf] }
 0x5d6   :  { %9765 = vmatpush.bf16.msrb.mxu3 %v15121_v42  ;;  %v14709_v16 = vor.u32 %v16134_v8, %v14706_v35  ;;  %v14658_v42 = vld [vmem:[#allocation15 + $0x370] sm:$0xf0] }
 0x5d7   :  { %9841 = vmatpush.bf16.msrb.mxu1 %v14901_v34  ;;  %v17238_v34 = vpack.c.b16 %v8369_v18, %v8369_v18  ;;  %v14661_v55 = vor.u32 %v16122_v61, %v14658_v42  ;;  %v16234_v61 = vld [vmem:[#allocation15 + $0x6e4] sm:$0xf]  ;;  %v15106_v42 = vld [vmem:[#allocation15 + $0x6f0] sm:$0xf0] }
 0x5d9   :  { %9829 = vmatpush.bf16.msrb.mxu0 %v14757_v1  ;;  %9797 = vmatpush.bf16.msra.mxu2 %v14597_v46  ;;  %v14313_v1 = vor.u32 %v16037_v59, %v14312_v38  ;;  %v14264_v46 = vld [vmem:[#allocation15 + $0x48] sm:$0xf]  ;;  %v8251_v8 = vpop.f32.mrf.mxu3 }
 0x5da   :  { %9810 = vmatpush.bf16.msra.mxu3 %v14725_v21  ;;  %9753 = vmatmul.bf16.vlgmr.msrb.gmra.mxu2 %v17238_v34  ;;  %v16057_v21 = vld [vmem:[#allocation15 + $0x154] sm:$0xf0]  ;;  %v14265_v38 = vor.u32 %v16025_v49, %v14264_v46  ;;  %v15234_v46 = vld [vmem:[#allocation15 + $0x7f0] sm:$0xf0] }
 0x5db   :  { %9842 = vmatpush.bf16.msrb.mxu1 %v14885_v43  ;;  %9766 = vmatmul.bf16.vlgmr.msrb.gmra.mxu3 %v17240_v39  ;;  %v14296_v43 = vld [vmem:[#allocation15 + $0x88] sm:$0xf]  ;;  %v8238_v28 = vpop.f32.mrf.mxu2  ;;  %v14393_v22 = vor.u32 %v16057_v21, %v14392_v50 }
 0x5dc   :  { %v14297_v32 = vor.u32 %v16033_v27, %v14296_v43  ;;  %v8239_v17 = vadd.f32 %v8238_v28, %v17234_v63  ;;  %v16082_v63 = vld [vmem:[#allocation15 + $0x224] sm:$0xf]  ;;  %v14249_v43 = vor.u32 %v16021_v3, %v14248_v33  ;;  %v14232_v27 = vld [vmem:[#allocation15 + $0x8] sm:$0xf]  ;;  %v15109_v28 = vor.u32 %v16234_v61, %v15106_v42  ;;  %v16165_v3 = vld [vmem:[#allocation15 + $0x4b4] sm:$0xf0] }
 0x5dd   :  { %9830 = vmatpush.bf16.msrb.mxu0 %v14741_v4  ;;  %9798 = vmatpush.bf16.msra.mxu2 %v14581_v47  ;;  %v17246_v44 = vpop.f32.mrf.mxu0  ;;  %v14280_v4 = vld [vmem:[#allocation15 + $0x68] sm:$0xf]  ;;  %v16157_v61 = vld [vmem:[#allocation15 + $0x474] sm:$0xf0] }
 0x5de   :  { %9811 = vmatpush.bf16.msra.mxu3 %v14709_v16  ;;  %v17251_v59 = vadd.f32 %v8251_v8, %v8239_v17  ;;  %v14517_v16 = vor.u32 %v16086_v45, %v14514_v52  ;;  %v14840_v21 = vld [vmem:[#allocation15 + $0x4c8] sm:$0xf]  ;;  %v16169_v45 = vld [vmem:[#allocation15 + $0x4d4] sm:$0xf0] }
 0x5df   :  { %9843 = vmatpush.bf16.msrb.mxu1 %v14869_v60  ;;  %v17248_v57 = vpop.f32.mrf.mxu1  ;;  %v16061_v60 = vld [vmem:[#allocation15 + $0x174] sm:$0xf0]  ;;  %v14968_v52 = vld [vmem:[#allocation15 + $0x5c8] sm:$0xf] }
 0x5e0   :  { %9831 = vmatmul.bf16.vlgmr.msrb.gmra.mxu0 %v17203_v20  ;;  %v14409_v18 = vor.u32 %v16061_v60, %v14408_v40  ;;  %v14856_v40 = vld [vmem:[#allocation15 + $0x4e8] sm:$0xf]  ;;  %v16201_v8 = vld [vmem:[#allocation15 + $0x5d4] sm:$0xf0] }
 0x5e1   :  { %9875 = vmatpush.bf16.msra.mxu0 %v14345_v15  ;;  %9799 = vmatpush.bf16.msra.mxu2 %v14565_v2  ;;  %v14281_v15 = vor.u32 %v16029_v54, %v14280_v4  ;;  %v14626_v2 = vld [vmem:[#allocation15 + $0x330] sm:$0xf0]  ;;  %v8253_v54 = vpop.f32.mrf.mxu3  ;;  %v14984_v60 = vld [vmem:[#allocation15 + $0x5e8] sm:$0xf] }
 0x5e2   :  { %9844 = vmatmul.bf16.vlgmr.msrb.gmra.mxu1 %v17205_v10  ;;  %9812 = vmatpush.bf16.msra.mxu3 %v14693_v6  ;;  %v14377_v6 = vor.u32 %v16053_v26, %v14376_v5  ;;  %v14610_v4 = vld [vmem:[#allocation15 + $0x310] sm:$0xf0]  ;;  %v14824_v33 = vld [vmem:[#allocation15 + $0x4a8] sm:$0xf]  ;;  %v16197_v26 = vld [vmem:[#allocation15 + $0x5b4] sm:$0xf0] }
 0x5e3   :  { %9888 = vmatpush.bf16.msra.mxu1 %v14473_v19  ;;  %v14533_v19 = vor.u32 %v16090_v9, %v14530_v31  ;;  %v14233_v9 = vor.u32 %v16017_v12, %v14232_v27  ;;  %v16205_v31 = vld [vmem:[#allocation15 + $0x5f4] sm:$0xf0]  ;;  %v14952_v5 = vld [vmem:[#allocation15 + $0x5a8] sm:$0xf] }
 0x5e4   :  { %v14953_v27 = vor.u32 %v16197_v26, %v14952_v5  ;;  %v14920_v42 = vld [vmem:[#allocation15 + $0x568] sm:$0xf] }
 0x5e5   :  { %9876 = vmatpush.bf16.msra.mxu0 %v14329_v24  ;;  %9800 = vmatpush.bf16.msra.mxu2 %v14549_v58  ;;  %v8318_v35 = vpop.f32.mrf.mxu0  ;;  %v16118_v24 = vld [vmem:[#allocation15 + $0x344] sm:$0xf] }
 0x5e6   :  { %9813 = vmatpush.bf16.msra.mxu3 %v14677_v37  ;;  %v16110_v58 = vld [vmem:[#allocation15 + $0x304] sm:$0xf]  ;;  %v16173_v37 = vld [vmem:[#allocation15 + $0x4f4] sm:$0xf0] }
 0x5e7   :  { %9889 = vmatpush.bf16.msra.mxu1 %v14457_v36  ;;  %v14642_v36 = vld [vmem:[#allocation15 + $0x350] sm:$0xf0]  ;;  %v8331_v47 = vpop.f32.mrf.mxu1  ;;  %v14613_v49 = vor.u32 %v16110_v58, %v14610_v4  ;;  %v14857_v50 = vor.u32 %v16173_v37, %v14856_v40  ;;  %v16230_v35 = vld [vmem:[#allocation15 + $0x6c4] sm:$0xf] }
 0x5e8   :  { %v14645_v30 = vor.u32 %v16118_v24, %v14642_v36  ;;  %v15090_v24 = vld [vmem:[#allocation15 + $0x6d0] sm:$0xf0]  ;;  %v16262_v36 = vld [vmem:[#allocation15 + $0x7c4] sm:$0xf] }
 0x5e9   :  { %9877 = vmatpush.bf16.msra.mxu0 %v14313_v1  ;;  %9801 = vmatpush.bf16.msra.mxu2 %v14533_v19  ;;  %v14498_v1 = vld [vmem:[#allocation15 + $0x230] sm:$0xf0]  ;;  %v16266_v19 = vld [vmem:[#allocation15 + $0x7e4] sm:$0xf] }
 0x5ea   :  { %9814 = vmatpush.bf16.msra.mxu3 %v14661_v55  ;;  %v14501_v56 = vor.u32 %v16082_v63, %v14498_v1  ;;  %v14985_v55 = vor.u32 %v16205_v31, %v14984_v60  ;;  %v15237_v17 = vor.u32 %v16266_v19, %v15234_v46  ;;  %v15218_v47 = vld [vmem:[#allocation15 + $0x7d0] sm:$0xf0]  ;;  %v16226_v63 = vld [vmem:[#allocation15 + $0x6a4] sm:$0xf]  ;;  %v14792_v31 = vld [vmem:[#allocation15 + $0x468] sm:$0xf] }
 0x5eb   :  { %9890 = vmatpush.bf16.msra.mxu1 %v14441_v41  ;;  %v16114_v41 = vld [vmem:[#allocation15 + $0x324] sm:$0xf]  ;;  %v15074_v1 = vld [vmem:[#allocation15 + $0x6b0] sm:$0xf0]  ;;  %v16189_v19 = vld [vmem:[#allocation15 + $0x574] sm:$0xf0] }
 0x5ec   :  { %v14629_v13 = vor.u32 %v16114_v41, %v14626_v2  ;;  %v16258_v41 = vld [vmem:[#allocation15 + $0x7a4] sm:$0xf]  ;;  %v15202_v2 = vld [vmem:[#allocation15 + $0x7b0] sm:$0xf0]  ;;  %v15077_v12 = vor.u32 %v16226_v63, %v15074_v1 }
 0x5ed   :  { %9878 = vmatpush.bf16.msra.mxu0 %v14297_v32  ;;  %9802 = vmatpush.bf16.msra.mxu2 %v14517_v16  ;;  %v8240_v32 = vpop.f32.mrf.mxu2  ;;  %v15093_v16 = vor.u32 %v16230_v35, %v15090_v24  ;;  %v16254_v58 = vld [vmem:[#allocation15 + $0x784] sm:$0xf]  ;;  %v15186_v4 = vld [vmem:[#allocation15 + $0x790] sm:$0xf0]  ;;  %v16185_v24 = vld [vmem:[#allocation15 + $0x554] sm:$0xf0] }
 0x5ee   :  { %9815 = vmatpush.bf16.msra.mxu3 %v14645_v30  ;;  %v15221_v30 = vor.u32 %v16262_v36, %v15218_v47  ;;  %v15058_v32 = vld [vmem:[#allocation15 + $0x690] sm:$0xf0]  ;;  %v16218_v46 = vld [vmem:[#allocation15 + $0x664] sm:$0xf] }
 0x5ef   :  { %9891 = vmatpush.bf16.msra.mxu1 %v14425_v11  ;;  %v14482_v11 = vld [vmem:[#allocation15 + $0x210] sm:$0xf0]  ;;  %v16214_v36 = vld [vmem:[#allocation15 + $0x644] sm:$0xf] }
 0x5f0   :  { %v15026_v47 = vld [vmem:[#allocation15 + $0x650] sm:$0xf0] }
 0x5f1   :  { %9879 = vmatpush.bf16.msra.mxu0 %v14281_v15  ;;  %9803 = vmatpush.bf16.msra.mxu2 %v14501_v56  ;;  %v14361_v15 = vor.u32 %v16049_v0, %v14360_v53  ;;  %v16161_v56 = vld [vmem:[#allocation15 + $0x494] sm:$0xf0]  ;;  %v14936_v53 = vld [vmem:[#allocation15 + $0x588] sm:$0xf]  ;;  %v15205_v0 = vor.u32 %v16258_v41, %v15202_v2  ;;  %v15029_v1 = vor.u32 %v16214_v36, %v15026_v47  ;;  %v14330_v36 = vld [vmem:[#allocation15 + $0xd8] sm:$0xf0] }
 0x5f2   :  { %9816 = vmatpush.bf16.msra.mxu3 %v14629_v13  ;;  %v16222_v13 = vld [vmem:[#allocation15 + $0x684] sm:$0xf]  ;;  %v14760_v41 = vld [vmem:[#allocation15 + $0x428] sm:$0xf]  ;;  %v16149_v2 = vld [vmem:[#allocation15 + $0x434] sm:$0xf0] }
 0x5f3   :  { %9892 = vmatpush.bf16.msra.mxu1 %v14409_v18  ;;  %v14485_v18 = vor.u32 %v16078_v7, %v14482_v11  ;;  %v16193_v7 = vld [vmem:[#allocation15 + $0x594] sm:$0xf0]  ;;  %v16071_v47 = vld [vmem:[#allocation15 + $0x1cc] sm:$0xf] }
 0x5f4   :  { %v14937_v60 = vor.u32 %v16193_v7, %v14936_v53  ;;  %v16242_v53 = vld [vmem:[#allocation15 + $0x724] sm:$0xf]  ;;  %v14761_v7 = vor.u32 %v16149_v2, %v14760_v41  ;;  %v14314_v41 = vld [vmem:[#allocation15 + $0xb8] sm:$0xf0]  ;;  %v16067_v2 = vld [vmem:[#allocation15 + $0x1ac] sm:$0xf] }
 0x5f5   :  { %9880 = vmatpush.bf16.msra.mxu0 %v14265_v38  ;;  %9804 = vmatpush.bf16.msra.mxu2 %v14485_v18  ;;  %v14841_v38 = vor.u32 %v16169_v45, %v14840_v21  ;;  %v15189_v18 = vor.u32 %v16254_v58, %v15186_v4  ;;  %v14776_v45 = vld [vmem:[#allocation15 + $0x448] sm:$0xf] }
 0x5f6   :  { %9817 = vmatpush.bf16.msra.mxu3 %v14613_v49  ;;  %v15042_v49 = vld [vmem:[#allocation15 + $0x670] sm:$0xf0]  ;;  %v14872_v4 = vld [vmem:[#allocation15 + $0x508] sm:$0xf] }
 0x5f7   :  { %9893 = vmatpush.bf16.msra.mxu1 %v14393_v22  ;;  %v14969_v22 = vor.u32 %v16201_v8, %v14968_v52  ;;  %v15045_v21 = vor.u32 %v16218_v46, %v15042_v49  ;;  %v16153_v52 = vld [vmem:[#allocation15 + $0x454] sm:$0xf0]  ;;  %v16075_v46 = vld [vmem:[#allocation15 + $0x1ec] sm:$0xf] }
 0x5f8   :  { %9805 = vmatmul.bf16.vlgmr.msra.gmra.mxu2 %v17221_v23 }
 0x5f9   :  { %9881 = vmatpush.bf16.msra.mxu0 %v14249_v43  ;;  %9849 = vmatpush.bf16.msrb.mxu2 %v15109_v28  ;;  %v14825_v43 = vor.u32 %v16165_v3, %v14824_v33  ;;  %v14921_v28 = vor.u32 %v16189_v19, %v14920_v42  ;;  %v16246_v33 = vld [vmem:[#allocation15 + $0x744] sm:$0xf]  ;;  %v15154_v3 = vld [vmem:[#allocation15 + $0x750] sm:$0xf0]  ;;  %v14346_v19 = vld [vmem:[#allocation15 + $0xf8] sm:$0xf0] }
 0x5fa   :  { %9862 = vmatpush.bf16.msrb.mxu3 %v15237_v17  ;;  %v14904_v17 = vld [vmem:[#allocation15 + $0x548] sm:$0xf] }
 0x5fb   :  { %9894 = vmatpush.bf16.msra.mxu1 %v14377_v6  ;;  %9818 = vmatmul.bf16.vlgmr.msra.gmra.mxu3 %v17223_v29  ;;  %v14808_v6 = vld [vmem:[#allocation15 + $0x488] sm:$0xf]  ;;  %v8290_v35 = vpop.f32.mrf.mxu2  ;;  %v14905_v63 = vor.u32 %v16185_v24, %v14904_v17  ;;  %v16039_v24 = vld [vmem:[#allocation15 + $0xcc] sm:$0xf] }
 0x5fc   :  { %v14809_v37 = vor.u32 %v16161_v56, %v14808_v6  ;;  %v16210_v6 = vld [vmem:[#allocation15 + $0x624] sm:$0xf] }
 0x5fd   :  { %9882 = vmatpush.bf16.msra.mxu0 %v14233_v9  ;;  %9850 = vmatpush.bf16.msrb.mxu2 %v15093_v16  ;;  %v9676_v11 = vpop.f32.mrf.mxu0  ;;  %v15061_v9 = vor.u32 %v16222_v13, %v15058_v32  ;;  %v14744_v13 = vld [vmem:[#allocation15 + $0x408] sm:$0xf]  ;;  %v16145_v32 = vld [vmem:[#allocation15 + $0x414] sm:$0xf0] }
 0x5fe   :  { %9863 = vmatpush.bf16.msrb.mxu3 %v15221_v30  ;;  %v9677_v54 = vadd.f32 %v9676_v11, %v17198_v62  ;;  %v14793_v62 = vor.u32 %v16157_v61, %v14792_v31  ;;  %v14777_v30 = vor.u32 %v16153_v52, %v14776_v45  ;;  %v16238_v31 = vld [vmem:[#allocation15 + $0x704] sm:$0xf]  ;;  %v15122_v61 = vld [vmem:[#allocation15 + $0x710] sm:$0xf0]  ;;  %v14745_v49 = vor.u32 %v16145_v32, %v14744_v13  ;;  %v16141_v45 = vld [vmem:[#allocation15 + $0x3f4] sm:$0xf0] }
 0x5ff   :  { %9895 = vmatpush.bf16.msra.mxu1 %v14361_v15  ;;  %v9689_v40 = vpop.f32.mrf.mxu1  ;;  %v15125_v52 = vor.u32 %v16238_v31, %v15122_v61  ;;  %v16031_v13 = vld [vmem:[#allocation15 + $0x8c] sm:$0xf]  ;;  %v14298_v32 = vld [vmem:[#allocation15 + $0x98] sm:$0xf0] }
 0x600   :  { %9883 = vmatmul.bf16.vlgmr.msra.gmra.mxu0 %v17187_v14  ;;  %v17258_v15 = vadd.f32 %v9689_v40, %v9677_v54  ;;  %v16177_v54 = vld [vmem:[#allocation15 + $0x514] sm:$0xf0]  ;;  %v16206_v40 = vld [vmem:[#allocation15 + $0x604] sm:$0xf]  ;;  %v14301_v61 = vor.u32 %v16031_v13, %v14298_v32  ;;  %v16015_v32 = vld [vmem:[#allocation15 + $0xc] sm:$0xf] }
 0x601   :  { %9927 = vmatpush.bf16.msrb.mxu0 %v14857_v50  ;;  %9851 = vmatpush.bf16.msrb.mxu2 %v15077_v12  ;;  %v16250_v50 = vld [vmem:[#allocation15 + $0x764] sm:$0xf]  ;;  %v16181_v12 = vld [vmem:[#allocation15 + $0x534] sm:$0xf0] }
 0x602   :  { %9896 = vmatmul.bf16.vlgmr.msra.gmra.mxu1 %v17189_v48  ;;  %9864 = vmatpush.bf16.msrb.mxu3 %v15205_v0  ;;  %v15138_v0 = vld [vmem:[#allocation15 + $0x730] sm:$0xf0] }
 0x603   :  { %9940 = vmatpush.bf16.msrb.mxu1 %v14985_v55  ;;  %v15170_v55 = vld [vmem:[#allocation15 + $0x770] sm:$0xf0] }
 0x604   :  { %v15173_v8 = vor.u32 %v16250_v50, %v15170_v55  ;;  %v14474_v50 = vld [vmem:[#allocation15 + $0x1f8] sm:$0xf0]  ;;  %v14600_v55 = vld [vmem:[#allocation15 + $0x2e8] sm:$0xf] }
 0x605   :  { %9928 = vmatpush.bf16.msrb.mxu0 %v14841_v38  ;;  %9852 = vmatpush.bf16.msrb.mxu2 %v15061_v9  ;;  %v8291_v38 = vadd.f32 %v8290_v35, %v17229_v51  ;;  %v9678_v16 = vpop.f32.mrf.mxu0  ;;  %v15010_v51 = vld [vmem:[#allocation15 + $0x630] sm:$0xf0]  ;;  %v8292_v9 = vpop.f32.mrf.mxu2 }
 0x606   :  { %9865 = vmatpush.bf16.msrb.mxu3 %v15189_v18  ;;  %v15013_v58 = vor.u32 %v16210_v6, %v15010_v51  ;;  %v16043_v18 = vld [vmem:[#allocation15 + $0xec] sm:$0xf]  ;;  %v14584_v16 = vld [vmem:[#allocation15 + $0x2c8] sm:$0xf]  ;;  %v16101_v6 = vld [vmem:[#allocation15 + $0x2b4] sm:$0xf0] }
 0x607   :  { %9941 = vmatpush.bf16.msrb.mxu1 %v14969_v22  ;;  %v8303_v22 = vpop.f32.mrf.mxu3  ;;  %v9691_v5 = vpop.f32.mrf.mxu1  ;;  %v14349_v17 = vor.u32 %v16043_v18, %v14346_v19  ;;  %v14696_v51 = vld [vmem:[#allocation15 + $0x3a8] sm:$0xf]  ;;  %v16027_v19 = vld [vmem:[#allocation15 + $0x6c] sm:$0xf] }
 0x608   :  { %v8304_v26 = vadd.f32 %v8303_v22, %v8291_v38  ;;  %v14458_v22 = vld [vmem:[#allocation15 + $0x1d8] sm:$0xf0]  ;;  %v16137_v5 = vld [vmem:[#allocation15 + $0x3d4] sm:$0xf0]  ;;  %v14680_v9 = vld [vmem:[#allocation15 + $0x388] sm:$0xf] }
 0x609   :  { %9929 = vmatpush.bf16.msrb.mxu0 %v14825_v43  ;;  %9853 = vmatpush.bf16.msrb.mxu2 %v15045_v21  ;;  %v14888_v43 = vld [vmem:[#allocation15 + $0x528] sm:$0xf] }
 0x60a   :  { %9866 = vmatpush.bf16.msrb.mxu3 %v15173_v8  ;;  %v8317_v56 = vadd.f32 %v17246_v44, %v8304_v26  ;;  %v14889_v11 = vor.u32 %v16181_v12, %v14888_v43  ;;  %v14994_v44 = vld [vmem:[#allocation15 + $0x610] sm:$0xf0]  ;;  %v14728_v21 = vld [vmem:[#allocation15 + $0x3e8] sm:$0xf]  ;;  %v14477_v8 = vor.u32 %v16075_v46, %v14474_v50  ;;  %v14461_v26 = vor.u32 %v16071_v47, %v14458_v22  ;;  %v14282_v46 = vld [vmem:[#allocation15 + $0x78] sm:$0xf0] }
 0x60b   :  { %9942 = vmatpush.bf16.msrb.mxu1 %v14953_v27  ;;  %v15157_v27 = vor.u32 %v16246_v33, %v15154_v3  ;;  %v14729_v38 = vor.u32 %v16141_v45, %v14728_v21  ;;  %v16105_v33 = vld [vmem:[#allocation15 + $0x2d4] sm:$0xf0]  ;;  %v14712_v3 = vld [vmem:[#allocation15 + $0x3c8] sm:$0xf]  ;;  %v14285_v45 = vor.u32 %v16027_v19, %v14282_v46 }
 0x60c   :  { %v14713_v43 = vor.u32 %v16137_v5, %v14712_v3  ;;  %v14568_v12 = vld [vmem:[#allocation15 + $0x2a8] sm:$0xf]  ;;  %v16125_v21 = vld [vmem:[#allocation15 + $0x374] sm:$0xf0] }
 0x60d   :  { %9930 = vmatpush.bf16.msrb.mxu0 %v14809_v37  ;;  %9854 = vmatpush.bf16.msrb.mxu2 %v15029_v1  ;;  %v17263_v37 = vadd.f32 %v17248_v57, %v8317_v56  ;;  %v14997_v57 = vor.u32 %v16206_v40, %v14994_v44  ;;  %v16035_v1 = vld [vmem:[#allocation15 + $0xac] sm:$0xf]  ;;  %v16133_v56 = vld [vmem:[#allocation15 + $0x3b4] sm:$0xf0]  ;;  %v14520_v22 = vld [vmem:[#allocation15 + $0x248] sm:$0xf] }
 0x60e   :  { %9867 = vmatpush.bf16.msrb.mxu3 %v15157_v27  ;;  %v14442_v27 = vld [vmem:[#allocation15 + $0x1b8] sm:$0xf0]  ;;  %v16097_v40 = vld [vmem:[#allocation15 + $0x294] sm:$0xf0] }
 0x60f   :  { %9943 = vmatpush.bf16.msrb.mxu1 %v14937_v60  ;;  %v15141_v60 = vor.u32 %v16242_v53, %v15138_v0  ;;  %v8305_v42 = vpop.f32.mrf.mxu3  ;;  %v14317_v53 = vor.u32 %v16035_v1, %v14314_v41  ;;  %v14445_v0 = vor.u32 %v16067_v2, %v14442_v27  ;;  %v16129_v44 = vld [vmem:[#allocation15 + $0x394] sm:$0xf0]  ;;  %v16019_v27 = vld [vmem:[#allocation15 + $0x2c] sm:$0xf] }
 0x610   :  { %v14681_v50 = vor.u32 %v16129_v44, %v14680_v9  ;;  %v14488_v9 = vld [vmem:[#allocation15 + $0x208] sm:$0xf]  ;;  %v16113_v19 = vld [vmem:[#allocation15 + $0x314] sm:$0xf0] }
 0x611   :  { %9931 = vmatpush.bf16.msrb.mxu0 %v14793_v62  ;;  %v16109_v62 = vld [vmem:[#allocation15 + $0x2f4] sm:$0xf0]  ;;  %9855 = vmatpush.bf16.msrb.mxu2 %v15013_v58  ;;  %v14697_v58 = vor.u32 %v16133_v56, %v14696_v51  ;;  %v14378_v56 = vld [vmem:[#allocation15 + $0x138] sm:$0xf0] }
 0x612   :  { %9868 = vmatpush.bf16.msrb.mxu3 %v15141_v60  ;;  %v14601_v35 = vor.u32 %v16109_v62, %v14600_v55  ;;  %v14410_v55 = vld [vmem:[#allocation15 + $0x178] sm:$0xf0]  ;;  %v14536_v62 = vld [vmem:[#allocation15 + $0x268] sm:$0xf] }
 0x613   :  { %9944 = vmatpush.bf16.msrb.mxu1 %v14921_v28  ;;  %v14873_v28 = vor.u32 %v16177_v54, %v14872_v4  ;;  %v14426_v4 = vld [vmem:[#allocation15 + $0x198] sm:$0xf0]  ;;  %v14552_v54 = vld [vmem:[#allocation15 + $0x288] sm:$0xf] }
 0x614   :  { %v14553_v18 = vor.u32 %v16097_v40, %v14552_v54  ;;  %v16047_v54 = vld [vmem:[#allocation15 + $0x10c] sm:$0xf]  ;;  %v14362_v40 = vld [vmem:[#allocation15 + $0x118] sm:$0xf0] }
 0x615   :  { %9932 = vmatpush.bf16.msrb.mxu0 %v14777_v30  ;;  %9856 = vmatpush.bf16.msrb.mxu2 %v14997_v57  ;;  %v14333_v30 = vor.u32 %v16039_v24, %v14330_v36  ;;  %v14664_v57 = vld [vmem:[#allocation15 + $0x368] sm:$0xf]  ;;  %v16055_v24 = vld [vmem:[#allocation15 + $0x14c] sm:$0xf] }
 0x616   :  { %9869 = vmatpush.bf16.msrb.mxu3 %v15125_v52  ;;  %v14665_v36 = vor.u32 %v16125_v21, %v14664_v57  ;;  %v15112_v57 = vld [vmem:[#allocation15 + $0x6e8] sm:$0xf]  ;;  %v16237_v21 = vld [vmem:[#allocation15 + $0x6f4] sm:$0xf0] }
 0x617   :  { %9945 = vmatpush.bf16.msrb.mxu1 %v14905_v63  ;;  %v14585_v63 = vor.u32 %v16105_v33, %v14584_v16  ;;  %v16089_v16 = vld [vmem:[#allocation15 + $0x254] sm:$0xf0] }
 0x618   :  { %9857 = vmatmul.bf16.vlgmr.msrb.gmra.mxu2 %v17238_v34 }
 0x619   :  { %9933 = vmatpush.bf16.msrb.mxu0 %v14761_v7  ;;  %9901 = vmatpush.bf16.msra.mxu2 %v14601_v35  ;;  %v14569_v7 = vor.u32 %v16101_v6, %v14568_v12  ;;  %v14266_v35 = vld [vmem:[#allocation15 + $0x58] sm:$0xf0]  ;;  %v16051_v6 = vld [vmem:[#allocation15 + $0x12c] sm:$0xf] }
 0x61a   :  { %9914 = vmatpush.bf16.msra.mxu3 %v14729_v38  ;;  %v14394_v38 = vld [vmem:[#allocation15 + $0x158] sm:$0xf0] }
 0x61b   :  { %9946 = vmatpush.bf16.msrb.mxu1 %v14889_v11  ;;  %9870 = vmatmul.bf16.vlgmr.msrb.gmra.mxu3 %v17240_v39  ;;  %v16063_v11 = vld [vmem:[#allocation15 + $0x18c] sm:$0xf]  ;;  %v8342_v47 = vpop.f32.mrf.mxu2  ;;  %v14397_v2 = vor.u32 %v16055_v24, %v14394_v38  ;;  %v14250_v12 = vld [vmem:[#allocation15 + $0x38] sm:$0xf0] }
 0x61c   :  { %v14429_v42 = vor.u32 %v16063_v11, %v14426_v4  ;;  %v8343_v33 = vadd.f32 %v8342_v47, %v17263_v37  ;;  %v14504_v37 = vld [vmem:[#allocation15 + $0x228] sm:$0xf]  ;;  %v14253_v13 = vor.u32 %v16019_v27, %v14250_v12  ;;  %v14234_v11 = vld [vmem:[#allocation15 + $0x18] sm:$0xf0]  ;;  %v15113_v47 = vor.u32 %v16237_v21, %v15112_v57  ;;  %v16167_v38 = vld [vmem:[#allocation15 + $0x4cc] sm:$0xf] }
 0x61d   :  { %9934 = vmatpush.bf16.msrb.mxu0 %v14745_v49  ;;  %9902 = vmatpush.bf16.msra.mxu2 %v14585_v63  ;;  %v17269_v60 = vpop.f32.mrf.mxu0  ;;  %v16059_v49 = vld [vmem:[#allocation15 + $0x16c] sm:$0xf]  ;;  %v14826_v12 = vld [vmem:[#allocation15 + $0x4b8] sm:$0xf0] }
 0x61e   :  { %9915 = vmatpush.bf16.msra.mxu3 %v14713_v43  ;;  %v14413_v52 = vor.u32 %v16059_v49, %v14410_v55  ;;  %v8355_v3 = vpop.f32.mrf.mxu3  ;;  %v14521_v43 = vor.u32 %v16089_v16, %v14520_v22  ;;  %v16171_v49 = vld [vmem:[#allocation15 + $0x4ec] sm:$0xf]  ;;  %v14842_v22 = vld [vmem:[#allocation15 + $0x4d8] sm:$0xf0] }
 0x61f   :  { %9947 = vmatpush.bf16.msrb.mxu1 %v14873_v28  ;;  %v17271_v31 = vpop.f32.mrf.mxu1  ;;  %v16093_v28 = vld [vmem:[#allocation15 + $0x274] sm:$0xf0]  ;;  %v17274_v41 = vadd.f32 %v8355_v3, %v8343_v33  ;;  %v16203_v55 = vld [vmem:[#allocation15 + $0x5ec] sm:$0xf]  ;;  %v14970_v3 = vld [vmem:[#allocation15 + $0x5d8] sm:$0xf0] }
 0x620   :  { %9935 = vmatmul.bf16.vlgmr.msrb.gmra.mxu0 %v17203_v20  ;;  %v16199_v16 = vld [vmem:[#allocation15 + $0x5cc] sm:$0xf] }
 0x621   :  { %9979 = vmatpush.bf16.msra.mxu0 %v14349_v17  ;;  %9903 = vmatpush.bf16.msra.mxu2 %v14569_v7  ;;  %v14537_v17 = vor.u32 %v16093_v28, %v14536_v62  ;;  %v16117_v7 = vld [vmem:[#allocation15 + $0x334] sm:$0xf0]  ;;  %v14237_v62 = vor.u32 %v16015_v32, %v14234_v11  ;;  %v14986_v28 = vld [vmem:[#allocation15 + $0x5f8] sm:$0xf0]  ;;  %v16163_v27 = vld [vmem:[#allocation15 + $0x4ac] sm:$0xf] }
 0x622   :  { %9948 = vmatmul.bf16.vlgmr.msrb.gmra.mxu1 %v17205_v10  ;;  %9916 = vmatpush.bf16.msra.mxu3 %v14697_v58  ;;  %v14381_v58 = vor.u32 %v16051_v6, %v14378_v56  ;;  %v16195_v6 = vld [vmem:[#allocation15 + $0x5ac] sm:$0xf]  ;;  %v14954_v56 = vld [vmem:[#allocation15 + $0x5b8] sm:$0xf0] }
 0x623   :  { %9992 = vmatpush.bf16.msra.mxu1 %v14477_v8  ;;  %v16023_v8 = vld [vmem:[#allocation15 + $0x4c] sm:$0xf]  ;;  %v14957_v32 = vor.u32 %v16195_v6, %v14954_v56 }
 0x624   :  { %v14269_v1 = vor.u32 %v16023_v8, %v14266_v35  ;;  %v16269_v8 = vld [vmem:[#allocation15 + $0x7f4] sm:$0xf0] }
 0x625   :  { %9980 = vmatpush.bf16.msra.mxu0 %v14333_v30  ;;  %9904 = vmatpush.bf16.msra.mxu2 %v14553_v18  ;;  %v9730_v5 = vpop.f32.mrf.mxu0  ;;  %v14648_v30 = vld [vmem:[#allocation15 + $0x348] sm:$0xf] }
 0x626   :  { %9917 = vmatpush.bf16.msra.mxu3 %v14681_v50  ;;  %v14616_v18 = vld [vmem:[#allocation15 + $0x308] sm:$0xf]  ;;  %v8357_v46 = vpop.f32.mrf.mxu3  ;;  %v14858_v50 = vld [vmem:[#allocation15 + $0x4f8] sm:$0xf0] }
 0x627   :  { %9993 = vmatpush.bf16.msra.mxu1 %v14461_v26  ;;  %v16121_v26 = vld [vmem:[#allocation15 + $0x354] sm:$0xf0]  ;;  %v9743_v63 = vpop.f32.mrf.mxu1  ;;  %v14617_v35 = vor.u32 %v16113_v19, %v14616_v18  ;;  %v14861_v24 = vor.u32 %v16171_v49, %v14858_v50  ;;  %v15096_v5 = vld [vmem:[#allocation15 + $0x6c8] sm:$0xf] }
 0x628   :  { %v14649_v51 = vor.u32 %v16121_v26, %v14648_v30  ;;  %v16233_v30 = vld [vmem:[#allocation15 + $0x6d4] sm:$0xf0]  ;;  %v15224_v26 = vld [vmem:[#allocation15 + $0x7c8] sm:$0xf] }
 0x629   :  { %9981 = vmatpush.bf16.msra.mxu0 %v14317_v53  ;;  %9905 = vmatpush.bf16.msra.mxu2 %v14537_v17  ;;  %v16085_v53 = vld [vmem:[#allocation15 + $0x234] sm:$0xf0]  ;;  %v15240_v17 = vld [vmem:[#allocation15 + $0x7e8] sm:$0xf] }
 0x62a   :  { %9918 = vmatpush.bf16.msra.mxu3 %v14665_v36  ;;  %v14505_v4 = vor.u32 %v16085_v53, %v14504_v37  ;;  %v14989_v36 = vor.u32 %v16203_v55, %v14986_v28  ;;  %v15241_v33 = vor.u32 %v16269_v8, %v15240_v17  ;;  %v16265_v63 = vld [vmem:[#allocation15 + $0x7d4] sm:$0xf0]  ;;  %v15080_v37 = vld [vmem:[#allocation15 + $0x6a8] sm:$0xf]  ;;  %v16155_v55 = vld [vmem:[#allocation15 + $0x46c] sm:$0xf] }
 0x62b   :  { %9994 = vmatpush.bf16.msra.mxu1 %v14445_v0  ;;  %v14632_v0 = vld [vmem:[#allocation15 + $0x328] sm:$0xf]  ;;  %v16229_v53 = vld [vmem:[#allocation15 + $0x6b4] sm:$0xf0]  ;;  %v16187_v28 = vld [vmem:[#allocation15 + $0x56c] sm:$0xf] }
 0x62c   :  { %v14633_v44 = vor.u32 %v16117_v7, %v14632_v0  ;;  %v15208_v0 = vld [vmem:[#allocation15 + $0x7a8] sm:$0xf]  ;;  %v16261_v7 = vld [vmem:[#allocation15 + $0x7b4] sm:$0xf0]  ;;  %v15081_v11 = vor.u32 %v16229_v53, %v15080_v37  ;;  %v16147_v37 = vld [vmem:[#allocation15 + $0x42c] sm:$0xf] }
 0x62d   :  { %9982 = vmatpush.bf16.msra.mxu0 %v14301_v61  ;;  %9906 = vmatpush.bf16.msra.mxu2 %v14521_v43  ;;  %v8344_v61 = vpop.f32.mrf.mxu2  ;;  %v15097_v43 = vor.u32 %v16233_v30, %v15096_v5  ;;  %v16221_v17 = vld [vmem:[#allocation15 + $0x674] sm:$0xf0]  ;;  %v15176_v8 = vld [vmem:[#allocation15 + $0x768] sm:$0xf]  ;;  %v14762_v53 = vld [vmem:[#allocation15 + $0x438] sm:$0xf0] }
 0x62e   :  { %9919 = vmatpush.bf16.msra.mxu3 %v14649_v51  ;;  %v15225_v51 = vor.u32 %v16265_v63, %v15224_v26  ;;  %v15192_v61 = vld [vmem:[#allocation15 + $0x788] sm:$0xf]  ;;  %v16217_v30 = vld [vmem:[#allocation15 + $0x654] sm:$0xf0] }
 0x62f   :  { %9995 = vmatpush.bf16.msra.mxu1 %v14429_v42  ;;  %v16081_v42 = vld [vmem:[#allocation15 + $0x214] sm:$0xf0]  ;;  %v15032_v5 = vld [vmem:[#allocation15 + $0x648] sm:$0xf] }
 0x630   :  { %v15033_v56 = vor.u32 %v16217_v30, %v15032_v5  ;;  %v16131_v5 = vld [vmem:[#allocation15 + $0x3ac] sm:$0xf]  ;;  %v14698_v30 = vld [vmem:[#allocation15 + $0x3b8] sm:$0xf0] }
 0x631   :  { %9983 = vmatpush.bf16.msra.mxu0 %v14285_v45  ;;  %9907 = vmatpush.bf16.msra.mxu2 %v14505_v4  ;;  %v14365_v45 = vor.u32 %v16047_v54, %v14362_v40  ;;  %v16191_v4 = vld [vmem:[#allocation15 + $0x58c] sm:$0xf]  ;;  %v15209_v54 = vor.u32 %v16261_v7, %v15208_v0  ;;  %v14938_v40 = vld [vmem:[#allocation15 + $0x598] sm:$0xf0] }
 0x632   :  { %9920 = vmatpush.bf16.msra.mxu3 %v14633_v44  ;;  %v14941_v49 = vor.u32 %v16191_v4, %v14938_v40  ;;  %v16179_v0 = vld [vmem:[#allocation15 + $0x52c] sm:$0xf]  ;;  %v14765_v4 = vor.u32 %v16147_v37, %v14762_v53  ;;  %v14666_v53 = vld [vmem:[#allocation15 + $0x378] sm:$0xf0] }
 0x633   :  { %9996 = vmatpush.bf16.msra.mxu1 %v14413_v52  ;;  %v14489_v52 = vor.u32 %v16081_v42, %v14488_v9  ;;  %v15064_v9 = vld [vmem:[#allocation15 + $0x688] sm:$0xf]  ;;  %v16257_v42 = vld [vmem:[#allocation15 + $0x794] sm:$0xf0]  ;;  %v16123_v37 = vld [vmem:[#allocation15 + $0x36c] sm:$0xf] }
 0x634   :  { %v15193_v21 = vor.u32 %v16257_v42, %v15192_v61  ;;  %v14874_v61 = vld [vmem:[#allocation15 + $0x518] sm:$0xf0] }
 0x635   :  { %9984 = vmatpush.bf16.msra.mxu0 %v14269_v1  ;;  %9908 = vmatpush.bf16.msra.mxu2 %v14489_v52  ;;  %v14845_v1 = vor.u32 %v16167_v38, %v14842_v22  ;;  %v15048_v52 = vld [vmem:[#allocation15 + $0x668] sm:$0xf]  ;;  %v14778_v38 = vld [vmem:[#allocation15 + $0x458] sm:$0xf0]  ;;  %v16183_v22 = vld [vmem:[#allocation15 + $0x54c] sm:$0xf] }
 0x636   :  { %9921 = vmatpush.bf16.msra.mxu3 %v14617_v35  ;;  %v16253_v35 = vld [vmem:[#allocation15 + $0x774] sm:$0xf0] }
 0x637   :  { %9997 = vmatpush.bf16.msra.mxu1 %v14397_v2  ;;  %v14973_v2 = vor.u32 %v16199_v16, %v14970_v3  ;;  %v15177_v16 = vor.u32 %v16253_v35, %v15176_v8  ;;  %v14906_v3 = vld [vmem:[#allocation15 + $0x558] sm:$0xf0] }
 0x638   :  { %9909 = vmatmul.bf16.vlgmr.msra.gmra.mxu2 %v17221_v23 }
 0x639   :  { %9985 = vmatpush.bf16.msra.mxu0 %v14253_v13  ;;  %9953 = vmatpush.bf16.msrb.mxu2 %v15113_v47  ;;  %v14829_v13 = vor.u32 %v16163_v27, %v14826_v12  ;;  %v16151_v47 = vld [vmem:[#allocation15 + $0x44c] sm:$0xf] }
 0x63a   :  { %9966 = vmatpush.bf16.msrb.mxu3 %v15241_v33  ;;  %v14781_v12 = vor.u32 %v16151_v47, %v14778_v38  ;;  %v16135_v47 = vld [vmem:[#allocation15 + $0x3cc] sm:$0xf]  ;;  %v14714_v38 = vld [vmem:[#allocation15 + $0x3d8] sm:$0xf0] }
 0x63b   :  { %9998 = vmatpush.bf16.msra.mxu1 %v14381_v58  ;;  %9922 = vmatmul.bf16.vlgmr.msra.gmra.mxu3 %v17223_v29  ;;  %v16159_v58 = vld [vmem:[#allocation15 + $0x48c] sm:$0xf]  ;;  %v9702_v33 = vpop.f32.mrf.mxu2 }
 0x63c   :  { %v9703_v26 = vadd.f32 %v9702_v33, %v17258_v15  ;;  %v16213_v15 = vld [vmem:[#allocation15 + $0x634] sm:$0xf0]  ;;  %v16099_v33 = vld [vmem:[#allocation15 + $0x2ac] sm:$0xf] }
 0x63d   :  { %9986 = vmatpush.bf16.msra.mxu0 %v14237_v62  ;;  %9954 = vmatpush.bf16.msrb.mxu2 %v15097_v43  ;;  %v9780_v44 = vpop.f32.mrf.mxu0  ;;  %v14794_v62 = vld [vmem:[#allocation15 + $0x478] sm:$0xf0]  ;;  %v16249_v43 = vld [vmem:[#allocation15 + $0x754] sm:$0xf0] }
 0x63e   :  { %9967 = vmatpush.bf16.msrb.mxu3 %v15225_v51  ;;  %v9781_v18 = vadd.f32 %v9780_v44, %v17217_v25  ;;  %v14797_v25 = vor.u32 %v16155_v55, %v14794_v62  ;;  %v9715_v63 = vpop.f32.mrf.mxu3  ;;  %v14909_v51 = vor.u32 %v16183_v22, %v14906_v3  ;;  %v16175_v44 = vld [vmem:[#allocation15 + $0x50c] sm:$0xf]  ;;  %v16241_v55 = vld [vmem:[#allocation15 + $0x714] sm:$0xf0]  ;;  %v14570_v3 = vld [vmem:[#allocation15 + $0x2b8] sm:$0xf0] }
 0x63f   :  { %9999 = vmatpush.bf16.msra.mxu1 %v14365_v45  ;;  %v9793_v19 = vpop.f32.mrf.mxu1  ;;  %v14922_v45 = vld [vmem:[#allocation15 + $0x578] sm:$0xf0]  ;;  %v9716_v6 = vadd.f32 %v9715_v63, %v9703_v26  ;;  %v16107_v62 = vld [vmem:[#allocation15 + $0x2ec] sm:$0xf]  ;;  %v14573_v26 = vor.u32 %v16099_v33, %v14570_v3  ;;  %v14701_v63 = vor.u32 %v16131_v5, %v14698_v30 }
 0x640   :  { %9987 = vmatmul.bf16.vlgmr.msra.gmra.mxu0 %v17187_v14  ;;  %v14810_v14 = vld [vmem:[#allocation15 + $0x498] sm:$0xf0]  ;;  %v17281_v57 = vadd.f32 %v9793_v19, %v9781_v18  ;;  %v16263_v3 = vld [vmem:[#allocation15 + $0x7cc] sm:$0xf] }
 0x641   :  { %10031 = vmatpush.bf16.msrb.mxu0 %v14861_v24  ;;  %v14813_v46 = vor.u32 %v16159_v58, %v14810_v14  ;;  %9955 = vmatpush.bf16.msrb.mxu2 %v15081_v11  ;;  %v14925_v24 = vor.u32 %v16187_v28, %v14922_v45  ;;  %v9729_v11 = vadd.f32 %v17269_v60, %v9716_v6  ;;  %v15144_v58 = vld [vmem:[#allocation15 + $0x728] sm:$0xf]  ;;  %v16245_v14 = vld [vmem:[#allocation15 + $0x734] sm:$0xf0]  ;;  %v14602_v28 = vld [vmem:[#allocation15 + $0x2f8] sm:$0xf0] }
 0x642   :  { %10000 = vmatmul.bf16.vlgmr.msra.gmra.mxu1 %v17189_v48  ;;  %v16225_v48 = vld [vmem:[#allocation15 + $0x694] sm:$0xf0]  ;;  %9968 = vmatpush.bf16.msrb.mxu3 %v15209_v54  ;;  %v16143_v54 = vld [vmem:[#allocation15 + $0x40c] sm:$0xf]  ;;  %v15145_v18 = vor.u32 %v16245_v14, %v15144_v58  ;;  %v14605_v35 = vor.u32 %v16107_v62, %v14602_v28  ;;  %v14650_v14 = vld [vmem:[#allocation15 + $0x358] sm:$0xf0] }
 0x643   :  { %10044 = vmatpush.bf16.msrb.mxu1 %v14989_v36  ;;  %v15065_v50 = vor.u32 %v16225_v48, %v15064_v9  ;;  %v15049_v36 = vor.u32 %v16221_v17, %v15048_v52  ;;  %v14746_v48 = vld [vmem:[#allocation15 + $0x418] sm:$0xf0]  ;;  %v17286_v42 = vadd.f32 %v17271_v31, %v9729_v11  ;;  %v9704_v19 = vpop.f32.mrf.mxu2  ;;  %v16209_v60 = vld [vmem:[#allocation15 + $0x614] sm:$0xf0]  ;;  %v16139_v45 = vld [vmem:[#allocation15 + $0x3ec] sm:$0xf]  ;;  %v14877_v17 = vor.u32 %v16175_v44, %v14874_v61 }
 0x644   :  { %v14730_v52 = vld [vmem:[#allocation15 + $0x3f8] sm:$0xf0]  ;;  %v16119_v58 = vld [vmem:[#allocation15 + $0x34c] sm:$0xf] }
 0x645   :  { %10032 = vmatpush.bf16.msrb.mxu0 %v14845_v1  ;;  %9956 = vmatpush.bf16.msrb.mxu2 %v15065_v50  ;;  %v9782_v1 = vpop.f32.mrf.mxu0  ;;  %v16083_v19 = vld [vmem:[#allocation15 + $0x22c] sm:$0xf]  ;;  %v15098_v33 = vld [vmem:[#allocation15 + $0x6d8] sm:$0xf0] }
 0x646   :  { %9969 = vmatpush.bf16.msrb.mxu3 %v15193_v21  ;;  %v9717_v50 = vpop.f32.mrf.mxu3  ;;  %v14749_v21 = vor.u32 %v16143_v54, %v14746_v48  ;;  %v16095_v1 = vld [vmem:[#allocation15 + $0x28c] sm:$0xf]  ;;  %v15226_v5 = vld [vmem:[#allocation15 + $0x7d8] sm:$0xf0] }
 0x647   :  { %10045 = vmatpush.bf16.msrb.mxu1 %v14973_v2  ;;  %v15160_v2 = vld [vmem:[#allocation15 + $0x748] sm:$0xf]  ;;  %v9795_v27 = vpop.f32.mrf.mxu1  ;;  %v16079_v62 = vld [vmem:[#allocation15 + $0x20c] sm:$0xf] }
 0x648   :  { %v15161_v7 = vor.u32 %v16249_v43, %v15160_v2  ;;  %v14554_v2 = vld [vmem:[#allocation15 + $0x298] sm:$0xf0]  ;;  %v16127_v43 = vld [vmem:[#allocation15 + $0x38c] sm:$0xf] }
 0x649   :  { %10033 = vmatpush.bf16.msrb.mxu0 %v14829_v13  ;;  %9957 = vmatpush.bf16.msrb.mxu2 %v15049_v36  ;;  %v14890_v13 = vld [vmem:[#allocation15 + $0x538] sm:$0xf0] }
 0x64a   :  { %9970 = vmatpush.bf16.msrb.mxu3 %v15177_v16  ;;  %v14893_v40 = vor.u32 %v16179_v0, %v14890_v13  ;;  %v14586_v36 = vld [vmem:[#allocation15 + $0x2d8] sm:$0xf0]  ;;  %v14717_v16 = vor.u32 %v16135_v47, %v14714_v38  ;;  %v14669_v13 = vor.u32 %v16123_v37, %v14666_v53 }
 0x64b   :  { %10046 = vmatpush.bf16.msrb.mxu1 %v14957_v32  ;;  %v15016_v32 = vld [vmem:[#allocation15 + $0x628] sm:$0xf]  ;;  %v14682_v27 = vld [vmem:[#allocation15 + $0x398] sm:$0xf0] }
 0x64c   :  { %v15017_v9 = vor.u32 %v16213_v15, %v15016_v32  ;;  %v14685_v6 = vor.u32 %v16127_v43, %v14682_v27  ;;  %v16087_v32 = vld [vmem:[#allocation15 + $0x24c] sm:$0xf]  ;;  %v14522_v15 = vld [vmem:[#allocation15 + $0x258] sm:$0xf0] }
 0x64d   :  { %10034 = vmatpush.bf16.msrb.mxu0 %v14813_v46  ;;  %9958 = vmatpush.bf16.msrb.mxu2 %v15033_v56  ;;  %v15000_v46 = vld [vmem:[#allocation15 + $0x608] sm:$0xf]  ;;  %v14538_v56 = vld [vmem:[#allocation15 + $0x278] sm:$0xf0]  ;;  %v14525_v44 = vor.u32 %v16087_v32, %v14522_v15  ;;  %v16219_v15 = vld [vmem:[#allocation15 + $0x66c] sm:$0xf] }
 0x64e   :  { %9971 = vmatpush.bf16.msrb.mxu3 %v15161_v7  ;;  %v15001_v8 = vor.u32 %v16209_v60, %v15000_v46  ;;  %v17296_v7 = vld [vmem:[#allocation18] sm:$0xf]  ;;  %v14506_v46 = vld [vmem:[#allocation15 + $0x238] sm:$0xf0]  ;;  %v16115_v60 = vld [vmem:[#allocation15 + $0x32c] sm:$0xf] }
 0x64f   :  { %10047 = vmatpush.bf16.msrb.mxu1 %v14941_v49  ;;  %v15128_v49 = vld [vmem:[#allocation15 + $0x708] sm:$0xf]  ;;  %v15210_v43 = vld [vmem:[#allocation15 + $0x7b8] sm:$0xf0] }
 0x650   :  { %v15129_v31 = vor.u32 %v16241_v55, %v15128_v49  ;;  %v14634_v49 = vld [vmem:[#allocation15 + $0x338] sm:$0xf0]  ;;  %v14509_v55 = vor.u32 %v16083_v19, %v14506_v46 }
 0x651   :  { %10035 = vmatpush.bf16.msrb.mxu0 %v14797_v25  ;;  %9959 = vmatpush.bf16.msrb.mxu2 %v15017_v9  ;;  %v14733_v25 = vor.u32 %v16139_v45, %v14730_v52  ;;  %v16111_v45 = vld [vmem:[#allocation15 + $0x30c] sm:$0xf]  ;;  %v15194_v37 = vld [vmem:[#allocation15 + $0x798] sm:$0xf0] }
 0x652   :  { %9972 = vmatpush.bf16.msrb.mxu3 %v15145_v18  ;;  %v14653_v18 = vor.u32 %v16119_v58, %v14650_v14  ;;  %v16251_v58 = vld [vmem:[#allocation15 + $0x76c] sm:$0xf] }
 0x653   :  { %10048 = vmatpush.bf16.msrb.mxu1 %v14925_v24  ;;  %v16103_v24 = vld [vmem:[#allocation15 + $0x2cc] sm:$0xf] }
 0x654   :  { %v14589_v22 = vor.u32 %v16103_v24, %v14586_v36  ;;  %v15242_v24 = vld [vmem:[#allocation15 + $0x7f8] sm:$0xf0] }
 0x655   :  { %10036 = vmatpush.bf16.msrb.mxu0 %v14781_v12  ;;  %9960 = vmatpush.bf16.msrb.mxu2 %v15001_v8  ;;  %v16235_v8 = vld [vmem:[#allocation15 + $0x6ec] sm:$0xf] }
 0x656   :  { %9973 = vmatpush.bf16.msrb.mxu3 %v15129_v31  ;;  %v15114_v31 = vld [vmem:[#allocation15 + $0x6f8] sm:$0xf0] }
 0x657   :  { %10049 = vmatpush.bf16.msrb.mxu1 %v14909_v51  ;;  %v16091_v51 = vld [vmem:[#allocation15 + $0x26c] sm:$0xf]  ;;  %v15117_v38 = vor.u32 %v16235_v8, %v15114_v31  ;;  %v15002_v8 = vld [vmem:[#allocation15 + $0x618] sm:$0xf0] }
 0x658   :  { %9961 = vmatmul.bf16.vlgmr.msrb.gmra.mxu2 %v17238_v34  ;;  %v14541_v0 = vor.u32 %v16091_v51, %v14538_v56  ;;  %v15066_v51 = vld [vmem:[#allocation15 + $0x698] sm:$0xf0]  ;;  %v16255_v56 = vld [vmem:[#allocation15 + $0x78c] sm:$0xf] }
 0x659   :  { %10037 = vmatpush.bf16.msrb.mxu0 %v14765_v4  ;;  %10005 = vmatpush.bf16.msra.mxu2 %v14605_v35  ;;  %v15130_v31 = vld [vmem:[#allocation15 + $0x718] sm:$0xf0] }
 0x65a   :  { %10018 = vmatpush.bf16.msra.mxu3 %v14733_v25  ;;  %v16267_v25 = vld [vmem:[#allocation15 + $0x7ec] sm:$0xf] }
 0x65b   :  { %10050 = vmatpush.bf16.msrb.mxu1 %v14893_v40  ;;  %9974 = vmatmul.bf16.vlgmr.msrb.gmra.mxu3 %v17240_v39  ;;  %v10085_v40 = vperm.slane %v17296_v7, 0 }
 0x65d   :  { %10038 = vmatpush.bf16.msrb.mxu0 %v14749_v21  ;;  %10006 = vmatpush.bf16.msra.mxu2 %v14589_v22  ;;  %v9754_v11 = vpop.f32.mrf.mxu2  ;;  %v14490_v21 = vld [vmem:[#allocation15 + $0x218] sm:$0xf0]  ;;  %v15245_v22 = vor.u32 %v16267_v25, %v15242_v24 }
 0x65e   :  { %10019 = vmatpush.bf16.msra.mxu3 %v14717_v16  ;;  %v9755_v4 = vadd.f32 %v9754_v11, %v17286_v42  ;;  %v9767_v54 = vpop.f32.mrf.mxu3  ;;  %v14637_v42 = vor.u32 %v16115_v60, %v14634_v49  ;;  %v14493_v36 = vor.u32 %v16079_v62, %v14490_v21  ;;  %v16231_v16 = vld [vmem:[#allocation15 + $0x6cc] sm:$0xf]  ;;  %v15050_v11 = vld [vmem:[#allocation15 + $0x678] sm:$0xf0] }
 0x65f   :  { %10051 = vmatpush.bf16.msrb.mxu1 %v14877_v17  ;;  %v17294_v12 = vpop.f32.mrf.mxu1  ;;  %v14618_v17 = vld [vmem:[#allocation15 + $0x318] sm:$0xf0]  ;;  %v15101_v30 = vor.u32 %v16231_v16, %v15098_v33 }
 0x660   :  { %10039 = vmatmul.bf16.vlgmr.msrb.gmra.mxu0 %v17203_v20  ;;  %v17292_v20 = vpop.f32.mrf.mxu0  ;;  %v9768_v61 = vadd.f32 %v9767_v54, %v9755_v4  ;;  %v14621_v47 = vor.u32 %v16111_v45, %v14618_v17  ;;  %v15053_v4 = vor.u32 %v16219_v15, %v15050_v11  ;;  %v16207_v17 = vld [vmem:[#allocation15 + $0x60c] sm:$0xf] }
 0x661   :  { %10007 = vmatpush.bf16.msra.mxu2 %v14573_v26  ;;  %v15229_v26 = vor.u32 %v16263_v3, %v15226_v5  ;;  %v10086_v3 = vperm.slane %v17296_v7, 1 }
 0x662   :  { %10052 = vmatmul.bf16.vlgmr.msrb.gmra.mxu1 %v17205_v10  ;;  %v14557_v10 = vor.u32 %v16095_v1, %v14554_v2  ;;  %10020 = vmatpush.bf16.msra.mxu3 %v14701_v63  ;;  %v10093_v50 = vadd.f32 %v10085_v40, %v9768_v61  ;;  %v16227_v63 = vld [vmem:[#allocation15 + $0x6ac] sm:$0xf]  ;;  %v15082_v1 = vld [vmem:[#allocation15 + $0x6b8] sm:$0xf0] }
 0x663   :  { %v16259_v2 = vld [vmem:[#allocation15 + $0x7ac] sm:$0xf]  ;;  %v15085_v27 = vor.u32 %v16227_v63, %v15082_v1 }
 0x664   :  { %v10097_v28 = vmax.f32 %v10093_v50, 0.0  ;;  %v16215_v40 = vld [vmem:[#allocation15 + $0x64c] sm:$0xf] }
 0x665   :  { %10008 = vmatpush.bf16.msra.mxu2 %v14557_v10  ;;  %v9756_v52 = vpop.f32.mrf.mxu2  ;;  %v15213_v10 = vor.u32 %v16259_v2, %v15210_v43  ;;  %v16211_v50 = vld [vmem:[#allocation15 + $0x62c] sm:$0xf] }
 0x666   :  { %10021 = vmatpush.bf16.msra.mxu3 %v14685_v6  ;;  %10101 = vst [vmem:[#allocation19] sm:$0xff] %v10097_v28  ;;  %v9769_v35 = vpop.f32.mrf.mxu3  ;;  %v16223_v6 = vld [vmem:[#allocation15 + $0x68c] sm:$0xf] }
 0x667   :  { %v9847_v48 = vpop.f32.mrf.mxu1  ;;  %v16243_v28 = vld [vmem:[#allocation15 + $0x72c] sm:$0xf] }
 0x668   :  { %v9834_v9 = vpop.f32.mrf.mxu0  ;;  %v16247_v48 = vld [vmem:[#allocation15 + $0x74c] sm:$0xf] }
 0x669   :  { %10009 = vmatpush.bf16.msra.mxu2 %v14541_v0  ;;  %v15069_v0 = vor.u32 %v16223_v6, %v15066_v51  ;;  %v15034_v9 = vld [vmem:[#allocation15 + $0x658] sm:$0xf0] }
 0x66a   :  { %10022 = vmatpush.bf16.msra.mxu3 %v14669_v13  ;;  %v15037_v46 = vor.u32 %v16215_v40, %v15034_v9 }
 0x66d   :  { %10010 = vmatpush.bf16.msra.mxu2 %v14525_v44  ;;  %v15162_v44 = vld [vmem:[#allocation15 + $0x758] sm:$0xf0] }
 0x66e   :  { %10023 = vmatpush.bf16.msra.mxu3 %v14653_v18  ;;  %v15165_v49 = vor.u32 %v16247_v48, %v15162_v44 }
 0x671   :  { %10011 = vmatpush.bf16.msra.mxu2 %v14509_v55  ;;  %v15018_v55 = vld [vmem:[#allocation15 + $0x638] sm:$0xf0] }
 0x672   :  { %10024 = vmatpush.bf16.msra.mxu3 %v14637_v42  ;;  %v15146_v42 = vld [vmem:[#allocation15 + $0x738] sm:$0xf0]  ;;  %v15021_v45 = vor.u32 %v16211_v50, %v15018_v55 }
 0x673   :  { %v15149_v52 = vor.u32 %v16243_v28, %v15146_v42 }
 0x675   :  { %10012 = vmatpush.bf16.msra.mxu2 %v14493_v36  ;;  %v15005_v36 = vor.u32 %v16207_v17, %v15002_v8 }
 0x676   :  { %10025 = vmatpush.bf16.msra.mxu3 %v14621_v47 }
 0x678   :  { %10013 = vmatmul.bf16.vlgmr.msra.gmra.mxu2 %v17221_v23  ;;  %v15197_v23 = vor.u32 %v16255_v56, %v15194_v37 }
 0x679   :  { %10057 = vmatpush.bf16.msrb.mxu2 %v15117_v38  ;;  %10026 = vmatmul.bf16.vlgmr.msra.gmra.mxu3 %v17223_v29  ;;  %v15178_v29 = vld [vmem:[#allocation15 + $0x778] sm:$0xf0] }
 0x67a   :  { %10070 = vmatpush.bf16.msrb.mxu3 %v15245_v22  ;;  %v15181_v54 = vor.u32 %v16251_v58, %v15178_v29 }
 0x67b   :  { %v9806_v61 = vpop.f32.mrf.mxu2 }
 0x67d   :  { %10058 = vmatpush.bf16.msrb.mxu2 %v15101_v30  ;;  %v9884_v53 = vpop.f32.mrf.mxu0 }
 0x67e   :  { %10071 = vmatpush.bf16.msrb.mxu3 %v15229_v26  ;;  %v9885_v13 = vadd.f32 %v9884_v53, %v17251_v59  ;;  %v9807_v59 = vadd.f32 %v9806_v61, %v17281_v57  ;;  %v9819_v18 = vpop.f32.mrf.mxu3  ;;  %v16239_v57 = vld [vmem:[#allocation15 + $0x70c] sm:$0xf] }
 0x67f   :  { %v9897_v32 = vpop.f32.mrf.mxu1  ;;  %v15133_v47 = vor.u32 %v16239_v57, %v15130_v31 }
 0x680   :  { %v17303_v14 = vadd.f32 %v9897_v32, %v9885_v13  ;;  %v9820_v62 = vadd.f32 %v9819_v18, %v9807_v59 }
 0x681   :  { %10059 = vmatpush.bf16.msrb.mxu2 %v15085_v27 }
 0x682   :  { %10072 = vmatpush.bf16.msrb.mxu3 %v15213_v10  ;;  %v9833_v21 = vadd.f32 %v17292_v20, %v9820_v62 }
 0x683   :  { %v9808_v25 = vpop.f32.mrf.mxu2 }
 0x684   :  { %v9846_v35 = vadd.f32 %v17294_v12, %v9833_v21  ;;  %v10088_v21 = vperm.slane %v17296_v7, 3 }
 0x685   :  { %10060 = vmatpush.bf16.msrb.mxu2 %v15069_v0  ;;  %v9886_v19 = vpop.f32.mrf.mxu0 }
 0x686   :  { %10073 = vmatpush.bf16.msrb.mxu3 %v15197_v23  ;;  %v9821_v24 = vpop.f32.mrf.mxu3 }
 0x687   :  { %v9899_v60 = vpop.f32.mrf.mxu1 }
 0x689   :  { %10061 = vmatpush.bf16.msrb.mxu2 %v15053_v4 }
 0x68a   :  { %10074 = vmatpush.bf16.msrb.mxu3 %v15181_v54 }
 0x68d   :  { %10062 = vmatpush.bf16.msrb.mxu2 %v15037_v46 }
 0x68e   :  { %10075 = vmatpush.bf16.msrb.mxu3 %v15165_v49 }
 0x691   :  { %10063 = vmatpush.bf16.msrb.mxu2 %v15021_v45 }
 0x692   :  { %10076 = vmatpush.bf16.msrb.mxu3 %v15149_v52 }
 0x695   :  { %10064 = vmatpush.bf16.msrb.mxu2 %v15005_v36 }
 0x696   :  { %10077 = vmatpush.bf16.msrb.mxu3 %v15133_v47 }
 0x698   :  { %10065 = vmatmul.bf16.vlgmr.msrb.gmra.mxu2 %v17238_v34 }
 0x699   :  { %10078 = vmatmul.bf16.vlgmr.msrb.gmra.mxu3 %v17240_v39 }
 0x69b   :  { %v9858_v22 = vpop.f32.mrf.mxu2 }
 0x69c   :  { %v9859_v16 = vadd.f32 %v9858_v22, %v9846_v35 }
 0x69d   :  { %v9936_v20 = vpop.f32.mrf.mxu0 }
 0x69e   :  { %v9871_v33 = vpop.f32.mrf.mxu3 }
 0x69f   :  { %v9949_v38 = vpop.f32.mrf.mxu1  ;;  %v9872_v30 = vadd.f32 %v9871_v33, %v9859_v16 }
 0x6a1   :  { %v10094_v26 = vadd.f32 %v10086_v3, %v9872_v30 }
 0x6a3   :  { %v10098_v63 = vmax.f32 %v10094_v26, 0.0  ;;  %v9860_v1 = vpop.f32.mrf.mxu2 }
 0x6a5   :  { %v9938_v12 = vpop.f32.mrf.mxu0  ;;  %10102 = vst [vmem:[#allocation19 + $0x8] sm:$0xff] %v10098_v63 }
 0x6a6   :  { %v9873_v2 = vpop.f32.mrf.mxu3 }
 0x6a7   :  { %v9951_v5 = vpop.f32.mrf.mxu1 }
 0x6bb   :  { %v9910_v10 = vpop.f32.mrf.mxu2 }
 0x6bc   :  { %v9911_v0 = vadd.f32 %v9910_v10, %v17303_v14 }
 0x6bd   :  { %v9988_v43 = vpop.f32.mrf.mxu0 }
 0x6be   :  { %v9989_v34 = vadd.f32 %v9988_v43, %v17274_v41  ;;  %v9923_v6 = vpop.f32.mrf.mxu3  ;;  %v10087_v41 = vperm.slane %v17296_v7, 2 }
 0x6bf   :  { %v10001_v27 = vpop.f32.mrf.mxu1  ;;  %v9924_v13 = vadd.f32 %v9923_v6, %v9911_v0 }
 0x6c0   :  { %v10002_v39 = vadd.f32 %v10001_v27, %v9989_v34 }
 0x6c1   :  { %v9937_v15 = vadd.f32 %v9936_v20, %v9924_v13 }
 0x6c3   :  { %v9912_v37 = vpop.f32.mrf.mxu2  ;;  %v9950_v11 = vadd.f32 %v9949_v38, %v9937_v15 }
 0x6c5   :  { %v9990_v51 = vpop.f32.mrf.mxu0 }
 0x6c6   :  { %v9925_v53 = vpop.f32.mrf.mxu3 }
 0x6c7   :  { %v10003_v56 = vpop.f32.mrf.mxu1 }
 0x6db   :  { %v9962_v58 = vpop.f32.mrf.mxu2 }
 0x6dc   :  { %v9963_v29 = vadd.f32 %v9962_v58, %v9950_v11 }
 0x6dd   :  { %v10040_v32 = vpop.f32.mrf.mxu0 }
 0x6de   :  { %v9975_v4 = vpop.f32.mrf.mxu3 }
 0x6df   :  { %v10053_v23 = vpop.f32.mrf.mxu1  ;;  %v9976_v9 = vadd.f32 %v9975_v4, %v9963_v29 }
 0x6e1   :  { %v10095_v48 = vadd.f32 %v10087_v41, %v9976_v9 }
 0x6e3   :  { %v10099_v44 = vmax.f32 %v10095_v48, 0.0  ;;  %v9964_v61 = vpop.f32.mrf.mxu2 }
 0x6e5   :  { %v10042_v54 = vpop.f32.mrf.mxu0  ;;  %10103 = vst [vmem:[#allocation19 + $0x10] sm:$0xff] %v10099_v44 }
 0x6e6   :  { %v9977_v59 = vpop.f32.mrf.mxu3 }
 0x6e7   :  { %v10055_v40 = vpop.f32.mrf.mxu1 }
 0x6fb   :  { %v10014_v18 = vpop.f32.mrf.mxu2 }
 0x6fc   :  { %v10027_v14 = vpop.f32.mrf.mxu3  ;;  %v10015_v60 = vadd.f32 %v10014_v18, %v10002_v39 }
 0x6fe   :  { %v10028_v49 = vadd.f32 %v10027_v14, %v10015_v60 }
 0x700   :  { %v10041_v50 = vadd.f32 %v10040_v32, %v10028_v49 }
 0x702   :  { %v10054_v55 = vadd.f32 %v10053_v23, %v10041_v50 }
 0x703   :  { %v10016_v19 = vpop.f32.mrf.mxu2 }
 0x704   :  { %v10029_v46 = vpop.f32.mrf.mxu3 }
 0x71b   :  { %v10066_v62 = vpop.f32.mrf.mxu2 }
 0x71c   :  { %v10067_v28 = vadd.f32 %v10066_v62, %v10054_v55  ;;  %v10079_v42 = vpop.f32.mrf.mxu3 }
 0x71e   :  { %v10080_v45 = vadd.f32 %v10079_v42, %v10067_v28 }
 0x720   :  { %v10096_v52 = vadd.f32 %v10088_v21, %v10080_v45 }
 0x722   :  { %v10100_v17 = vmax.f32 %v10096_v52, 0.0 }
 0x723   :  { %v10068_v8 = vpop.f32.mrf.mxu2 }
 0x724   :  { %10104 = vst [vmem:[#allocation19 + $0x18] sm:$0xff] %v10100_v17  ;;  %v10081_v57 = vpop.f32.mrf.mxu3 }
 0x725   :  { %10115 = dma.vmem_to_hbm [thread:$0]  %s10111_s8, 512, %s10113_s5, [#allocation6]  }
 0x726   :  { %16793 = dma.done.wait [#allocation6], 512  }
 0x727   :  { %16794 = vsyncadd [#allocation6], 4294966784 }
 0x728   :  { %10120 = vsyncpa [#allocation5], 1 }
 0x729   :  { %10121 = vsyncpa [#allocation8], 1 }
 0x72a   :  { %10122 = vsyncpa [#allocation11], 1 }
 0x72b   :  { %10123 = vsyncpa [#allocation14], 1 }
 0x72c   :  { %10124 = vsyncpa [#allocation17], 1 }
 0x72d   :  { %10125 = vsyncpa [#allocation6], 1 }

</bundles_post_ra>
